<compile_context>
chip_gen: v7x
topology: tpu7x:2x2x1
jax: 0.10.0
libtpu: 0.0.40
codegen_flags: <defaults>
</compile_context>

<pallas_src>
import functools

import jax
import jax.numpy as jnp
from jax.experimental import pallas as pl
from jax.experimental.pallas import tpu as pltpu


def _round_up(x, m):
    return (x + m - 1) // m * m


# ----------------------------------------------------------------------------
# Kernel 1: fused 3x3 conv (+bias, +ReLU).  Input arrives halo-padded (H+2, W+2).
# ----------------------------------------------------------------------------
def _conv3x3_kernel(xp_ref, w_ref, b_ref, o_ref, *, relu):
    # xp_ref: (1, H+2, W+2, Cin)  halo-padded input tile (bf16)
    # w_ref : (9, Cin, Cout)      one (Cin, Cout) matrix per tap (bf16)
    # b_ref : (1, Cout)           f32 bias
    # o_ref : (1, H, W, Cout)
    _, H, W, Cout = o_ref.shape
    Cin = xp_ref.shape[3]
    acc = jnp.zeros((H * W, Cout), jnp.float32)
    for k in range(9):                           # static unroll over taps
        dy, dx = divmod(k, 3)
        patch = xp_ref[0, dy:dy + H, dx:dx + W, :].reshape(H * W, Cin)
        acc = acc + jnp.dot(patch, w_ref[k], preferred_element_type=jnp.float32)
    acc = acc + b_ref[...]
    if relu:
        acc = jnp.maximum(acc, 0.0)
    o_ref[0] = acc.reshape(H, W, Cout).astype(o_ref.dtype)


def pallas_conv3x3(x_padded, w, b, *, relu=True, out_dtype=jnp.bfloat16):
    """3x3 'same' conv.  x_padded: (N, H+2, W+2, Cin) NHWC, w: (3,3,Cin,Cout)."""
    N, Hp, Wp, Cin = x_padded.shape
    H, W = Hp - 2, Wp - 2
    Cout = w.shape[-1]
    w9 = w.reshape(9, Cin, Cout).astype(jnp.bfloat16)
    b2 = b.reshape(1, Cout).astype(jnp.float32)
    # TODO(synk): for real detector feature maps, tile H with halo overlap instead of
    # whole-image VMEM tiles (needed once (H+2)*(W+2)*Cin no longer fits v7x's 64 MiB VMEM).
    return pl.pallas_call(
        functools.partial(_conv3x3_kernel, relu=relu),
        out_shape=jax.ShapeDtypeStruct((N, H, W, Cout), out_dtype),
        grid=(N,),
        in_specs=[
            pl.BlockSpec((1, Hp, Wp, Cin), lambda n: (n, 0, 0, 0)),
            pl.BlockSpec((9, Cin, Cout), lambda n: (0, 0, 0)),
            pl.BlockSpec((1, Cout), lambda n: (0, 0)),
        ],
        out_specs=pl.BlockSpec((1, H, W, Cout), lambda n: (n, 0, 0, 0)),
        compiler_params=pltpu.CompilerParams(dimension_semantics=("parallel",)),
    )(x_padded.astype(jnp.bfloat16), w9, b2)


# ----------------------------------------------------------------------------
# Kernel 2: tiled matmul  y = x @ w + b  (bf16 operands, f32 accumulation).
# ----------------------------------------------------------------------------
def _matmul_kernel(x_ref, w_ref, b_ref, o_ref, acc_ref, *, relu):
    @pl.when(pl.program_id(2) == 0)
    def _():
        acc_ref[...] = jnp.zeros_like(acc_ref)

    acc_ref[...] += jnp.dot(x_ref[...], w_ref[...],
                            preferred_element_type=jnp.float32)

    @pl.when(pl.program_id(2) == pl.num_programs(2) - 1)
    def _():
        acc = acc_ref[...] + b_ref[...]
        if relu:
            acc = jnp.maximum(acc, 0.0)
        o_ref[...] = acc.astype(o_ref.dtype)


def pallas_matmul(x, w, b, *, relu=False, out_dtype=jnp.float32,
                  tm=256, tn=128, tk=256):
    """Tiled MXU matmul with lane-dense (128-multiple) output tiles.

    Inputs are zero-padded up to tile multiples (exact; padding sliced off on return).
    Tile sizes are modest so they fit v7x's 64 MiB VMEM as well as v5e/v6e.
    """
    M, K = x.shape
    _, N = w.shape
    tm = min(tm, _round_up(M, 8))
    tk = min(tk, _round_up(K, 128))
    tn = min(tn, _round_up(N, 128))
    Mp, Kp, Np = _round_up(M, tm), _round_up(K, tk), _round_up(N, tn)
    xp = jnp.zeros((Mp, Kp), jnp.bfloat16).at[:M, :K].set(x.astype(jnp.bfloat16))
    wp = jnp.zeros((Kp, Np), jnp.bfloat16).at[:K, :N].set(w.astype(jnp.bfloat16))
    bp = jnp.zeros((1, Np), jnp.float32).at[:, :N].set(
        b.reshape(1, N).astype(jnp.float32))
    out = pl.pallas_call(
        functools.partial(_matmul_kernel, relu=relu),
        out_shape=jax.ShapeDtypeStruct((Mp, Np), out_dtype),
        grid=(Mp // tm, Np // tn, Kp // tk),
        in_specs=[
            pl.BlockSpec((tm, tk), lambda i, j, k: (i, k)),
            pl.BlockSpec((tk, tn), lambda i, j, k: (k, j)),
            pl.BlockSpec((1, tn), lambda i, j, k: (0, j)),
        ],
        out_specs=pl.BlockSpec((tm, tn), lambda i, j, k: (i, j)),
        scratch_shapes=[pltpu.VMEM((tm, tn), jnp.float32)],
        compiler_params=pltpu.CompilerParams(
            dimension_semantics=("parallel", "parallel", "arbitrary")),
    )(xp, wp, bp)
    return out[:M, :N]


# ----------------------------------------------------------------------------
# Kernel 3: ROI average pooling as a mask-matmul (boxes scalar-prefetched to SMEM).
# ----------------------------------------------------------------------------
def _roi_pool_kernel(boxes_ref, feat_ref, o_ref, *, num_rois, width):
    # boxes_ref: SMEM int32 flat (N*R*4,) as (x0, y0, x1, y1), inclusive coords.
    # feat_ref : VMEM (1, H*W, C) bf16 features of image n.
    # o_ref    : VMEM (1, R, C) f32 masked-average-pooled feature per ROI.
    n = pl.program_id(0)
    HW = feat_ref.shape[1]
    pix = jax.lax.broadcasted_iota(jnp.int32, (1, HW), 1)
    px = pix % width
    py = pix // width
    rows = []
    for r in range(num_rois):                    # small static trip count (mask build only)
        base = (n * num_rois + r) * 4
        x0 = boxes_ref[base + 0]
        y0 = boxes_ref[base + 1]
        x1 = boxes_ref[base + 2]
        y1 = boxes_ref[base + 3]
        inside = (px >= x0) & (px <= x1) & (py >= y0) & (py <= y1)
        rows.append(jnp.where(inside, 1.0, 0.0).astype(jnp.float32))
    mask = jnp.concatenate(rows, axis=0)                       # (R, H*W) f32 {0,1}
    counts = jnp.sum(mask, axis=1, keepdims=True)              # (R, 1) f32
    pooled = jnp.dot(mask.astype(feat_ref.dtype), feat_ref[0],
                     preferred_element_type=jnp.float32)       # (R, C) on the MXU
    inv = pl.reciprocal(jnp.maximum(counts, 1.0), approx=True)
    o_ref[0] = pooled * inv


def pallas_roi_pool(feat, boxes_int):
    """feat: (N, H, W, C);  boxes_int: (N, R, 4) int32 -> pooled (N, R, C) f32."""
    N, H, W, C = feat.shape
    R = boxes_int.shape[1]
    feat2 = feat.reshape(N, H * W, C)
    boxes_flat = boxes_int.reshape(-1).astype(jnp.int32)
    # TODO(synk): for large feature maps, tile H*W and accumulate partial masked sums
    # (or DMA each ROI's window) instead of a whole-image VMEM tile.
    return pl.pallas_call(
        functools.partial(_roi_pool_kernel, num_rois=R, width=W),
        out_shape=jax.ShapeDtypeStruct((N, R, C), jnp.float32),
        grid_spec=pltpu.PrefetchScalarGridSpec(
            num_scalar_prefetch=1,
            grid=(N,),
            in_specs=[pl.BlockSpec((1, H * W, C), lambda n, boxes: (n, 0, 0))],
            out_specs=pl.BlockSpec((1, R, C), lambda n, boxes: (n, 0, 0)),
        ),
        compiler_params=pltpu.CompilerParams(dimension_semantics=("parallel",)),
    )(boxes_flat, feat2)


# ----------------------------------------------------------------------------
# Kernel 4: fused box head  (fc1 -> ReLU -> [cls | box]) with hvec resident in VMEM.
# ----------------------------------------------------------------------------
def _box_head_kernel(x_ref, w1_ref, b1_ref, w2_ref, b2_ref, o_ref):
    h = jnp.dot(x_ref[...], w1_ref[...], preferred_element_type=jnp.float32)
    h = jnp.maximum(h + b1_ref[...], 0.0)
    out = jnp.dot(h.astype(w2_ref.dtype), w2_ref[...],
                  preferred_element_type=jnp.float32) + b2_ref[...]
    o_ref[...] = out


def pallas_box_head(x, w1, b1, w2, b2):
    """Fused fc1 -> ReLU -> concatenated cls/box heads; output padded to 128 lanes."""
    M, K1 = x.shape
    H1 = w1.shape[1]
    N2 = w2.shape[1]
    Mp = _round_up(M, 8)
    K1p, H1p, N2p = _round_up(K1, 128), _round_up(H1, 128), _round_up(N2, 128)
    xp = jnp.zeros((Mp, K1p), jnp.bfloat16).at[:M, :K1].set(x.astype(jnp.bfloat16))
    w1p = jnp.zeros((K1p, H1p), jnp.bfloat16).at[:K1, :H1].set(w1.astype(jnp.bfloat16))
    b1p = jnp.zeros((1, H1p), jnp.float32).at[:, :H1].set(
        b1.reshape(1, -1).astype(jnp.float32))
    w2p = jnp.zeros((H1p, N2p), jnp.bfloat16).at[:H1, :N2].set(w2.astype(jnp.bfloat16))
    b2p = jnp.zeros((1, N2p), jnp.float32).at[:, :N2].set(
        b2.reshape(1, -1).astype(jnp.float32))
    out = pl.pallas_call(
        _box_head_kernel,
        out_shape=jax.ShapeDtypeStruct((Mp, N2p), jnp.float32),
        grid=(1,),
        in_specs=[
            pl.BlockSpec((Mp, K1p), lambda i: (0, 0)),
            pl.BlockSpec((K1p, H1p), lambda i: (0, 0)),
            pl.BlockSpec((1, H1p), lambda i: (0, 0)),
            pl.BlockSpec((H1p, N2p), lambda i: (0, 0)),
            pl.BlockSpec((1, N2p), lambda i: (0, 0)),
        ],
        out_specs=pl.BlockSpec((Mp, N2p), lambda i: (0, 0)),
    )(xp, w1p, b1p, w2p, b2p)
    return out[:M, :N2]


# ----------------------------------------------------------------------------
# Glue (anchor decode, top-k, postprocess)
# ----------------------------------------------------------------------------
def decode_boxes(boxes_cxcywh, deltas, img_h, img_w):
    """Standard dx,dy,dw,dh box regression decode; returns (x0,y0,x1,y1) clipped."""
    cx, cy, w, h = [boxes_cxcywh[..., i] for i in range(4)]
    dx, dy, dw, dh = [deltas[..., i] for i in range(4)]
    cx = cx + dx * w
    cy = cy + dy * h
    w = w * jnp.exp(jnp.clip(dw, -2.0, 2.0))
    h = h * jnp.exp(jnp.clip(dh, -2.0, 2.0))
    x0 = jnp.clip(cx - 0.5 * w, 0.0, img_w - 1.0)
    y0 = jnp.clip(cy - 0.5 * h, 0.0, img_h - 1.0)
    x1 = jnp.clip(cx + 0.5 * w, 0.0, img_w - 1.0)
    y1 = jnp.clip(cy + 0.5 * h, 0.0, img_h - 1.0)
    return jnp.stack([x0, y0, jnp.maximum(x1, x0), jnp.maximum(y1, y0)], axis=-1)


def init_params(key, cin, cf, hidden, num_anchors, num_classes):
    ks = jax.random.split(key, 12)
    s = 0.05

    def w(k, shape):
        return jax.random.normal(k, shape, jnp.float32) * s

    return dict(
        pixel_mean=jnp.array([103.5, 116.3, 123.7], jnp.float32),
        pixel_std=jnp.array([57.4, 57.1, 58.4], jnp.float32),
        bb_w=w(ks[0], (3, 3, cin, cf)), bb_b=jnp.zeros((cf,), jnp.float32),
        rpn_w=w(ks[1], (3, 3, cf, cf)), rpn_b=jnp.zeros((cf,), jnp.float32),
        obj_w=w(ks[2], (cf, num_anchors)), obj_b=jnp.zeros((num_anchors,), jnp.float32),
        dlt_w=w(ks[3], (cf, 4 * num_anchors)), dlt_b=jnp.zeros((4 * num_anchors,), jnp.float32),
        fc1_w=w(ks[4], (cf, hidden)), fc1_b=jnp.zeros((hidden,), jnp.float32),
        cls_w=w(ks[5], (hidden, num_classes + 1)), cls_b=jnp.zeros((num_classes + 1,), jnp.float32),
        box_w=w(ks[6], (hidden, 4 * num_classes)), box_b=jnp.zeros((4 * num_classes,), jnp.float32),
    )


def generalized_rcnn_inference(params, images_nchw, out_sizes,
                               anchor_sizes=(8.0, 16.0, 24.0),
                               num_proposals=8, num_classes=5):
    """images_nchw: (N, C, H, W) float32 (PyTorch layout); out_sizes: (N, 2) [h, w]."""
    N, C, H, W = images_nchw.shape
    x = jnp.transpose(images_nchw, (0, 2, 3, 1)).astype(jnp.float32)   # NCHW -> NHWC

    # ---- preprocess_image folded exactly into the backbone conv ----
    mean = params["pixel_mean"].astype(jnp.float32)
    std = params["pixel_std"].astype(jnp.float32)
    bb_w = params["bb_w"] / std.reshape(1, 1, C, 1)
    bb_b = params["bb_b"] - jnp.sum(
        params["bb_w"] * (mean / std).reshape(1, 1, C, 1), axis=(0, 1, 2))
    # halo padded with the per-channel mean == zero-padding the normalized image
    x_pad = jnp.broadcast_to(mean.reshape(1, 1, 1, C), (N, H + 2, W + 2, C))
    x_pad = x_pad.at[:, 1:H + 1, 1:W + 1, :].set(x)

    # ---- backbone: fused 3x3 conv + ReLU (Pallas, bf16 MXU) ----
    feat = pallas_conv3x3(x_pad, bb_w, bb_b, relu=True)                # (N, H, W, Cf) bf16
    Cf = feat.shape[-1]

    # ---- proposal_generator (RPN): 3x3 conv + ReLU, fused 1x1 heads ----
    feat_pad = jnp.pad(feat, ((0, 0), (1, 1), (1, 1), (0, 0)))
    rpn = pallas_conv3x3(feat_pad, params["rpn_w"], params["rpn_b"], relu=True)
    rpn_flat = rpn.reshape(N * H * W, Cf)
    A = params["obj_w"].shape[-1]
    head_w = jnp.concatenate([params["obj_w"], params["dlt_w"]], axis=1)   # (Cf, 5A)
    head_b = jnp.concatenate([params["obj_b"], params["dlt_b"]], axis=0)
    head_out = pallas_matmul(rpn_flat, head_w, head_b)                     # (N*H*W, 5A) f32
    obj = head_out[:, :A].reshape(N, H * W, A)
    dlt = head_out[:, A:].reshape(N, H * W, A, 4)

    # anchors (cx, cy, w, h) per location / per anchor size
    ys = jnp.arange(H, dtype=jnp.float32) + 0.5
    xs = jnp.arange(W, dtype=jnp.float32) + 0.5
    cy, cx = jnp.meshgrid(ys, xs, indexing="ij")
    sizes = jnp.asarray(anchor_sizes, jnp.float32)
    anc = jnp.stack([
        jnp.broadcast_to(cx[:, :, None], (H, W, A)),
        jnp.broadcast_to(cy[:, :, None], (H, W, A)),
        jnp.broadcast_to(sizes[None, None, :], (H, W, A)),
        jnp.broadcast_to(sizes[None, None, :], (H, W, A)),
    ], axis=-1).reshape(1, H * W, A, 4)

    prop_boxes = decode_boxes(jnp.broadcast_to(anc, (N, H * W, A, 4)),
                              dlt, float(H), float(W)).reshape(N, H * W * A, 4)
    obj = obj.reshape(N, H * W * A)
    _, top_idx = jax.lax.top_k(obj, num_proposals)                          # (N, R)
    proposals = jnp.take_along_axis(prop_boxes, top_idx[:, :, None], axis=1)  # (N, R, 4)

    # ---- roi_heads: mask-matmul ROI pooling + fused box head ----
    boxes_int = jnp.round(proposals).astype(jnp.int32)
    boxes_int = jnp.clip(boxes_int,
                         jnp.zeros((4,), jnp.int32),
                         jnp.array([W - 1, H - 1, W - 1, H - 1], jnp.int32))
    pooled = pallas_roi_pool(feat, boxes_int)                               # (N, R, Cf) f32

    R = num_proposals
    Kc = num_classes
    head2_w = jnp.concatenate([params["cls_w"], params["box_w"]], axis=1)   # (hidden, (K+1)+4K)
    head2_b = jnp.concatenate([params["cls_b"], params["box_b"]], axis=0)
    head2 = pallas_box_head(pooled.reshape(N * R, Cf),
                            params["fc1_w"], params["fc1_b"], head2_w, head2_b)
    cls_logits = head2[:, :Kc + 1]                                          # (N*R, K+1)
    box_deltas = head2[:, Kc + 1:Kc + 1 + 4 * Kc]                           # (N*R, 4K)

    probs = jax.nn.softmax(cls_logits, axis=-1)
    fg_probs = probs[:, :Kc]
    pred_classes = jnp.argmax(fg_probs, axis=-1)                            # (N*R,)
    scores = jnp.take_along_axis(fg_probs, pred_classes[:, None], axis=1)[:, 0]

    deltas_per_cls = box_deltas.reshape(N * R, Kc, 4)
    sel_deltas = jnp.take_along_axis(deltas_per_cls, pred_classes[:, None, None],
                                     axis=1)[:, 0, :].reshape(N, R, 4)
    px0, py0, px1, py1 = [proposals[..., i] for i in range(4)]
    prop_cxcywh = jnp.stack([0.5 * (px0 + px1), 0.5 * (py0 + py1),
                             jnp.maximum(px1 - px0, 1.0), jnp.maximum(py1 - py0, 1.0)],
                            axis=-1)
    pred_boxes = decode_boxes(prop_cxcywh, sel_deltas, float(H), float(W))  # (N, R, 4)

    # ---- _postprocess: rescale to requested output resolution ----
    scale = jnp.stack([out_sizes[:, 1] / W, out_sizes[:, 0] / H,
                       out_sizes[:, 1] / W, out_sizes[:, 0] / H], axis=-1)  # (N, 4)
    pred_boxes = pred_boxes * scale[:, None, :]

    results = []
    for n in range(N):
        results.append({
            "instances": {
                "pred_boxes": pred_boxes[n],
                "scores": scores.reshape(N, R)[n],
                "pred_classes": pred_classes.reshape(N, R)[n],
            }
        })
    return results


# ----------------------------------------------------------------------------
if __name__ == "__main__":
    key = jax.random.PRNGKey(0)
    k_img, k_par = jax.random.split(key)

    N, C, H, W = 2, 3, 32, 32            # small, divisible-friendly shapes
    CF, HIDDEN, A, NUM_CLASSES, R = 128, 128, 3, 5, 8   # lane-dense channel widths

    # batched_inputs: list of dicts with 'image' in (C, H, W), plus output size.
    images = jax.random.uniform(k_img, (N, C, H, W), jnp.float32, 0.0, 255.0)
    batched_inputs = [{"image": images[i], "height": 64, "width": 64} for i in range(N)]

    params = init_params(k_par, C, CF, HIDDEN, A, NUM_CLASSES)

    imgs_nchw = jnp.stack([d["image"] for d in batched_inputs], axis=0)
    out_sizes = jnp.array([[d["height"], d["width"]] for d in batched_inputs], jnp.float32)

    results = generalized_rcnn_inference(params, imgs_nchw, out_sizes,
                                         num_proposals=R, num_classes=NUM_CLASSES)
    results = jax.block_until_ready(results)

    inst0 = results[0]["instances"]
    assert inst0["pred_boxes"].shape == (R, 4)
    assert inst0["scores"].shape == (R,)
    assert inst0["pred_classes"].shape == (R,)
    print("KERNEL_OK")
</pallas_src>

<mosaic_0001>
module attributes {stable_mosaic.version = 11 : i64} {
  func.func @_conv3x3_kernel(%arg0: i32, %arg1: memref<1x34x34x3xbf16, #tpu.memory_space<vmem>>, %arg2: memref<9x3x128xbf16, #tpu.memory_space<vmem>>, %arg3: memref<1x128xf32, #tpu.memory_space<vmem>>, %arg4: memref<1x32x32x128xbf16, #tpu.memory_space<vmem>>) attributes {dimension_semantics = [#tpu.dimension_semantics<parallel>], iteration_bounds = array<i64: 2>, scalar_prefetch = 0 : i64, scratch_operands = 0 : i64, tpu.core_type = #tpu.core_type<tc>, window_params = [{transform_indices = @transform_0, window_bounds = array<i64: 1, 34, 34, 3>}, {pipeline_mode = #tpu.pipeline_mode<synchronous>, transform_indices = @transform_1, window_bounds = array<i64: 9, 3, 128>}, {pipeline_mode = #tpu.pipeline_mode<synchronous>, transform_indices = @transform_2, window_bounds = array<i64: 1, 128>}, {transform_indices = @transform_3, window_bounds = array<i64: 1, 32, 32, 128>}]} {
    %cst = arith.constant 0.000000e+00 : f32
    %0 = vector.broadcast %cst : f32 to vector<1024x128xf32>
    %c0 = arith.constant 0 : index
    %c0_0 = arith.constant 0 : index
    %c0_1 = arith.constant 0 : index
    %c0_2 = arith.constant 0 : index
    %1 = vector.load %arg1[%c0, %c0_0, %c0_1, %c0_2] : memref<1x34x34x3xbf16, #tpu.memory_space<vmem>>, vector<1x32x32x3xbf16>
    %2 = vector.shape_cast %1 : vector<1x32x32x3xbf16> to vector<32x32x3xbf16>
    %3 = vector.shape_cast %2 : vector<32x32x3xbf16> to vector<1024x3xbf16>
    %c0_3 = arith.constant 0 : index
    %c0_4 = arith.constant 0 : index
    %c0_5 = arith.constant 0 : index
    %4 = vector.load %arg2[%c0_3, %c0_4, %c0_5] : memref<9x3x128xbf16, #tpu.memory_space<vmem>>, vector<1x3x128xbf16>
    %5 = vector.shape_cast %4 : vector<1x3x128xbf16> to vector<3x128xbf16>
    %cst_6 = arith.constant dense<0.000000e+00> : vector<1024x128xf32>
    %6 = tpu.matmul %3, %5, %cst_6 {dimension_numbers = #tpu.dot_dimension_numbers<[1], [0], [0], [1], [0, 0, 1, 1], [], []>} : vector<1024x3xbf16>, vector<3x128xbf16>, vector<1024x128xf32> -> vector<1024x128xf32>
    %7 = arith.addf %0, %6 : vector<1024x128xf32>
    %c0_7 = arith.constant 0 : index
    %c0_8 = arith.constant 0 : index
    %c1 = arith.constant 1 : index
    %c0_9 = arith.constant 0 : index
    %8 = vector.load %arg1[%c0_7, %c0_8, %c1, %c0_9] : memref<1x34x34x3xbf16, #tpu.memory_space<vmem>>, vector<1x32x32x3xbf16>
    %9 = vector.shape_cast %8 : vector<1x32x32x3xbf16> to vector<32x32x3xbf16>
    %10 = vector.shape_cast %9 : vector<32x32x3xbf16> to vector<1024x3xbf16>
    %c1_10 = arith.constant 1 : index
    %c0_11 = arith.constant 0 : index
    %c0_12 = arith.constant 0 : index
    %11 = vector.load %arg2[%c1_10, %c0_11, %c0_12] : memref<9x3x128xbf16, #tpu.memory_space<vmem>>, vector<1x3x128xbf16>
    %12 = vector.shape_cast %11 : vector<1x3x128xbf16> to vector<3x128xbf16>
    %cst_13 = arith.constant dense<0.000000e+00> : vector<1024x128xf32>
    %13 = tpu.matmul %10, %12, %cst_13 {dimension_numbers = #tpu.dot_dimension_numbers<[1], [0], [0], [1], [0, 0, 1, 1], [], []>} : vector<1024x3xbf16>, vector<3x128xbf16>, vector<1024x128xf32> -> vector<1024x128xf32>
    %14 = arith.addf %7, %13 : vector<1024x128xf32>
    %c0_14 = arith.constant 0 : index
    %c0_15 = arith.constant 0 : index
    %c2 = arith.constant 2 : index
    %c0_16 = arith.constant 0 : index
    %15 = vector.load %arg1[%c0_14, %c0_15, %c2, %c0_16] : memref<1x34x34x3xbf16, #tpu.memory_space<vmem>>, vector<1x32x32x3xbf16>
    %16 = vector.shape_cast %15 : vector<1x32x32x3xbf16> to vector<32x32x3xbf16>
    %17 = vector.shape_cast %16 : vector<32x32x3xbf16> to vector<1024x3xbf16>
    %c2_17 = arith.constant 2 : index
    %c0_18 = arith.constant 0 : index
    %c0_19 = arith.constant 0 : index
    %18 = vector.load %arg2[%c2_17, %c0_18, %c0_19] : memref<9x3x128xbf16, #tpu.memory_space<vmem>>, vector<1x3x128xbf16>
    %19 = vector.shape_cast %18 : vector<1x3x128xbf16> to vector<3x128xbf16>
    %cst_20 = arith.constant dense<0.000000e+00> : vector<1024x128xf32>
    %20 = tpu.matmul %17, %19, %cst_20 {dimension_numbers = #tpu.dot_dimension_numbers<[1], [0], [0], [1], [0, 0, 1, 1], [], []>} : vector<1024x3xbf16>, vector<3x128xbf16>, vector<1024x128xf32> -> vector<1024x128xf32>
    %21 = arith.addf %14, %20 : vector<1024x128xf32>
    %c0_21 = arith.constant 0 : index
    %c1_22 = arith.constant 1 : index
    %c0_23 = arith.constant 0 : index
    %c0_24 = arith.constant 0 : index
    %22 = vector.load %arg1[%c0_21, %c1_22, %c0_23, %c0_24] : memref<1x34x34x3xbf16, #tpu.memory_space<vmem>>, vector<1x32x32x3xbf16>
    %23 = vector.shape_cast %22 : vector<1x32x32x3xbf16> to vector<32x32x3xbf16>
    %24 = vector.shape_cast %23 : vector<32x32x3xbf16> to vector<1024x3xbf16>
    %c3 = arith.constant 3 : index
    %c0_25 = arith.constant 0 : index
    %c0_26 = arith.constant 0 : index
    %25 = vector.load %arg2[%c3, %c0_25, %c0_26] : memref<9x3x128xbf16, #tpu.memory_space<vmem>>, vector<1x3x128xbf16>
    %26 = vector.shape_cast %25 : vector<1x3x128xbf16> to vector<3x128xbf16>
    %cst_27 = arith.constant dense<0.000000e+00> : vector<1024x128xf32>
    %27 = tpu.matmul %24, %26, %cst_27 {dimension_numbers = #tpu.dot_dimension_numbers<[1], [0], [0], [1], [0, 0, 1, 1], [], []>} : vector<1024x3xbf16>, vector<3x128xbf16>, vector<1024x128xf32> -> vector<1024x128xf32>
    %28 = arith.addf %21, %27 : vector<1024x128xf32>
    %c0_28 = arith.constant 0 : index
    %c1_29 = arith.constant 1 : index
    %c1_30 = arith.constant 1 : index
    %c0_31 = arith.constant 0 : index
    %29 = vector.load %arg1[%c0_28, %c1_29, %c1_30, %c0_31] : memref<1x34x34x3xbf16, #tpu.memory_space<vmem>>, vector<1x32x32x3xbf16>
    %30 = vector.shape_cast %29 : vector<1x32x32x3xbf16> to vector<32x32x3xbf16>
    %31 = vector.shape_cast %30 : vector<32x32x3xbf16> to vector<1024x3xbf16>
    %c4 = arith.constant 4 : index
    %c0_32 = arith.constant 0 : index
    %c0_33 = arith.constant 0 : index
    %32 = vector.load %arg2[%c4, %c0_32, %c0_33] : memref<9x3x128xbf16, #tpu.memory_space<vmem>>, vector<1x3x128xbf16>
    %33 = vector.shape_cast %32 : vector<1x3x128xbf16> to vector<3x128xbf16>
    %cst_34 = arith.constant dense<0.000000e+00> : vector<1024x128xf32>
    %34 = tpu.matmul %31, %33, %cst_34 {dimension_numbers = #tpu.dot_dimension_numbers<[1], [0], [0], [1], [0, 0, 1, 1], [], []>} : vector<1024x3xbf16>, vector<3x128xbf16>, vector<1024x128xf32> -> vector<1024x128xf32>
    %35 = arith.addf %28, %34 : vector<1024x128xf32>
    %c0_35 = arith.constant 0 : index
    %c1_36 = arith.constant 1 : index
    %c2_37 = arith.constant 2 : index
    %c0_38 = arith.constant 0 : index
    %36 = vector.load %arg1[%c0_35, %c1_36, %c2_37, %c0_38] : memref<1x34x34x3xbf16, #tpu.memory_space<vmem>>, vector<1x32x32x3xbf16>
    %37 = vector.shape_cast %36 : vector<1x32x32x3xbf16> to vector<32x32x3xbf16>
    %38 = vector.shape_cast %37 : vector<32x32x3xbf16> to vector<1024x3xbf16>
    %c5 = arith.constant 5 : index
    %c0_39 = arith.constant 0 : index
    %c0_40 = arith.constant 0 : index
    %39 = vector.load %arg2[%c5, %c0_39, %c0_40] : memref<9x3x128xbf16, #tpu.memory_space<vmem>>, vector<1x3x128xbf16>
    %40 = vector.shape_cast %39 : vector<1x3x128xbf16> to vector<3x128xbf16>
    %cst_41 = arith.constant dense<0.000000e+00> : vector<1024x128xf32>
    %41 = tpu.matmul %38, %40, %cst_41 {dimension_numbers = #tpu.dot_dimension_numbers<[1], [0], [0], [1], [0, 0, 1, 1], [], []>} : vector<1024x3xbf16>, vector<3x128xbf16>, vector<1024x128xf32> -> vector<1024x128xf32>
    %42 = arith.addf %35, %41 : vector<1024x128xf32>
    %c0_42 = arith.constant 0 : index
    %c2_43 = arith.constant 2 : index
    %c0_44 = arith.constant 0 : index
    %c0_45 = arith.constant 0 : index
    %43 = vector.load %arg1[%c0_42, %c2_43, %c0_44, %c0_45] : memref<1x34x34x3xbf16, #tpu.memory_space<vmem>>, vector<1x32x32x3xbf16>
    %44 = vector.shape_cast %43 : vector<1x32x32x3xbf16> to vector<32x32x3xbf16>
    %45 = vector.shape_cast %44 : vector<32x32x3xbf16> to vector<1024x3xbf16>
    %c6 = arith.constant 6 : index
    %c0_46 = arith.constant 0 : index
    %c0_47 = arith.constant 0 : index
    %46 = vector.load %arg2[%c6, %c0_46, %c0_47] : memref<9x3x128xbf16, #tpu.memory_space<vmem>>, vector<1x3x128xbf16>
    %47 = vector.shape_cast %46 : vector<1x3x128xbf16> to vector<3x128xbf16>
    %cst_48 = arith.constant dense<0.000000e+00> : vector<1024x128xf32>
    %48 = tpu.matmul %45, %47, %cst_48 {dimension_numbers = #tpu.dot_dimension_numbers<[1], [0], [0], [1], [0, 0, 1, 1], [], []>} : vector<1024x3xbf16>, vector<3x128xbf16>, vector<1024x128xf32> -> vector<1024x128xf32>
    %49 = arith.addf %42, %48 : vector<1024x128xf32>
    %c0_49 = arith.constant 0 : index
    %c2_50 = arith.constant 2 : index
    %c1_51 = arith.constant 1 : index
    %c0_52 = arith.constant 0 : index
    %50 = vector.load %arg1[%c0_49, %c2_50, %c1_51, %c0_52] : memref<1x34x34x3xbf16, #tpu.memory_space<vmem>>, vector<1x32x32x3xbf16>
    %51 = vector.shape_cast %50 : vector<1x32x32x3xbf16> to vector<32x32x3xbf16>
    %52 = vector.shape_cast %51 : vector<32x32x3xbf16> to vector<1024x3xbf16>
    %c7 = arith.constant 7 : index
    %c0_53 = arith.constant 0 : index
    %c0_54 = arith.constant 0 : index
    %53 = vector.load %arg2[%c7, %c0_53, %c0_54] : memref<9x3x128xbf16, #tpu.memory_space<vmem>>, vector<1x3x128xbf16>
    %54 = vector.shape_cast %53 : vector<1x3x128xbf16> to vector<3x128xbf16>
    %cst_55 = arith.constant dense<0.000000e+00> : vector<1024x128xf32>
    %55 = tpu.matmul %52, %54, %cst_55 {dimension_numbers = #tpu.dot_dimension_numbers<[1], [0], [0], [1], [0, 0, 1, 1], [], []>} : vector<1024x3xbf16>, vector<3x128xbf16>, vector<1024x128xf32> -> vector<1024x128xf32>
    %56 = arith.addf %49, %55 : vector<1024x128xf32>
    %c0_56 = arith.constant 0 : index
    %c2_57 = arith.constant 2 : index
    %c2_58 = arith.constant 2 : index
    %c0_59 = arith.constant 0 : index
    %57 = vector.load %arg1[%c0_56, %c2_57, %c2_58, %c0_59] : memref<1x34x34x3xbf16, #tpu.memory_space<vmem>>, vector<1x32x32x3xbf16>
    %58 = vector.shape_cast %57 : vector<1x32x32x3xbf16> to vector<32x32x3xbf16>
    %59 = vector.shape_cast %58 : vector<32x32x3xbf16> to vector<1024x3xbf16>
    %c8 = arith.constant 8 : index
    %c0_60 = arith.constant 0 : index
    %c0_61 = arith.constant 0 : index
    %60 = vector.load %arg2[%c8, %c0_60, %c0_61] : memref<9x3x128xbf16, #tpu.memory_space<vmem>>, vector<1x3x128xbf16>
    %61 = vector.shape_cast %60 : vector<1x3x128xbf16> to vector<3x128xbf16>
    %cst_62 = arith.constant dense<0.000000e+00> : vector<1024x128xf32>
    %62 = tpu.matmul %59, %61, %cst_62 {dimension_numbers = #tpu.dot_dimension_numbers<[1], [0], [0], [1], [0, 0, 1, 1], [], []>} : vector<1024x3xbf16>, vector<3x128xbf16>, vector<1024x128xf32> -> vector<1024x128xf32>
    %63 = arith.addf %56, %62 : vector<1024x128xf32>
    %c0_63 = arith.constant 0 : index
    %c0_64 = arith.constant 0 : index
    %64 = vector.load %arg3[%c0_63, %c0_64] : memref<1x128xf32, #tpu.memory_space<vmem>>, vector<1x128xf32>
    %65 = vector.broadcast %64 : vector<1x128xf32> to vector<1024x128xf32>
    %66 = arith.addf %63, %65 : vector<1024x128xf32>
    %cst_65 = arith.constant 0.000000e+00 : f32
    %67 = vector.broadcast %cst_65 : f32 to vector<1024x128xf32>
    %68 = arith.maximumf %66, %67 : vector<1024x128xf32>
    %69 = vector.shape_cast %68 : vector<1024x128xf32> to vector<32x32x128xf32>
    %70 = arith.truncf %69 : vector<32x32x128xf32> to vector<32x32x128xbf16>
    %c0_66 = arith.constant 0 : index
    %c0_67 = arith.constant 0 : index
    %c0_68 = arith.constant 0 : index
    %c0_69 = arith.constant 0 : index
    %71 = vector.load %arg4[%c0_66, %c0_67, %c0_68, %c0_69] : memref<1x32x32x128xbf16, #tpu.memory_space<vmem>>, vector<1x32x32x128xbf16>
    %72 = vector.shape_cast %71 : vector<1x32x32x128xbf16> to vector<32x32x128xbf16>
    %73 = vector.shape_cast %70 : vector<32x32x128xbf16> to vector<1x32x32x128xbf16>
    tpu.vector_store %arg4[%c0_66, %c0_67, %c0_68, %c0_69], %73 {strides = array<i32>} : memref<1x32x32x128xbf16, #tpu.memory_space<vmem>>, vector<1x32x32x128xbf16>,
    return
  }
  func.func @transform_0(%arg0: i32) -> (i32, i32, i32, i32) {
    %c0_i32 = arith.constant 0 : i32
    %c0_i32_0 = arith.constant 0 : i32
    %c0_i32_1 = arith.constant 0 : i32
    %c0_i32_2 = arith.constant 0 : i32
    return %arg0, %c0_i32, %c0_i32_0, %c0_i32_1 : i32, i32, i32, i32
  }
  func.func @transform_1(%arg0: i32) -> (i32, i32, i32) {
    %c0_i32 = arith.constant 0 : i32
    %c0_i32_0 = arith.constant 0 : i32
    %c0_i32_1 = arith.constant 0 : i32
    %c0_i32_2 = arith.constant 0 : i32
    return %c0_i32, %c0_i32_0, %c0_i32_1 : i32, i32, i32
  }
  func.func @transform_2(%arg0: i32) -> (i32, i32) {
    %c0_i32 = arith.constant 0 : i32
    %c0_i32_0 = arith.constant 0 : i32
    %c0_i32_1 = arith.constant 0 : i32
    return %c0_i32, %c0_i32_0 : i32, i32
  }
  func.func @transform_3(%arg0: i32) -> (i32, i32, i32, i32) {
    %c0_i32 = arith.constant 0 : i32
    %c0_i32_0 = arith.constant 0 : i32
    %c0_i32_1 = arith.constant 0 : i32
    %c0_i32_2 = arith.constant 0 : i32
    return %arg0, %c0_i32, %c0_i32_0, %c0_i32_1 : i32, i32, i32, i32
  }
}

</mosaic_0001>

<bundles_post_ra>
// kernel: tpu_custom_call.1
= control target key start
LH: loop header
LB: loop body
LE: loop exit
PB: predicated region body
PF: predicated region fallthrough
CT: control target
= control target key end

     0   :  { %8 = vsyncpa [#allocation3], 0  ;;  %s29647_s0 = inlined_call_operand.vmem [shape: bf16[2,34,34,3], index: 0, kind: input, shape index: {}]   ;;  %s29648_s1 = inlined_call_operand.vmem [shape: bf16[9,3,128], index: 1, kind: input, shape index: {}]   ;;  %s29649_s2 = inlined_call_operand.vmem [shape: f32[1,128], index: 2, kind: input, shape index: {}]   ;;  %s29650_s3 = inlined_call_operand.hbm [shape: bf16[2,32,32,128], index: 3, kind: output, shape index: {}]  }
   0x1   :  { %10 = vsyncpa [#allocation3 + $0x1], 0  ;;  %s23641_s12 = smov 0   ;;  %s23643_s13 = smov 0  }
   0x2   :  { %s23645_s14 = smov 0   ;;  %s23647_s15 = smov 0  }
   0x3 LB: > { %s23662_s16 = sadd.s32 4294967295, %s23615_s15   ;;  %s17535_s17 = sadd.s32 4294967294, %s23615_s15   ;;  %s23615_s15 = sphi %s23647_s15, %s30032_s15   ;;  %s23611_s14 = sphi %s23645_s14, %s30031_s14   ;;  %s23607_s13 = sphi %s23643_s13, %s30030_s13   ;;  %s23603_s12 = sphi %s23641_s12, %s30029_s12  }
   0x4   : > { %s23666_s18 = sadd.s32 1, %s23615_s15   ;;  %s91_s19 = sadd.s32 1, %s23611_s14 }
   0x5   : > { %s88_s20 = ssub.s32 %s23615_s15, %s23666_s18  ;;  %p101_p0 = scmp.ne.s32.totalorder %s23611_s14, %s23607_s13 }
   0x6   : > { %p89_p1 = scmp.eq.s32.totalorder %s88_s20, 0  ;;  %p102_p2 = scmp.eq.s32.totalorder %s23662_s16, 1 }
   0x7   : > { %p107_p3 = scmp.ne.s32.totalorder %s23607_s13, %s23603_s12  ;;  %p108_p4 = scmp.eq.s32.totalorder %s17535_s17, 1 }
   0x8   : > { %s23677_s21 = scalar_select %p89_p1, %s23611_s14, %s91_s19  }
   0x9   : > { %p23679_p5 = por %p102_p2, %p101_p0  ;;  %p23683_p6 = por %p108_p4, %p107_p3 }
   0xa   : > { %p17538_p7 = scmp.ge.s32.totalorder %s23615_s15, 1  ;;  %p140_p8 = scmp.lt.s32.totalorder %s23615_s15, 3 }
   0xc   : > { %p141_p9 = pnand %p17538_p7, %p140_p8 }
   0xe   : > { %144 = sbr.rel (%p141_p9) target bundleno = 1611 (0x64b), region = 32 }
  0x15   : > { %v17541_v0 = vld [vmem:[%s29648_s1 + $0x2] sm:$0x3]  ;;  %vm2129_vm0 = vcmask 1040384   ;;  %vm2130_vm1 = vcmask 1041408   ;;  %p164_p10 = scmp.lt.s32.totalorder %s23662_s16, 1  ;;  %v23617_v1 = vmov 65535  }
  0x16   : > { %v2131_v2 = vsel %vm2129_vm0, 4294967295, %v23617_v1  ;;  %v18376_v3 = vld [vmem:[%s29648_s1 + $0x8] sm:$0x3]  ;;  %v298_v5 = vld [vmem:[%s29648_s1] sm:$0x3]  ;;  %vm1936_vm4 = vcmask 23552  }
  0x17   : > { %v23696_v4 = vsel %vm2130_vm1, %v2131_v2, 0  ;;  %s165_s28 = scalar_select %p164_p10, %s23662_s16, 1  ;;  %v18569_v9 = vld [vmem:[%s29648_s1 + $0xa] sm:$0x3]  ;;  %vm331_vm2 = vsmask.f32 3328 }
  0x18   : > { %v2134_v6 = vand.u32 %v17541_v0, %v23696_v4  ;;  %v23704_v7 = vand.u32 %v18376_v3, %v23696_v4  ;;  %v23707_v8 = vand.u32 %v23696_v4, %v298_v5  ;;  %v23713_v10 = vand.u32 %v18569_v9, %v23696_v4  ;;  %s161_s4 = sand.u32 1, %s23607_s13   ;;  %s23618_s24 = smov [#allocation2]  }
  0x19   : > { %s22864_s6 = smul.u32 680, %s165_s28  ;;  %vm332_vm3 = vsmask.f32 7440  ;;  %v29708_v35 = vmov 0  ;;  %vm3837_vm6 = vcmask 1042432   ;;  %vm3838_vm7 = vcmask 1046532  }
  0x1a   : > { %29707 = vst [vmem:[#allocation5_spill] sm:$0xff] %v23704_v7  ;;  %20668 = vmatprep.subr.bf16.mxu1 %v2134_v6  ;;  %21188 = vmatprep.subr.bf16.mxu0 %v23704_v7  ;;  %vm23738_vm5 = vmor %vm331_vm2, %vm332_vm3  ;;  %s29236_s5 = sshll.u32 %s161_s4, 9  ;;  %s23557_s25 = sshll.u32 %s23618_s24, 4  ;;  %s23558_s25 = int_to_ptr.vmem [resolvable:$false] %s23557_s25 }
  0x1b   : > { %20669 = vmatpush3.bf16.msra.mxu1 %v2134_v6  ;;  %21189 = vmatpush3.bf16.msra.mxu0 %v23704_v7  ;;  %s23720_s9 = scalar_lea.vmem %s29647_s0, %s22864_s6  ;;  %v29709_v35 = vsel %vm23738_vm5, 4294967295, %v29708_v35  ;;  %vm24244_vm8 = vmor %vm3837_vm6, %vm3838_vm7  ;;  %s29270_s6 = scalar_lea.vmem [#allocation2], %s29236_s5 }
  0x1c   : > { %v170_v11 = vld [vmem:[%s23720_s9] sm:$0xf]  ;;  %v171_v12 = vld [vmem:[%s23720_s9 + $0x4] sm:$0xf]  ;;  %v172_v13 = vld [vmem:[%s23720_s9 + $0x8] sm:$0xf]  ;;  %20798 = vmatprep.subr.bf16.mxu1 %v23707_v8  ;;  %21318 = vmatprep.subr.bf16.mxu0 %v23713_v10 }
  0x1d   : > { %v335_v14 = vshrl.u32 %v170_v11, 16  ;;  %v338_v15 = vshll.u32 %v170_v11, 16  ;;  %v344_v16 = vshll.u32 %v171_v12, 16  ;;  %v348_v17 = vshrl.u32 %v171_v12, 16  ;;  %v18216_v20 = vld [vmem:[%s23720_s9 + $0x14] sm:$0xf] }
  0x1e   : > { %v354_v18 = vshll.u32 %v172_v13, 16  ;;  %v358_v19 = vshrl.u32 %v172_v13, 16  ;;  %v23729_v21 = vld [vmem:[%s23720_s9 + $0x18] sm:$0xf]  ;;  %v23732_v26 = vld [vmem:[%s23720_s9 + $0x1c] sm:$0xf] }
  0x1f   : > { %v337_v22 = vrot.slane %v335_v14, 4  ;;  %v340_v23 = vrot.slane %v338_v15, 5  ;;  %v346_v24 = vrot.slane %v344_v16, 5  ;;  %v350_v25 = vrot.slane %v348_v17, 4  ;;  %29710 = vst [vmem:[#allocation6_spill] sm:$0xff] %v29709_v35  ;;  %s17473_s10 = sshll.u32 %s29270_s6, 4  ;;  %s29600_s10 = int_to_ptr.vmem [resolvable:$true] %s17473_s10 }
  0x20   : > { %v356_v27 = vrot.slane %v354_v18, 5  ;;  %v360_v28 = vrot.slane %v358_v19, 4  ;;  %v6798_v29 = vshrl.u32 %v18216_v20, 16  ;;  %v6801_v30 = vshll.u32 %v18216_v20, 16  ;;  %v173_v44 = vld [vmem:[%s23720_s9 + $0xc] sm:$0xf]  ;;  %p23560_p0 = scmp.lt.s32.totalorder %s29600_s10, %s23558_s25 }
  0x21   : > { %v341_v31 = vor.u32 %v340_v23, %v337_v22  ;;  %v351_v32 = vor.u32 %v350_v25, %v346_v24  ;;  %v6807_v33 = vshll.u32 %v23729_v21, 16  ;;  %v6811_v34 = vshrl.u32 %v23729_v21, 16  ;;  %v299_v48 = vld [vmem:[%s23720_s9 + $0x10] sm:$0x1]  ;;  %v23752_v61 = vld [vmem:[%s23720_s9 + $0x20] sm:$0xf] }
  0x22   : > { %v361_v36 = vor.u32 %v360_v28, %v356_v27  ;;  %v6800_v37 = vrot.slane %v6798_v29, 4  ;;  %v6803_v38 = vrot.slane %v6801_v30, 5  ;;  %v6817_v39 = vshll.u32 %v23732_v26, 16  ;;  %v23763_v2 = vld [vmem:[%s23720_s9 + $0x24] sm:$0x1]  ;;  %s23553_s20 = scalar_lea.vmem %s29600_s10, 8192 }
  0x23   : > { %v342_v40 = vrot.slane %v341_v31, 4  ;;  %v352_v41 = vrot.slane %v351_v32, 4  ;;  %v6809_v42 = vrot.slane %v6807_v33, 5  ;;  %v6813_v43 = vrot.slane %v6811_v34, 4  ;;  %v174_v11 = vld [vmem:[%s23720_s9 + $0x14] sm:$0xf]  ;;  %p23554_p11 = scmp.ne.s32.totalorder %s29600_s10, %s23553_s20 }
  0x24   : > { %v6804_v45 = vor.u32 %v6803_v38, %v6800_v37  ;;  %v6819_v46 = vrot.slane %v6817_v39, 5  ;;  %v6821_v47 = vshrl.u32 %v23732_v26, 16  ;;  %v362_v51 = vrot.slane %v361_v36, 4  ;;  %v175_v20 = vld [vmem:[%s23720_s9 + $0x18] sm:$0xf]  ;;  %s23559_s26 = scalar_lea.vmem %s23558_s25, 16384 }
  0x25   : > { %v347_v49 = vsel %vm23738_vm5, %v342_v40, %v346_v24  ;;  %v357_v50 = vsel %vm23738_vm5, %v352_v41, %v356_v27  ;;  %v6814_v52 = vor.u32 %v6813_v43, %v6809_v42  ;;  %v9464_v56 = vrot.slane %v23732_v26, 5  ;;  %v176_v25 = vld [vmem:[%s23720_s9 + $0x1c] sm:$0xf]  ;;  %v18221_v32 = vld [vmem:[%s23720_s9 + $0x28] sm:$0xf]  ;;  %p23555_p12 = pnand %p23554_p11, %p23679_p5  ;;  %p23561_p1 = scmp.lt.s32.totalorder %s23559_s26, %s23553_s20 }
  0x26   : > { %v17542_v53 = vcombine.low %v347_v49, %v357_v50  ;;  %v6805_v54 = vrot.slane %v6804_v45, 4  ;;  %v6823_v55 = vrot.slane %v6821_v47, 4  ;;  %v364_v58 = vshll.u32 %v173_v44, 16  ;;  %v18223_v50 = vld [vmem:[%s23720_s9 + $0x30] sm:$0xf] }
  0x27   : > { %v6815_v57 = vrot.slane %v6814_v52, 4  ;;  %v368_v59 = vshrl.u32 %v173_v44, 16  ;;  %v374_v60 = vshll.u32 %v299_v48, 16  ;;  %v9461_v0 = vrot.slane %v23729_v21, 5  ;;  %p23556_p13 = pneg %p23555_p12  ;;  %p23562_p2 = por %p23561_p1, %p23560_p0 }
  0x28   : > { %20670 = vmatprep.mubr.msk.bf16.mxu1 %vm1936_vm4, %v17542_v53  ;;  %v6810_v62 = vsel %vm23738_vm5, %v6805_v54, %v6809_v42  ;;  %v6824_v63 = vor.u32 %v6823_v55, %v6819_v46  ;;  %v23760_v1 = vrot.slane %v9464_v56, 4  ;;  %v366_v5 = vrot.slane %v364_v58, 5  ;;  %v18222_v42 = vld [vmem:[%s23720_s9 + $0x2c] sm:$0xf] }
  0x29   : > { %v6820_v3 = vsel %vm23738_vm5, %v6815_v57, %v6819_v46  ;;  %v370_v6 = vrot.slane %v368_v59, 4  ;;  %v376_v9 = vrot.slane %v374_v60, 5  ;;  %v6827_v14 = vshll.u32 %v23752_v61, 16  ;;  %v177_v57 = vld [vmem:[%s23720_s9 + $0x20] sm:$0xf]  ;;  %p23563_p3 = pnand %p23562_p2, %p23556_p13 }
  0x2a   : > { %v6825_v12 = vrot.slane %v6824_v63, 4  ;;  %v18377_v13 = vcombine.low %v6810_v62, %v6820_v3  ;;  %v6831_v15 = vshrl.u32 %v23752_v61, 16  ;;  %v367_v16 = vsel %vm23738_vm5, %v362_v51, %v366_v5 }
  0x2b   : > { %v371_v17 = vor.u32 %v370_v6, %v366_v5  ;;  %v6837_v18 = vshll.u32 %v23763_v2, 16  ;;  %v9467_v19 = vrot.slane %v23752_v61, 5  ;;  %v6829_v22 = vrot.slane %v6827_v14, 5  ;;  %v300_v6 = vld [vmem:[%s23720_s9 + $0x24] sm:$0x1] }
  0x2c   : > { %21190 = vmatprep.mubr.msk.bf16.mxu0 %vm1936_vm4, %v18377_v13  ;;  %v6833_v23 = vrot.slane %v6831_v15, 4  ;;  %v9470_v24 = vrot.slane %v23763_v2, 5  ;;  %v379_v27 = vshrl.u32 %v174_v11, 16  ;;  %v382_v31 = vshll.u32 %v174_v11, 16 }
  0x2d   : > { %v372_v28 = vrot.slane %v371_v17, 4  ;;  %v6839_v29 = vrot.slane %v6837_v18, 5  ;;  %v23780_v30 = vrot.slane %v9467_v19, 4  ;;  %v6830_v33 = vsel %vm23738_vm5, %v6825_v12, %v6829_v22  ;;  %v18224_v18 = vld [vmem:[%s23720_s9 + $0x34] sm:$0xf] }
  0x2e   : > { %v6834_v34 = vor.u32 %v6833_v23, %v6829_v22  ;;  %v381_v36 = vrot.slane %v379_v27, 4  ;;  %v388_v37 = vshll.u32 %v175_v20, 16  ;;  %v384_v39 = vrot.slane %v382_v31, 5 }
  0x2f   : > { %v377_v38 = vsel %vm23738_vm5, %v372_v28, %v376_v9  ;;  %v392_v40 = vshrl.u32 %v175_v20, 16  ;;  %v398_v41 = vshll.u32 %v176_v25, 16  ;;  %v6842_v46 = vshrl.u32 %v18221_v32, 16 }
  0x30   : > { %v17543_v43 = vcombine.low %v367_v16, %v377_v38  ;;  %v6835_v44 = vrot.slane %v6834_v34, 4  ;;  %v390_v45 = vrot.slane %v388_v37, 5  ;;  %v385_v47 = vor.u32 %v384_v39, %v381_v36  ;;  %v178_v37 = vld [vmem:[%s23720_s9 + $0x28] sm:$0xf] }
  0x31   : > { %v394_v48 = vrot.slane %v392_v40, 4  ;;  %v400_v49 = vrot.slane %v398_v41, 5  ;;  %v6845_v51 = vshll.u32 %v18221_v32, 16  ;;  %v6844_v53 = vrot.slane %v6842_v46, 4  ;;  %v18225_v32 = vld [vmem:[%s23720_s9 + $0x38] sm:$0x1] }
  0x32   : > { %20671 = vmatmul.mubr.msk.bf16.vlgmr.msra.gmra.mrb[0].mxu1 %vm1936_vm4, %v17543_v43  ;;  %v6840_v52 = vsel %vm23738_vm5, %v6835_v44, %v6839_v29  ;;  %v6851_v54 = vshll.u32 %v18222_v42, 16  ;;  %v6855_v55 = vshrl.u32 %v18222_v42, 16  ;;  %v386_v59 = vrot.slane %v385_v47, 4  ;;  %v179_v42 = vld [vmem:[%s23720_s9 + $0x2c] sm:$0xf] }
  0x33   : > { %20799 = vmatpush3.bf16.msra.mxu1 %v23707_v8  ;;  %v18378_v58 = vcombine.low %v6830_v33, %v6840_v52  ;;  %v395_v60 = vor.u32 %v394_v48, %v390_v45  ;;  %v6847_v62 = vrot.slane %v6845_v51, 5  ;;  %v6861_v5 = vshll.u32 %v18223_v50, 16 }
  0x34   : > { %v6853_v63 = vrot.slane %v6851_v54, 5  ;;  %v6857_v3 = vrot.slane %v6855_v55, 4  ;;  %v402_v9 = vshrl.u32 %v176_v25, 16  ;;  %v391_v11 = vsel %vm23738_vm5, %v386_v59, %v390_v45 }
  0x35   : > { %21191 = vmatmul.mubr.msk.bf16.vlgmr.msra.gmra.mrb[0].mxu0 %vm1936_vm4, %v18378_v58  ;;  %v396_v12 = vrot.slane %v395_v60, 4  ;;  %v6848_v13 = vor.u32 %v6847_v62, %v6844_v53  ;;  %v408_v14 = vshll.u32 %v177_v57, 16  ;;  %v6863_v15 = vrot.slane %v6861_v5, 5 }
  0x36   : > { %21319 = vmatpush3.bf16.msra.mxu0 %v23713_v10  ;;  %v6858_v8 = vor.u32 %v6857_v3, %v6853_v63  ;;  %v404_v16 = vrot.slane %v402_v9, 4  ;;  %v412_v17 = vshrl.u32 %v177_v57, 16  ;;  %v418_v25 = vshll.u32 %v300_v6, 16  ;;  %v18226_v57 = vld [vmem:[%s23720_s9 + $0x3c] sm:$0xf] }
  0x37   : > { %v401_v20 = vsel %vm23738_vm5, %v396_v12, %v400_v49  ;;  %v6849_v22 = vrot.slane %v6848_v13, 4  ;;  %v410_v23 = vrot.slane %v408_v14, 5  ;;  %v6865_v34 = vshrl.u32 %v18223_v50, 16  ;;  %v180_v50 = vld [vmem:[%s23720_s9 + $0x30] sm:$0xf] }
  0x38   : > { %v17544_v27 = vcombine.low %v391_v11, %v401_v20  ;;  %v6859_v28 = vrot.slane %v6858_v8, 4  ;;  %v405_v29 = vor.u32 %v404_v16, %v400_v49  ;;  %v414_v31 = vrot.slane %v412_v17, 4  ;;  %v18228_v16 = vld [vmem:[%s23720_s9 + $0x44] sm:$0xf] }
  0x39   : > { %v6854_v10 = vsel %vm23738_vm5, %v6849_v22, %v6853_v63  ;;  %v420_v33 = vrot.slane %v418_v25, 5  ;;  %v6871_v36 = vshll.u32 %v18224_v18, 16  ;;  %v6875_v41 = vshrl.u32 %v18224_v18, 16  ;;  %v18227_v63 = vld [vmem:[%s23720_s9 + $0x40] sm:$0xf] }
  0x3a   : > { %20674 = vmatprep.mubr.msk.bf16.mxu1 %vm1936_vm4, %v17544_v27  ;;  %v6864_v38 = vsel %vm23738_vm5, %v6859_v28, %v6863_v15  ;;  %v406_v39 = vrot.slane %v405_v29, 4  ;;  %v415_v40 = vor.u32 %v414_v31, %v410_v23  ;;  %v6867_v44 = vrot.slane %v6865_v34, 4  ;;  %v181_v27 = vld [vmem:[%s23720_s9 + $0x34] sm:$0xf] }
  0x3b   : > { %v18379_v43 = vcombine.low %v6854_v10, %v6864_v38  ;;  %v6873_v45 = vrot.slane %v6871_v36, 5  ;;  %v6881_v46 = vshll.u32 %v18225_v32, 16  ;;  %v6877_v49 = vrot.slane %v6875_v41, 4 }
  0x3c   : > { %v411_v47 = vsel %vm23738_vm5, %v406_v39, %v410_v23  ;;  %v416_v48 = vrot.slane %v415_v40, 4  ;;  %v423_v51 = vshrl.u32 %v178_v37, 16  ;;  %v6868_v52 = vor.u32 %v6867_v44, %v6863_v15  ;;  %v301_v39 = vld [vmem:[%s23720_s9 + $0x38] sm:$0x1] }
  0x3d   : > { %21194 = vmatprep.mubr.msk.bf16.mxu0 %vm1936_vm4, %v18379_v43  ;;  %v6883_v53 = vrot.slane %v6881_v46, 5  ;;  %v426_v54 = vshll.u32 %v178_v37, 16  ;;  %v432_v55 = vshll.u32 %v179_v42, 16  ;;  %v6878_v59 = vor.u32 %v6877_v49, %v6873_v45  ;;  %v18229_v46 = vld [vmem:[%s23720_s9 + $0x48] sm:$0xf] }
  0x3e   : > { %v421_v58 = vsel %vm23738_vm5, %v416_v48, %v420_v33  ;;  %v425_v60 = vrot.slane %v423_v51, 4  ;;  %v436_v62 = vshrl.u32 %v179_v42, 16  ;;  %v6869_v5 = vrot.slane %v6868_v52, 4 }
  0x3f   : > { %v17545_v3 = vcombine.low %v411_v47, %v421_v58  ;;  %v428_v6 = vrot.slane %v426_v54, 5  ;;  %v434_v9 = vrot.slane %v432_v55, 5  ;;  %v6879_v11 = vrot.slane %v6878_v59, 4  ;;  %v18230_v54 = vld [vmem:[%s23720_s9 + $0x4c] sm:$0x1] }
  0x40   : > { %v438_v12 = vrot.slane %v436_v62, 4  ;;  %v442_v13 = vshll.u32 %v180_v50, 16  ;;  %v6886_v14 = vshrl.u32 %v18226_v57, 16  ;;  %v6874_v8 = vsel %vm23738_vm5, %v6869_v5, %v6873_v45  ;;  %v182_v62 = vld [vmem:[%s23720_s9 + $0x3c] sm:$0xf] }
  0x41   : > { %20675 = vmatmul.mubr.msk.bf16.gmra.mrb[4].mxu1 %vm1936_vm4, %v17545_v3  ;;  %v429_v15 = vor.u32 %v428_v6, %v425_v60  ;;  %v6889_v17 = vshll.u32 %v18226_v57, 16  ;;  %v6895_v18 = vshll.u32 %v18227_v63, 16  ;;  %v6884_v20 = vsel %vm23738_vm5, %v6879_v11, %v6883_v53 }
  0x42   : > { %v439_v22 = vor.u32 %v438_v12, %v434_v9  ;;  %v444_v23 = vrot.slane %v442_v13, 5  ;;  %v6888_v25 = vrot.slane %v6886_v14, 4  ;;  %v18380_v28 = vcombine.low %v6874_v8, %v6884_v20 }
  0x43   : > { %v430_v29 = vrot.slane %v429_v15, 4  ;;  %v6891_v31 = vrot.slane %v6889_v17, 5  ;;  %v6897_v32 = vrot.slane %v6895_v18, 5  ;;  %v6899_v33 = vshrl.u32 %v18227_v63, 16  ;;  %v184_v17 = vld [vmem:[%s23720_s9 + $0x44] sm:$0xf] }
  0x44   : > { %v440_v10 = vrot.slane %v439_v22, 4  ;;  %v6905_v34 = vshll.u32 %v18228_v16, 16  ;;  %v446_v36 = vshrl.u32 %v180_v50, 16  ;;  %21195 = vmatmul.mubr.msk.bf16.gmra.mrb[4].mxu0 %vm1936_vm4, %v18380_v28  ;;  %v452_v40 = vshll.u32 %v181_v27, 16 }
  0x45   : > { %v435_v37 = vsel %vm23738_vm5, %v430_v29, %v434_v9  ;;  %v6892_v38 = vor.u32 %v6891_v31, %v6888_v25  ;;  %v456_v41 = vshrl.u32 %v181_v27, 16  ;;  %v6901_v43 = vrot.slane %v6899_v33, 4  ;;  %v18231_v27 = vld [vmem:[%s23720_s9 + $0x50] sm:$0xf] }
  0x46   : > { %v445_v42 = vsel %vm23738_vm5, %v440_v10, %v444_v23  ;;  %v6907_v44 = vrot.slane %v6905_v34, 5  ;;  %v448_v45 = vrot.slane %v446_v36, 4  ;;  %v454_v49 = vrot.slane %v452_v40, 5  ;;  %v18233_v40 = vld [vmem:[%s23720_s9 + $0x58] sm:$0xf] }
  0x47   : > { %v17546_v47 = vcombine.low %v435_v37, %v445_v42  ;;  %v6893_v48 = vrot.slane %v6892_v38, 4  ;;  %v458_v50 = vrot.slane %v456_v41, 4  ;;  %v6902_v51 = vor.u32 %v6901_v43, %v6897_v32  ;;  %v18232_v37 = vld [vmem:[%s23720_s9 + $0x54] sm:$0xf] }
  0x48   : > { %v449_v52 = vor.u32 %v448_v45, %v444_v23  ;;  %v462_v53 = vshll.u32 %v301_v39, 16  ;;  %v6909_v55 = vshrl.u32 %v18228_v16, 16  ;;  %v6915_v59 = vshll.u32 %v18229_v46, 16  ;;  %v183_v16 = vld [vmem:[%s23720_s9 + $0x40] sm:$0xf] }
  0x49   : > { %20678 = vmatprep.mubr.msk.bf16.mxu1 %vm1936_vm4, %v17546_v47  ;;  %v6898_v57 = vsel %vm23738_vm5, %v6893_v48, %v6897_v32  ;;  %v459_v58 = vor.u32 %v458_v50, %v454_v49  ;;  %v6919_v60 = vshrl.u32 %v18229_v46, 16  ;;  %v6903_v63 = vrot.slane %v6902_v51, 4  ;;  %v185_v47 = vld [vmem:[%s23720_s9 + $0x48] sm:$0xf] }
  0x4a   : > { %v450_v3 = vrot.slane %v449_v52, 4  ;;  %v464_v5 = vrot.slane %v462_v53, 5  ;;  %v6911_v6 = vrot.slane %v6909_v55, 4  ;;  %v6917_v11 = vrot.slane %v6915_v59, 5  ;;  %v302_v59 = vld [vmem:[%s23720_s9 + $0x4c] sm:$0x1] }
  0x4b   : > { %v460_v9 = vrot.slane %v459_v58, 4  ;;  %v6921_v12 = vrot.slane %v6919_v60, 4  ;;  %v6925_v13 = vshll.u32 %v18230_v54, 16  ;;  %v6908_v14 = vsel %vm23738_vm5, %v6903_v63, %v6907_v44 }
  0x4c   : > { %v455_v8 = vsel %vm23738_vm5, %v450_v3, %v454_v49  ;;  %v6912_v15 = vor.u32 %v6911_v6, %v6907_v44  ;;  %v467_v18 = vshrl.u32 %v182_v62, 16  ;;  %v18381_v20 = vcombine.low %v6898_v57, %v6908_v14  ;;  %v18234_v14 = vld [vmem:[%s23720_s9 + $0x5c] sm:$0xf] }
  0x4d   : > { %v465_v22 = vsel %vm23738_vm5, %v460_v9, %v464_v5  ;;  %v6922_v23 = vor.u32 %v6921_v12, %v6917_v11  ;;  %v6927_v25 = vrot.slane %v6925_v13, 5  ;;  %v470_v32 = vshll.u32 %v182_v62, 16 }
  0x4e   : > { %v17547_v28 = vcombine.low %v455_v8, %v465_v22  ;;  %v6913_v29 = vrot.slane %v6912_v15, 4  ;;  %v469_v31 = vrot.slane %v467_v18, 4  ;;  %21198 = vmatprep.mubr.msk.bf16.mxu0 %vm1936_vm4, %v18381_v20  ;;  %v476_v33 = vshll.u32 %v183_v16, 16 }
  0x4f   : > { %v6923_v10 = vrot.slane %v6922_v23, 4  ;;  %v480_v34 = vshrl.u32 %v183_v16, 16  ;;  %v486_v36 = vshll.u32 %v184_v17, 16  ;;  %v472_v39 = vrot.slane %v470_v32, 5 }
  0x50   : > { %20679 = vmatmul.mubr.msk.bf16.gmra.mrb[8].mxu1 %vm1936_vm4, %v17547_v28  ;;  %v6918_v38 = vsel %vm23738_vm5, %v6913_v29, %v6917_v11  ;;  %v6930_v41 = vshrl.u32 %v18231_v27, 16  ;;  %v6933_v42 = vshll.u32 %v18231_v27, 16  ;;  %v478_v44 = vrot.slane %v476_v33, 5  ;;  %v186_v27 = vld [vmem:[%s23720_s9 + $0x50] sm:$0xf] }
  0x51   : > { %v6928_v43 = vsel %vm23738_vm5, %v6923_v10, %v6927_v25  ;;  %v482_v45 = vrot.slane %v480_v34, 4  ;;  %v488_v46 = vrot.slane %v486_v36, 5  ;;  %v473_v49 = vor.u32 %v472_v39, %v469_v31 }
  0x52   : > { %v18382_v48 = vcombine.low %v6918_v38, %v6928_v43  ;;  %v6932_v50 = vrot.slane %v6930_v41, 4  ;;  %v6935_v51 = vrot.slane %v6933_v42, 5  ;;  %v6939_v53 = vshll.u32 %v18232_v37, 16  ;;  %v187_v41 = vld [vmem:[%s23720_s9 + $0x54] sm:$0xf] }
  0x53   : > { %v483_v52 = vor.u32 %v482_v45, %v478_v44  ;;  %v6943_v54 = vshrl.u32 %v18232_v37, 16  ;;  %v6949_v55 = vshll.u32 %v18233_v40, 16  ;;  %v474_v57 = vrot.slane %v473_v49, 4 }
  0x54   : > { %21199 = vmatmul.mubr.msk.bf16.gmra.mrb[8].mxu0 %vm1936_vm4, %v18382_v48  ;;  %v6936_v58 = vor.u32 %v6935_v51, %v6932_v50  ;;  %v490_v60 = vshrl.u32 %v184_v17, 16  ;;  %v496_v62 = vshll.u32 %v185_v47, 16  ;;  %v6941_v3 = vrot.slane %v6939_v53, 5  ;;  %v18235_v17 = vld [vmem:[%s23720_s9 + $0x60] sm:$0x1] }
  0x55   : > { %v484_v63 = vrot.slane %v483_v52, 4  ;;  %v6945_v5 = vrot.slane %v6943_v54, 4  ;;  %v6951_v6 = vrot.slane %v6949_v55, 5  ;;  %v479_v9 = vsel %vm23738_vm5, %v474_v57, %v478_v44 }
  0x56   : > { %v6937_v11 = vrot.slane %v6936_v58, 4  ;;  %v492_v12 = vrot.slane %v490_v60, 4  ;;  %v498_v13 = vrot.slane %v496_v62, 5  ;;  %v500_v16 = vshrl.u32 %v185_v47, 16  ;;  %v18236_v47 = vld [vmem:[%s23720_s9 + $0x64] sm:$0xf] }
  0x57   : > { %v489_v8 = vsel %vm23738_vm5, %v484_v63, %v488_v46  ;;  %v6946_v15 = vor.u32 %v6945_v5, %v6941_v3  ;;  %v506_v18 = vshll.u32 %v302_v59, 16  ;;  %v6953_v25 = vshrl.u32 %v18233_v40, 16  ;;  %v18237_v60 = vld [vmem:[%s23720_s9 + $0x68] sm:$0xf] }
  0x58   : > { %v17548_v20 = vcombine.low %v479_v9, %v489_v8  ;;  %v6942_v22 = vsel %vm23738_vm5, %v6937_v11, %v6941_v3  ;;  %v493_v23 = vor.u32 %v492_v12, %v488_v46  ;;  %v502_v29 = vrot.slane %v500_v16, 4  ;;  %v188_v46 = vld [vmem:[%s23720_s9 + $0x58] sm:$0xf]  ;;  %v18238_v9 = vld [vmem:[%s23720_s9 + $0x6c] sm:$0xf] }
  0x59   : > { %v6947_v28 = vrot.slane %v6946_v15, 4  ;;  %v508_v31 = vrot.slane %v506_v18, 5  ;;  %v6959_v32 = vshll.u32 %v18234_v14, 16  ;;  %v6955_v33 = vrot.slane %v6953_v25, 4 }
  0x5a   : > { %20682 = vmatprep.mubr.msk.bf16.mxu1 %vm1936_vm4, %v17548_v20  ;;  %v494_v10 = vrot.slane %v493_v23, 4  ;;  %v6963_v34 = vshrl.u32 %v18234_v14, 16  ;;  %v6969_v36 = vshll.u32 %v18235_v17, 16  ;;  %v503_v38 = vor.u32 %v502_v29, %v498_v13  ;;  %v189_v17 = vld [vmem:[%s23720_s9 + $0x5c] sm:$0xf] }
  0x5b   : > { %v6952_v37 = vsel %vm23738_vm5, %v6947_v28, %v6951_v6  ;;  %v6961_v39 = vrot.slane %v6959_v32, 5  ;;  %v511_v40 = vshrl.u32 %v186_v27, 16  ;;  %v6956_v44 = vor.u32 %v6955_v33, %v6951_v6 }
  0x5c   : > { %v18383_v42 = vcombine.low %v6942_v22, %v6952_v37  ;;  %v499_v43 = vsel %vm23738_vm5, %v494_v10, %v498_v13  ;;  %v6965_v45 = vrot.slane %v6963_v34, 4  ;;  %v504_v48 = vrot.slane %v503_v38, 4 }
  0x5d   : > { %v6971_v49 = vrot.slane %v6969_v36, 5  ;;  %v513_v50 = vrot.slane %v511_v40, 4  ;;  %v514_v51 = vshll.u32 %v186_v27, 16  ;;  %v6957_v52 = vrot.slane %v6956_v44, 4  ;;  %v18239_v40 = vld [vmem:[%s23720_s9 + $0x70] sm:$0xf] }
  0x5e   : > { %21202 = vmatprep.mubr.msk.bf16.mxu0 %vm1936_vm4, %v18383_v42  ;;  %v6966_v53 = vor.u32 %v6965_v45, %v6961_v39  ;;  %v520_v54 = vshll.u32 %v187_v41, 16  ;;  %v524_v55 = vshrl.u32 %v187_v41, 16  ;;  %v509_v57 = vsel %vm23738_vm5, %v504_v48, %v508_v31  ;;  %v303_v31 = vld [vmem:[%s23720_s9 + $0x60] sm:$0x1] }
  0x5f   : > { %v516_v58 = vrot.slane %v514_v51, 5  ;;  %v530_v59 = vshll.u32 %v188_v46, 16  ;;  %v6974_v62 = vshrl.u32 %v18236_v47, 16  ;;  %v17549_v63 = vcombine.low %v499_v43, %v509_v57 }
  0x60   : > { %v6962_v3 = vsel %vm23738_vm5, %v6957_v52, %v6961_v39  ;;  %v6967_v5 = vrot.slane %v6966_v53, 4  ;;  %v522_v6 = vrot.slane %v520_v54, 5  ;;  %v526_v12 = vrot.slane %v524_v55, 4  ;;  %v190_v55 = vld [vmem:[%s23720_s9 + $0x64] sm:$0xf] }
  0x61   : > { %v517_v11 = vor.u32 %v516_v58, %v513_v50  ;;  %v532_v13 = vrot.slane %v530_v59, 5  ;;  %v6976_v14 = vrot.slane %v6974_v62, 4  ;;  %20683 = vmatmul.mubr.msk.bf16.gmra.mrb[12].mxu1 %vm1936_vm4, %v17549_v63  ;;  %v6977_v15 = vshll.u32 %v18236_v47, 16  ;;  %v18240_v50 = vld [vmem:[%s23720_s9 + $0x74] sm:$0x1] }
  0x62   : > { %v6972_v8 = vsel %vm23738_vm5, %v6967_v5, %v6971_v49  ;;  %v6983_v16 = vshll.u32 %v18237_v60, 16  ;;  %v6987_v18 = vshrl.u32 %v18237_v60, 16  ;;  %v527_v23 = vor.u32 %v526_v12, %v522_v6  ;;  %v191_v62 = vld [vmem:[%s23720_s9 + $0x68] sm:$0xf] }
  0x63   : > { %v18384_v20 = vcombine.low %v6962_v3, %v6972_v8  ;;  %v518_v22 = vrot.slane %v517_v11, 4  ;;  %v6993_v25 = vshll.u32 %v18238_v9, 16  ;;  %v6979_v27 = vrot.slane %v6977_v15, 5 }
  0x64   : > { %v6985_v28 = vrot.slane %v6983_v16, 5  ;;  %v6989_v29 = vrot.slane %v6987_v18, 4  ;;  %v534_v32 = vshrl.u32 %v188_v46, 16  ;;  %v528_v33 = vrot.slane %v527_v23, 4 }
  0x65   : > { %21203 = vmatmul.mubr.msk.bf16.gmra.mrb[12].mxu0 %vm1936_vm4, %v18384_v20  ;;  %v523_v10 = vsel %vm23738_vm5, %v518_v22, %v522_v6  ;;  %v6995_v34 = vrot.slane %v6993_v25, 5  ;;  %v540_v36 = vshll.u32 %v189_v17, 16  ;;  %v6980_v37 = vor.u32 %v6979_v27, %v6976_v14  ;;  %v18242_v27 = vld [vmem:[%s23720_s9 + $0x7c] sm:$0xf] }
  0x66   : > { %v6990_v38 = vor.u32 %v6989_v29, %v6985_v28  ;;  %v536_v39 = vrot.slane %v534_v32, 4  ;;  %v544_v41 = vshrl.u32 %v189_v17, 16  ;;  %v533_v42 = vsel %vm23738_vm5, %v528_v33, %v532_v13  ;;  %v18241_v17 = vld [vmem:[%s23720_s9 + $0x78] sm:$0xf] }
  0x67   : > { %v542_v43 = vrot.slane %v540_v36, 5  ;;  %v550_v44 = vshll.u32 %v303_v31, 16  ;;  %v6997_v45 = vshrl.u32 %v18238_v9, 16  ;;  %v17550_v46 = vcombine.low %v523_v10, %v533_v42 }
  0x68   : > { %v6981_v47 = vrot.slane %v6980_v37, 4  ;;  %v6991_v48 = vrot.slane %v6990_v38, 4  ;;  %v537_v49 = vor.u32 %v536_v39, %v532_v13  ;;  %v546_v51 = vrot.slane %v544_v41, 4  ;;  %v192_v13 = vld [vmem:[%s23720_s9 + $0x6c] sm:$0xf] }
  0x69   : > { %v552_v52 = vrot.slane %v550_v44, 5  ;;  %v6999_v53 = vrot.slane %v6997_v45, 4  ;;  %v7003_v54 = vshll.u32 %v18239_v40, 16  ;;  %20686 = vmatprep.mubr.msk.bf16.mxu1 %vm1936_vm4, %v17550_v46  ;;  %v7007_v60 = vshrl.u32 %v18239_v40, 16  ;;  %v18243_v38 = vld [vmem:[%s23720_s9 + $0x80] sm:$0xf] }
  0x6a   : > { %v6986_v57 = vsel %vm23738_vm5, %v6981_v47, %v6985_v28  ;;  %v6996_v58 = vsel %vm23738_vm5, %v6991_v48, %v6995_v34  ;;  %v538_v59 = vrot.slane %v537_v49, 4  ;;  %v547_v3 = vor.u32 %v546_v51, %v542_v43  ;;  %v193_v46 = vld [vmem:[%s23720_s9 + $0x70] sm:$0xf] }
  0x6b   : > { %v18385_v63 = vcombine.low %v6986_v57, %v6996_v58  ;;  %v7000_v5 = vor.u32 %v6999_v53, %v6995_v34  ;;  %v7005_v6 = vrot.slane %v7003_v54, 5  ;;  %v7009_v11 = vrot.slane %v7007_v60, 4  ;;  %v304_v58 = vld [vmem:[%s23720_s9 + $0x74] sm:$0x1] }
  0x6c   : > { %v543_v9 = vsel %vm23738_vm5, %v538_v59, %v542_v43  ;;  %v7013_v12 = vshll.u32 %v18240_v50, 16  ;;  %v555_v14 = vshrl.u32 %v190_v55, 16  ;;  %v548_v8 = vrot.slane %v547_v3, 4 }
  0x6d   : > { %21206 = vmatprep.mubr.msk.bf16.mxu0 %vm1936_vm4, %v18385_v63  ;;  %v7001_v15 = vrot.slane %v7000_v5, 4  ;;  %v558_v16 = vshll.u32 %v190_v55, 16  ;;  %v564_v18 = vshll.u32 %v191_v62, 16  ;;  %v7010_v20 = vor.u32 %v7009_v11, %v7005_v6 }
  0x6e   : > { %v7015_v22 = vrot.slane %v7013_v12, 5  ;;  %v557_v23 = vrot.slane %v555_v14, 4  ;;  %v568_v25 = vshrl.u32 %v191_v62, 16  ;;  %v553_v28 = vsel %vm23738_vm5, %v548_v8, %v552_v52 }
  0x6f   : > { %v7006_v29 = vsel %vm23738_vm5, %v7001_v15, %v7005_v6  ;;  %v560_v31 = vrot.slane %v558_v16, 5  ;;  %v566_v32 = vrot.slane %v564_v18, 5  ;;  %v17551_v10 = vcombine.low %v543_v9, %v553_v28  ;;  %v18244_v6 = vld [vmem:[%s23720_s9 + $0x84] sm:$0xf] }
  0x70   : > { %v7011_v33 = vrot.slane %v7010_v20, 4  ;;  %v570_v34 = vrot.slane %v568_v25, 4  ;;  %v574_v36 = vshll.u32 %v192_v13, 16  ;;  %v7018_v39 = vshrl.u32 %v18241_v17, 16  ;;  %v18245_v20 = vld [vmem:[%s23720_s9 + $0x88] sm:$0x1] }
  0x71   : > { %v561_v37 = vor.u32 %v560_v31, %v557_v23  ;;  %v7021_v41 = vshll.u32 %v18241_v17, 16  ;;  %v7027_v40 = vshll.u32 %v18242_v27, 16  ;;  %20687 = vmatmul.mubr.msk.bf16.gmra.mrb[16].mxu1 %vm1936_vm4, %v17551_v10  ;;  %v7031_v45 = vshrl.u32 %v18242_v27, 16  ;;  %v194_v25 = vld [vmem:[%s23720_s9 + $0x78] sm:$0xf] }
  0x72   : > { %v7016_v42 = vsel %vm23738_vm5, %v7011_v33, %v7015_v22  ;;  %v571_v43 = vor.u32 %v570_v34, %v566_v32  ;;  %v576_v44 = vrot.slane %v574_v36, 5  ;;  %v7020_v49 = vrot.slane %v7018_v39, 4 }
  0x73   : > { %v18386_v47 = vcombine.low %v7006_v29, %v7016_v42  ;;  %v562_v48 = vrot.slane %v561_v37, 4  ;;  %v7023_v50 = vrot.slane %v7021_v41, 5  ;;  %v7029_v52 = vrot.slane %v7027_v40, 5 }
  0x74   : > { %v572_v51 = vrot.slane %v571_v43, 4  ;;  %v7033_v53 = vrot.slane %v7031_v45, 4  ;;  %v7037_v54 = vshll.u32 %v18243_v38, 16  ;;  %v578_v59 = vshrl.u32 %v192_v13, 16  ;;  %v196_v43 = vld [vmem:[%s23720_s9 + $0x80] sm:$0xf] }
  0x75   : > { %21207 = vmatmul.mubr.msk.bf16.gmra.mrb[16].mxu0 %vm1936_vm4, %v18386_v47  ;;  %v567_v55 = vsel %vm23738_vm5, %v562_v48, %v566_v32  ;;  %v7024_v57 = vor.u32 %v7023_v50, %v7020_v49  ;;  %v584_v60 = vshll.u32 %v193_v46, 16  ;;  %v588_v5 = vshrl.u32 %v193_v46, 16  ;;  %v195_v32 = vld [vmem:[%s23720_s9 + $0x7c] sm:$0xf]  ;;  %v18246_v46 = vld [vmem:[%s23720_s9 + $0x8c] sm:$0xf] }
  0x76   : > { %v577_v62 = vsel %vm23738_vm5, %v572_v51, %v576_v44  ;;  %v7034_v63 = vor.u32 %v7033_v53, %v7029_v52  ;;  %v7039_v3 = vrot.slane %v7037_v54, 5  ;;  %v580_v12 = vrot.slane %v578_v59, 4  ;;  %v18247_v51 = vld [vmem:[%s23720_s9 + $0x90] sm:$0xf] }
  0x77   : > { %v17552_v9 = vcombine.low %v567_v55, %v577_v62  ;;  %v7025_v11 = vrot.slane %v7024_v57, 4  ;;  %v586_v14 = vrot.slane %v584_v60, 5  ;;  %v590_v15 = vrot.slane %v588_v5, 4 }
  0x78   : > { %v7035_v8 = vrot.slane %v7034_v63, 4  ;;  %v594_v16 = vshll.u32 %v304_v58, 16  ;;  %v7041_v18 = vshrl.u32 %v18243_v38, 16  ;;  %v581_v17 = vor.u32 %v580_v12, %v576_v44 }
  0x79   : > { %20690 = vmatprep.mubr.msk.bf16.mxu1 %vm1936_vm4, %v17552_v9  ;;  %v7030_v13 = vsel %vm23738_vm5, %v7025_v11, %v7029_v52  ;;  %v7047_v22 = vshll.u32 %v18244_v6, 16  ;;  %v7051_v23 = vshrl.u32 %v18244_v6, 16  ;;  %v591_v28 = vor.u32 %v590_v15, %v586_v14  ;;  %v197_v9 = vld [vmem:[%s23720_s9 + $0x84] sm:$0xf] }
  0x7a   : > { %v7040_v27 = vsel %vm23738_vm5, %v7035_v8, %v7039_v3  ;;  %v596_v29 = vrot.slane %v594_v16, 5  ;;  %v7043_v31 = vrot.slane %v7041_v18, 4  ;;  %v582_v33 = vrot.slane %v581_v17, 4 }
  0x7b   : > { %v18387_v10 = vcombine.low %v7030_v13, %v7040_v27  ;;  %v7049_v34 = vrot.slane %v7047_v22, 5  ;;  %v7053_v36 = vrot.slane %v7051_v23, 4  ;;  %v592_v37 = vrot.slane %v591_v28, 4  ;;  %v305_v22 = vld [vmem:[%s23720_s9 + $0x88] sm:$0x1] }
  0x7c   : > { %v7044_v38 = vor.u32 %v7043_v31, %v7039_v3  ;;  %v7057_v39 = vshll.u32 %v18245_v20, 16  ;;  %v599_v41 = vshrl.u32 %v194_v25, 16  ;;  %v587_v40 = vsel %vm23738_vm5, %v582_v33, %v586_v14  ;;  %v18248_v3 = vld [vmem:[%s23720_s9 + $0x94] sm:$0xf] }
  0x7d   : > { %21210 = vmatprep.mubr.msk.bf16.mxu0 %vm1936_vm4, %v18387_v10  ;;  %v7054_v42 = vor.u32 %v7053_v36, %v7049_v34  ;;  %v602_v44 = vshll.u32 %v194_v25, 16  ;;  %v608_v45 = vshll.u32 %v195_v32, 16  ;;  %v597_v47 = vsel %vm23738_vm5, %v592_v37, %v596_v29 }
  0x7e   : > { %v7045_v48 = vrot.slane %v7044_v38, 4  ;;  %v7059_v49 = vrot.slane %v7057_v39, 5  ;;  %v601_v50 = vrot.slane %v599_v41, 4  ;;  %v17553_v52 = vcombine.low %v587_v40, %v597_v47  ;;  %v18250_v40 = vld [vmem:[%s23720_s9 + $0x9c] sm:$0x1] }
  0x7f   : > { %v7055_v53 = vrot.slane %v7054_v42, 4  ;;  %v604_v54 = vrot.slane %v602_v44, 5  ;;  %v610_v55 = vrot.slane %v608_v45, 5  ;;  %v612_v58 = vshrl.u32 %v195_v32, 16  ;;  %v18249_v32 = vld [vmem:[%s23720_s9 + $0x98] sm:$0xf] }
  0x80   : > { %v7050_v57 = vsel %vm23738_vm5, %v7045_v48, %v7049_v34  ;;  %v618_v59 = vshll.u32 %v196_v43, 16  ;;  %v7062_v60 = vshrl.u32 %v18246_v46, 16  ;;  %20691 = vmatmul.mubr.msk.bf16.gmra.mrb[20].mxu1 %vm1936_vm4, %v17553_v52  ;;  %v7065_v5 = vshll.u32 %v18246_v46, 16  ;;  %v198_v46 = vld [vmem:[%s23720_s9 + $0x8c] sm:$0xf] }
  0x81   : > { %v7060_v62 = vsel %vm23738_vm5, %v7055_v53, %v7059_v49  ;;  %v605_v63 = vor.u32 %v604_v54, %v601_v50  ;;  %v7071_v6 = vshll.u32 %v18247_v51, 16  ;;  %v614_v12 = vrot.slane %v612_v58, 4 }
  0x82   : > { %v18388_v11 = vcombine.low %v7050_v57, %v7060_v62  ;;  %v620_v14 = vrot.slane %v618_v59, 5  ;;  %v7064_v8 = vrot.slane %v7062_v60, 4  ;;  %v7067_v16 = vrot.slane %v7065_v5, 5  ;;  %v200_v57 = vld [vmem:[%s23720_s9 + $0x94] sm:$0xf] }
  0x83   : > { %v606_v15 = vrot.slane %v605_v63, 4  ;;  %v7073_v18 = vrot.slane %v7071_v6, 5  ;;  %v7075_v13 = vshrl.u32 %v18247_v51, 16  ;;  %v615_v17 = vor.u32 %v614_v12, %v610_v55  ;;  %v199_v51 = vld [vmem:[%s23720_s9 + $0x90] sm:$0xf] }
  0x84   : > { %21211 = vmatmul.mubr.msk.bf16.gmra.mrb[20].mxu0 %vm1936_vm4, %v18388_v11  ;;  %v7081_v20 = vshll.u32 %v18248_v3, 16  ;;  %v622_v23 = vshrl.u32 %v196_v43, 16  ;;  %v628_v25 = vshll.u32 %v197_v9, 16  ;;  %v7068_v28 = vor.u32 %v7067_v16, %v7064_v8  ;;  %v18251_v63 = vld [vmem:[%s23720_s9 + $0xa0] sm:$0xf] }
  0x85   : > { %v611_v27 = vsel %vm23738_vm5, %v606_v15, %v610_v55  ;;  %v7077_v29 = vrot.slane %v7075_v13, 4  ;;  %v632_v31 = vshrl.u32 %v197_v9, 16  ;;  %v616_v10 = vrot.slane %v615_v17, 4 }
  0x86   : > { %v7083_v33 = vrot.slane %v7081_v20, 5  ;;  %v624_v34 = vrot.slane %v622_v23, 4  ;;  %v630_v36 = vrot.slane %v628_v25, 5  ;;  %v7069_v37 = vrot.slane %v7068_v28, 4  ;;  %v18252_v25 = vld [vmem:[%s23720_s9 + $0xa4] sm:$0xf] }
  0x87   : > { %v7078_v38 = vor.u32 %v7077_v29, %v7073_v18  ;;  %v634_v39 = vrot.slane %v632_v31, 4  ;;  %v638_v41 = vshll.u32 %v305_v22, 16  ;;  %v621_v42 = vsel %vm23738_vm5, %v616_v10, %v620_v14  ;;  %v18253_v29 = vld [vmem:[%s23720_s9 + $0xa8] sm:$0xf] }
  0x88   : > { %v625_v43 = vor.u32 %v624_v34, %v620_v14  ;;  %v7085_v44 = vshrl.u32 %v18248_v3, 16  ;;  %v7091_v45 = vshll.u32 %v18249_v32, 16  ;;  %v17554_v47 = vcombine.low %v611_v27, %v621_v42 }
  0x89   : > { %v7074_v48 = vsel %vm23738_vm5, %v7069_v37, %v7073_v18  ;;  %v7079_v49 = vrot.slane %v7078_v38, 4  ;;  %v635_v50 = vor.u32 %v634_v39, %v630_v36  ;;  %v640_v53 = vrot.slane %v638_v41, 5 }
  0x8a   : > { %v626_v52 = vrot.slane %v625_v43, 4  ;;  %v7087_v54 = vrot.slane %v7085_v44, 4  ;;  %v7093_v55 = vrot.slane %v7091_v45, 5  ;;  %20694 = vmatprep.mubr.msk.bf16.mxu1 %vm1936_vm4, %v17554_v47  ;;  %v7095_v60 = vshrl.u32 %v18249_v32, 16  ;;  %v201_v45 = vld [vmem:[%s23720_s9 + $0x98] sm:$0xf] }
  0x8b   : > { %v7084_v58 = vsel %vm23738_vm5, %v7079_v49, %v7083_v33  ;;  %v636_v59 = vrot.slane %v635_v50, 4  ;;  %v7101_v62 = vshll.u32 %v18250_v40, 16  ;;  %v643_v9 = vshrl.u32 %v198_v46, 16  ;;  %v306_v50 = vld [vmem:[%s23720_s9 + $0x9c] sm:$0x1] }
  0x8c   : > { %v18389_v3 = vcombine.low %v7074_v48, %v7084_v58  ;;  %v631_v5 = vsel %vm23738_vm5, %v626_v52, %v630_v36  ;;  %v7088_v6 = vor.u32 %v7087_v54, %v7083_v33  ;;  %v7097_v12 = vrot.slane %v7095_v60, 4 }
  0x8d   : > { %v641_v11 = vsel %vm23738_vm5, %v636_v59, %v640_v53  ;;  %v7103_v14 = vrot.slane %v7101_v62, 5  ;;  %v646_v8 = vshll.u32 %v198_v46, 16  ;;  %v645_v18 = vrot.slane %v643_v9, 4 }
  0x8e   : > { %21214 = vmatprep.mubr.msk.bf16.mxu0 %vm1936_vm4, %v18389_v3  ;;  %v17555_v15 = vcombine.low %v631_v5, %v641_v11  ;;  %v7089_v16 = vrot.slane %v7088_v6, 4  ;;  %v652_v13 = vshll.u32 %v199_v51, 16  ;;  %v7098_v17 = vor.u32 %v7097_v12, %v7093_v55  ;;  %v18255_v6 = vld [vmem:[%s23720_s9 + $0xb0] sm:$0x1] }
  0x8f   : > { %v648_v20 = vrot.slane %v646_v8, 5  ;;  %v656_v22 = vshrl.u32 %v199_v51, 16  ;;  %v662_v23 = vshll.u32 %v200_v57, 16  ;;  %v7106_v31 = vshrl.u32 %v18251_v63, 16  ;;  %v202_v8 = vld [vmem:[%s23720_s9 + $0xa0] sm:$0xf] }
  0x90   : > { %20695 = vmatmul.mubr.msk.bf16.gmra.mrb[24].mxu1 %vm1936_vm4, %v17555_v15  ;;  %v7094_v27 = vsel %vm23738_vm5, %v7089_v16, %v7093_v55  ;;  %v654_v28 = vrot.slane %v652_v13, 5  ;;  %v7109_v32 = vshll.u32 %v18251_v63, 16  ;;  %v7099_v10 = vrot.slane %v7098_v17, 4  ;;  %v18254_v55 = vld [vmem:[%s23720_s9 + $0xac] sm:$0xf] }
  0x91   : > { %v649_v33 = vor.u32 %v648_v20, %v645_v18  ;;  %v658_v34 = vrot.slane %v656_v22, 4  ;;  %v664_v36 = vrot.slane %v662_v23, 5  ;;  %v7108_v37 = vrot.slane %v7106_v31, 4  ;;  %v203_v17 = vld [vmem:[%s23720_s9 + $0xa4] sm:$0xf] }
  0x92   : > { %v7111_v38 = vrot.slane %v7109_v32, 5  ;;  %v7115_v39 = vshll.u32 %v18252_v25, 16  ;;  %v7119_v41 = vshrl.u32 %v18252_v25, 16  ;;  %v7104_v40 = vsel %vm23738_vm5, %v7099_v10, %v7103_v14 }
  0x93   : > { %v650_v42 = vrot.slane %v649_v33, 4  ;;  %v659_v43 = vor.u32 %v658_v34, %v654_v28  ;;  %v7125_v44 = vshll.u32 %v18253_v29, 16  ;;  %v18390_v46 = vcombine.low %v7094_v27, %v7104_v40  ;;  %v204_v27 = vld [vmem:[%s23720_s9 + $0xa8] sm:$0xf] }
  0x94   : > { %v7112_v47 = vor.u32 %v7111_v38, %v7108_v37  ;;  %v7117_v48 = vrot.slane %v7115_v39, 5  ;;  %v7121_v49 = vrot.slane %v7119_v41, 4  ;;  %v666_v54 = vshrl.u32 %v200_v57, 16  ;;  %v18256_v37 = vld [vmem:[%s23720_s9 + $0xb4] sm:$0xf] }
  0x95   : > { %v655_v51 = vsel %vm23738_vm5, %v650_v42, %v654_v28  ;;  %v660_v52 = vrot.slane %v659_v43, 4  ;;  %v7127_v53 = vrot.slane %v7125_v44, 5  ;;  %21215 = vmatmul.mubr.msk.bf16.gmra.mrb[24].mxu0 %vm1936_vm4, %v18390_v46  ;;  %v672_v60 = vshll.u32 %v201_v45, 16  ;;  %v18257_v42 = vld [vmem:[%s23720_s9 + $0xb8] sm:$0xf] }
  0x96   : > { %v7113_v58 = vrot.slane %v7112_v47, 4  ;;  %v7122_v59 = vor.u32 %v7121_v49, %v7117_v48  ;;  %v676_v62 = vshrl.u32 %v201_v45, 16  ;;  %v668_v3 = vrot.slane %v666_v54, 4 }
  0x97   : > { %v665_v63 = vsel %vm23738_vm5, %v660_v52, %v664_v36  ;;  %v682_v5 = vshll.u32 %v306_v50, 16  ;;  %v7129_v9 = vshrl.u32 %v18253_v29, 16  ;;  %v674_v14 = vrot.slane %v672_v60, 5 }
  0x98   : > { %v17556_v11 = vcombine.low %v655_v51, %v665_v63  ;;  %v7118_v57 = vsel %vm23738_vm5, %v7113_v58, %v7117_v48  ;;  %v7123_v12 = vrot.slane %v7122_v59, 4  ;;  %v669_v15 = vor.u32 %v668_v3, %v664_v36  ;;  %v18258_v59 = vld [vmem:[%s23720_s9 + $0xbc] sm:$0xf] }
  0x99   : > { %v678_v16 = vrot.slane %v676_v62, 4  ;;  %v684_v18 = vrot.slane %v682_v5, 5  ;;  %v7131_v13 = vrot.slane %v7129_v9, 4  ;;  %v7135_v22 = vshll.u32 %v18254_v55, 16  ;;  %v205_v9 = vld [vmem:[%s23720_s9 + $0xac] sm:$0xf] }
  0x9a   : > { %20698 = vmatprep.mubr.msk.bf16.mxu1 %vm1936_vm4, %v17556_v11  ;;  %v7128_v20 = vsel %vm23738_vm5, %v7123_v12, %v7127_v53  ;;  %v7139_v23 = vshrl.u32 %v18254_v55, 16  ;;  %v7145_v25 = vshll.u32 %v18255_v6, 16  ;;  %v670_v29 = vrot.slane %v669_v15, 4 }
  0x9b   : > { %v18391_v28 = vcombine.low %v7118_v57, %v7128_v20  ;;  %v679_v31 = vor.u32 %v678_v16, %v674_v14  ;;  %v7132_v32 = vor.u32 %v7131_v13, %v7127_v53  ;;  %v7137_v10 = vrot.slane %v7135_v22, 5 }
  0x9c   : > { %v7141_v33 = vrot.slane %v7139_v23, 4  ;;  %v7147_v34 = vrot.slane %v7145_v25, 5  ;;  %v687_v36 = vshrl.u32 %v202_v8, 16  ;;  %v675_v38 = vsel %vm23738_vm5, %v670_v29, %v674_v14 }
  0x9d   : > { %21218 = vmatprep.mubr.msk.bf16.mxu0 %vm1936_vm4, %v18391_v28  ;;  %v680_v39 = vrot.slane %v679_v31, 4  ;;  %v7133_v41 = vrot.slane %v7132_v32, 4  ;;  %v690_v40 = vshll.u32 %v202_v8, 16  ;;  %v696_v45 = vshll.u32 %v203_v17, 16  ;;  %v307_v8 = vld [vmem:[%s23720_s9 + $0xb0] sm:$0x1] }
  0x9e   : > { %v7142_v43 = vor.u32 %v7141_v33, %v7137_v10  ;;  %v689_v44 = vrot.slane %v687_v36, 4  ;;  %v700_v46 = vshrl.u32 %v203_v17, 16  ;;  %v706_v50 = vshll.u32 %v204_v27, 16  ;;  %v18259_v32 = vld [vmem:[%s23720_s9 + $0xc0] sm:$0xf] }
  0x9f   : > { %v685_v47 = vsel %vm23738_vm5, %v680_v39, %v684_v18  ;;  %v7138_v48 = vsel %vm23738_vm5, %v7133_v41, %v7137_v10  ;;  %v692_v49 = vrot.slane %v690_v40, 5  ;;  %v698_v53 = vrot.slane %v696_v45, 5 }
  0xa0   : > { %v17557_v51 = vcombine.low %v675_v38, %v685_v47  ;;  %v7143_v52 = vrot.slane %v7142_v43, 4  ;;  %v702_v54 = vrot.slane %v700_v46, 4  ;;  %v708_v58 = vrot.slane %v706_v50, 5  ;;  %v206_v38 = vld [vmem:[%s23720_s9 + $0xb4] sm:$0xf] }
  0xa1   : > { %v693_v55 = vor.u32 %v692_v49, %v689_v44  ;;  %v7150_v60 = vshrl.u32 %v18256_v37, 16  ;;  %v7153_v62 = vshll.u32 %v18256_v37, 16  ;;  %v7159_v5 = vshll.u32 %v18257_v42, 16  ;;  %v18260_v37 = vld [vmem:[%s23720_s9 + $0xc4] sm:$0x1] }
  0xa2   : > { %20699 = vmatmul.mubr.msk.bf16.gmra.mrb[28].mxu1 %vm1936_vm4, %v17557_v51  ;;  %v7148_v63 = vsel %vm23738_vm5, %v7143_v52, %v7147_v34  ;;  %v703_v3 = vor.u32 %v702_v54, %v698_v53  ;;  %v7163_v6 = vshrl.u32 %v18257_v42, 16  ;;  %v7169_v13 = vshll.u32 %v18258_v59, 16  ;;  %v207_v50 = vld [vmem:[%s23720_s9 + $0xb8] sm:$0xf] }
  0xa3   : > { %v18392_v11 = vcombine.low %v7138_v48, %v7148_v63  ;;  %v694_v57 = vrot.slane %v693_v55, 4  ;;  %v7152_v12 = vrot.slane %v7150_v60, 4  ;;  %v7155_v14 = vrot.slane %v7153_v62, 5 }
  0xa4   : > { %v704_v15 = vrot.slane %v703_v3, 4  ;;  %v7161_v16 = vrot.slane %v7159_v5, 5  ;;  %v7165_v18 = vrot.slane %v7163_v6, 4  ;;  %v710_v22 = vshrl.u32 %v204_v27, 16  ;;  %v208_v3 = vld [vmem:[%s23720_s9 + $0xbc] sm:$0xf] }
  0xa5   : > { %21219 = vmatmul.mubr.msk.bf16.gmra.mrb[28].mxu0 %vm1936_vm4, %v18392_v11  ;;  %v699_v17 = vsel %vm23738_vm5, %v694_v57, %v698_v53  ;;  %v7156_v20 = vor.u32 %v7155_v14, %v7152_v12  ;;  %v716_v23 = vshll.u32 %v205_v9, 16  ;;  %v7171_v29 = vrot.slane %v7169_v13, 5 }
  0xa6   : > { %v709_v25 = vsel %vm23738_vm5, %v704_v15, %v708_v58  ;;  %v7166_v28 = vor.u32 %v7165_v18, %v7161_v16  ;;  %v720_v31 = vshrl.u32 %v205_v9, 16  ;;  %v712_v34 = vrot.slane %v710_v22, 4  ;;  %v18261_v9 = vld [vmem:[%s23720_s9 + $0xc8] sm:$0xf] }
  0xa7   : > { %v17558_v10 = vcombine.low %v699_v17, %v709_v25  ;;  %v7157_v33 = vrot.slane %v7156_v20, 4  ;;  %v718_v36 = vrot.slane %v716_v23, 5  ;;  %v726_v40 = vshll.u32 %v307_v8, 16  ;;  %v18262_v8 = vld [vmem:[%s23720_s9 + $0xcc] sm:$0xf] }
  0xa8   : > { %v7167_v39 = vrot.slane %v7166_v28, 4  ;;  %v722_v41 = vrot.slane %v720_v31, 4  ;;  %v7173_v42 = vshrl.u32 %v18258_v59, 16  ;;  %v713_v43 = vor.u32 %v712_v34, %v708_v58  ;;  %v18263_v17 = vld [vmem:[%s23720_s9 + $0xd0] sm:$0xf] }
  0xa9   : > { %20702 = vmatprep.mubr.msk.bf16.mxu1 %vm1936_vm4, %v17558_v10  ;;  %v7162_v27 = vsel %vm23738_vm5, %v7157_v33, %v7161_v16  ;;  %v7179_v44 = vshll.u32 %v18259_v32, 16  ;;  %v7183_v45 = vshrl.u32 %v18259_v32, 16  ;;  %v728_v48 = vrot.slane %v726_v40, 5  ;;  %v209_v10 = vld [vmem:[%s23720_s9 + $0xc0] sm:$0xf] }
  0xaa   : > { %v7172_v46 = vsel %vm23738_vm5, %v7167_v39, %v7171_v29  ;;  %v723_v47 = vor.u32 %v722_v41, %v718_v36  ;;  %v7175_v49 = vrot.slane %v7173_v42, 4  ;;  %v714_v52 = vrot.slane %v713_v43, 4  ;;  %v308_v43 = vld [vmem:[%s23720_s9 + $0xc4] sm:$0x1] }
  0xab   : > { %v18393_v51 = vcombine.low %v7162_v27, %v7172_v46  ;;  %v7181_v53 = vrot.slane %v7179_v44, 5  ;;  %v7185_v54 = vrot.slane %v7183_v45, 4  ;;  %v7189_v60 = vshll.u32 %v18260_v37, 16 }
  0xac   : > { %v724_v55 = vrot.slane %v723_v47, 4  ;;  %v7176_v59 = vor.u32 %v7175_v49, %v7171_v29  ;;  %v731_v58 = vshrl.u32 %v206_v38, 16  ;;  %v719_v62 = vsel %vm23738_vm5, %v714_v52, %v718_v36 }
  0xad   : > { %21222 = vmatprep.mubr.msk.bf16.mxu0 %vm1936_vm4, %v18393_v51  ;;  %v7186_v63 = vor.u32 %v7185_v54, %v7181_v53  ;;  %v734_v5 = vshll.u32 %v206_v38, 16  ;;  %v740_v6 = vshll.u32 %v207_v50, 16  ;;  %v7191_v12 = vrot.slane %v7189_v60, 5 }
  0xae   : > { %v729_v11 = vsel %vm23738_vm5, %v724_v55, %v728_v48  ;;  %v7177_v57 = vrot.slane %v7176_v59, 4  ;;  %v733_v14 = vrot.slane %v731_v58, 4  ;;  %v744_v22 = vshrl.u32 %v207_v50, 16  ;;  %v18264_v50 = vld [vmem:[%s23720_s9 + $0xd4] sm:$0xf] }
  0xaf   : > { %v17559_v15 = vcombine.low %v719_v62, %v729_v11  ;;  %v7187_v16 = vrot.slane %v7186_v63, 4  ;;  %v736_v18 = vrot.slane %v734_v5, 5  ;;  %v742_v13 = vrot.slane %v740_v6, 5  ;;  %v18265_v55 = vld [vmem:[%s23720_s9 + $0xd8] sm:$0x1] }
  0xb0   : > { %v7182_v20 = vsel %vm23738_vm5, %v7177_v57, %v7181_v53  ;;  %v750_v23 = vshll.u32 %v208_v3, 16  ;;  %v7194_v25 = vshrl.u32 %v18261_v9, 16  ;;  %v7197_v31 = vshll.u32 %v18261_v9, 16  ;;  %v210_v63 = vld [vmem:[%s23720_s9 + $0xc8] sm:$0xf] }
  0xb1   : > { %20703 = vmatmul.mubr.msk.bf16.gmra.mrb[32].mxu1 %vm1936_vm4, %v17559_v15  ;;  %v7192_v28 = vsel %vm23738_vm5, %v7187_v16, %v7191_v12  ;;  %v737_v29 = vor.u32 %v736_v18, %v733_v14  ;;  %v7203_v32 = vshll.u32 %v18262_v8, 16  ;;  %v746_v34 = vrot.slane %v744_v22, 4 }
  0xb2   : > { %v18394_v33 = vcombine.low %v7182_v20, %v7192_v28  ;;  %v752_v36 = vrot.slane %v750_v23, 5  ;;  %v7196_v37 = vrot.slane %v7194_v25, 4  ;;  %v7199_v39 = vrot.slane %v7197_v31, 5  ;;  %v212_v20 = vld [vmem:[%s23720_s9 + $0xd0] sm:$0xf] }
  0xb3   : > { %v738_v38 = vrot.slane %v737_v29, 4  ;;  %v7205_v41 = vrot.slane %v7203_v32, 5  ;;  %v7207_v40 = vshrl.u32 %v18262_v8, 16  ;;  %v747_v42 = vor.u32 %v746_v34, %v742_v13  ;;  %v211_v8 = vld [vmem:[%s23720_s9 + $0xcc] sm:$0xf] }
  0xb4   : > { %21223 = vmatmul.mubr.msk.bf16.gmra.mrb[32].mxu0 %vm1936_vm4, %v18394_v33  ;;  %v7213_v27 = vshll.u32 %v18263_v17, 16  ;;  %v754_v44 = vshrl.u32 %v208_v3, 16  ;;  %v760_v45 = vshll.u32 %v209_v10, 16  ;;  %v7200_v47 = vor.u32 %v7199_v39, %v7196_v37  ;;  %v18266_v28 = vld [vmem:[%s23720_s9 + $0xdc] sm:$0xf] }
  0xb5   : > { %v743_v46 = vsel %vm23738_vm5, %v738_v38, %v742_v13  ;;  %v7209_v48 = vrot.slane %v7207_v40, 4  ;;  %v764_v49 = vshrl.u32 %v209_v10, 16  ;;  %v748_v51 = vrot.slane %v747_v42, 4  ;;  %v18267_v38 = vld [vmem:[%s23720_s9 + $0xe0] sm:$0xf] }
  0xb6   : > { %v7215_v52 = vrot.slane %v7213_v27, 5  ;;  %v756_v53 = vrot.slane %v754_v44, 4  ;;  %v762_v54 = vrot.slane %v760_v45, 5  ;;  %v7201_v59 = vrot.slane %v7200_v47, 4 }
  0xb7   : > { %v7210_v60 = vor.u32 %v7209_v48, %v7205_v41  ;;  %v766_v58 = vrot.slane %v764_v49, 4  ;;  %v770_v62 = vshll.u32 %v308_v43, 16  ;;  %v753_v3 = vsel %vm23738_vm5, %v748_v51, %v752_v36  ;;  %v18268_v48 = vld [vmem:[%s23720_s9 + $0xe4] sm:$0xf] }
  0xb8   : > { %v757_v5 = vor.u32 %v756_v53, %v752_v36  ;;  %v7217_v6 = vshrl.u32 %v18263_v17, 16  ;;  %v7223_v9 = vshll.u32 %v18264_v50, 16  ;;  %v17560_v11 = vcombine.low %v743_v46, %v753_v3 }
  0xb9   : > { %v7206_v57 = vsel %vm23738_vm5, %v7201_v59, %v7205_v41  ;;  %v7211_v12 = vrot.slane %v7210_v60, 4  ;;  %v767_v14 = vor.u32 %v766_v58, %v762_v54  ;;  %v772_v16 = vrot.slane %v770_v62, 5  ;;  %v213_v62 = vld [vmem:[%s23720_s9 + $0xd4] sm:$0xf] }
  0xba   : > { %v758_v15 = vrot.slane %v757_v5, 4  ;;  %v7219_v18 = vrot.slane %v7217_v6, 4  ;;  %v7225_v13 = vrot.slane %v7223_v9, 5  ;;  %20706 = vmatprep.mubr.msk.bf16.mxu1 %vm1936_vm4, %v17560_v11  ;;  %v7227_v23 = vshrl.u32 %v18264_v50, 16  ;;  %v309_v9 = vld [vmem:[%s23720_s9 + $0xd8] sm:$0x1] }
  0xbb   : > { %v7216_v17 = vsel %vm23738_vm5, %v7211_v12, %v7215_v52  ;;  %v768_v22 = vrot.slane %v767_v14, 4  ;;  %v7233_v25 = vshll.u32 %v18265_v55, 16  ;;  %v775_v10 = vshrl.u32 %v210_v63, 16 }
  0xbc   : > { %v18395_v29 = vcombine.low %v7206_v57, %v7216_v17  ;;  %v763_v31 = vsel %vm23738_vm5, %v758_v15, %v762_v54  ;;  %v7220_v32 = vor.u32 %v7219_v18, %v7215_v52  ;;  %v7229_v34 = vrot.slane %v7227_v23, 4 }
  0xbd   : > { %v773_v33 = vsel %vm23738_vm5, %v768_v22, %v772_v16  ;;  %v7235_v36 = vrot.slane %v7233_v25, 5  ;;  %v778_v37 = vshll.u32 %v210_v63, 16  ;;  %v777_v40 = vrot.slane %v775_v10, 4 }
  0xbe   : > { %21226 = vmatprep.mubr.msk.bf16.mxu0 %vm1936_vm4, %v18395_v29  ;;  %v17561_v39 = vcombine.low %v763_v31, %v773_v33  ;;  %v7221_v41 = vrot.slane %v7220_v32, 4  ;;  %v784_v42 = vshll.u32 %v211_v8, 16  ;;  %v7230_v27 = vor.u32 %v7229_v34, %v7225_v13  ;;  %v214_v33 = vld [vmem:[%s23720_s9 + $0xdc] sm:$0xf] }
  0xbf   : > { %v780_v43 = vrot.slane %v778_v37, 5  ;;  %v788_v44 = vshrl.u32 %v211_v8, 16  ;;  %v794_v45 = vshll.u32 %v212_v20, 16  ;;  %v7238_v49 = vshrl.u32 %v18266_v28, 16 }
  0xc0   : > { %20707 = vmatmul.mubr.msk.bf16.gmra.mrb[36].mxu1 %vm1936_vm4, %v17561_v39  ;;  %v7226_v46 = vsel %vm23738_vm5, %v7221_v41, %v7225_v13  ;;  %v786_v47 = vrot.slane %v784_v42, 5  ;;  %v7241_v50 = vshll.u32 %v18266_v28, 16  ;;  %v7231_v51 = vrot.slane %v7230_v27, 4  ;;  %v18269_v13 = vld [vmem:[%s23720_s9 + $0xe8] sm:$0xf] }
  0xc1   : > { %v781_v52 = vor.u32 %v780_v43, %v777_v40  ;;  %v790_v53 = vrot.slane %v788_v44, 4  ;;  %v796_v54 = vrot.slane %v794_v45, 5  ;;  %v7240_v55 = vrot.slane %v7238_v49, 4  ;;  %v18270_v28 = vld [vmem:[%s23720_s9 + $0xec] sm:$0x1] }
  0xc2   : > { %v7243_v59 = vrot.slane %v7241_v50, 5  ;;  %v7247_v60 = vshll.u32 %v18267_v38, 16  ;;  %v7251_v58 = vshrl.u32 %v18267_v38, 16  ;;  %v7236_v63 = vsel %vm23738_vm5, %v7231_v51, %v7235_v36  ;;  %v215_v42 = vld [vmem:[%s23720_s9 + $0xe0] sm:$0xf] }
  0xc3   : > { %v782_v3 = vrot.slane %v781_v52, 4  ;;  %v791_v5 = vor.u32 %v790_v53, %v786_v47  ;;  %v7257_v6 = vshll.u32 %v18268_v48, 16  ;;  %v18396_v11 = vcombine.low %v7226_v46, %v7236_v63  ;;  %v216_v53 = vld [vmem:[%s23720_s9 + $0xe4] sm:$0xf] }
  0xc4   : > { %v7244_v57 = vor.u32 %v7243_v59, %v7240_v55  ;;  %v7249_v12 = vrot.slane %v7247_v60, 5  ;;  %v7253_v14 = vrot.slane %v7251_v58, 4  ;;  %v798_v18 = vshrl.u32 %v212_v20, 16 }
  0xc5   : > { %v787_v8 = vsel %vm23738_vm5, %v782_v3, %v786_v47  ;;  %v792_v15 = vrot.slane %v791_v5, 4  ;;  %v7259_v16 = vrot.slane %v7257_v6, 5  ;;  %21227 = vmatmul.mubr.msk.bf16.gmra.mrb[36].mxu0 %vm1936_vm4, %v18396_v11  ;;  %v804_v23 = vshll.u32 %v213_v62, 16  ;;  %v18271_v6 = vld [vmem:[%s23720_s9 + $0xf0] sm:$0xf] }
  0xc6   : > { %v7245_v17 = vrot.slane %v7244_v57, 4  ;;  %v7254_v22 = vor.u32 %v7253_v14, %v7249_v12  ;;  %v808_v25 = vshrl.u32 %v213_v62, 16  ;;  %v800_v31 = vrot.slane %v798_v18, 4  ;;  %v18272_v14 = vld [vmem:[%s23720_s9 + $0xf4] sm:$0xf] }
  0xc7   : > { %v797_v29 = vsel %vm23738_vm5, %v792_v15, %v796_v54  ;;  %v814_v32 = vshll.u32 %v309_v9, 16  ;;  %v7261_v10 = vshrl.u32 %v18268_v48, 16  ;;  %v806_v37 = vrot.slane %v804_v23, 5 }
  0xc8   : > { %v17562_v34 = vcombine.low %v787_v8, %v797_v29  ;;  %v7250_v20 = vsel %vm23738_vm5, %v7245_v17, %v7249_v12  ;;  %v7255_v36 = vrot.slane %v7254_v22, 4  ;;  %v801_v38 = vor.u32 %v800_v31, %v796_v54  ;;  %v18273_v22 = vld [vmem:[%s23720_s9 + $0xf8] sm:$0xf] }
  0xc9   : > { %v810_v39 = vrot.slane %v808_v25, 4  ;;  %v816_v41 = vrot.slane %v814_v32, 5  ;;  %v7263_v40 = vrot.slane %v7261_v10, 4  ;;  %v7267_v43 = vshll.u32 %v18269_v13, 16  ;;  %v217_v10 = vld [vmem:[%s23720_s9 + $0xe8] sm:$0xf] }
  0xca   : > { %20710 = vmatprep.mubr.msk.bf16.mxu1 %vm1936_vm4, %v17562_v34  ;;  %v7260_v27 = vsel %vm23738_vm5, %v7255_v36, %v7259_v16  ;;  %v7271_v44 = vshrl.u32 %v18269_v13, 16  ;;  %v7277_v45 = vshll.u32 %v18270_v28, 16  ;;  %v802_v47 = vrot.slane %v801_v38, 4 }
  0xcb   : > { %v18397_v46 = vcombine.low %v7250_v20, %v7260_v27  ;;  %v811_v48 = vor.u32 %v810_v39, %v806_v37  ;;  %v7264_v49 = vor.u32 %v7263_v40, %v7259_v16  ;;  %v7269_v50 = vrot.slane %v7267_v43, 5 }
  0xcc   : > { %v7273_v51 = vrot.slane %v7271_v44, 4  ;;  %v7279_v52 = vrot.slane %v7277_v45, 5  ;;  %v819_v54 = vshrl.u32 %v214_v33, 16  ;;  %v807_v55 = vsel %vm23738_vm5, %v802_v47, %v806_v37  ;;  %v310_v37 = vld [vmem:[%s23720_s9 + $0xec] sm:$0x1] }
  0xcd   : > { %21230 = vmatprep.mubr.msk.bf16.mxu0 %vm1936_vm4, %v18397_v46  ;;  %v812_v59 = vrot.slane %v811_v48, 4  ;;  %v7265_v60 = vrot.slane %v7264_v49, 4  ;;  %v822_v58 = vshll.u32 %v214_v33, 16  ;;  %v828_v3 = vshll.u32 %v215_v42, 16 }
  0xce   : > { %v7274_v62 = vor.u32 %v7273_v51, %v7269_v50  ;;  %v821_v63 = vrot.slane %v819_v54, 4  ;;  %v832_v5 = vshrl.u32 %v215_v42, 16  ;;  %v838_v12 = vshll.u32 %v216_v53, 16  ;;  %v18274_v42 = vld [vmem:[%s23720_s9 + $0xfc] sm:$0xf] }
  0xcf   : > { %v817_v9 = vsel %vm23738_vm5, %v812_v59, %v816_v41  ;;  %v7270_v11 = vsel %vm23738_vm5, %v7265_v60, %v7269_v50  ;;  %v824_v57 = vrot.slane %v822_v58, 5  ;;  %v830_v16 = vrot.slane %v828_v3, 5  ;;  %v18275_v58 = vld [vmem:[%s23720_s9 + $0x100] sm:$0x1] }
  0xd0   : > { %v17563_v8 = vcombine.low %v807_v55, %v817_v9  ;;  %v7275_v15 = vrot.slane %v7274_v62, 4  ;;  %v834_v18 = vrot.slane %v832_v5, 4  ;;  %v840_v17 = vrot.slane %v838_v12, 5  ;;  %v219_v9 = vld [vmem:[%s23720_s9 + $0xf4] sm:$0xf] }
  0xd1   : > { %v825_v13 = vor.u32 %v824_v57, %v821_v63  ;;  %v7282_v23 = vshrl.u32 %v18271_v6, 16  ;;  %v7285_v25 = vshll.u32 %v18271_v6, 16  ;;  %v7291_v31 = vshll.u32 %v18272_v14, 16  ;;  %v218_v6 = vld [vmem:[%s23720_s9 + $0xf0] sm:$0xf] }
  0xd2   : > { %20711 = vmatmul.mubr.msk.bf16.gmra.mrb[40].mxu1 %vm1936_vm4, %v17563_v8  ;;  %v7280_v28 = vsel %vm23738_vm5, %v7275_v15, %v7279_v52  ;;  %v835_v29 = vor.u32 %v834_v18, %v830_v16  ;;  %v7295_v32 = vshrl.u32 %v18272_v14, 16  ;;  %v7301_v40 = vshll.u32 %v18273_v22, 16 }
  0xd3   : > { %v18398_v33 = vcombine.low %v7270_v11, %v7280_v28  ;;  %v826_v34 = vrot.slane %v825_v13, 4  ;;  %v7284_v20 = vrot.slane %v7282_v23, 4  ;;  %v7287_v36 = vrot.slane %v7285_v25, 5  ;;  %v220_v13 = vld [vmem:[%s23720_s9 + $0xf8] sm:$0xf] }
  0xd4   : > { %v836_v38 = vrot.slane %v835_v29, 4  ;;  %v7293_v39 = vrot.slane %v7291_v31, 5  ;;  %v7297_v41 = vrot.slane %v7295_v32, 4  ;;  %v842_v44 = vshrl.u32 %v216_v53, 16  ;;  %v18276_v28 = vld [vmem:[%s23720_s9 + $0x104] sm:$0xf] }
  0xd5   : > { %21231 = vmatmul.mubr.msk.bf16.gmra.mrb[40].mxu0 %vm1936_vm4, %v18398_v33  ;;  %v831_v27 = vsel %vm23738_vm5, %v826_v34, %v830_v16  ;;  %v7288_v43 = vor.u32 %v7287_v36, %v7284_v20  ;;  %v848_v45 = vshll.u32 %v217_v10, 16  ;;  %v7303_v48 = vrot.slane %v7301_v40, 5  ;;  %v18277_v33 = vld [vmem:[%s23720_s9 + $0x108] sm:$0xf] }
  0xd6   : > { %v841_v46 = vsel %vm23738_vm5, %v836_v38, %v840_v17  ;;  %v7298_v47 = vor.u32 %v7297_v41, %v7293_v39  ;;  %v852_v49 = vshrl.u32 %v217_v10, 16  ;;  %v844_v52 = vrot.slane %v842_v44, 4 }
  0xd7   : > { %v17564_v50 = vcombine.low %v831_v27, %v841_v46  ;;  %v7289_v51 = vrot.slane %v7288_v43, 4  ;;  %v850_v54 = vrot.slane %v848_v45, 5  ;;  %v858_v60 = vshll.u32 %v310_v37, 16  ;;  %v221_v27 = vld [vmem:[%s23720_s9 + $0xfc] sm:$0xf] }
  0xd8   : > { %v7299_v55 = vrot.slane %v7298_v47, 4  ;;  %v854_v59 = vrot.slane %v852_v49, 4  ;;  %v7305_v62 = vshrl.u32 %v18273_v22, 16  ;;  %v845_v63 = vor.u32 %v844_v52, %v840_v17 }
  0xd9   : > { %20714 = vmatprep.mubr.msk.bf16.mxu1 %vm1936_vm4, %v17564_v50  ;;  %v7294_v53 = vsel %vm23738_vm5, %v7289_v51, %v7293_v39  ;;  %v7311_v3 = vshll.u32 %v18274_v42, 16  ;;  %v7315_v5 = vshrl.u32 %v18274_v42, 16  ;;  %v860_v12 = vrot.slane %v858_v60, 5  ;;  %v18278_v42 = vld [vmem:[%s23720_s9 + $0x10c] sm:$0xf] }
  0xda   : > { %v7304_v11 = vsel %vm23738_vm5, %v7299_v55, %v7303_v48  ;;  %v855_v57 = vor.u32 %v854_v59, %v850_v54  ;;  %v7307_v14 = vrot.slane %v7305_v62, 4  ;;  %v846_v15 = vrot.slane %v845_v63, 4 }
  0xdb   : > { %v18399_v8 = vcombine.low %v7294_v53, %v7304_v11  ;;  %v7313_v16 = vrot.slane %v7311_v3, 5  ;;  %v7317_v18 = vrot.slane %v7315_v5, 4  ;;  %v7321_v17 = vshll.u32 %v18275_v58, 16  ;;  %v311_v3 = vld [vmem:[%s23720_s9 + $0x100] sm:$0x1] }
  0xdc   : > { %v856_v22 = vrot.slane %v855_v57, 4  ;;  %v7308_v23 = vor.u32 %v7307_v14, %v7303_v48  ;;  %v863_v25 = vshrl.u32 %v218_v6, 16  ;;  %v851_v29 = vsel %vm23738_vm5, %v846_v15, %v850_v54  ;;  %v18279_v14 = vld [vmem:[%s23720_s9 + $0x110] sm:$0xf] }
  0xdd   : > { %21234 = vmatprep.mubr.msk.bf16.mxu0 %vm1936_vm4, %v18399_v8  ;;  %v7318_v31 = vor.u32 %v7317_v18, %v7313_v16  ;;  %v866_v32 = vshll.u32 %v218_v6, 16  ;;  %v872_v10 = vshll.u32 %v219_v9, 16  ;;  %v7323_v36 = vrot.slane %v7321_v17, 5 }
  0xde   : > { %v861_v34 = vsel %vm23738_vm5, %v856_v22, %v860_v12  ;;  %v7309_v20 = vrot.slane %v7308_v23, 4  ;;  %v865_v37 = vrot.slane %v863_v25, 4  ;;  %v876_v44 = vshrl.u32 %v219_v9, 16 }
  0xdf   : > { %v17565_v38 = vcombine.low %v851_v29, %v861_v34  ;;  %v7319_v39 = vrot.slane %v7318_v31, 4  ;;  %v868_v41 = vrot.slane %v866_v32, 5  ;;  %v874_v40 = vrot.slane %v872_v10, 5  ;;  %v222_v10 = vld [vmem:[%s23720_s9 + $0x104] sm:$0xf] }
  0xe0   : > { %v7314_v43 = vsel %vm23738_vm5, %v7309_v20, %v7313_v16  ;;  %v882_v45 = vshll.u32 %v220_v13, 16  ;;  %v7326_v46 = vshrl.u32 %v18276_v28, 16  ;;  %v7329_v49 = vshll.u32 %v18276_v28, 16 }
  0xe1   : > { %20715 = vmatmul.mubr.msk.bf16.gmra.mrb[44].mxu1 %vm1936_vm4, %v17565_v38  ;;  %v7324_v47 = vsel %vm23738_vm5, %v7319_v39, %v7323_v36  ;;  %v869_v48 = vor.u32 %v868_v41, %v865_v37  ;;  %v7335_v50 = vshll.u32 %v18277_v33, 16  ;;  %v878_v52 = vrot.slane %v876_v44, 4  ;;  %v223_v37 = vld [vmem:[%s23720_s9 + $0x108] sm:$0xf] }
  0xe2   : > { %v18400_v51 = vcombine.low %v7314_v43, %v7324_v47  ;;  %v884_v54 = vrot.slane %v882_v45, 5  ;;  %v7328_v55 = vrot.slane %v7326_v46, 4  ;;  %v7331_v60 = vrot.slane %v7329_v49, 5  ;;  %v18281_v46 = vld [vmem:[%s23720_s9 + $0x118] sm:$0xf] }
  0xe3   : > { %v870_v59 = vrot.slane %v869_v48, 4  ;;  %v7337_v58 = vrot.slane %v7335_v50, 5  ;;  %v7339_v62 = vshrl.u32 %v18277_v33, 16  ;;  %v879_v53 = vor.u32 %v878_v52, %v874_v40 }
  0xe4   : > { %21235 = vmatmul.mubr.msk.bf16.gmra.mrb[44].mxu0 %vm1936_vm4, %v18400_v51  ;;  %v7345_v63 = vshll.u32 %v18278_v42, 16  ;;  %v886_v5 = vshrl.u32 %v220_v13, 16  ;;  %v892_v6 = vshll.u32 %v221_v27, 16  ;;  %v7332_v11 = vor.u32 %v7331_v60, %v7328_v55  ;;  %v18280_v13 = vld [vmem:[%s23720_s9 + $0x114] sm:$0x1] }
  0xe5   : > { %v875_v9 = vsel %vm23738_vm5, %v870_v59, %v874_v40  ;;  %v7341_v57 = vrot.slane %v7339_v62, 4  ;;  %v896_v12 = vshrl.u32 %v221_v27, 16  ;;  %v880_v8 = vrot.slane %v879_v53, 4  ;;  %v224_v27 = vld [vmem:[%s23720_s9 + $0x10c] sm:$0xf] }
  0xe6   : > { %v7347_v15 = vrot.slane %v7345_v63, 5  ;;  %v888_v16 = vrot.slane %v886_v5, 4  ;;  %v894_v18 = vrot.slane %v892_v6, 5  ;;  %v7333_v22 = vrot.slane %v7332_v11, 4  ;;  %v18282_v6 = vld [vmem:[%s23720_s9 + $0x11c] sm:$0xf] }
  0xe7   : > { %v7342_v23 = vor.u32 %v7341_v57, %v7337_v58  ;;  %v898_v17 = vrot.slane %v896_v12, 4  ;;  %v902_v25 = vshll.u32 %v311_v3, 16  ;;  %v885_v28 = vsel %vm23738_vm5, %v880_v8, %v884_v54  ;;  %v18283_v57 = vld [vmem:[%s23720_s9 + $0x120] sm:$0xf] }
  0xe8   : > { %v889_v29 = vor.u32 %v888_v16, %v884_v54  ;;  %v7349_v31 = vshrl.u32 %v18278_v42, 16  ;;  %v7355_v32 = vshll.u32 %v18279_v14, 16  ;;  %v17566_v33 = vcombine.low %v875_v9, %v885_v28 }
  0xe9   : > { %v7338_v34 = vsel %vm23738_vm5, %v7333_v22, %v7337_v58  ;;  %v7343_v20 = vrot.slane %v7342_v23, 4  ;;  %v899_v36 = vor.u32 %v898_v17, %v894_v18  ;;  %v904_v39 = vrot.slane %v902_v25, 5 }
  0xea   : > { %v890_v38 = vrot.slane %v889_v29, 4  ;;  %v7351_v41 = vrot.slane %v7349_v31, 4  ;;  %v7357_v40 = vrot.slane %v7355_v32, 5  ;;  %20718 = vmatprep.mubr.msk.bf16.mxu1 %vm1936_vm4, %v17566_v33  ;;  %v7359_v44 = vshrl.u32 %v18279_v14, 16  ;;  %v225_v32 = vld [vmem:[%s23720_s9 + $0x110] sm:$0xf] }
  0xeb   : > { %v7348_v42 = vsel %vm23738_vm5, %v7343_v20, %v7347_v15  ;;  %v900_v43 = vrot.slane %v899_v36, 4  ;;  %v7365_v45 = vshll.u32 %v18280_v13, 16  ;;  %v907_v50 = vshrl.u32 %v222_v10, 16  ;;  %v312_v36 = vld [vmem:[%s23720_s9 + $0x114] sm:$0x1] }
  0xec   : > { %v18401_v47 = vcombine.low %v7338_v34, %v7348_v42  ;;  %v895_v48 = vsel %vm23738_vm5, %v890_v38, %v894_v18  ;;  %v7352_v49 = vor.u32 %v7351_v41, %v7347_v15  ;;  %v7361_v52 = vrot.slane %v7359_v44, 4  ;;  %v18285_v42 = vld [vmem:[%s23720_s9 + $0x128] sm:$0x1] }
  0xed   : > { %v905_v51 = vsel %vm23738_vm5, %v900_v43, %v904_v39  ;;  %v7367_v54 = vrot.slane %v7365_v45, 5  ;;  %v910_v55 = vshll.u32 %v222_v10, 16  ;;  %v909_v58 = vrot.slane %v907_v50, 4 }
  0xee   : > { %21238 = vmatprep.mubr.msk.bf16.mxu0 %vm1936_vm4, %v18401_v47  ;;  %v17567_v59 = vcombine.low %v895_v48, %v905_v51  ;;  %v7353_v60 = vrot.slane %v7352_v49, 4  ;;  %v916_v62 = vshll.u32 %v223_v37, 16  ;;  %v7362_v53 = vor.u32 %v7361_v52, %v7357_v40 }
  0xef   : > { %v912_v63 = vrot.slane %v910_v55, 5  ;;  %v920_v3 = vshrl.u32 %v223_v37, 16  ;;  %v926_v5 = vshll.u32 %v224_v27, 16  ;;  %v7370_v12 = vshrl.u32 %v18281_v46, 16 }
  0xf0   : > { %20719 = vmatmul.mubr.msk.bf16.gmra.mrb[48].mxu1 %vm1936_vm4, %v17567_v59  ;;  %v7358_v9 = vsel %vm23738_vm5, %v7353_v60, %v7357_v40  ;;  %v918_v11 = vrot.slane %v916_v62, 5  ;;  %v7373_v14 = vshll.u32 %v18281_v46, 16  ;;  %v7363_v8 = vrot.slane %v7362_v53, 4  ;;  %v18284_v40 = vld [vmem:[%s23720_s9 + $0x124] sm:$0xf] }
  0xf1   : > { %v913_v15 = vor.u32 %v912_v63, %v909_v58  ;;  %v922_v16 = vrot.slane %v920_v3, 4  ;;  %v928_v18 = vrot.slane %v926_v5, 5  ;;  %v7372_v22 = vrot.slane %v7370_v12, 4  ;;  %v226_v62 = vld [vmem:[%s23720_s9 + $0x118] sm:$0xf] }
  0xf2   : > { %v7375_v23 = vrot.slane %v7373_v14, 5  ;;  %v7379_v17 = vshll.u32 %v18282_v6, 16  ;;  %v7383_v25 = vshrl.u32 %v18282_v6, 16  ;;  %v7368_v13 = vsel %vm23738_vm5, %v7363_v8, %v7367_v54  ;;  %v227_v12 = vld [vmem:[%s23720_s9 + $0x11c] sm:$0xf] }
  0xf3   : > { %v914_v28 = vrot.slane %v913_v15, 4  ;;  %v923_v29 = vor.u32 %v922_v16, %v918_v11  ;;  %v7389_v31 = vshll.u32 %v18283_v57, 16  ;;  %v18402_v10 = vcombine.low %v7358_v9, %v7368_v13  ;;  %v228_v14 = vld [vmem:[%s23720_s9 + $0x120] sm:$0xf] }
  0xf4   : > { %v7376_v33 = vor.u32 %v7375_v23, %v7372_v22  ;;  %v7381_v34 = vrot.slane %v7379_v17, 5  ;;  %v7385_v20 = vrot.slane %v7383_v25, 4  ;;  %v930_v41 = vshrl.u32 %v224_v27, 16  ;;  %v18286_v22 = vld [vmem:[%s23720_s9 + $0x12c] sm:$0xf] }
  0xf5   : > { %v919_v37 = vsel %vm23738_vm5, %v914_v28, %v918_v11  ;;  %v924_v38 = vrot.slane %v923_v29, 4  ;;  %v7391_v39 = vrot.slane %v7389_v31, 5  ;;  %21239 = vmatmul.mubr.msk.bf16.gmra.mrb[48].mxu0 %vm1936_vm4, %v18402_v10  ;;  %v936_v45 = vshll.u32 %v225_v32, 16  ;;  %v18287_v10 = vld [vmem:[%s23720_s9 + $0x130] sm:$0xf] }
  0xf6   : > { %v7377_v43 = vrot.slane %v7376_v33, 4  ;;  %v7386_v44 = vor.u32 %v7385_v20, %v7381_v34  ;;  %v940_v46 = vshrl.u32 %v225_v32, 16  ;;  %v932_v48 = vrot.slane %v930_v41, 4 }
  0xf7   : > { %v929_v47 = vsel %vm23738_vm5, %v924_v38, %v928_v18  ;;  %v946_v49 = vshll.u32 %v312_v36, 16  ;;  %v7393_v50 = vshrl.u32 %v18283_v57, 16  ;;  %v938_v54 = vrot.slane %v936_v45, 5 }
  0xf8   : > { %v17568_v51 = vcombine.low %v919_v37, %v929_v47  ;;  %v7382_v52 = vsel %vm23738_vm5, %v7377_v43, %v7381_v34  ;;  %v7387_v27 = vrot.slane %v7386_v44, 4  ;;  %v933_v55 = vor.u32 %v932_v48, %v928_v18  ;;  %v18288_v37 = vld [vmem:[%s23720_s9 + $0x134] sm:$0xf] }
  0xf9   : > { %v942_v59 = vrot.slane %v940_v46, 4  ;;  %v948_v60 = vrot.slane %v946_v49, 5  ;;  %v7395_v58 = vrot.slane %v7393_v50, 4  ;;  %v7399_v63 = vshll.u32 %v18284_v40, 16 }
  0xfa   : > { %20722 = vmatprep.mubr.msk.bf16.mxu1 %vm1936_vm4, %v17568_v51  ;;  %v7392_v53 = vsel %vm23738_vm5, %v7387_v27, %v7391_v39  ;;  %v7403_v3 = vshrl.u32 %v18284_v40, 16  ;;  %v7409_v5 = vshll.u32 %v18285_v42, 16  ;;  %v934_v9 = vrot.slane %v933_v55, 4  ;;  %v229_v42 = vld [vmem:[%s23720_s9 + $0x124] sm:$0xf] }
  0xfb   : > { %v18403_v6 = vcombine.low %v7382_v52, %v7392_v53  ;;  %v943_v11 = vor.u32 %v942_v59, %v938_v54  ;;  %v7396_v57 = vor.u32 %v7395_v58, %v7391_v39  ;;  %v7401_v8 = vrot.slane %v7399_v63, 5  ;;  %v313_v63 = vld [vmem:[%s23720_s9 + $0x128] sm:$0x1] }
  0xfc   : > { %v7405_v15 = vrot.slane %v7403_v3, 4  ;;  %v7411_v16 = vrot.slane %v7409_v5, 5  ;;  %v951_v18 = vshrl.u32 %v226_v62, 16  ;;  %v939_v23 = vsel %vm23738_vm5, %v934_v9, %v938_v54 }
  0xfd   : > { %21242 = vmatprep.mubr.msk.bf16.mxu0 %vm1936_vm4, %v18403_v6  ;;  %v944_v17 = vrot.slane %v943_v11, 4  ;;  %v7397_v25 = vrot.slane %v7396_v57, 4  ;;  %v954_v13 = vshll.u32 %v226_v62, 16  ;;  %v960_v31 = vshll.u32 %v227_v12, 16 }
  0xfe   : > { %v7406_v28 = vor.u32 %v7405_v15, %v7401_v8  ;;  %v953_v29 = vrot.slane %v951_v18, 4  ;;  %v964_v32 = vshrl.u32 %v227_v12, 16  ;;  %v970_v36 = vshll.u32 %v228_v14, 16  ;;  %v18289_v12 = vld [vmem:[%s23720_s9 + $0x138] sm:$0xf] }
  0xff   : > { %v949_v33 = vsel %vm23738_vm5, %v944_v17, %v948_v60  ;;  %v7402_v34 = vsel %vm23738_vm5, %v7397_v25, %v7401_v8  ;;  %v956_v20 = vrot.slane %v954_v13, 5  ;;  %v962_v41 = vrot.slane %v960_v31, 5 }
 0x100   : > { %v17569_v38 = vcombine.low %v939_v23, %v949_v33  ;;  %v7407_v39 = vrot.slane %v7406_v28, 4  ;;  %v966_v40 = vrot.slane %v964_v32, 4  ;;  %v972_v44 = vrot.slane %v970_v36, 5  ;;  %v230_v23 = vld [vmem:[%s23720_s9 + $0x12c] sm:$0xf] }
 0x101   : > { %v957_v43 = vor.u32 %v956_v20, %v953_v29  ;;  %v7414_v45 = vshrl.u32 %v18286_v22, 16  ;;  %v7417_v46 = vshll.u32 %v18286_v22, 16  ;;  %v7423_v49 = vshll.u32 %v18287_v10, 16  ;;  %v18290_v22 = vld [vmem:[%s23720_s9 + $0x13c] sm:$0x1] }
 0x102   : > { %20723 = vmatmul.mubr.msk.bf16.gmra.mrb[52].mxu1 %vm1936_vm4, %v17569_v38  ;;  %v7412_v47 = vsel %vm23738_vm5, %v7407_v39, %v7411_v16  ;;  %v967_v48 = vor.u32 %v966_v40, %v962_v41  ;;  %v7427_v50 = vshrl.u32 %v18287_v10, 16  ;;  %v7433_v58 = vshll.u32 %v18288_v37, 16  ;;  %v231_v36 = vld [vmem:[%s23720_s9 + $0x130] sm:$0xf]  ;;  %v232_v40 = vld [vmem:[%s23720_s9 + $0x134] sm:$0xf] }
 0x103   : > { %v18404_v51 = vcombine.low %v7402_v34, %v7412_v47  ;;  %v958_v52 = vrot.slane %v957_v43, 4  ;;  %v7416_v27 = vrot.slane %v7414_v45, 4  ;;  %v7419_v54 = vrot.slane %v7417_v46, 5  ;;  %v18292_v47 = vld [vmem:[%s23720_s9 + $0x144] sm:$0xf] }
 0x104   : > { %v968_v55 = vrot.slane %v967_v48, 4  ;;  %v7425_v59 = vrot.slane %v7423_v49, 5  ;;  %v7429_v60 = vrot.slane %v7427_v50, 4  ;;  %v974_v3 = vshrl.u32 %v228_v14, 16 }
 0x105   : > { %21243 = vmatmul.mubr.msk.bf16.gmra.mrb[52].mxu0 %vm1936_vm4, %v18404_v51  ;;  %v963_v62 = vsel %vm23738_vm5, %v958_v52, %v962_v41  ;;  %v7420_v53 = vor.u32 %v7419_v54, %v7416_v27  ;;  %v980_v5 = vshll.u32 %v229_v42, 16  ;;  %v7435_v11 = vrot.slane %v7433_v58, 5 }
 0x106   : > { %v973_v6 = vsel %vm23738_vm5, %v968_v55, %v972_v44  ;;  %v7430_v9 = vor.u32 %v7429_v60, %v7425_v59  ;;  %v984_v57 = vshrl.u32 %v229_v42, 16  ;;  %v976_v16 = vrot.slane %v974_v3, 4  ;;  %v18291_v42 = vld [vmem:[%s23720_s9 + $0x140] sm:$0xf] }
 0x107   : > { %v17570_v8 = vcombine.low %v963_v62, %v973_v6  ;;  %v7421_v15 = vrot.slane %v7420_v53, 4  ;;  %v982_v18 = vrot.slane %v980_v5, 5  ;;  %v990_v13 = vshll.u32 %v313_v63, 16 }
 0x108   : > { %v7431_v17 = vrot.slane %v7430_v9, 4  ;;  %v986_v25 = vrot.slane %v984_v57, 4  ;;  %v7437_v14 = vshrl.u32 %v18288_v37, 16  ;;  %v977_v29 = vor.u32 %v976_v16, %v972_v44 }
 0x109   : > { %20726 = vmatprep.mubr.msk.bf16.mxu1 %vm1936_vm4, %v17570_v8  ;;  %v7426_v28 = vsel %vm23738_vm5, %v7421_v15, %v7425_v59  ;;  %v7443_v31 = vshll.u32 %v18289_v12, 16  ;;  %v7447_v32 = vshrl.u32 %v18289_v12, 16  ;;  %v992_v34 = vrot.slane %v990_v13, 5  ;;  %v233_v8 = vld [vmem:[%s23720_s9 + $0x138] sm:$0xf] }
 0x10a   : > { %v7436_v10 = vsel %vm23738_vm5, %v7431_v17, %v7435_v11  ;;  %v987_v33 = vor.u32 %v986_v25, %v982_v18  ;;  %v7439_v20 = vrot.slane %v7437_v14, 4  ;;  %v978_v39 = vrot.slane %v977_v29, 4 }
 0x10b   : > { %v18405_v38 = vcombine.low %v7426_v28, %v7436_v10  ;;  %v7445_v37 = vrot.slane %v7443_v31, 5  ;;  %v7449_v41 = vrot.slane %v7447_v32, 4  ;;  %v7453_v46 = vshll.u32 %v18290_v22, 16 }
 0x10c   : > { %v988_v43 = vrot.slane %v987_v33, 4  ;;  %v7440_v45 = vor.u32 %v7439_v20, %v7435_v11  ;;  %v995_v44 = vshrl.u32 %v230_v23, 16  ;;  %v983_v48 = vsel %vm23738_vm5, %v978_v39, %v982_v18  ;;  %v18293_v11 = vld [vmem:[%s23720_s9 + $0x148] sm:$0xf] }
 0x10d   : > { %21246 = vmatprep.mubr.msk.bf16.mxu0 %vm1936_vm4, %v18405_v38  ;;  %v7450_v49 = vor.u32 %v7449_v41, %v7445_v37  ;;  %v998_v50 = vshll.u32 %v230_v23, 16  ;;  %v1004_v51 = vshll.u32 %v231_v36, 16  ;;  %v7455_v54 = vrot.slane %v7453_v46, 5  ;;  %v314_v23 = vld [vmem:[%s23720_s9 + $0x13c] sm:$0x1] }
 0x10e   : > { %v993_v52 = vsel %vm23738_vm5, %v988_v43, %v992_v34  ;;  %v7441_v27 = vrot.slane %v7440_v45, 4  ;;  %v997_v55 = vrot.slane %v995_v44, 4  ;;  %v1008_v63 = vshrl.u32 %v231_v36, 16  ;;  %v18294_v36 = vld [vmem:[%s23720_s9 + $0x14c] sm:$0xf] }
 0x10f   : > { %v17571_v59 = vcombine.low %v983_v48, %v993_v52  ;;  %v7451_v60 = vrot.slane %v7450_v49, 4  ;;  %v1000_v58 = vrot.slane %v998_v50, 5  ;;  %v1006_v62 = vrot.slane %v1004_v51, 5 }
 0x110   : > { %v7446_v53 = vsel %vm23738_vm5, %v7441_v27, %v7445_v37  ;;  %v1014_v3 = vshll.u32 %v232_v40, 16  ;;  %v7458_v5 = vshrl.u32 %v18291_v42, 16  ;;  %v7461_v57 = vshll.u32 %v18291_v42, 16  ;;  %v18295_v42 = vld [vmem:[%s23720_s9 + $0x150] sm:$0x1] }
 0x111   : > { %20727 = vmatmul.mubr.msk.bf16.gmra.mrb[56].mxu1 %vm1936_vm4, %v17571_v59  ;;  %v7456_v6 = vsel %vm23738_vm5, %v7451_v60, %v7455_v54  ;;  %v1001_v9 = vor.u32 %v1000_v58, %v997_v55  ;;  %v7467_v12 = vshll.u32 %v18292_v47, 16  ;;  %v1010_v16 = vrot.slane %v1008_v63, 4  ;;  %v235_v55 = vld [vmem:[%s23720_s9 + $0x144] sm:$0xf] }
 0x112   : > { %v18406_v15 = vcombine.low %v7446_v53, %v7456_v6  ;;  %v1016_v18 = vrot.slane %v1014_v3, 5  ;;  %v7460_v22 = vrot.slane %v7458_v5, 4  ;;  %v7463_v25 = vrot.slane %v7461_v57, 5  ;;  %v236_v57 = vld [vmem:[%s23720_s9 + $0x148] sm:$0xf] }
 0x113   : > { %v1002_v17 = vrot.slane %v1001_v9, 4  ;;  %v7469_v13 = vrot.slane %v7467_v12, 5  ;;  %v7471_v14 = vshrl.u32 %v18292_v47, 16  ;;  %v1011_v28 = vor.u32 %v1010_v16, %v1006_v62 }
 0x114   : > { %21247 = vmatmul.mubr.msk.bf16.gmra.mrb[56].mxu0 %vm1936_vm4, %v18406_v15  ;;  %v7477_v29 = vshll.u32 %v18293_v11, 16  ;;  %v1018_v31 = vshrl.u32 %v232_v40, 16  ;;  %v1024_v32 = vshll.u32 %v233_v8, 16  ;;  %v7464_v33 = vor.u32 %v7463_v25, %v7460_v22  ;;  %v234_v40 = vld [vmem:[%s23720_s9 + $0x140] sm:$0xf] }
 0x115   : > { %v1007_v10 = vsel %vm23738_vm5, %v1002_v17, %v1006_v62  ;;  %v7473_v34 = vrot.slane %v7471_v14, 4  ;;  %v1028_v20 = vshrl.u32 %v233_v8, 16  ;;  %v1012_v38 = vrot.slane %v1011_v28, 4  ;;  %v18505_v22 = vld [vmem:[%s23720_s9 + $0x14] sm:$0xe] }
 0x116   : > { %v7479_v39 = vrot.slane %v7477_v29, 5  ;;  %v1020_v37 = vrot.slane %v1018_v31, 4  ;;  %v1026_v41 = vrot.slane %v1024_v32, 5  ;;  %v7465_v43 = vrot.slane %v7464_v33, 4  ;;  %v18826_v14 = vld [vmem:[%s29648_s1 + $0xc] sm:$0x3] }
 0x117   : > { %v7474_v45 = vor.u32 %v7473_v34, %v7469_v13  ;;  %v1030_v46 = vrot.slane %v1028_v20, 4  ;;  %v1034_v44 = vshll.u32 %v314_v23, 16  ;;  %v1017_v47 = vsel %vm23738_vm5, %v1012_v38, %v1016_v18  ;;  %v237_v28 = vld [vmem:[%s23720_s9 + $0x14c] sm:$0xf] }
 0x118   : > { %v1021_v48 = vor.u32 %v1020_v37, %v1016_v18  ;;  %v7481_v49 = vshrl.u32 %v18293_v11, 16  ;;  %v7487_v50 = vshll.u32 %v18294_v36, 16  ;;  %v17572_v51 = vcombine.low %v1007_v10, %v1017_v47 }
 0x119   : > { %v7470_v52 = vsel %vm23738_vm5, %v7465_v43, %v7469_v13  ;;  %v7475_v27 = vrot.slane %v7474_v45, 4  ;;  %v1031_v54 = vor.u32 %v1030_v46, %v1026_v41  ;;  %v1036_v60 = vrot.slane %v1034_v44, 5  ;;  %v238_v44 = vld [vmem:[%s23720_s9 + $0x154] sm:$0xf] }
 0x11a   : > { %v1022_v59 = vrot.slane %v1021_v48, 4  ;;  %v7483_v58 = vrot.slane %v7481_v49, 4  ;;  %v7489_v62 = vrot.slane %v7487_v50, 5  ;;  %20730 = vmatprep.mubr.msk.bf16.mxu1 %vm1936_vm4, %v17572_v51  ;;  %v7491_v3 = vshrl.u32 %v18294_v36, 16 }
 0x11b   : > { %v7480_v53 = vsel %vm23738_vm5, %v7475_v27, %v7479_v39  ;;  %v1032_v63 = vrot.slane %v1031_v54, 4  ;;  %v7497_v5 = vshll.u32 %v18295_v42, 16  ;;  %v1039_v12 = vshrl.u32 %v234_v40, 16  ;;  %v239_v54 = vld [vmem:[%s23720_s9 + $0x158] sm:$0xf] }
 0x11c   : > { %v18407_v6 = vcombine.low %v7470_v52, %v7480_v53  ;;  %v1027_v9 = vsel %vm23738_vm5, %v1022_v59, %v1026_v41  ;;  %v7484_v11 = vor.u32 %v7483_v58, %v7479_v39  ;;  %v7493_v15 = vrot.slane %v7491_v3, 4  ;;  %v315_v41 = vld [vmem:[%s23720_s9 + $0x150] sm:$0x1] }
 0x11d   : > { %v1037_v8 = vsel %vm23738_vm5, %v1032_v63, %v1036_v60  ;;  %v7499_v16 = vrot.slane %v7497_v5, 5  ;;  %v1042_v18 = vshll.u32 %v234_v40, 16  ;;  %v1041_v25 = vrot.slane %v1039_v12, 4  ;;  %v240_v63 = vld [vmem:[%s23720_s9 + $0x15c] sm:$0xf] }
 0x11e   : > { %21250 = vmatprep.mubr.msk.bf16.mxu0 %vm1936_vm4, %v18407_v6  ;;  %v17573_v23 = vcombine.low %v1027_v9, %v1037_v8  ;;  %v7485_v17 = vrot.slane %v7484_v11, 4  ;;  %v1048_v13 = vshll.u32 %v235_v55, 16  ;;  %v7494_v29 = vor.u32 %v7493_v15, %v7489_v62  ;;  %v241_v15 = vld [vmem:[%s23720_s9 + $0x160] sm:$0xf] }
 0x11f   : > { %v1044_v31 = vrot.slane %v1042_v18, 5  ;;  %v1052_v32 = vshrl.u32 %v235_v55, 16  ;;  %v1058_v10 = vshll.u32 %v236_v57, 16  ;;  %v18537_v42 = vrot.slane %v18505_v22, 9 }
 0x120   : > { %20731 = vmatmul.mubr.msk.bf16.gmra.mrb[60].mxu1 %vm1936_vm4, %v17573_v23  ;;  %v7490_v33 = vsel %vm23738_vm5, %v7485_v17, %v7489_v62  ;;  %v1050_v34 = vrot.slane %v1048_v13, 5  ;;  %v7495_v20 = vrot.slane %v7494_v29, 4  ;;  %v9463_v43 = vrot.slane %v9461_v0, 4  ;;  %v23099_v17 = vld [vmem:[%s23720_s9 + $0x2c] sm:$0xf] }
 0x121   : > { %v1045_v36 = vor.u32 %v1044_v31, %v1041_v25  ;;  %v1054_v38 = vrot.slane %v1052_v32, 4  ;;  %v1060_v39 = vrot.slane %v1058_v10, 5  ;;  %v24252_v45 = vand.u32 %v18826_v14, %v23696_v4  ;;  %v23100_v29 = vld [vmem:[%s23720_s9 + $0x30] sm:$0xf]  ;;  %v316_v32 = vld [vmem:[%s23720_s9 + $0x164] sm:$0x1] }
 0x122   : > { %v1062_v46 = vshrl.u32 %v236_v57, 16  ;;  %v7500_v40 = vsel %vm23738_vm5, %v7495_v20, %v7499_v16  ;;  %v1068_v49 = vshll.u32 %v237_v28, 16  ;;  %v9462_v51 = vsel %vm24244_vm8, %v18537_v42, %v9461_v0 }
 0x123   : > { %v1046_v47 = vrot.slane %v1045_v36, 4  ;;  %v1055_v48 = vor.u32 %v1054_v38, %v1050_v34  ;;  %v18408_v50 = vcombine.low %v7490_v33, %v7500_v40  ;;  %v9465_v52 = vsel %vm24244_vm8, %v9463_v43, %v9464_v56  ;;  %21448 = vmatprep.subr.bf16.mxu0 %v24252_v45  ;;  %v242_v36 = vld [vmem:[%s23720_s9 + $0x168] sm:$0xf] }
 0x124   : > { %v1064_v27 = vrot.slane %v1062_v46, 4  ;;  %v18570_v60 = vcombine.low %v9462_v51, %v9465_v52  ;;  %v1070_v58 = vrot.slane %v1068_v49, 5  ;;  %v1072_v0 = vshrl.u32 %v237_v28, 16  ;;  %v243_v51 = vld [vmem:[%s23720_s9 + $0x16c] sm:$0xf] }
 0x125   : > { %v1051_v55 = vsel %vm23738_vm5, %v1046_v47, %v1050_v34  ;;  %v1056_v59 = vrot.slane %v1055_v48, 4  ;;  %21251 = vmatmul.mubr.msk.bf16.gmra.mrb[60].mxu0 %vm1936_vm4, %v18408_v50  ;;  %v1078_v26 = vshll.u32 %v315_v41, 16  ;;  %v9468_v56 = vsel %vm24244_vm8, %v23760_v1, %v9467_v19  ;;  %v18506_v19 = vld [vmem:[%s23720_s9 + $0x28] sm:$0xe]  ;;  %v244_v52 = vld [vmem:[%s23720_s9 + $0x170] sm:$0xf] }
 0x126   : > { %v1065_v21 = vor.u32 %v1064_v27, %v1060_v39  ;;  %21320 = vmatprep.mubr.msk.bf16.mxu0 %vm1936_vm4, %v18570_v60  ;;  %v9471_v53 = vsel %vm24244_vm8, %v23780_v30, %v9470_v24  ;;  %v1083_v3 = vshrl.u32 %v238_v44, 16  ;;  %v1086_v5 = vshll.u32 %v238_v44, 16 }
 0x127   : > { %v1061_v62 = vsel %vm23738_vm5, %v1056_v59, %v1060_v39  ;;  %v1074_v9 = vrot.slane %v1072_v0, 4  ;;  %v1080_v1 = vrot.slane %v1078_v26, 5  ;;  %v18571_v11 = vcombine.low %v9468_v56, %v9471_v53 }
 0x128   : > { %v17574_v61 = vcombine.low %v1051_v55, %v1061_v62  ;;  %v1066_v6 = vrot.slane %v1065_v21, 4  ;;  %v1085_v57 = vrot.slane %v1083_v3, 4  ;;  %v1088_v12 = vrot.slane %v1086_v5, 5  ;;  %v23101_v55 = vld [vmem:[%s23720_s9 + $0x34] sm:$0xf] }
 0x129   : > { %v1092_v8 = vshll.u32 %v239_v54, 16  ;;  %v1075_v24 = vor.u32 %v1074_v9, %v1070_v58  ;;  %v1096_v30 = vshrl.u32 %v239_v54, 16  ;;  %v1102_v16 = vshll.u32 %v240_v63, 16  ;;  %v23102_v21 = vld [vmem:[%s23720_s9 + $0x38] sm:$0x1] }
 0x12a   : > { %20734 = vmatprep.mubr.msk.bf16.mxu1 %vm1936_vm4, %v17574_v61  ;;  %v1071_v2 = vsel %vm23738_vm5, %v1066_v6, %v1070_v58  ;;  %v1089_v18 = vor.u32 %v1088_v12, %v1085_v57  ;;  %v18538_v23 = vrot.slane %v18506_v19, 9  ;;  %v9474_v25 = vrot.slane %v23099_v17, 5  ;;  %v18507_v3 = vld [vmem:[%s23720_s9 + $0x3c] sm:$0xe] }
 0x12b   : > { %v1094_v22 = vrot.slane %v1092_v8, 5  ;;  %v1076_v13 = vrot.slane %v1075_v24, 4  ;;  %v1098_v14 = vrot.slane %v1096_v30, 4  ;;  %v1104_v28 = vrot.slane %v1102_v16, 5  ;;  %v317_v8 = vld [vmem:[%s23720_s9 + $0x178] sm:$0x1] }
 0x12c   : > { %v9477_v31 = vrot.slane %v23100_v29, 5  ;;  %v1090_v10 = vrot.slane %v1089_v18, 4  ;;  %v9475_v33 = vsel %vm24244_vm8, %v18538_v23, %v9474_v25  ;;  %v9476_v34 = vrot.slane %v9474_v25, 4 }
 0x12d   : > { %v1106_v20 = vshrl.u32 %v240_v63, 16  ;;  %v1081_v38 = vsel %vm23738_vm5, %v1076_v13, %v1080_v1  ;;  %21321 = vmatmul.mubr.msk.bf16.vlgmr.msra.gmra.mrb[0].mxu0 %vm1936_vm4, %v18571_v11  ;;  %v1099_v39 = vor.u32 %v1098_v14, %v1094_v22  ;;  %v1112_v41 = vshll.u32 %v241_v15, 16  ;;  %v245_v1 = vld [vmem:[%s23720_s9 + $0x174] sm:$0xf]  ;;  %v23103_v13 = vld [vmem:[%s23720_s9 + $0x40] sm:$0xf] }
 0x12e   : > { %v1116_v42 = vshrl.u32 %v241_v15, 16  ;;  %v17575_v43 = vcombine.low %v1071_v2, %v1081_v38  ;;  %21449 = vmatpush3.bf16.msra.mxu0 %v24252_v45  ;;  %v1095_v46 = vsel %vm23738_vm5, %v1090_v10, %v1094_v22  ;;  %v9478_v44 = vsel %vm24244_vm8, %v9476_v34, %v9477_v31  ;;  %v246_v34 = vld [vmem:[%s23720_s9 + $0x17c] sm:$0xf] }
 0x12f   : > { %v1108_v40 = vrot.slane %v1106_v20, 4  ;;  %v1100_v47 = vrot.slane %v1099_v39, 4  ;;  %v18572_v48 = vcombine.low %v9475_v33, %v9478_v44  ;;  %v1114_v49 = vrot.slane %v1112_v41, 5  ;;  %v247_v41 = vld [vmem:[%s23720_s9 + $0x180] sm:$0xf] }
 0x130   : > { %v1118_v50 = vrot.slane %v1116_v42, 4  ;;  %20735 = vmatmul.mubr.msk.bf16.gmra.mrb[64].mxu1 %vm1936_vm4, %v17575_v43  ;;  %v1122_v54 = vshll.u32 %v316_v32, 16  ;;  %v9479_v45 = vrot.slane %v9477_v31, 4  ;;  %v9480_v59 = vrot.slane %v23101_v55, 5 }
 0x131   : > { %v1109_v27 = vor.u32 %v1108_v40, %v1104_v28  ;;  %v1105_v60 = vsel %vm23738_vm5, %v1100_v47, %v1104_v28  ;;  %21324 = vmatprep.mubr.msk.bf16.mxu0 %vm1936_vm4, %v18572_v48  ;;  %v9483_v0 = vrot.slane %v23102_v21, 5  ;;  %v1127_v26 = vshrl.u32 %v242_v36, 16  ;;  %v23104_v28 = vld [vmem:[%s23720_s9 + $0x44] sm:$0xf] }
 0x132   : > { %v1119_v58 = vor.u32 %v1118_v50, %v1114_v49  ;;  %v17576_v56 = vcombine.low %v1095_v46, %v1105_v60  ;;  %v1124_v53 = vrot.slane %v1122_v54, 5  ;;  %v9481_v63 = vsel %vm24244_vm8, %v9479_v45, %v9480_v59  ;;  %v23105_v45 = vld [vmem:[%s23720_s9 + $0x48] sm:$0xf] }
 0x133   : > { %v1110_v62 = vrot.slane %v1109_v27, 4  ;;  %v9482_v61 = vrot.slane %v9480_v59, 4  ;;  %v1129_v6 = vrot.slane %v1127_v26, 4  ;;  %v1130_v9 = vshll.u32 %v242_v36, 16  ;;  %v23106_v59 = vld [vmem:[%s23720_s9 + $0x4c] sm:$0x1] }
 0x134   : > { %v1120_v5 = vrot.slane %v1119_v58, 4  ;;  %20738 = vmatprep.mubr.msk.bf16.mxu1 %vm1936_vm4, %v17576_v56  ;;  %v1136_v11 = vshll.u32 %v243_v51, 16  ;;  %v1140_v57 = vshrl.u32 %v243_v51, 16  ;;  %v1146_v12 = vshll.u32 %v244_v52, 16  ;;  %v248_v26 = vld [vmem:[%s23720_s9 + $0x184] sm:$0xf] }
 0x135   : > { %v1115_v19 = vsel %vm23738_vm5, %v1110_v62, %v1114_v49  ;;  %v9484_v2 = vsel %vm24244_vm8, %v9482_v61, %v9483_v0  ;;  %v1132_v24 = vrot.slane %v1130_v9, 5  ;;  %v18539_v30 = vrot.slane %v18507_v3, 9  ;;  %v18508_v61 = vld [vmem:[%s23720_s9 + $0x50] sm:$0xe] }
 0x136   : > { %v1125_v15 = vsel %vm23738_vm5, %v1120_v5, %v1124_v53  ;;  %v18573_v18 = vcombine.low %v9481_v63, %v9484_v2  ;;  %v1138_v22 = vrot.slane %v1136_v11, 5  ;;  %v1142_v23 = vrot.slane %v1140_v57, 4  ;;  %v249_v11 = vld [vmem:[%s23720_s9 + $0x188] sm:$0xf] }
 0x137   : > { %v17577_v16 = vcombine.low %v1115_v19, %v1125_v15  ;;  %v1133_v17 = vor.u32 %v1132_v24, %v1129_v6  ;;  %v1148_v25 = vrot.slane %v1146_v12, 5  ;;  %v9487_v14 = vrot.slane %v23103_v13, 5 }
 0x138   : > { %v9490_v29 = vrot.slane %v23104_v28, 5  ;;  %21325 = vmatmul.mubr.msk.bf16.gmra.mrb[4].mxu0 %vm1936_vm4, %v18573_v18  ;;  %v1143_v31 = vor.u32 %v1142_v23, %v1138_v22  ;;  %v1150_v32 = vshrl.u32 %v244_v52, 16  ;;  %v1156_v10 = vshll.u32 %v245_v1, 16 }
 0x139   : > { %20739 = vmatmul.mubr.msk.bf16.gmra.mrb[68].mxu1 %vm1936_vm4, %v17577_v16  ;;  %v1160_v33 = vshrl.u32 %v245_v1, 16  ;;  %v1134_v20 = vrot.slane %v1133_v17, 4  ;;  %v9488_v36 = vsel %vm24244_vm8, %v18539_v30, %v9487_v14  ;;  %v9489_v38 = vrot.slane %v9487_v14, 4  ;;  %v23107_v16 = vld [vmem:[%s23720_s9 + $0x54] sm:$0xf] }
 0x13a   : > { %v1166_v39 = vshll.u32 %v317_v8, 16  ;;  %v1144_v42 = vrot.slane %v1143_v31, 4  ;;  %v1152_v43 = vrot.slane %v1150_v32, 4  ;;  %v1158_v46 = vrot.slane %v1156_v10, 5  ;;  %v250_v10 = vld [vmem:[%s23720_s9 + $0x190] sm:$0xf] }
 0x13b   : > { %v1162_v44 = vrot.slane %v1160_v33, 4  ;;  %v1139_v40 = vsel %vm23738_vm5, %v1134_v20, %v1138_v22  ;;  %v9491_v47 = vsel %vm24244_vm8, %v9489_v38, %v9490_v29  ;;  %v9492_v49 = vrot.slane %v9490_v29, 4  ;;  %v318_v22 = vld [vmem:[%s23720_s9 + $0x18c] sm:$0x1]  ;;  %v251_v38 = vld [vmem:[%s23720_s9 + $0x194] sm:$0xf] }
 0x13c   : > { %v1168_v48 = vrot.slane %v1166_v39, 5  ;;  %v1149_v50 = vsel %vm23738_vm5, %v1144_v42, %v1148_v25  ;;  %v18574_v51 = vcombine.low %v9488_v36, %v9491_v47  ;;  %v1153_v52 = vor.u32 %v1152_v43, %v1148_v25  ;;  %v23108_v25 = vld [vmem:[%s23720_s9 + $0x58] sm:$0xf] }
 0x13d   : > { %v1163_v27 = vor.u32 %v1162_v44, %v1158_v46  ;;  %v17578_v54 = vcombine.low %v1139_v40, %v1149_v50  ;;  %v9493_v55 = vrot.slane %v23105_v45, 5  ;;  %v9496_v60 = vrot.slane %v23106_v59, 5  ;;  %v23109_v50 = vld [vmem:[%s23720_s9 + $0x5c] sm:$0xf] }
 0x13e   : > { %v1171_v58 = vshrl.u32 %v246_v34, 16  ;;  %21328 = vmatprep.mubr.msk.bf16.mxu0 %vm1936_vm4, %v18574_v51  ;;  %v1154_v21 = vrot.slane %v1153_v52, 4  ;;  %v1174_v56 = vshll.u32 %v246_v34, 16  ;;  %v1180_v62 = vshll.u32 %v247_v41, 16  ;;  %v23110_v52 = vld [vmem:[%s23720_s9 + $0x60] sm:$0x1] }
 0x13f   : > { %v1164_v0 = vrot.slane %v1163_v27, 4  ;;  %20742 = vmatprep.mubr.msk.bf16.mxu1 %vm1936_vm4, %v17578_v54  ;;  %v9494_v53 = vsel %vm24244_vm8, %v9492_v49, %v9493_v55  ;;  %v9495_v63 = vrot.slane %v9493_v55, 4  ;;  %v1184_v5 = vshrl.u32 %v247_v41, 16  ;;  %v252_v55 = vld [vmem:[%s23720_s9 + $0x198] sm:$0xf] }
 0x140   : > { %v1173_v3 = vrot.slane %v1171_v58, 4  ;;  %v1159_v6 = vsel %vm23738_vm5, %v1154_v21, %v1158_v46  ;;  %v1176_v1 = vrot.slane %v1174_v56, 5  ;;  %v1182_v19 = vrot.slane %v1180_v62, 5  ;;  %v18509_v56 = vld [vmem:[%s23720_s9 + $0x64] sm:$0xe] }
 0x141   : > { %v1169_v9 = vsel %vm23738_vm5, %v1164_v0, %v1168_v48  ;;  %v9497_v12 = vsel %vm24244_vm8, %v9495_v63, %v9496_v60  ;;  %v1186_v8 = vrot.slane %v1184_v5, 4  ;;  %v1190_v15 = vshll.u32 %v248_v26, 16 }
 0x142   : > { %v17579_v57 = vcombine.low %v1159_v6, %v1169_v9  ;;  %v18575_v2 = vcombine.low %v9494_v53, %v9497_v12  ;;  %v1177_v24 = vor.u32 %v1176_v1, %v1173_v3  ;;  %v18540_v30 = vrot.slane %v18508_v61, 9  ;;  %v253_v1 = vld [vmem:[%s23720_s9 + $0x19c] sm:$0xf] }
 0x143   : > { %v9500_v18 = vrot.slane %v23107_v16, 5  ;;  %v1187_v23 = vor.u32 %v1186_v8, %v1182_v19  ;;  %v1192_v17 = vrot.slane %v1190_v15, 5  ;;  %v9503_v13 = vrot.slane %v23108_v25, 5  ;;  %v319_v16 = vld [vmem:[%s23720_s9 + $0x1a0] sm:$0x1] }
 0x144   : > { %20743 = vmatmul.mubr.msk.bf16.gmra.mrb[72].mxu1 %vm1936_vm4, %v17579_v57  ;;  %v1194_v14 = vshrl.u32 %v248_v26, 16  ;;  %21329 = vmatmul.mubr.msk.bf16.gmra.mrb[8].mxu0 %vm1936_vm4, %v18575_v2  ;;  %v1178_v28 = vrot.slane %v1177_v24, 4  ;;  %v1200_v32 = vshll.u32 %v249_v11, 16  ;;  %v1204_v20 = vshrl.u32 %v249_v11, 16  ;;  %v23111_v24 = vld [vmem:[%s23720_s9 + $0x68] sm:$0xf] }
 0x145   : > { %v9501_v29 = vsel %vm24244_vm8, %v18540_v30, %v9500_v18  ;;  %v9502_v31 = vrot.slane %v9500_v18, 4  ;;  %v1188_v33 = vrot.slane %v1187_v23, 4  ;;  %v1210_v36 = vshll.u32 %v318_v22, 16  ;;  %v23112_v22 = vld [vmem:[%s23720_s9 + $0x6c] sm:$0xf] }
 0x146   : > { %v1196_v34 = vrot.slane %v1194_v14, 4  ;;  %v1183_v39 = vsel %vm23738_vm5, %v1178_v28, %v1182_v19  ;;  %v1202_v42 = vrot.slane %v1200_v32, 5  ;;  %v9505_v43 = vrot.slane %v9503_v13, 4  ;;  %v255_v32 = vld [vmem:[%s23720_s9 + $0x1a8] sm:$0xf] }
 0x147   : > { %v9504_v41 = vsel %vm24244_vm8, %v9502_v31, %v9503_v13  ;;  %v1193_v46 = vsel %vm23738_vm5, %v1188_v33, %v1192_v17  ;;  %v1206_v47 = vrot.slane %v1204_v20, 4  ;;  %v1212_v49 = vrot.slane %v1210_v36, 5  ;;  %v254_v13 = vld [vmem:[%s23720_s9 + $0x1a4] sm:$0xf] }
 0x148   : > { %v18576_v44 = vcombine.low %v9501_v29, %v9504_v41  ;;  %v1197_v40 = vor.u32 %v1196_v34, %v1192_v17  ;;  %v17580_v48 = vcombine.low %v1183_v39, %v1193_v46  ;;  %v9506_v51 = vrot.slane %v23109_v50, 5 }
 0x149   : > { %v9509_v27 = vrot.slane %v23110_v52, 5  ;;  %v1207_v45 = vor.u32 %v1206_v47, %v1202_v42  ;;  %v1215_v59 = vshrl.u32 %v250_v10, 16  ;;  %v1218_v60 = vshll.u32 %v250_v10, 16  ;;  %v18510_v47 = vld [vmem:[%s23720_s9 + $0x78] sm:$0xe] }
 0x14a   : > { %21332 = vmatprep.mubr.msk.bf16.mxu0 %vm1936_vm4, %v18576_v44  ;;  %v1198_v54 = vrot.slane %v1197_v40, 4  ;;  %20746 = vmatprep.mubr.msk.bf16.mxu1 %vm1936_vm4, %v17580_v48  ;;  %v9507_v58 = vsel %vm24244_vm8, %v9505_v43, %v9506_v51  ;;  %v9508_v21 = vrot.slane %v9506_v51, 4  ;;  %v1224_v0 = vshll.u32 %v251_v38, 16  ;;  %v256_v40 = vld [vmem:[%s23720_s9 + $0x1ac] sm:$0xf] }
 0x14b   : > { %v1228_v26 = vshrl.u32 %v251_v38, 16  ;;  %v1208_v53 = vrot.slane %v1207_v45, 4  ;;  %v1217_v63 = vrot.slane %v1215_v59, 4  ;;  %v1220_v3 = vrot.slane %v1218_v60, 5  ;;  %v23114_v51 = vld [vmem:[%s23720_s9 + $0x74] sm:$0x1] }
 0x14c   : > { %v1203_v62 = vsel %vm23738_vm5, %v1198_v54, %v1202_v42  ;;  %v9510_v5 = vsel %vm24244_vm8, %v9508_v21, %v9509_v27  ;;  %v1226_v61 = vrot.slane %v1224_v0, 5  ;;  %v1234_v9 = vshll.u32 %v252_v55, 16 }
 0x14d   : > { %v1230_v6 = vrot.slane %v1228_v26, 4  ;;  %v1213_v19 = vsel %vm23738_vm5, %v1208_v53, %v1212_v49  ;;  %v18577_v11 = vcombine.low %v9507_v58, %v9510_v5  ;;  %v1221_v57 = vor.u32 %v1220_v3, %v1217_v63  ;;  %v23113_v49 = vld [vmem:[%s23720_s9 + $0x70] sm:$0xf] }
 0x14e   : > { %v18541_v12 = vrot.slane %v18509_v56, 9  ;;  %v17581_v8 = vcombine.low %v1203_v62, %v1213_v19  ;;  %v1236_v2 = vrot.slane %v1234_v9, 5  ;;  %v9513_v30 = vrot.slane %v23111_v24, 5 }
 0x14f   : > { %v1231_v15 = vor.u32 %v1230_v6, %v1226_v61  ;;  %21333 = vmatmul.mubr.msk.bf16.gmra.mrb[12].mxu0 %vm1936_vm4, %v18577_v11  ;;  %v1222_v18 = vrot.slane %v1221_v57, 4  ;;  %v9516_v23 = vrot.slane %v23112_v22, 5  ;;  %v1238_v17 = vshrl.u32 %v252_v55, 16  ;;  %v257_v6 = vld [vmem:[%s23720_s9 + $0x1b0] sm:$0xf] }
 0x150   : > { %v1244_v25 = vshll.u32 %v253_v1, 16  ;;  %20747 = vmatmul.mubr.msk.bf16.gmra.mrb[76].mxu1 %vm1936_vm4, %v17581_v8  ;;  %v9514_v28 = vsel %vm24244_vm8, %v18541_v12, %v9513_v30  ;;  %v9515_v29 = vrot.slane %v9513_v30, 4  ;;  %v1248_v31 = vshrl.u32 %v253_v1, 16  ;;  %v320_v57 = vld [vmem:[%s23720_s9 + $0x1b4] sm:$0x1] }
 0x151   : > { %v1232_v14 = vrot.slane %v1231_v15, 4  ;;  %v1227_v10 = vsel %vm23738_vm5, %v1222_v18, %v1226_v61  ;;  %v1240_v33 = vrot.slane %v1238_v17, 4  ;;  %v1254_v20 = vshll.u32 %v319_v16, 16  ;;  %v23115_v8 = vld [vmem:[%s23720_s9 + $0x7c] sm:$0xf] }
 0x152   : > { %v1246_v34 = vrot.slane %v1244_v25, 5  ;;  %v9517_v38 = vsel %vm24244_vm8, %v9515_v29, %v9516_v23  ;;  %v1250_v39 = vrot.slane %v1248_v31, 4  ;;  %v9518_v41 = vrot.slane %v9516_v23, 4  ;;  %v258_v17 = vld [vmem:[%s23720_s9 + $0x1b8] sm:$0xf] }
 0x153   : > { %v1237_v36 = vsel %vm23738_vm5, %v1232_v14, %v1236_v2  ;;  %v18578_v43 = vcombine.low %v9514_v28, %v9517_v38  ;;  %v1241_v46 = vor.u32 %v1240_v33, %v1236_v2  ;;  %v1256_v44 = vrot.slane %v1254_v20, 5  ;;  %v23116_v2 = vld [vmem:[%s23720_s9 + $0x80] sm:$0xf]  ;;  %v259_v29 = vld [vmem:[%s23720_s9 + $0x1bc] sm:$0xf] }
 0x154   : > { %v17582_v42 = vcombine.low %v1227_v10, %v1237_v36  ;;  %v1251_v48 = vor.u32 %v1250_v39, %v1246_v34  ;;  %v9519_v50 = vrot.slane %v23113_v49, 5  ;;  %v9522_v52 = vrot.slane %v23114_v51, 5 }
 0x155   : > { %v1259_v27 = vshrl.u32 %v254_v13, 16  ;;  %21336 = vmatprep.mubr.msk.bf16.mxu0 %vm1936_vm4, %v18578_v43  ;;  %v1242_v54 = vrot.slane %v1241_v46, 4  ;;  %v1262_v45 = vshll.u32 %v254_v13, 16  ;;  %v1268_v55 = vshll.u32 %v255_v32, 16  ;;  %v23117_v43 = vld [vmem:[%s23720_s9 + $0x84] sm:$0xf] }
 0x156   : > { %20750 = vmatprep.mubr.msk.bf16.mxu1 %vm1936_vm4, %v17582_v42  ;;  %v1272_v59 = vshrl.u32 %v255_v32, 16  ;;  %v1252_v60 = vrot.slane %v1251_v48, 4  ;;  %v9520_v58 = vsel %vm24244_vm8, %v9518_v41, %v9519_v50  ;;  %v9521_v21 = vrot.slane %v9519_v50, 4  ;;  %v260_v48 = vld [vmem:[%s23720_s9 + $0x1c0] sm:$0xf] }
 0x157   : > { %v1261_v0 = vrot.slane %v1259_v27, 4  ;;  %v1247_v26 = vsel %vm23738_vm5, %v1242_v54, %v1246_v34  ;;  %v1264_v56 = vrot.slane %v1262_v45, 5  ;;  %v1270_v62 = vrot.slane %v1268_v55, 5 }
 0x158   : > { %v1274_v53 = vrot.slane %v1272_v59, 4  ;;  %v1257_v63 = vsel %vm23738_vm5, %v1252_v60, %v1256_v44  ;;  %v9523_v3 = vsel %vm24244_vm8, %v9521_v21, %v9522_v52  ;;  %v1278_v5 = vshll.u32 %v256_v40, 16 }
 0x159   : > { %v18542_v61 = vrot.slane %v18510_v47, 9  ;;  %v17583_v9 = vcombine.low %v1247_v26, %v1257_v63  ;;  %v18579_v1 = vcombine.low %v9520_v58, %v9523_v3  ;;  %v1265_v19 = vor.u32 %v1264_v56, %v1261_v0  ;;  %v18511_v58 = vld [vmem:[%s23720_s9 + $0x8c] sm:$0xe] }
 0x15a   : > { %v1275_v11 = vor.u32 %v1274_v53, %v1270_v62  ;;  %v1280_v12 = vrot.slane %v1278_v5, 5  ;;  %v9526_v15 = vrot.slane %v23115_v8, 5  ;;  %v9529_v24 = vrot.slane %v23116_v2, 5  ;;  %v321_v53 = vld [vmem:[%s23720_s9 + $0x1c8] sm:$0x1] }
 0x15b   : > { %v1282_v30 = vshrl.u32 %v256_v40, 16  ;;  %20751 = vmatmul.mubr.msk.bf16.gmra.mrb[80].mxu1 %vm1936_vm4, %v17583_v9  ;;  %21337 = vmatmul.mubr.msk.bf16.gmra.mrb[16].mxu0 %vm1936_vm4, %v18579_v1  ;;  %v1266_v16 = vrot.slane %v1265_v19, 4  ;;  %v1288_v22 = vshll.u32 %v257_v6, 16  ;;  %v1292_v23 = vshrl.u32 %v257_v6, 16  ;;  %v23118_v40 = vld [vmem:[%s23720_s9 + $0x88] sm:$0x1] }
 0x15c   : > { %v1276_v18 = vrot.slane %v1275_v11, 4  ;;  %v9527_v25 = vsel %vm24244_vm8, %v18542_v61, %v9526_v15  ;;  %v9528_v13 = vrot.slane %v9526_v15, 4  ;;  %v1298_v28 = vshll.u32 %v320_v57, 16  ;;  %v23119_v1 = vld [vmem:[%s23720_s9 + $0x90] sm:$0xf] }
 0x15d   : > { %v1284_v14 = vrot.slane %v1282_v30, 4  ;;  %v1271_v31 = vsel %vm23738_vm5, %v1266_v16, %v1270_v62  ;;  %v1290_v10 = vrot.slane %v1288_v22, 5  ;;  %v1294_v33 = vrot.slane %v1292_v23, 4  ;;  %v261_v62 = vld [vmem:[%s23720_s9 + $0x1c4] sm:$0xf] }
 0x15e   : > { %v1281_v32 = vsel %vm23738_vm5, %v1276_v18, %v1280_v12  ;;  %v9530_v20 = vsel %vm24244_vm8, %v9528_v13, %v9529_v24  ;;  %v1300_v38 = vrot.slane %v1298_v28, 5  ;;  %v9531_v42 = vrot.slane %v9529_v24, 4  ;;  %v23120_v11 = vld [vmem:[%s23720_s9 + $0x94] sm:$0xf]  ;;  %v262_v13 = vld [vmem:[%s23720_s9 + $0x1cc] sm:$0xf] }
 0x15f   : > { %v17584_v34 = vcombine.low %v1271_v31, %v1281_v32  ;;  %v1285_v36 = vor.u32 %v1284_v14, %v1280_v12  ;;  %v18580_v39 = vcombine.low %v9527_v25, %v9530_v20  ;;  %v1295_v41 = vor.u32 %v1294_v33, %v1290_v10 }
 0x160   : > { %v9532_v46 = vrot.slane %v23117_v43, 5  ;;  %v9535_v47 = vrot.slane %v23118_v40, 5  ;;  %v1303_v49 = vshrl.u32 %v258_v17, 16  ;;  %v1306_v50 = vshll.u32 %v258_v17, 16 }
 0x161   : > { %20754 = vmatprep.mubr.msk.bf16.mxu1 %vm1936_vm4, %v17584_v34  ;;  %v1286_v44 = vrot.slane %v1285_v36, 4  ;;  %21340 = vmatprep.mubr.msk.bf16.mxu0 %vm1936_vm4, %v18580_v39  ;;  %v1296_v51 = vrot.slane %v1295_v41, 4  ;;  %v1312_v54 = vshll.u32 %v259_v29, 16  ;;  %v1316_v60 = vshrl.u32 %v259_v29, 16  ;;  %v23121_v34 = vld [vmem:[%s23720_s9 + $0x98] sm:$0xf] }
 0x162   : > { %v9533_v52 = vsel %vm24244_vm8, %v9531_v42, %v9532_v46  ;;  %v9534_v27 = vrot.slane %v9532_v46, 4  ;;  %v1305_v55 = vrot.slane %v1303_v49, 4  ;;  %v1308_v59 = vrot.slane %v1306_v50, 5  ;;  %v263_v36 = vld [vmem:[%s23720_s9 + $0x1d0] sm:$0xf] }
 0x163   : > { %v1291_v45 = vsel %vm23738_vm5, %v1286_v44, %v1290_v10  ;;  %v1301_v21 = vsel %vm23738_vm5, %v1296_v51, %v1300_v38  ;;  %v1314_v26 = vrot.slane %v1312_v54, 5  ;;  %v1322_v56 = vshll.u32 %v260_v48, 16  ;;  %v264_v38 = vld [vmem:[%s23720_s9 + $0x1d4] sm:$0xf]  ;;  %v23122_v42 = vld [vmem:[%s23720_s9 + $0x9c] sm:$0x1] }
 0x164   : > { %v9536_v0 = vsel %vm24244_vm8, %v9534_v27, %v9535_v47  ;;  %v17585_v63 = vcombine.low %v1291_v45, %v1301_v21  ;;  %v1309_v5 = vor.u32 %v1308_v59, %v1305_v55  ;;  %v1318_v61 = vrot.slane %v1316_v60, 4  ;;  %v18512_v44 = vld [vmem:[%s23720_s9 + $0xa0] sm:$0xe]  ;;  %v265_v54 = vld [vmem:[%s23720_s9 + $0x1d8] sm:$0xf] }
 0x165   : > { %v18581_v3 = vcombine.low %v9533_v52, %v9536_v0  ;;  %v1324_v6 = vrot.slane %v1322_v56, 5  ;;  %v18543_v9 = vrot.slane %v18511_v58, 9  ;;  %v9539_v19 = vrot.slane %v23119_v1, 5  ;;  %v322_v45 = vld [vmem:[%s23720_s9 + $0x1dc] sm:$0x1] }
 0x166   : > { %v9542_v57 = vrot.slane %v23120_v11, 5  ;;  %20755 = vmatmul.mubr.msk.bf16.gmra.mrb[84].mxu1 %vm1936_vm4, %v17585_v63  ;;  %v1310_v12 = vrot.slane %v1309_v5, 4  ;;  %v1319_v8 = vor.u32 %v1318_v61, %v1314_v26  ;;  %v1326_v15 = vshrl.u32 %v260_v48, 16  ;;  %v23123_v61 = vld [vmem:[%s23720_s9 + $0xa4] sm:$0xf] }
 0x167   : > { %21341 = vmatmul.mubr.msk.bf16.gmra.mrb[20].mxu0 %vm1936_vm4, %v18581_v3  ;;  %v1332_v2 = vshll.u32 %v261_v62, 16  ;;  %v9540_v24 = vsel %vm24244_vm8, %v18543_v9, %v9539_v19  ;;  %v9541_v30 = vrot.slane %v9539_v19, 4  ;;  %v1336_v16 = vshrl.u32 %v261_v62, 16  ;;  %v23124_v9 = vld [vmem:[%s23720_s9 + $0xa8] sm:$0xf] }
 0x168   : > { %v1342_v18 = vshll.u32 %v321_v53, 16  ;;  %v1315_v22 = vsel %vm23738_vm5, %v1310_v12, %v1314_v26  ;;  %v1320_v23 = vrot.slane %v1319_v8, 4  ;;  %v1328_v17 = vrot.slane %v1326_v15, 4 }
 0x169   : > { %v1334_v25 = vrot.slane %v1332_v2, 5  ;;  %v9543_v14 = vsel %vm24244_vm8, %v9541_v30, %v9542_v57  ;;  %v1338_v28 = vrot.slane %v1336_v16, 4  ;;  %v9544_v31 = vrot.slane %v9542_v57, 4  ;;  %v266_v16 = vld [vmem:[%s23720_s9 + $0x1e0] sm:$0xf] }
 0x16a   : > { %v1344_v29 = vrot.slane %v1342_v18, 5  ;;  %v1325_v32 = vsel %vm23738_vm5, %v1320_v23, %v1324_v6  ;;  %v18582_v10 = vcombine.low %v9540_v24, %v9543_v14  ;;  %v1329_v33 = vor.u32 %v1328_v17, %v1324_v6 }
 0x16b   : > { %v9545_v20 = vrot.slane %v23121_v34, 5  ;;  %v17586_v39 = vcombine.low %v1315_v22, %v1325_v32  ;;  %v1339_v41 = vor.u32 %v1338_v28, %v1334_v25  ;;  %v9548_v43 = vrot.slane %v23122_v42, 5  ;;  %v23125_v34 = vld [vmem:[%s23720_s9 + $0xac] sm:$0xf] }
 0x16c   : > { %v1347_v46 = vshrl.u32 %v262_v13, 16  ;;  %21344 = vmatprep.mubr.msk.bf16.mxu0 %vm1936_vm4, %v18582_v10  ;;  %v1330_v40 = vrot.slane %v1329_v33, 4  ;;  %v1350_v49 = vshll.u32 %v262_v13, 16  ;;  %v1356_v52 = vshll.u32 %v263_v36, 16 }
 0x16d   : > { %v9546_v47 = vsel %vm24244_vm8, %v9544_v31, %v9545_v20  ;;  %v9547_v48 = vrot.slane %v9545_v20, 4  ;;  %20758 = vmatprep.mubr.msk.bf16.mxu1 %vm1936_vm4, %v17586_v39  ;;  %v1340_v50 = vrot.slane %v1339_v41, 4  ;;  %v1360_v27 = vshrl.u32 %v263_v36, 16  ;;  %v268_v31 = vld [vmem:[%s23720_s9 + $0x1e8] sm:$0xf] }
 0x16e   : > { %v1349_v51 = vrot.slane %v1347_v46, 4  ;;  %v1335_v55 = vsel %vm23738_vm5, %v1330_v40, %v1334_v25  ;;  %v1352_v60 = vrot.slane %v1350_v49, 5  ;;  %v1366_v58 = vshll.u32 %v264_v38, 16  ;;  %v267_v25 = vld [vmem:[%s23720_s9 + $0x1e4] sm:$0xf] }
 0x16f   : > { %v9549_v59 = vsel %vm24244_vm8, %v9547_v48, %v9548_v43  ;;  %v1345_v21 = vsel %vm23738_vm5, %v1340_v50, %v1344_v29  ;;  %v1358_v26 = vrot.slane %v1356_v52, 5  ;;  %v1362_v56 = vrot.slane %v1360_v27, 4 }
 0x170   : > { %v18583_v0 = vcombine.low %v9546_v47, %v9549_v59  ;;  %v17587_v62 = vcombine.low %v1335_v55, %v1345_v21  ;;  %v1353_v53 = vor.u32 %v1352_v60, %v1349_v51  ;;  %v1368_v63 = vrot.slane %v1366_v58, 5  ;;  %v18513_v51 = vld [vmem:[%s23720_s9 + $0xb4] sm:$0xe]  ;;  %v269_v55 = vld [vmem:[%s23720_s9 + $0x1ec] sm:$0xf] }
 0x171   : > { %v18544_v3 = vrot.slane %v18512_v44, 9  ;;  %v1363_v5 = vor.u32 %v1362_v56, %v1358_v26  ;;  %v9552_v6 = vrot.slane %v23123_v61, 5  ;;  %v9555_v1 = vrot.slane %v23124_v9, 5 }
 0x172   : > { %21345 = vmatmul.mubr.msk.bf16.gmra.mrb[24].mxu0 %vm1936_vm4, %v18583_v0  ;;  %v1370_v19 = vshrl.u32 %v264_v38, 16  ;;  %20759 = vmatmul.mubr.msk.bf16.gmra.mrb[88].mxu1 %vm1936_vm4, %v17587_v62  ;;  %v1354_v11 = vrot.slane %v1353_v53, 4  ;;  %v1376_v57 = vshll.u32 %v265_v54, 16  ;;  %v1380_v12 = vshrl.u32 %v265_v54, 16  ;;  %v23126_v38 = vld [vmem:[%s23720_s9 + $0xb0] sm:$0x1] }
 0x173   : > { %v1386_v8 = vshll.u32 %v322_v45, 16  ;;  %v1364_v15 = vrot.slane %v1363_v5, 4  ;;  %v9553_v2 = vsel %vm24244_vm8, %v18544_v3, %v9552_v6  ;;  %v9554_v24 = vrot.slane %v9552_v6, 4  ;;  %v323_v0 = vld [vmem:[%s23720_s9 + $0x1f0] sm:$0x1] }
 0x174   : > { %v1372_v30 = vrot.slane %v1370_v19, 4  ;;  %v1359_v18 = vsel %vm23738_vm5, %v1354_v11, %v1358_v26  ;;  %v1378_v22 = vrot.slane %v1376_v57, 5  ;;  %v1382_v23 = vrot.slane %v1380_v12, 4  ;;  %v23127_v62 = vld [vmem:[%s23720_s9 + $0xb8] sm:$0xf] }
 0x175   : > { %v1388_v17 = vrot.slane %v1386_v8, 5  ;;  %v1369_v13 = vsel %vm23738_vm5, %v1364_v15, %v1368_v63  ;;  %v9556_v14 = vsel %vm24244_vm8, %v9554_v24, %v9555_v1  ;;  %v9557_v29 = vrot.slane %v9555_v1, 4  ;;  %v270_v1 = vld [vmem:[%s23720_s9 + $0x1f4] sm:$0xf] }
 0x176   : > { %v1373_v28 = vor.u32 %v1372_v30, %v1368_v63  ;;  %v17588_v32 = vcombine.low %v1359_v18, %v1369_v13  ;;  %v18584_v10 = vcombine.low %v9553_v2, %v9556_v14  ;;  %v1383_v33 = vor.u32 %v1382_v23, %v1378_v22  ;;  %v23128_v63 = vld [vmem:[%s23720_s9 + $0xbc] sm:$0xf]  ;;  %v23129_v13 = vld [vmem:[%s23720_s9 + $0xc0] sm:$0xf] }
 0x177   : > { %v9558_v20 = vrot.slane %v23125_v34, 5  ;;  %v9561_v39 = vrot.slane %v23126_v38, 5  ;;  %v1391_v41 = vshrl.u32 %v266_v16, 16  ;;  %v1394_v42 = vshll.u32 %v266_v16, 16 }
 0x178   : > { %v1374_v36 = vrot.slane %v1373_v28, 4  ;;  %20762 = vmatprep.mubr.msk.bf16.mxu1 %vm1936_vm4, %v17588_v32  ;;  %21348 = vmatprep.mubr.msk.bf16.mxu0 %vm1936_vm4, %v18584_v10  ;;  %v1384_v43 = vrot.slane %v1383_v33, 4  ;;  %v1400_v40 = vshll.u32 %v267_v25, 16  ;;  %v1404_v50 = vshrl.u32 %v267_v25, 16  ;;  %v271_v28 = vld [vmem:[%s23720_s9 + $0x1f8] sm:$0xf] }
 0x179   : > { %v9559_v46 = vsel %vm24244_vm8, %v9557_v29, %v9558_v20  ;;  %v9560_v44 = vrot.slane %v9558_v20, 4  ;;  %v1393_v48 = vrot.slane %v1391_v41, 4  ;;  %v1396_v49 = vrot.slane %v1394_v42, 5  ;;  %v23130_v32 = vld [vmem:[%s23720_s9 + $0xc4] sm:$0x1] }
 0x17a   : > { %v1379_v47 = vsel %vm23738_vm5, %v1374_v36, %v1378_v22  ;;  %v1389_v52 = vsel %vm23738_vm5, %v1384_v43, %v1388_v17  ;;  %v1402_v54 = vrot.slane %v1400_v40, 5  ;;  %v1410_v45 = vshll.u32 %v268_v31, 16  ;;  %v272_v33 = vld [vmem:[%s23720_s9 + $0x1fc] sm:$0xf]  ;;  %v18514_v41 = vld [vmem:[%s23720_s9 + $0xc8] sm:$0xe] }
 0x17b   : > { %v9562_v27 = vsel %vm24244_vm8, %v9560_v44, %v9561_v39  ;;  %v17589_v59 = vcombine.low %v1379_v47, %v1389_v52  ;;  %v1397_v58 = vor.u32 %v1396_v49, %v1393_v48  ;;  %v1406_v21 = vrot.slane %v1404_v50, 4  ;;  %v273_v40 = vld [vmem:[%s23720_s9 + $0x200] sm:$0xf]  ;;  %v324_v47 = vld [vmem:[%s23720_s9 + $0x204] sm:$0x1] }
 0x17c   : > { %v18585_v60 = vcombine.low %v9559_v46, %v9562_v27  ;;  %v1412_v26 = vrot.slane %v1410_v45, 5  ;;  %v18545_v56 = vrot.slane %v18513_v51, 9  ;;  %v9565_v53 = vrot.slane %v23127_v62, 5 }
 0x17d   : > { %v9568_v3 = vrot.slane %v23128_v63, 5  ;;  %20763 = vmatmul.mubr.msk.bf16.gmra.mrb[92].mxu1 %vm1936_vm4, %v17589_v59  ;;  %v1398_v5 = vrot.slane %v1397_v58, 4  ;;  %v1407_v61 = vor.u32 %v1406_v21, %v1402_v54  ;;  %v1414_v6 = vshrl.u32 %v268_v31, 16 }
 0x17e   : > { %21349 = vmatmul.mubr.msk.bf16.gmra.mrb[28].mxu0 %vm1936_vm4, %v18585_v60  ;;  %v1420_v9 = vshll.u32 %v269_v55, 16  ;;  %v9566_v19 = vsel %vm24244_vm8, %v18545_v56, %v9565_v53  ;;  %v9567_v11 = vrot.slane %v9565_v53, 4  ;;  %v1424_v57 = vshrl.u32 %v269_v55, 16  ;;  %v23132_v56 = vld [vmem:[%s23720_s9 + $0xd0] sm:$0xf] }
 0x17f   : > { %v1430_v12 = vshll.u32 %v323_v0, 16  ;;  %v1403_v8 = vsel %vm23738_vm5, %v1398_v5, %v1402_v54  ;;  %v1408_v15 = vrot.slane %v1407_v61, 4  ;;  %v1416_v2 = vrot.slane %v1414_v6, 4  ;;  %v23131_v0 = vld [vmem:[%s23720_s9 + $0xcc] sm:$0xf] }
 0x180   : > { %v1422_v24 = vrot.slane %v1420_v9, 5  ;;  %v9569_v30 = vsel %vm24244_vm8, %v9567_v11, %v9568_v3  ;;  %v1426_v16 = vrot.slane %v1424_v57, 4  ;;  %v9570_v22 = vrot.slane %v9568_v3, 4  ;;  %v274_v11 = vld [vmem:[%s23720_s9 + $0x208] sm:$0xf] }
 0x181   : > { %v1432_v18 = vrot.slane %v1430_v12, 5  ;;  %v1413_v23 = vsel %vm23738_vm5, %v1408_v15, %v1412_v26  ;;  %v18586_v17 = vcombine.low %v9566_v19, %v9569_v30  ;;  %v1417_v25 = vor.u32 %v1416_v2, %v1412_v26  ;;  %v275_v2 = vld [vmem:[%s23720_s9 + $0x20c] sm:$0xf] }
 0x182   : > { %v9571_v14 = vrot.slane %v23129_v13, 5  ;;  %v17590_v29 = vcombine.low %v1403_v8, %v1413_v23  ;;  %v1427_v31 = vor.u32 %v1426_v16, %v1422_v24  ;;  %v9574_v10 = vrot.slane %v23130_v32, 5  ;;  %v23133_v13 = vld [vmem:[%s23720_s9 + $0xd4] sm:$0xf] }
 0x183   : > { %v1435_v34 = vshrl.u32 %v270_v1, 16  ;;  %21352 = vmatprep.mubr.msk.bf16.mxu0 %vm1936_vm4, %v18586_v17  ;;  %v1418_v20 = vrot.slane %v1417_v25, 4  ;;  %v1438_v39 = vshll.u32 %v270_v1, 16  ;;  %v1444_v46 = vshll.u32 %v271_v28, 16 }
 0x184   : > { %v9572_v36 = vsel %vm24244_vm8, %v9570_v22, %v9571_v14  ;;  %v9573_v38 = vrot.slane %v9571_v14, 4  ;;  %20766 = vmatprep.mubr.msk.bf16.mxu1 %vm1936_vm4, %v17590_v29  ;;  %v1428_v42 = vrot.slane %v1427_v31, 4  ;;  %v1448_v44 = vshrl.u32 %v271_v28, 16  ;;  %v276_v22 = vld [vmem:[%s23720_s9 + $0x210] sm:$0xf] }
 0x185   : > { %v1437_v43 = vrot.slane %v1435_v34, 4  ;;  %v1423_v48 = vsel %vm23738_vm5, %v1418_v20, %v1422_v24  ;;  %v1440_v50 = vrot.slane %v1438_v39, 5  ;;  %v1454_v51 = vshll.u32 %v272_v33, 16  ;;  %v23134_v29 = vld [vmem:[%s23720_s9 + $0xd8] sm:$0x1] }
 0x186   : > { %v9575_v49 = vsel %vm24244_vm8, %v9573_v38, %v9574_v10  ;;  %v1433_v52 = vsel %vm23738_vm5, %v1428_v42, %v1432_v18  ;;  %v1446_v54 = vrot.slane %v1444_v46, 5  ;;  %v1450_v45 = vrot.slane %v1448_v44, 4 }
 0x187   : > { %v18587_v27 = vcombine.low %v9572_v36, %v9575_v49  ;;  %v17591_v55 = vcombine.low %v1423_v48, %v1433_v52  ;;  %v1441_v59 = vor.u32 %v1440_v50, %v1437_v43  ;;  %v1456_v60 = vrot.slane %v1454_v51, 5  ;;  %v18515_v43 = vld [vmem:[%s23720_s9 + $0xdc] sm:$0xe]  ;;  %v277_v48 = vld [vmem:[%s23720_s9 + $0x214] sm:$0xf] }
 0x188   : > { %v18546_v58 = vrot.slane %v18514_v41, 9  ;;  %v1451_v21 = vor.u32 %v1450_v45, %v1446_v54  ;;  %v9578_v26 = vrot.slane %v23131_v0, 5  ;;  %v9581_v62 = vrot.slane %v23132_v56, 5 }
 0x189   : > { %21353 = vmatmul.mubr.msk.bf16.gmra.mrb[32].mxu0 %vm1936_vm4, %v18587_v27  ;;  %v1458_v53 = vshrl.u32 %v272_v33, 16  ;;  %20767 = vmatmul.mubr.msk.bf16.gmra.mrb[96].mxu1 %vm1936_vm4, %v17591_v55  ;;  %v1442_v63 = vrot.slane %v1441_v59, 4  ;;  %v1464_v3 = vshll.u32 %v273_v40, 16  ;;  %v1468_v5 = vshrl.u32 %v273_v40, 16  ;;  %v325_v27 = vld [vmem:[%s23720_s9 + $0x218] sm:$0x1] }
 0x18a   : > { %v1474_v61 = vshll.u32 %v324_v47, 16  ;;  %v1452_v6 = vrot.slane %v1451_v21, 4  ;;  %v9579_v9 = vsel %vm24244_vm8, %v18546_v58, %v9578_v26  ;;  %v9580_v1 = vrot.slane %v9578_v26, 4  ;;  %v23135_v55 = vld [vmem:[%s23720_s9 + $0xe0] sm:$0xf] }
 0x18b   : > { %v1460_v19 = vrot.slane %v1458_v53, 4  ;;  %v1447_v57 = vsel %vm23738_vm5, %v1442_v63, %v1446_v54  ;;  %v1466_v12 = vrot.slane %v1464_v3, 5  ;;  %v1470_v8 = vrot.slane %v1468_v5, 4 }
 0x18c   : > { %v1476_v15 = vrot.slane %v1474_v61, 5  ;;  %v1457_v24 = vsel %vm23738_vm5, %v1452_v6, %v1456_v60  ;;  %v9582_v30 = vsel %vm24244_vm8, %v9580_v1, %v9581_v62  ;;  %v9583_v18 = vrot.slane %v9581_v62, 4  ;;  %v278_v62 = vld [vmem:[%s23720_s9 + $0x21c] sm:$0xf] }
 0x18d   : > { %v1461_v16 = vor.u32 %v1460_v19, %v1456_v60  ;;  %v17592_v23 = vcombine.low %v1447_v57, %v1457_v24  ;;  %v18588_v17 = vcombine.low %v9579_v9, %v9582_v30  ;;  %v1471_v25 = vor.u32 %v1470_v8, %v1466_v12  ;;  %v23136_v60 = vld [vmem:[%s23720_s9 + $0xe4] sm:$0xf]  ;;  %v23137_v24 = vld [vmem:[%s23720_s9 + $0xe8] sm:$0xf] }
 0x18e   : > { %v9584_v14 = vrot.slane %v23133_v13, 5  ;;  %v9587_v31 = vrot.slane %v23134_v29, 5  ;;  %v1479_v32 = vshrl.u32 %v274_v11, 16  ;;  %v1482_v10 = vshll.u32 %v274_v11, 16 }
 0x18f   : > { %v1462_v28 = vrot.slane %v1461_v16, 4  ;;  %20770 = vmatprep.mubr.msk.bf16.mxu1 %vm1936_vm4, %v17592_v23  ;;  %21356 = vmatprep.mubr.msk.bf16.mxu0 %vm1936_vm4, %v18588_v17  ;;  %v1472_v33 = vrot.slane %v1471_v25, 4  ;;  %v1488_v36 = vshll.u32 %v275_v2, 16  ;;  %v1492_v42 = vshrl.u32 %v275_v2, 16  ;;  %v279_v16 = vld [vmem:[%s23720_s9 + $0x220] sm:$0xf] }
 0x190   : > { %v9585_v34 = vsel %vm24244_vm8, %v9583_v18, %v9584_v14  ;;  %v9586_v20 = vrot.slane %v9584_v14, 4  ;;  %v1481_v39 = vrot.slane %v1479_v32, 4  ;;  %v1484_v41 = vrot.slane %v1482_v10, 5  ;;  %v23138_v23 = vld [vmem:[%s23720_s9 + $0xec] sm:$0x1] }
 0x191   : > { %v1467_v38 = vsel %vm23738_vm5, %v1462_v28, %v1466_v12  ;;  %v1477_v46 = vsel %vm23738_vm5, %v1472_v33, %v1476_v15  ;;  %v1490_v40 = vrot.slane %v1488_v36, 5  ;;  %v1498_v47 = vshll.u32 %v276_v22, 16  ;;  %v280_v25 = vld [vmem:[%s23720_s9 + $0x224] sm:$0xf]  ;;  %v281_v36 = vld [vmem:[%s23720_s9 + $0x228] sm:$0xf] }
 0x192   : > { %v9588_v44 = vsel %vm24244_vm8, %v9586_v20, %v9587_v31  ;;  %v17593_v49 = vcombine.low %v1467_v38, %v1477_v46  ;;  %v1485_v51 = vor.u32 %v1484_v41, %v1481_v39  ;;  %v1494_v52 = vrot.slane %v1492_v42, 4  ;;  %v18516_v20 = vld [vmem:[%s23720_s9 + $0xf0] sm:$0xe]  ;;  %v326_v38 = vld [vmem:[%s23720_s9 + $0x22c] sm:$0x1] }
 0x193   : > { %v18589_v50 = vcombine.low %v9585_v34, %v9588_v44  ;;  %v1500_v54 = vrot.slane %v1498_v47, 5  ;;  %v18547_v45 = vrot.slane %v18515_v43, 9  ;;  %v9591_v59 = vrot.slane %v23135_v55, 5 }
 0x194   : > { %v9594_v58 = vrot.slane %v23136_v60, 5  ;;  %20771 = vmatmul.mubr.msk.bf16.gmra.mrb[100].mxu1 %vm1936_vm4, %v17593_v49  ;;  %v1486_v21 = vrot.slane %v1485_v51, 4  ;;  %v1495_v0 = vor.u32 %v1494_v52, %v1490_v40  ;;  %v1502_v26 = vshrl.u32 %v276_v22, 16 }
 0x195   : > { %21357 = vmatmul.mubr.msk.bf16.gmra.mrb[36].mxu0 %vm1936_vm4, %v18589_v50  ;;  %v1508_v56 = vshll.u32 %v277_v48, 16  ;;  %v9592_v53 = vsel %vm24244_vm8, %v18547_v45, %v9591_v59  ;;  %v9593_v63 = vrot.slane %v9591_v59, 4  ;;  %v1512_v3 = vshrl.u32 %v277_v48, 16  ;;  %v23140_v45 = vld [vmem:[%s23720_s9 + $0xf8] sm:$0xf] }
 0x196   : > { %v1518_v5 = vshll.u32 %v325_v27, 16  ;;  %v1491_v61 = vsel %vm23738_vm5, %v1486_v21, %v1490_v40  ;;  %v1496_v6 = vrot.slane %v1495_v0, 4  ;;  %v1504_v9 = vrot.slane %v1502_v26, 4  ;;  %v23139_v27 = vld [vmem:[%s23720_s9 + $0xf4] sm:$0xf] }
 0x197   : > { %v1510_v1 = vrot.slane %v1508_v56, 5  ;;  %v9595_v19 = vsel %vm24244_vm8, %v9593_v63, %v9594_v58  ;;  %v1514_v11 = vrot.slane %v1512_v3, 4  ;;  %v9596_v12 = vrot.slane %v9594_v58, 4 }
 0x198   : > { %v1520_v57 = vrot.slane %v1518_v5, 5  ;;  %v1501_v8 = vsel %vm23738_vm5, %v1496_v6, %v1500_v54  ;;  %v18590_v15 = vcombine.low %v9592_v53, %v9595_v19  ;;  %v1505_v2 = vor.u32 %v1504_v9, %v1500_v54  ;;  %v282_v6 = vld [vmem:[%s23720_s9 + $0x230] sm:$0xf] }
 0x199   : > { %v9597_v30 = vrot.slane %v23137_v24, 5  ;;  %v17594_v18 = vcombine.low %v1491_v61, %v1501_v8  ;;  %v1515_v22 = vor.u32 %v1514_v11, %v1510_v1  ;;  %v9600_v17 = vrot.slane %v23138_v23, 5  ;;  %v23141_v24 = vld [vmem:[%s23720_s9 + $0xfc] sm:$0xf] }
 0x19a   : > { %v1523_v13 = vshrl.u32 %v278_v62, 16  ;;  %21360 = vmatprep.mubr.msk.bf16.mxu0 %vm1936_vm4, %v18590_v15  ;;  %v1506_v14 = vrot.slane %v1505_v2, 4  ;;  %v1526_v31 = vshll.u32 %v278_v62, 16  ;;  %v1532_v33 = vshll.u32 %v279_v16, 16 }
 0x19b   : > { %v9598_v28 = vsel %vm24244_vm8, %v9596_v12, %v9597_v30  ;;  %v9599_v29 = vrot.slane %v9597_v30, 4  ;;  %20774 = vmatprep.mubr.msk.bf16.mxu1 %vm1936_vm4, %v17594_v18  ;;  %v1516_v32 = vrot.slane %v1515_v22, 4  ;;  %v1536_v34 = vshrl.u32 %v279_v16, 16  ;;  %v284_v12 = vld [vmem:[%s23720_s9 + $0x238] sm:$0xf] }
 0x19c   : > { %v1525_v10 = vrot.slane %v1523_v13, 4  ;;  %v1511_v39 = vsel %vm23738_vm5, %v1506_v14, %v1510_v1  ;;  %v1528_v42 = vrot.slane %v1526_v31, 5  ;;  %v1542_v43 = vshll.u32 %v280_v25, 16  ;;  %v23142_v18 = vld [vmem:[%s23720_s9 + $0x100] sm:$0x1] }
 0x19d   : > { %v9601_v41 = vsel %vm24244_vm8, %v9599_v29, %v9600_v17  ;;  %v1521_v46 = vsel %vm23738_vm5, %v1516_v32, %v1520_v57  ;;  %v1534_v40 = vrot.slane %v1532_v33, 5  ;;  %v1538_v47 = vrot.slane %v1536_v34, 4  ;;  %v283_v57 = vld [vmem:[%s23720_s9 + $0x234] sm:$0xf] }
 0x19e   : > { %v18591_v44 = vcombine.low %v9598_v28, %v9601_v41  ;;  %v17595_v48 = vcombine.low %v1511_v39, %v1521_v46  ;;  %v1529_v49 = vor.u32 %v1528_v42, %v1525_v10  ;;  %v1544_v50 = vrot.slane %v1542_v43, 5  ;;  %v285_v39 = vld [vmem:[%s23720_s9 + $0x23c] sm:$0xf] }
 0x19f   : > { %v18548_v51 = vrot.slane %v18516_v20, 9  ;;  %v1539_v52 = vor.u32 %v1538_v47, %v1534_v40  ;;  %v9604_v54 = vrot.slane %v23139_v27, 5  ;;  %v9607_v55 = vrot.slane %v23140_v45, 5 }
 0x1a0   : > { %21361 = vmatmul.mubr.msk.bf16.gmra.mrb[40].mxu0 %vm1936_vm4, %v18591_v44  ;;  %v1546_v59 = vshrl.u32 %v280_v25, 16  ;;  %20775 = vmatmul.mubr.msk.bf16.gmra.mrb[104].mxu1 %vm1936_vm4, %v17595_v48  ;;  %v1530_v60 = vrot.slane %v1529_v49, 4  ;;  %v1552_v58 = vshll.u32 %v281_v36, 16  ;;  %v1556_v21 = vshrl.u32 %v281_v36, 16  ;;  %v18517_v25 = vld [vmem:[%s23720_s9 + $0x104] sm:$0xe] }
 0x1a1   : > { %v1562_v0 = vshll.u32 %v326_v38, 16  ;;  %v1540_v26 = vrot.slane %v1539_v52, 4  ;;  %v9605_v56 = vsel %vm24244_vm8, %v18548_v51, %v9604_v54  ;;  %v9606_v62 = vrot.slane %v9604_v54, 4  ;;  %v327_v44 = vld [vmem:[%s23720_s9 + $0x240] sm:$0x1] }
 0x1a2   : > { %v1548_v53 = vrot.slane %v1546_v59, 4  ;;  %v1535_v63 = vsel %vm23738_vm5, %v1530_v60, %v1534_v40  ;;  %v1554_v3 = vrot.slane %v1552_v58, 5  ;;  %v1558_v5 = vrot.slane %v1556_v21, 4  ;;  %v23143_v48 = vld [vmem:[%s23720_s9 + $0x108] sm:$0xf] }
 0x1a3   : > { %v1564_v61 = vrot.slane %v1562_v0, 5  ;;  %v1545_v9 = vsel %vm23738_vm5, %v1540_v26, %v1544_v50  ;;  %v9608_v1 = vsel %vm24244_vm8, %v9606_v62, %v9607_v55  ;;  %v9609_v11 = vrot.slane %v9607_v55, 4  ;;  %v286_v55 = vld [vmem:[%s23720_s9 + $0x244] sm:$0xf] }
 0x1a4   : > { %v1549_v19 = vor.u32 %v1548_v53, %v1544_v50  ;;  %v17596_v8 = vcombine.low %v1535_v63, %v1545_v9  ;;  %v18592_v15 = vcombine.low %v9605_v56, %v9608_v1  ;;  %v1559_v2 = vor.u32 %v1558_v5, %v1554_v3  ;;  %v23144_v50 = vld [vmem:[%s23720_s9 + $0x10c] sm:$0xf]  ;;  %v287_v53 = vld [vmem:[%s23720_s9 + $0x248] sm:$0xf] }
 0x1a5   : > { %v9610_v30 = vrot.slane %v23141_v24, 5  ;;  %v9613_v22 = vrot.slane %v23142_v18, 5  ;;  %v1567_v23 = vshrl.u32 %v282_v6, 16  ;;  %v1570_v17 = vshll.u32 %v282_v6, 16 }
 0x1a6   : > { %v1550_v16 = vrot.slane %v1549_v19, 4  ;;  %20778 = vmatprep.mubr.msk.bf16.mxu1 %vm1936_vm4, %v17596_v8  ;;  %21364 = vmatprep.mubr.msk.bf16.mxu0 %vm1936_vm4, %v18592_v15  ;;  %v1560_v13 = vrot.slane %v1559_v2, 4  ;;  %v1576_v29 = vshll.u32 %v283_v57, 16  ;;  %v1580_v33 = vshrl.u32 %v283_v57, 16  ;;  %v23145_v19 = vld [vmem:[%s23720_s9 + $0x110] sm:$0xf] }
 0x1a7   : > { %v9611_v14 = vsel %vm24244_vm8, %v9609_v11, %v9610_v30  ;;  %v9612_v28 = vrot.slane %v9610_v30, 4  ;;  %v1569_v32 = vrot.slane %v1567_v23, 4  ;;  %v1572_v10 = vrot.slane %v1570_v17, 5  ;;  %v23146_v8 = vld [vmem:[%s23720_s9 + $0x114] sm:$0x1] }
 0x1a8   : > { %v1555_v31 = vsel %vm23738_vm5, %v1550_v16, %v1554_v3  ;;  %v1565_v34 = vsel %vm23738_vm5, %v1560_v13, %v1564_v61  ;;  %v1578_v36 = vrot.slane %v1576_v29, 5  ;;  %v1586_v38 = vshll.u32 %v284_v12, 16  ;;  %v288_v2 = vld [vmem:[%s23720_s9 + $0x24c] sm:$0xf] }
 0x1a9   : > { %v9614_v20 = vsel %vm24244_vm8, %v9612_v28, %v9613_v22  ;;  %v17597_v41 = vcombine.low %v1555_v31, %v1565_v34  ;;  %v1573_v43 = vor.u32 %v1572_v10, %v1569_v32  ;;  %v1582_v46 = vrot.slane %v1580_v33, 4  ;;  %v289_v10 = vld [vmem:[%s23720_s9 + $0x250] sm:$0xf]  ;;  %v328_v33 = vld [vmem:[%s23720_s9 + $0x254] sm:$0x1] }
 0x1aa   : > { %v18593_v42 = vcombine.low %v9611_v14, %v9614_v20  ;;  %v1588_v40 = vrot.slane %v1586_v38, 5  ;;  %v18549_v47 = vrot.slane %v18517_v25, 9  ;;  %v9617_v49 = vrot.slane %v23143_v48, 5  ;;  %v18518_v14 = vld [vmem:[%s23720_s9 + $0x118] sm:$0xe] }
 0x1ab   : > { %v9620_v51 = vrot.slane %v23144_v50, 5  ;;  %20779 = vmatmul.mubr.msk.bf16.gmra.mrb[108].mxu1 %vm1936_vm4, %v17597_v41  ;;  %v1574_v52 = vrot.slane %v1573_v43, 4  ;;  %v1583_v27 = vor.u32 %v1582_v46, %v1578_v36  ;;  %v1590_v54 = vshrl.u32 %v284_v12, 16 }
 0x1ac   : > { %21365 = vmatmul.mubr.msk.bf16.gmra.mrb[44].mxu0 %vm1936_vm4, %v18593_v42  ;;  %v1596_v45 = vshll.u32 %v285_v39, 16  ;;  %v9618_v59 = vsel %vm24244_vm8, %v18549_v47, %v9617_v49  ;;  %v9619_v60 = vrot.slane %v9617_v49, 4  ;;  %v1600_v58 = vshrl.u32 %v285_v39, 16  ;;  %v23148_v47 = vld [vmem:[%s23720_s9 + $0x120] sm:$0xf] }
 0x1ad   : > { %v1606_v21 = vshll.u32 %v327_v44, 16  ;;  %v1579_v0 = vsel %vm23738_vm5, %v1574_v52, %v1578_v36  ;;  %v1584_v26 = vrot.slane %v1583_v27, 4  ;;  %v1592_v56 = vrot.slane %v1590_v54, 4  ;;  %v23147_v44 = vld [vmem:[%s23720_s9 + $0x11c] sm:$0xf] }
 0x1ae   : > { %v1598_v62 = vrot.slane %v1596_v45, 5  ;;  %v9621_v63 = vsel %vm24244_vm8, %v9619_v60, %v9620_v51  ;;  %v1602_v3 = vrot.slane %v1600_v58, 4  ;;  %v9622_v61 = vrot.slane %v9620_v51, 4 }
 0x1af   : > { %v1608_v5 = vrot.slane %v1606_v21, 5  ;;  %v1589_v6 = vsel %vm23738_vm5, %v1584_v26, %v1588_v40  ;;  %v18594_v9 = vcombine.low %v9618_v59, %v9621_v63  ;;  %v1593_v1 = vor.u32 %v1592_v56, %v1588_v40  ;;  %v290_v26 = vld [vmem:[%s23720_s9 + $0x258] sm:$0xf] }
 0x1b0   : > { %v9623_v11 = vrot.slane %v23145_v19, 5  ;;  %v17598_v57 = vcombine.low %v1579_v0, %v1589_v6  ;;  %v1603_v12 = vor.u32 %v1602_v3, %v1598_v62  ;;  %v9626_v15 = vrot.slane %v23146_v8, 5  ;;  %v291_v3 = vld [vmem:[%s23720_s9 + $0x25c] sm:$0xf]  ;;  %v292_v19 = vld [vmem:[%s23720_s9 + $0x260] sm:$0xf] }
 0x1b1   : > { %v1611_v24 = vshrl.u32 %v286_v55, 16  ;;  %21368 = vmatprep.mubr.msk.bf16.mxu0 %vm1936_vm4, %v18594_v9  ;;  %v1594_v30 = vrot.slane %v1593_v1, 4  ;;  %v1614_v22 = vshll.u32 %v286_v55, 16  ;;  %v1620_v25 = vshll.u32 %v287_v53, 16  ;;  %v23149_v9 = vld [vmem:[%s23720_s9 + $0x124] sm:$0xf] }
 0x1b2   : > { %v9624_v16 = vsel %vm24244_vm8, %v9622_v61, %v9623_v11  ;;  %v9625_v18 = vrot.slane %v9623_v11, 4  ;;  %20782 = vmatprep.mubr.msk.bf16.mxu1 %vm1936_vm4, %v17598_v57  ;;  %v1604_v23 = vrot.slane %v1603_v12, 4  ;;  %v1624_v13 = vshrl.u32 %v287_v53, 16  ;;  %v23150_v57 = vld [vmem:[%s23720_s9 + $0x128] sm:$0x1] }
 0x1b3   : > { %v1613_v17 = vrot.slane %v1611_v24, 4  ;;  %v1599_v28 = vsel %vm23738_vm5, %v1594_v30, %v1598_v62  ;;  %v1616_v31 = vrot.slane %v1614_v22, 5  ;;  %v1630_v32 = vshll.u32 %v288_v2, 16  ;;  %v293_v22 = vld [vmem:[%s23720_s9 + $0x264] sm:$0xf] }
 0x1b4   : > { %v9627_v29 = vsel %vm24244_vm8, %v9625_v18, %v9626_v15  ;;  %v1609_v34 = vsel %vm23738_vm5, %v1604_v23, %v1608_v5  ;;  %v1622_v36 = vrot.slane %v1620_v25, 5  ;;  %v1626_v38 = vrot.slane %v1624_v13, 4 }
 0x1b5   : > { %v18595_v20 = vcombine.low %v9624_v16, %v9627_v29  ;;  %v17599_v39 = vcombine.low %v1599_v28, %v1609_v34  ;;  %v1617_v41 = vor.u32 %v1616_v31, %v1613_v17  ;;  %v1632_v42 = vrot.slane %v1630_v32, 5 }
 0x1b6   : > { %v18550_v43 = vrot.slane %v18518_v14, 9  ;;  %v1627_v46 = vor.u32 %v1626_v38, %v1622_v36  ;;  %v9630_v40 = vrot.slane %v23147_v44, 5  ;;  %v9633_v48 = vrot.slane %v23148_v47, 5 }
 0x1b7   : > { %21369 = vmatmul.mubr.msk.bf16.gmra.mrb[48].mxu0 %vm1936_vm4, %v18595_v20  ;;  %v1634_v49 = vshrl.u32 %v288_v2, 16  ;;  %20783 = vmatmul.mubr.msk.bf16.gmra.mrb[112].mxu1 %vm1936_vm4, %v17599_v39  ;;  %v1618_v50 = vrot.slane %v1617_v41, 4  ;;  %v1640_v51 = vshll.u32 %v289_v10, 16  ;;  %v1644_v52 = vshrl.u32 %v289_v10, 16  ;;  %v18519_v2 = vld [vmem:[%s23720_s9 + $0x12c] sm:$0xe] }
 0x1b8   : > { %v1650_v27 = vshll.u32 %v328_v33, 16  ;;  %v1628_v54 = vrot.slane %v1627_v46, 4  ;;  %v9631_v45 = vsel %vm24244_vm8, %v18550_v43, %v9630_v40  ;;  %v9632_v55 = vrot.slane %v9630_v40, 4  ;;  %v329_v20 = vld [vmem:[%s23720_s9 + $0x268] sm:$0x1] }
 0x1b9   : > { %v1636_v59 = vrot.slane %v1634_v49, 4  ;;  %v1623_v60 = vsel %vm23738_vm5, %v1618_v50, %v1622_v36  ;;  %v1642_v58 = vrot.slane %v1640_v51, 5  ;;  %v1646_v21 = vrot.slane %v1644_v52, 4  ;;  %v23151_v39 = vld [vmem:[%s23720_s9 + $0x130] sm:$0xf] }
 0x1ba   : > { %v1652_v0 = vrot.slane %v1650_v27, 5  ;;  %v1633_v56 = vsel %vm23738_vm5, %v1628_v54, %v1632_v42  ;;  %v9634_v62 = vsel %vm24244_vm8, %v9632_v55, %v9633_v48  ;;  %v9635_v63 = vrot.slane %v9633_v48, 4  ;;  %v294_v55 = vld [vmem:[%s23720_s9 + $0x26c] sm:$0xf] }
 0x1bb   : > { %v1637_v53 = vor.u32 %v1636_v59, %v1632_v42  ;;  %v17600_v5 = vcombine.low %v1623_v60, %v1633_v56  ;;  %v18596_v61 = vcombine.low %v9631_v45, %v9634_v62  ;;  %v1647_v6 = vor.u32 %v1646_v21, %v1642_v58  ;;  %v23152_v42 = vld [vmem:[%s23720_s9 + $0x134] sm:$0xf]  ;;  %v23153_v62 = vld [vmem:[%s23720_s9 + $0x138] sm:$0xf] }
 0x1bc   : > { %v9636_v1 = vrot.slane %v23149_v9, 5  ;;  %v9639_v12 = vrot.slane %v23150_v57, 5  ;;  %v1655_v8 = vshrl.u32 %v290_v26, 16  ;;  %v1658_v15 = vshll.u32 %v290_v26, 16  ;;  %v296_v9 = vld [vmem:[%s23720_s9 + $0x274] sm:$0xf] }
 0x1bd   : > { %v1638_v11 = vrot.slane %v1637_v53, 4  ;;  %20786 = vmatprep.mubr.msk.bf16.mxu1 %vm1936_vm4, %v17600_v5  ;;  %21372 = vmatprep.mubr.msk.bf16.mxu0 %vm1936_vm4, %v18596_v61  ;;  %v1648_v24 = vrot.slane %v1647_v6, 4  ;;  %v1664_v18 = vshll.u32 %v291_v3, 16  ;;  %v1668_v13 = vshrl.u32 %v291_v3, 16  ;;  %v23154_v61 = vld [vmem:[%s23720_s9 + $0x13c] sm:$0x1] }
 0x1be   : > { %v9637_v30 = vsel %vm24244_vm8, %v9635_v63, %v9636_v1  ;;  %v9638_v16 = vrot.slane %v9636_v1, 4  ;;  %v1657_v17 = vrot.slane %v1655_v8, 4  ;;  %v1660_v25 = vrot.slane %v1658_v15, 5  ;;  %v295_v63 = vld [vmem:[%s23720_s9 + $0x270] sm:$0xf] }
 0x1bf   : > { %v1643_v23 = vsel %vm23738_vm5, %v1638_v11, %v1642_v58  ;;  %v1653_v14 = vsel %vm23738_vm5, %v1648_v24, %v1652_v0  ;;  %v1666_v29 = vrot.slane %v1664_v18, 5  ;;  %v1674_v31 = vshll.u32 %v292_v19, 16 }
 0x1c0   : > { %v9640_v28 = vsel %vm24244_vm8, %v9638_v16, %v9639_v12  ;;  %v17601_v32 = vcombine.low %v1643_v23, %v1653_v14  ;;  %v1661_v33 = vor.u32 %v1660_v25, %v1657_v17  ;;  %v1670_v34 = vrot.slane %v1668_v13, 4 }
 0x1c1   : > { %v18597_v10 = vcombine.low %v9637_v30, %v9640_v28  ;;  %v1676_v36 = vrot.slane %v1674_v31, 5  ;;  %v18551_v38 = vrot.slane %v18519_v2, 9  ;;  %v9643_v41 = vrot.slane %v23151_v39, 5  ;;  %v18520_v30 = vld [vmem:[%s23720_s9 + $0x140] sm:$0xe] }
 0x1c2   : > { %v9646_v43 = vrot.slane %v23152_v42, 5  ;;  %20787 = vmatmul.mubr.msk.bf16.gmra.mrb[116].mxu1 %vm1936_vm4, %v17601_v32  ;;  %v1662_v46 = vrot.slane %v1661_v33, 4  ;;  %v1671_v44 = vor.u32 %v1670_v34, %v1666_v29  ;;  %v1678_v40 = vshrl.u32 %v292_v19, 16  ;;  %v297_v28 = vld [vmem:[%s23720_s9 + $0x278] sm:$0xf] }
 0x1c3   : > { %21373 = vmatmul.mubr.msk.bf16.gmra.mrb[52].mxu0 %vm1936_vm4, %v18597_v10  ;;  %v1684_v47 = vshll.u32 %v293_v22, 16  ;;  %v9644_v48 = vsel %vm24244_vm8, %v18551_v38, %v9643_v41  ;;  %v9645_v49 = vrot.slane %v9643_v41, 4  ;;  %v1688_v50 = vshrl.u32 %v293_v22, 16  ;;  %v23156_v38 = vld [vmem:[%s23720_s9 + $0x148] sm:$0xf] }
 0x1c4   : > { %v1694_v51 = vshll.u32 %v329_v20, 16  ;;  %v1667_v52 = vsel %vm23738_vm5, %v1662_v46, %v1666_v29  ;;  %v1672_v27 = vrot.slane %v1671_v44, 4  ;;  %v1680_v54 = vrot.slane %v1678_v40, 4  ;;  %v330_v29 = vld [vmem:[%s23720_s9 + $0x27c] sm:$0x1] }
 0x1c5   : > { %v1686_v45 = vrot.slane %v1684_v47, 5  ;;  %v9647_v59 = vsel %vm24244_vm8, %v9645_v49, %v9646_v43  ;;  %v1690_v60 = vrot.slane %v1688_v50, 4  ;;  %v9648_v21 = vrot.slane %v9646_v43, 4  ;;  %v23155_v20 = vld [vmem:[%s23720_s9 + $0x144] sm:$0xf] }
 0x1c6   : > { %v1696_v58 = vrot.slane %v1694_v51, 5  ;;  %v1677_v0 = vsel %vm23738_vm5, %v1672_v27, %v1676_v36  ;;  %v18598_v26 = vcombine.low %v9644_v48, %v9647_v59  ;;  %v1681_v56 = vor.u32 %v1680_v54, %v1676_v36  ;;  %v17830_v54 = vld [vmem:[%s29648_s1 + $0x4] sm:$0x3] }
 0x1c7   : > { %v9649_v53 = vrot.slane %v23153_v62, 5  ;;  %v17602_v3 = vcombine.low %v1667_v52, %v1677_v0  ;;  %v1691_v5 = vor.u32 %v1690_v60, %v1686_v45  ;;  %v9652_v6 = vrot.slane %v23154_v61, 5 }
 0x1c8   : > { %v1699_v1 = vshrl.u32 %v294_v55, 16  ;;  %21376 = vmatprep.mubr.msk.bf16.mxu0 %vm1936_vm4, %v18598_v26  ;;  %v1682_v19 = vrot.slane %v1681_v56, 4  ;;  %v1702_v12 = vshll.u32 %v294_v55, 16  ;;  %v1708_v2 = vshll.u32 %v295_v63, 16  ;;  %v23157_v56 = vld [vmem:[%s23720_s9 + $0x14c] sm:$0xf] }
 0x1c9   : > { %v9650_v11 = vsel %vm24244_vm8, %v9648_v21, %v9649_v53  ;;  %v9651_v57 = vrot.slane %v9649_v53, 4  ;;  %20790 = vmatprep.mubr.msk.bf16.mxu1 %vm1936_vm4, %v17602_v3  ;;  %v1692_v8 = vrot.slane %v1691_v5, 4  ;;  %v1712_v24 = vshrl.u32 %v295_v63, 16  ;;  %v18297_v53 = vld [vmem:[%s23720_s9 + $0x158] sm:$0xf] }
 0x1ca   : > { %v1701_v15 = vrot.slane %v1699_v1, 4  ;;  %v1687_v16 = vsel %vm23738_vm5, %v1682_v19, %v1686_v45  ;;  %v1704_v22 = vrot.slane %v1702_v12, 5  ;;  %v1718_v23 = vshll.u32 %v296_v9, 16  ;;  %v18298_v63 = vld [vmem:[%s23720_s9 + $0x15c] sm:$0xf] }
 0x1cb   : > { %v9653_v18 = vsel %vm24244_vm8, %v9651_v57, %v9652_v6  ;;  %v1697_v17 = vsel %vm23738_vm5, %v1692_v8, %v1696_v58  ;;  %v1710_v13 = vrot.slane %v1708_v2, 5  ;;  %v1714_v14 = vrot.slane %v1712_v24, 4  ;;  %v18521_v58 = vld [vmem:[%s23720_s9 + $0x154] sm:$0xe]  ;;  %v23158_v5 = vld [vmem:[%s23720_s9 + $0x150] sm:$0x1] }
 0x1cc   : > { %v18599_v25 = vcombine.low %v9650_v11, %v9653_v18  ;;  %v17603_v31 = vcombine.low %v1687_v16, %v1697_v17  ;;  %v1705_v32 = vor.u32 %v1704_v22, %v1701_v15  ;;  %v1720_v10 = vrot.slane %v1718_v23, 5  ;;  %v23159_v24 = vld [vmem:[%s23720_s9] sm:$0xf]  ;;  %v18300_v22 = vld [vmem:[%s23720_s9 + $0x164] sm:$0x1] }
 0x1cd   : > { %v18552_v33 = vrot.slane %v18520_v30, 9  ;;  %v1715_v34 = vor.u32 %v1714_v14, %v1710_v13  ;;  %v9656_v36 = vrot.slane %v23155_v20, 5  ;;  %v9659_v39 = vrot.slane %v23156_v38, 5  ;;  %v23160_v30 = vld [vmem:[%s23720_s9 + $0x4] sm:$0xf] }
 0x1ce   : > { %21377 = vmatmul.mubr.msk.bf16.gmra.mrb[56].mxu0 %vm1936_vm4, %v18599_v25  ;;  %v1722_v41 = vshrl.u32 %v296_v9, 16  ;;  %20791 = vmatmul.mubr.msk.bf16.gmra.mrb[120].mxu1 %vm1936_vm4, %v17603_v31  ;;  %v1706_v42 = vrot.slane %v1705_v32, 4  ;;  %v1728_v43 = vshll.u32 %v297_v28, 16  ;;  %v1732_v46 = vshrl.u32 %v297_v28, 16  ;;  %v18299_v18 = vld [vmem:[%s23720_s9 + $0x160] sm:$0xf] }
 0x1cf   : > { %v1738_v44 = vshll.u32 %v330_v29, 16  ;;  %v1716_v40 = vrot.slane %v1715_v34, 4  ;;  %v9657_v47 = vsel %vm24244_vm8, %v18552_v33, %v9656_v36  ;;  %v9658_v48 = vrot.slane %v9656_v36, 4  ;;  %v18302_v14 = vld [vmem:[%s23720_s9 + $0x16c] sm:$0xf] }
 0x1d0   : > { %v1724_v49 = vrot.slane %v1722_v41, 4  ;;  %v1711_v50 = vsel %vm23738_vm5, %v1706_v42, %v1710_v13  ;;  %v1730_v51 = vrot.slane %v1728_v43, 5  ;;  %v1734_v52 = vrot.slane %v1732_v46, 4  ;;  %v18522_v28 = vld [vmem:[%s23720_s9 + $0x168] sm:$0xe] }
 0x1d1   : > { %v1740_v27 = vrot.slane %v1738_v44, 5  ;;  %v1721_v45 = vsel %vm23738_vm5, %v1716_v40, %v1720_v10  ;;  %v9660_v55 = vsel %vm24244_vm8, %v9658_v48, %v9659_v39  ;;  %v9661_v60 = vrot.slane %v9659_v39, 4  ;;  %v18303_v31 = vld [vmem:[%s23720_s9 + $0x170] sm:$0xf]  ;;  %v18304_v34 = vld [vmem:[%s23720_s9 + $0x174] sm:$0xf] }
 0x1d2   : > { %v1725_v59 = vor.u32 %v1724_v49, %v1720_v10  ;;  %v17604_v21 = vcombine.low %v1711_v50, %v1721_v45  ;;  %v18600_v0 = vcombine.low %v9657_v47, %v9660_v55  ;;  %v1735_v26 = vor.u32 %v1734_v52, %v1730_v51  ;;  %v18305_v43 = vld [vmem:[%s23720_s9 + $0x178] sm:$0x1]  ;;  %v18307_v46 = vld [vmem:[%s23720_s9 + $0x180] sm:$0xf]  ;;  %v18308_v48 = vld [vmem:[%s23720_s9 + $0x184] sm:$0xf] }
 0x1d3   : > { %v9662_v62 = vrot.slane %v23157_v56, 5  ;;  %v9665_v61 = vrot.slane %v23158_v5, 5  ;;  %v24734_v6 = vand.u32 %v17830_v54, %v23696_v4  ;;  %v18553_v11 = vrot.slane %v18521_v58, 9  ;;  %v18523_v49 = vld [vmem:[%s23720_s9 + $0x17c] sm:$0xe] }
 0x1d4   : > { %v1726_v3 = vrot.slane %v1725_v59, 4  ;;  %20794 = vmatprep.mubr.msk.bf16.mxu1 %vm1936_vm4, %v17604_v21  ;;  %21380 = vmatprep.mubr.msk.bf16.mxu0 %vm1936_vm4, %v18600_v0  ;;  %v1736_v9 = vrot.slane %v1735_v26, 4  ;;  %v9669_v12 = vrot.slane %v18297_v53, 5  ;;  %v9672_v8 = vrot.slane %v18298_v63, 5  ;;  %v24772_v50 = vld [vmem:[%s23720_s9 + $0x8] sm:$0xf] }
 0x1d5   : > { %v9663_v1 = vsel %vm24244_vm8, %v9661_v60, %v9662_v62  ;;  %v9664_v19 = vrot.slane %v9662_v62, 4  ;;  %20928 = vmatprep.subr.bf16.mxu1 %v24734_v6  ;;  %v17670_v16 = vcombine.low %v23159_v24, %v23160_v30  ;;  %v9675_v10 = vrot.slane %v18299_v18, 5  ;;  %v23163_v54 = vld [vmem:[%s23720_s9 + $0x14] sm:$0xf]  ;;  %v24783_v45 = vld [vmem:[%s23720_s9 + $0x18] sm:$0xf] }
 0x1d6   : > { %v1731_v57 = vsel %vm23738_vm5, %v1726_v3, %v1730_v51  ;;  %v1741_v15 = vsel %vm23738_vm5, %v1736_v9, %v1740_v27  ;;  %v9670_v25 = vsel %vm24244_vm8, %v18553_v11, %v9669_v12  ;;  %v9671_v13 = vrot.slane %v9669_v12, 4  ;;  %v24775_v51 = vld [vmem:[%s23720_s9 + $0xc] sm:$0xf]  ;;  %v18309_v63 = vld [vmem:[%s23720_s9 + $0x188] sm:$0xf] }
 0x1d7   : > { %v9666_v2 = vsel %vm24244_vm8, %v9664_v19, %v9665_v61  ;;  %v17605_v23 = vcombine.low %v1731_v57, %v1741_v15  ;;  %v9674_v29 = vrot.slane %v9672_v8, 4  ;;  %v9678_v33 = vrot.slane %v18300_v22, 5  ;;  %v18312_v3 = vld [vmem:[%s23720_s9 + $0x194] sm:$0xf]  ;;  %v18313_v12 = vld [vmem:[%s23720_s9 + $0x198] sm:$0xf] }
 0x1d8   : > { %v18601_v17 = vcombine.low %v9663_v1, %v9666_v2  ;;  %v9673_v32 = vsel %vm24244_vm8, %v9671_v13, %v9672_v8  ;;  %v18554_v36 = vrot.slane %v18522_v28, 9  ;;  %v9682_v38 = vrot.slane %v18302_v14, 5  ;;  %v18524_v8 = vld [vmem:[%s23720_s9 + $0x190] sm:$0xe]  ;;  %v24807_v15 = vld [vmem:[%s23720_s9 + $0x1c] sm:$0xf] }
 0x1d9   : > { %20795 = vmatmul.mubr.msk.bf16.gmra.mrb[124].mxu1 %vm1936_vm4, %v17605_v23  ;;  %v18602_v20 = vcombine.low %v9670_v25, %v9673_v32  ;;  %v9676_v39 = vsel %vm24244_vm8, %v9674_v29, %v9675_v10  ;;  %v9677_v41 = vrot.slane %v9675_v10, 4  ;;  %v9685_v42 = vrot.slane %v18303_v31, 5  ;;  %v24810_v2 = vld [vmem:[%s23720_s9 + $0x20] sm:$0xf]  ;;  %v24816_v18 = vld [vmem:[%s23720_s9 + $0x2c] sm:$0xf] }
 0x1da   : > { %21381 = vmatmul.mubr.msk.bf16.gmra.mrb[60].mxu0 %vm1936_vm4, %v18601_v17  ;;  %20800 = vmatprep.mubr.msk.bf16.mxu1 %vm1936_vm4, %v17670_v16  ;;  %v9683_v44 = vsel %vm24244_vm8, %v18554_v36, %v9682_v38  ;;  %v9684_v40 = vrot.slane %v9682_v38, 4  ;;  %v9688_v47 = vrot.slane %v18304_v34, 5  ;;  %v17671_v52 = vcombine.low %v24772_v50, %v24775_v51  ;;  %v23167_v16 = vld [vmem:[%s23720_s9 + $0x28] sm:$0xf]  ;;  %v18314_v31 = vld [vmem:[%s23720_s9 + $0x19c] sm:$0xf] }
 0x1db   : > { %21384 = vmatprep.mubr.msk.bf16.mxu0 %vm1936_vm4, %v18602_v20  ;;  %v9679_v27 = vsel %vm24244_vm8, %v9677_v41, %v9678_v33  ;;  %v17672_v55 = vcombine.low %v23163_v54, %v24783_v45  ;;  %v9687_v59 = vrot.slane %v9685_v42, 4  ;;  %v9691_v0 = vrot.slane %v18305_v43, 5  ;;  %v18317_v32 = vld [vmem:[%s23720_s9 + $0x1a8] sm:$0xf]  ;;  %v18315_v38 = vld [vmem:[%s23720_s9 + $0x1a0] sm:$0x1] }
 0x1dc   : > { %v18603_v60 = vcombine.low %v9676_v39, %v9679_v27  ;;  %v9686_v58 = vsel %vm24244_vm8, %v9684_v40, %v9685_v42  ;;  %v9690_v21 = vrot.slane %v9688_v47, 4  ;;  %v18555_v56 = vrot.slane %v18523_v49, 9  ;;  %v18318_v41 = vld [vmem:[%s23720_s9 + $0x1ac] sm:$0xf]  ;;  %v18525_v42 = vld [vmem:[%s23720_s9 + $0x1a4] sm:$0xe] }
 0x1dd   : > { %v18604_v26 = vcombine.low %v9683_v44, %v9686_v58  ;;  %v9695_v62 = vrot.slane %v18307_v46, 5  ;;  %v9698_v53 = vrot.slane %v18308_v48, 5  ;;  %v9689_v61 = vsel %vm24244_vm8, %v9687_v59, %v9688_v47  ;;  %v24837_v43 = vld [vmem:[%s23720_s9 + $0x30] sm:$0xf]  ;;  %v24840_v46 = vld [vmem:[%s23720_s9 + $0x34] sm:$0xf] }
 0x1de   : > { %v9692_v9 = vsel %vm24244_vm8, %v9690_v21, %v9691_v0  ;;  %v9701_v1 = vrot.slane %v18309_v63, 5  ;;  %v9708_v57 = vrot.slane %v18312_v3, 5  ;;  %v17673_v24 = vcombine.low %v24807_v15, %v24810_v2  ;;  %v23171_v47 = vld [vmem:[%s23720_s9 + $0x3c] sm:$0xf]  ;;  %v24846_v48 = vld [vmem:[%s23720_s9 + $0x40] sm:$0xf] }
 0x1df   : > { %v9697_v5 = vrot.slane %v9695_v62, 4  ;;  %v9696_v19 = vsel %vm24244_vm8, %v18555_v56, %v9695_v62  ;;  %v18605_v30 = vcombine.low %v9689_v61, %v9692_v9  ;;  %v17674_v22 = vcombine.low %v23167_v16, %v24816_v18  ;;  %v18319_v21 = vld [vmem:[%s23720_s9 + $0x1b0] sm:$0xf]  ;;  %v18322_v0 = vld [vmem:[%s23720_s9 + $0x1bc] sm:$0xf] }
 0x1e0   : > { %v9700_v17 = vrot.slane %v9698_v53, 4  ;;  %v9703_v25 = vrot.slane %v9701_v1, 4  ;;  %v18556_v14 = vrot.slane %v18524_v8, 9  ;;  %v9710_v28 = vrot.slane %v9708_v57, 4  ;;  %v18320_v3 = vld [vmem:[%s23720_s9 + $0x1b4] sm:$0x1] }
 0x1e1   : > { %20801 = vmatmul.mubr.msk.bf16.vlgmr.msra.gmra.mrb[0].mxu1 %vm1936_vm4, %v17671_v52  ;;  %v9699_v11 = vsel %vm24244_vm8, %v9697_v5, %v9698_v53  ;;  %v9711_v29 = vrot.slane %v18313_v12, 5  ;;  %v9714_v34 = vrot.slane %v18314_v31, 5  ;;  %v9721_v39 = vrot.slane %v18317_v32, 5  ;;  %v18323_v61 = vld [vmem:[%s23720_s9 + $0x1c0] sm:$0xf] }
 0x1e2   : > { %21385 = vmatmul.mubr.msk.bf16.gmra.mrb[64].mxu0 %vm1936_vm4, %v18603_v60  ;;  %20929 = vmatpush3.bf16.msra.mxu1 %v24734_v6  ;;  %v18310_v6 = vld [vmem:[%s23720_s9 + $0x18c] sm:$0x1]  ;;  %v18606_v23 = vcombine.low %v9696_v19, %v9699_v11  ;;  %v9702_v10 = vsel %vm24244_vm8, %v9700_v17, %v9701_v1  ;;  %v9709_v20 = vsel %vm24244_vm8, %v18556_v14, %v9708_v57  ;;  %v18557_v59 = vrot.slane %v18525_v42, 9  ;;  %v18526_v9 = vld [vmem:[%s23720_s9 + $0x1b8] sm:$0xe] }
 0x1e3   : > { %20804 = vmatprep.mubr.msk.bf16.mxu1 %vm1936_vm4, %v17672_v55  ;;  %21388 = vmatprep.mubr.msk.bf16.mxu0 %vm1936_vm4, %v18604_v26  ;;  %v9704_v13 = vrot.slane %v18310_v6, 5  ;;  %v9712_v36 = vsel %vm24244_vm8, %v9710_v28, %v9711_v29  ;;  %v17675_v44 = vcombine.low %v24837_v43, %v24840_v46  ;;  %v17676_v49 = vcombine.low %v23171_v47, %v24846_v48  ;;  %v24867_v1 = vld [vmem:[%s23720_s9 + $0x44] sm:$0xf]  ;;  %v24870_v19 = vld [vmem:[%s23720_s9 + $0x48] sm:$0xf] }
 0x1e4   : > { %v18608_v52 = vcombine.low %v9709_v20, %v9712_v36  ;;  %v9713_v27 = vrot.slane %v9711_v29, 4  ;;  %v9716_v54 = vrot.slane %v9714_v34, 4  ;;  %v9717_v55 = vrot.slane %v18315_v38, 5  ;;  %v23175_v57 = vld [vmem:[%s23720_s9 + $0x50] sm:$0xf] }
 0x1e5   : > { %v9705_v33 = vsel %vm24244_vm8, %v9703_v25, %v9704_v13  ;;  %v9723_v60 = vrot.slane %v9721_v39, 4  ;;  %v9724_v58 = vrot.slane %v18318_v41, 5  ;;  %v9727_v62 = vrot.slane %v18319_v21, 5  ;;  %v24876_v12 = vld [vmem:[%s23720_s9 + $0x54] sm:$0xf] }
 0x1e6   : > { %v18607_v40 = vcombine.low %v9702_v10, %v9705_v33  ;;  %v9715_v26 = vsel %vm24244_vm8, %v9713_v27, %v9714_v34  ;;  %v9718_v56 = vsel %vm24244_vm8, %v9716_v54, %v9717_v55  ;;  %v9722_v53 = vsel %vm24244_vm8, %v18557_v59, %v9721_v39  ;;  %v18324_v13 = vld [vmem:[%s23720_s9 + $0x1c4] sm:$0xf]  ;;  %v18327_v14 = vld [vmem:[%s23720_s9 + $0x1d0] sm:$0xf]  ;;  %v18325_v33 = vld [vmem:[%s23720_s9 + $0x1c8] sm:$0x1] }
 0x1e7   : > { %v9725_v63 = vsel %vm24244_vm8, %v9723_v60, %v9724_v58  ;;  %v9734_v5 = vrot.slane %v18322_v0, 5  ;;  %v17677_v11 = vcombine.low %v24867_v1, %v24870_v19  ;;  %v18609_v6 = vcombine.low %v9715_v26, %v9718_v56  ;;  %v18328_v20 = vld [vmem:[%s23720_s9 + $0x1d4] sm:$0xf]  ;;  %v18527_v36 = vld [vmem:[%s23720_s9 + $0x1cc] sm:$0xe] }
 0x1e8   : > { %v17678_v8 = vcombine.low %v23175_v57, %v24876_v12  ;;  %v9729_v16 = vrot.slane %v9727_v62, 4  ;;  %v9737_v25 = vrot.slane %v18323_v61, 5  ;;  %v9740_v31 = vrot.slane %v18324_v13, 5  ;;  %v24897_v38 = vld [vmem:[%s23720_s9 + $0x58] sm:$0xf] }
 0x1e9   : > { %20805 = vmatmul.mubr.msk.bf16.gmra.mrb[4].mxu1 %vm1936_vm4, %v17673_v24  ;;  %v18610_v24 = vcombine.low %v9722_v53, %v9725_v63  ;;  %v9736_v17 = vrot.slane %v9734_v5, 4  ;;  %v9747_v34 = vrot.slane %v18327_v14, 5  ;;  %v24900_v39 = vld [vmem:[%s23720_s9 + $0x5c] sm:$0xf]  ;;  %v9743_v54 = vrot.slane %v18325_v33, 5 }
 0x1ea   : > { %21389 = vmatmul.mubr.msk.bf16.gmra.mrb[68].mxu0 %vm1936_vm4, %v18605_v30  ;;  %20808 = vmatprep.mubr.msk.bf16.mxu1 %vm1936_vm4, %v17674_v22  ;;  %v9726_v30 = vrot.slane %v9724_v58, 4  ;;  %v9730_v22 = vrot.slane %v18320_v3, 5  ;;  %v17679_v41 = vcombine.low %v24897_v38, %v24900_v39  ;;  %v9742_v27 = vrot.slane %v9740_v31, 4  ;;  %v18329_v58 = vld [vmem:[%s23720_s9 + $0x1d8] sm:$0xf] }
 0x1eb   : > { %21392 = vmatprep.mubr.msk.bf16.mxu0 %vm1936_vm4, %v18606_v23  ;;  %v18558_v23 = vrot.slane %v18526_v9, 9  ;;  %v9738_v10 = vsel %vm24244_vm8, %v9736_v17, %v9737_v25  ;;  %v18559_v55 = vrot.slane %v18527_v36, 9  ;;  %v9749_v59 = vrot.slane %v9747_v34, 4  ;;  %v18332_v21 = vld [vmem:[%s23720_s9 + $0x1e4] sm:$0xf] }
 0x1ec   : > { %v9728_v28 = vsel %vm24244_vm8, %v9726_v30, %v9727_v62  ;;  %v9731_v29 = vsel %vm24244_vm8, %v9729_v16, %v9730_v22  ;;  %v9750_v60 = vrot.slane %v18328_v20, 5  ;;  %v9744_v26 = vsel %vm24244_vm8, %v9742_v27, %v9743_v54  ;;  %v18330_v63 = vld [vmem:[%s23720_s9 + $0x1dc] sm:$0x1]  ;;  %v18528_v61 = vld [vmem:[%s23720_s9 + $0x1e0] sm:$0xe] }
 0x1ed   : > { %v9735_v32 = vsel %vm24244_vm8, %v18558_v23, %v9734_v5  ;;  %v18611_v42 = vcombine.low %v9728_v28, %v9731_v29  ;;  %v9753_v56 = vrot.slane %v18329_v58, 5  ;;  %v9748_v62 = vsel %vm24244_vm8, %v18559_v55, %v9747_v34  ;;  %v18333_v5 = vld [vmem:[%s23720_s9 + $0x1e8] sm:$0xf]  ;;  %v24927_v9 = vld [vmem:[%s23720_s9 + $0x6c] sm:$0xf] }
 0x1ee   : > { %v9751_v53 = vsel %vm24244_vm8, %v9749_v59, %v9750_v60  ;;  %v9760_v3 = vrot.slane %v18332_v21, 5  ;;  %v9752_v22 = vrot.slane %v9750_v60, 4  ;;  %v9756_v17 = vrot.slane %v18330_v63, 5  ;;  %v18334_v28 = vld [vmem:[%s23720_s9 + $0x1ec] sm:$0xf] }
 0x1ef   : > { %v18614_v16 = vcombine.low %v9748_v62, %v9751_v53  ;;  %v9755_v23 = vrot.slane %v9753_v56, 4  ;;  %v9763_v14 = vrot.slane %v18333_v5, 5  ;;  %v18337_v29 = vld [vmem:[%s23720_s9 + $0x1f8] sm:$0xf]  ;;  %v18335_v20 = vld [vmem:[%s23720_s9 + $0x1f0] sm:$0x1] }
 0x1f0   : > { %v9762_v13 = vrot.slane %v9760_v3, 4  ;;  %v9773_v36 = vrot.slane %v18337_v29, 5  ;;  %v23187_v27 = vld [vmem:[%s23720_s9 + $0x8c] sm:$0xf]  ;;  %v24966_v54 = vld [vmem:[%s23720_s9 + $0x90] sm:$0xf] }
 0x1f1   : > { %20809 = vmatmul.mubr.msk.bf16.gmra.mrb[8].mxu1 %vm1936_vm4, %v17675_v44  ;;  %v23179_v44 = vld [vmem:[%s23720_s9 + $0x64] sm:$0xf]  ;;  %v17684_v55 = vcombine.low %v23187_v27, %v24966_v54  ;;  %v9765_v60 = vrot.slane %v9763_v14, 4  ;;  %v9769_v21 = vrot.slane %v18335_v20, 5  ;;  %v18339_v62 = vld [vmem:[%s23720_s9 + $0x200] sm:$0xf] }
 0x1f2   : > { %21393 = vmatmul.mubr.msk.bf16.gmra.mrb[72].mxu0 %vm1936_vm4, %v18607_v40  ;;  %20812 = vmatprep.mubr.msk.bf16.mxu1 %vm1936_vm4, %v17676_v49  ;;  %v24906_v40 = vld [vmem:[%s23720_s9 + $0x68] sm:$0xf]  ;;  %v18612_v49 = vcombine.low %v9735_v32, %v9738_v10  ;;  %v9757_v32 = vsel %vm24244_vm8, %v9755_v23, %v9756_v17  ;;  %v9766_v10 = vrot.slane %v18334_v28, 5  ;;  %v9764_v34 = vsel %vm24244_vm8, %v9762_v13, %v9763_v14  ;;  %v18342_v53 = vld [vmem:[%s23720_s9 + $0x20c] sm:$0xf] }
 0x1f3   : > { %21396 = vmatprep.mubr.msk.bf16.mxu0 %vm1936_vm4, %v18608_v52  ;;  %v17680_v47 = vcombine.low %v23179_v44, %v24906_v40  ;;  %v9739_v52 = vrot.slane %v9737_v25, 4  ;;  %v18560_v25 = vrot.slane %v18528_v61, 9  ;;  %v24957_v44 = vld [vmem:[%s23720_s9 + $0x80] sm:$0xf]  ;;  %v18340_v5 = vld [vmem:[%s23720_s9 + $0x204] sm:$0x1] }
 0x1f4   : > { %v9768_v58 = vrot.slane %v9766_v10, 4  ;;  %v9767_v63 = vsel %vm24244_vm8, %v9765_v60, %v9766_v10  ;;  %v9779_v61 = vrot.slane %v18339_v62, 5  ;;  %v24990_v23 = vld [vmem:[%s23720_s9 + $0x94] sm:$0xf]  ;;  %v24993_v17 = vld [vmem:[%s23720_s9 + $0x98] sm:$0xf] }
 0x1f5   : > { %v9741_v0 = vsel %vm24244_vm8, %v9739_v52, %v9740_v31  ;;  %v9754_v31 = vsel %vm24244_vm8, %v9752_v22, %v9753_v56  ;;  %v9761_v33 = vsel %vm24244_vm8, %v18560_v25, %v9760_v3  ;;  %v18530_v22 = vld [vmem:[%s23720_s9 + $0x208] sm:$0xe]  ;;  %v17685_v25 = vcombine.low %v24990_v23, %v24993_v17  ;;  %v23191_v14 = vld [vmem:[%s23720_s9 + $0xa0] sm:$0xf]  ;;  %v24999_v28 = vld [vmem:[%s23720_s9 + $0xa4] sm:$0xf] }
 0x1f6   : > { %v18613_v57 = vcombine.low %v9741_v0, %v9744_v26  ;;  %v18615_v52 = vcombine.low %v9754_v31, %v9757_v32  ;;  %v18616_v59 = vcombine.low %v9761_v33, %v9764_v34  ;;  %v9775_v26 = vrot.slane %v9773_v36, 4  ;;  %v25027_v62 = vld [vmem:[%s23720_s9 + $0xac] sm:$0xf] }
 0x1f7   : > { %v9770_v3 = vsel %vm24244_vm8, %v9768_v58, %v9769_v21  ;;  %v17686_v29 = vcombine.low %v23191_v14, %v24999_v28  ;;  %v9782_v31 = vrot.slane %v18340_v5, 5  ;;  %v9781_v33 = vrot.slane %v9779_v61, 4  ;;  %v18345_v58 = vld [vmem:[%s23720_s9 + $0x218] sm:$0x1]  ;;  %v18352_v14 = vld [vmem:[%s23720_s9 + $0x234] sm:$0xf] }
 0x1f8   : > { %v18617_v13 = vcombine.low %v9767_v63, %v9770_v3  ;;  %v18562_v20 = vrot.slane %v18530_v22, 9  ;;  %v23195_v3 = vld [vmem:[%s23720_s9 + $0xb4] sm:$0xf]  ;;  %v25033_v5 = vld [vmem:[%s23720_s9 + $0xb8] sm:$0xf] }
 0x1f9   : > { %20813 = vmatmul.mubr.msk.bf16.gmra.mrb[12].mxu1 %vm1936_vm4, %v17677_v11  ;;  %v24930_v11 = vld [vmem:[%s23720_s9 + $0x70] sm:$0xf]  ;;  %v9783_v27 = vsel %vm24244_vm8, %v9781_v33, %v9782_v31 }
 0x1fa   : > { %21397 = vmatmul.mubr.msk.bf16.gmra.mrb[76].mxu0 %vm1936_vm4, %v18609_v6  ;;  %20816 = vmatprep.mubr.msk.bf16.mxu1 %vm1936_vm4, %v17678_v8  ;;  %v17681_v6 = vcombine.low %v24927_v9, %v24930_v11  ;;  %v23183_v8 = vld [vmem:[%s23720_s9 + $0x78] sm:$0xf] }
 0x1fb   : > { %21400 = vmatprep.mubr.msk.bf16.mxu0 %vm1936_vm4, %v18610_v24  ;;  %v24936_v24 = vld [vmem:[%s23720_s9 + $0x7c] sm:$0xf] }
 0x1fc   : > { %v17682_v30 = vcombine.low %v23183_v8, %v24936_v24  ;;  %v9786_v8 = vrot.slane %v18342_v53, 5 }
 0x201   : > { %20817 = vmatmul.mubr.msk.bf16.gmra.mrb[16].mxu1 %vm1936_vm4, %v17679_v41  ;;  %v18338_v41 = vld [vmem:[%s23720_s9 + $0x1fc] sm:$0xf] }
 0x202   : > { %21401 = vmatmul.mubr.msk.bf16.gmra.mrb[80].mxu0 %vm1936_vm4, %v18611_v42  ;;  %20820 = vmatprep.mubr.msk.bf16.mxu1 %vm1936_vm4, %v17680_v47  ;;  %v18529_v42 = vld [vmem:[%s23720_s9 + $0x1f4] sm:$0xe]  ;;  %v24960_v47 = vld [vmem:[%s23720_s9 + $0x84] sm:$0xf]  ;;  %v9776_v56 = vrot.slane %v18338_v41, 5 }
 0x203   : > { %21404 = vmatprep.mubr.msk.bf16.mxu0 %vm1936_vm4, %v18612_v49  ;;  %v17683_v49 = vcombine.low %v24957_v44, %v24960_v47  ;;  %v18561_v0 = vrot.slane %v18529_v42, 9  ;;  %v18344_v42 = vld [vmem:[%s23720_s9 + $0x214] sm:$0xf] }
 0x204   : > { %v9778_v10 = vrot.slane %v9776_v56, 4 }
 0x209   : > { %20821 = vmatmul.mubr.msk.bf16.gmra.mrb[20].mxu1 %vm1936_vm4, %v17681_v6  ;;  %v9774_v6 = vsel %vm24244_vm8, %v18561_v0, %v9773_v36  ;;  %v9788_v36 = vrot.slane %v9786_v8, 4  ;;  %v18348_v0 = vld [vmem:[%s23720_s9 + $0x224] sm:$0xf] }
 0x20a   : > { %21405 = vmatmul.mubr.msk.bf16.gmra.mrb[84].mxu0 %vm1936_vm4, %v18613_v57  ;;  %20824 = vmatprep.mubr.msk.bf16.mxu1 %vm1936_vm4, %v17682_v30  ;;  %v9777_v57 = vsel %vm24244_vm8, %v9775_v26, %v9776_v56  ;;  %v19115_v30 = vld [vmem:[%s29648_s1 + $0xe] sm:$0x3]  ;;  %v18531_v26 = vld [vmem:[%s23720_s9 + $0x21c] sm:$0xe]  ;;  %v25024_v56 = vld [vmem:[%s23720_s9 + $0xa8] sm:$0xf] }
 0x20b   : > { %21408 = vmatprep.mubr.msk.bf16.mxu0 %vm1936_vm4, %v18614_v16  ;;  %v18343_v16 = vld [vmem:[%s23720_s9 + $0x210] sm:$0xf]  ;;  %v18618_v32 = vcombine.low %v9774_v6, %v9777_v57  ;;  %v25003_v34 = vand.u32 %v19115_v30, %v23696_v4  ;;  %v17687_v53 = vcombine.low %v25024_v56, %v25027_v62  ;;  %v9795_v30 = vrot.slane %v18345_v58, 5 }
 0x20c   : > { %v9789_v41 = vrot.slane %v18343_v16, 5  ;;  %v18563_v16 = vrot.slane %v18531_v26, 9 }
 0x20d   : > { %21578 = vmatprep.subr.bf16.mxu0 %v25003_v34 }
 0x20e   : > { %v9790_v60 = vsel %vm24244_vm8, %v9788_v36, %v9789_v41  ;;  %v9791_v57 = vrot.slane %v9789_v41, 4  ;;  %v9812_v36 = vrot.slane %v18352_v14, 5  ;;  %v18353_v41 = vld [vmem:[%s23720_s9 + $0x238] sm:$0xf] }
 0x211   : > { %20825 = vmatmul.mubr.msk.bf16.gmra.mrb[24].mxu1 %vm1936_vm4, %v17683_v49  ;;  %v18347_v49 = vld [vmem:[%s23720_s9 + $0x220] sm:$0xf] }
 0x212   : > { %21409 = vmatmul.mubr.msk.bf16.gmra.mrb[88].mxu0 %vm1936_vm4, %v18615_v52  ;;  %20828 = vmatprep.mubr.msk.bf16.mxu1 %vm1936_vm4, %v17684_v55  ;;  %v9780_v52 = vsel %vm24244_vm8, %v9778_v10, %v9779_v61  ;;  %v9792_v55 = vrot.slane %v18344_v42, 5  ;;  %v9799_v21 = vrot.slane %v18347_v49, 5  ;;  %v17688_v61 = vcombine.low %v23195_v3, %v25033_v5  ;;  %v18532_v42 = vld [vmem:[%s23720_s9 + $0x230] sm:$0xe]  ;;  %v25054_v49 = vld [vmem:[%s23720_s9 + $0xbc] sm:$0xf] }
 0x213   : > { %21412 = vmatprep.mubr.msk.bf16.mxu0 %vm1936_vm4, %v18616_v59  ;;  %v9787_v59 = vsel %vm24244_vm8, %v18562_v20, %v9786_v8  ;;  %v18619_v63 = vcombine.low %v9780_v52, %v9783_v27  ;;  %v18350_v20 = vld [vmem:[%s23720_s9 + $0x22c] sm:$0x1]  ;;  %v25057_v52 = vld [vmem:[%s23720_s9 + $0xc0] sm:$0xf]  ;;  %v9814_v3 = vrot.slane %v9812_v36, 4 }
 0x214   : > { %v18620_v6 = vcombine.low %v9787_v59, %v9790_v60  ;;  %v9794_v8 = vrot.slane %v9792_v55, 4  ;;  %v9801_v22 = vrot.slane %v9799_v21, 4  ;;  %v9800_v10 = vsel %vm24244_vm8, %v18563_v16, %v9799_v21  ;;  %v23199_v59 = vld [vmem:[%s23720_s9 + $0xc8] sm:$0xf]  ;;  %v25063_v60 = vld [vmem:[%s23720_s9 + $0xcc] sm:$0xf] }
 0x215   : > { %v17689_v27 = vcombine.low %v25054_v49, %v25057_v52  ;;  %v17690_v58 = vcombine.low %v23199_v59, %v25063_v60 }
 0x216   : > { %v9796_v31 = vsel %vm24244_vm8, %v9794_v8, %v9795_v30 }
 0x219   : > { %20829 = vmatmul.mubr.msk.bf16.gmra.mrb[28].mxu1 %vm1936_vm4, %v17685_v25  ;;  %v9802_v25 = vrot.slane %v18348_v0, 5 }
 0x21a   : > { %21413 = vmatmul.mubr.msk.bf16.gmra.mrb[92].mxu0 %vm1936_vm4, %v18617_v13  ;;  %20832 = vmatprep.mubr.msk.bf16.mxu1 %vm1936_vm4, %v17686_v29  ;;  %v18349_v13 = vld [vmem:[%s23720_s9 + $0x228] sm:$0xf]  ;;  %v9793_v29 = vsel %vm24244_vm8, %v9791_v57, %v9792_v55 }
 0x21b   : > { %21416 = vmatprep.mubr.msk.bf16.mxu0 %vm1936_vm4, %v18618_v32  ;;  %v9805_v32 = vrot.slane %v18349_v13, 5  ;;  %v9803_v33 = vsel %vm24244_vm8, %v9801_v22, %v9802_v25  ;;  %v18621_v55 = vcombine.low %v9793_v29, %v9796_v31  ;;  %v9804_v0 = vrot.slane %v9802_v25, 4  ;;  %v18357_v57 = vld [vmem:[%s23720_s9 + $0x248] sm:$0xf]  ;;  %v18355_v13 = vld [vmem:[%s23720_s9 + $0x240] sm:$0x1] }
 0x21c   : > { %v18622_v21 = vcombine.low %v9800_v10, %v9803_v33  ;;  %v9825_v14 = vrot.slane %v18357_v57, 5  ;;  %v18358_v29 = vld [vmem:[%s23720_s9 + $0x24c] sm:$0xf]  ;;  %v18533_v31 = vld [vmem:[%s23720_s9 + $0x244] sm:$0xe] }
 0x21d   : > { %v9807_v26 = vrot.slane %v9805_v32, 4  ;;  %v9806_v8 = vsel %vm24244_vm8, %v9804_v0, %v9805_v32  ;;  %v25084_v10 = vld [vmem:[%s23720_s9 + $0xd0] sm:$0xf]  ;;  %v25087_v33 = vld [vmem:[%s23720_s9 + $0xd4] sm:$0xf] }
 0x21e   : > { %v17691_v32 = vcombine.low %v25084_v10, %v25087_v33  ;;  %v9827_v0 = vrot.slane %v9825_v14, 4 }
 0x221   : > { %20833 = vmatmul.mubr.msk.bf16.gmra.mrb[32].mxu1 %vm1936_vm4, %v17687_v53  ;;  %v9808_v53 = vrot.slane %v18350_v20, 5 }
 0x222   : > { %21417 = vmatmul.mubr.msk.bf16.gmra.mrb[96].mxu0 %vm1936_vm4, %v18619_v63  ;;  %20836 = vmatprep.mubr.msk.bf16.mxu1 %vm1936_vm4, %v17688_v61  ;;  %v18564_v63 = vrot.slane %v18532_v42, 9  ;;  %v9815_v61 = vrot.slane %v18353_v41, 5  ;;  %v23203_v41 = vld [vmem:[%s23720_s9 + $0xdc] sm:$0xf]  ;;  %v25093_v42 = vld [vmem:[%s23720_s9 + $0xe0] sm:$0xf] }
 0x223   : > { %21420 = vmatprep.mubr.msk.bf16.mxu0 %vm1936_vm4, %v18620_v6  ;;  %v18354_v6 = vld [vmem:[%s23720_s9 + $0x23c] sm:$0xf]  ;;  %v9809_v30 = vsel %vm24244_vm8, %v9807_v26, %v9808_v53  ;;  %v9828_v26 = vrot.slane %v18358_v29, 5  ;;  %v18359_v53 = vld [vmem:[%s23720_s9 + $0x250] sm:$0xf] }
 0x224   : > { %v9818_v16 = vrot.slane %v18354_v6, 5  ;;  %v9813_v22 = vsel %vm24244_vm8, %v18564_v63, %v9812_v36  ;;  %v9816_v25 = vsel %vm24244_vm8, %v9814_v3, %v9815_v61  ;;  %v18623_v20 = vcombine.low %v9806_v8, %v9809_v30  ;;  %v18362_v63 = vld [vmem:[%s23720_s9 + $0x25c] sm:$0xf]  ;;  %v18360_v30 = vld [vmem:[%s23720_s9 + $0x254] sm:$0x1] }
 0x225   : > { %v17692_v36 = vcombine.low %v23203_v41, %v25093_v42  ;;  %v9831_v6 = vrot.slane %v18359_v53, 5  ;;  %v9829_v8 = vsel %vm24244_vm8, %v9827_v0, %v9828_v26  ;;  %v25114_v29 = vld [vmem:[%s23720_s9 + $0xe4] sm:$0xf]  ;;  %v25123_v41 = vld [vmem:[%s23720_s9 + $0xf4] sm:$0xf] }
 0x226   : > { %v9820_v59 = vrot.slane %v9818_v16, 4  ;;  %29713 = vst [vmem:[#allocation7_spill] sm:$0xff] %v25123_v41  ;;  %v18364_v53 = vld [vmem:[%s23720_s9 + $0x264] sm:$0xf] }
 0x229   : > { %20837 = vmatmul.mubr.msk.bf16.gmra.mrb[36].mxu1 %vm1936_vm4, %v17689_v27  ;;  %v18624_v27 = vcombine.low %v9813_v22, %v9816_v25  ;;  %v9838_v22 = vrot.slane %v18362_v63, 5  ;;  %v18363_v25 = vld [vmem:[%s23720_s9 + $0x260] sm:$0xf]  ;;  %v18367_v63 = vld [vmem:[%s23720_s9 + $0x270] sm:$0xf] }
 0x22a   : > { %21421 = vmatmul.mubr.msk.bf16.gmra.mrb[100].mxu0 %vm1936_vm4, %v18621_v55  ;;  %20840 = vmatprep.mubr.msk.bf16.mxu1 %vm1936_vm4, %v17690_v58  ;;  %v9817_v55 = vrot.slane %v9815_v61, 4  ;;  %v9821_v58 = vrot.slane %v18355_v13, 5  ;;  %v18534_v13 = vld [vmem:[%s23720_s9 + $0x258] sm:$0xe]  ;;  %v9841_v0 = vrot.slane %v18363_v25, 5  ;;  %v9851_v25 = vrot.slane %v18367_v63, 5 }
 0x22b   : > { %21424 = vmatprep.mubr.msk.bf16.mxu0 %vm1936_vm4, %v18622_v21  ;;  %v18565_v21 = vrot.slane %v18533_v31, 9  ;;  %v25117_v31 = vld [vmem:[%s23720_s9 + $0xe8] sm:$0xf] }
 0x22c   : > { %v9819_v3 = vsel %vm24244_vm8, %v9817_v55, %v9818_v16  ;;  %v9822_v61 = vsel %vm24244_vm8, %v9820_v59, %v9821_v58  ;;  %v17693_v16 = vcombine.low %v25114_v29, %v25117_v31  ;;  %v9833_v55 = vrot.slane %v9831_v6, 4 }
 0x22d   : > { %v9826_v57 = vsel %vm24244_vm8, %v18565_v21, %v9825_v14  ;;  %v9834_v59 = vrot.slane %v18360_v30, 5  ;;  %v18566_v58 = vrot.slane %v18534_v13, 9  ;;  %v9840_v21 = vrot.slane %v9838_v22, 4  ;;  %v18365_v30 = vld [vmem:[%s23720_s9 + $0x268] sm:$0x1] }
 0x22e   : > { %v18368_v13 = vld [vmem:[%s23720_s9 + $0x274] sm:$0xf]  ;;  %v9853_v63 = vrot.slane %v9851_v25, 4 }
 0x22f   : > { %v9854_v35 = vrot.slane %v18368_v13, 5 }
 0x231   : > { %20841 = vmatmul.mubr.msk.bf16.gmra.mrb[40].mxu1 %vm1936_vm4, %v17691_v32  ;;  %v18625_v32 = vcombine.low %v9819_v3, %v9822_v61  ;;  %v9835_v3 = vsel %vm24244_vm8, %v9833_v55, %v9834_v59  ;;  %v9844_v61 = vrot.slane %v18364_v53, 5  ;;  %v9843_v59 = vrot.slane %v9841_v0, 4 }
 0x232   : > { %21425 = vmatmul.mubr.msk.bf16.gmra.mrb[104].mxu0 %vm1936_vm4, %v18623_v20  ;;  %20844 = vmatprep.mubr.msk.bf16.mxu1 %vm1936_vm4, %v17692_v36  ;;  %v23207_v20 = vld [vmem:[%s23720_s9 + $0xf0] sm:$0xf]  ;;  %v18626_v36 = vcombine.low %v9826_v57, %v9829_v8  ;;  %v9839_v57 = vsel %vm24244_vm8, %v18566_v58, %v9838_v22  ;;  %v9842_v8 = vsel %vm24244_vm8, %v9840_v21, %v9841_v0  ;;  %v9847_v21 = vrot.slane %v18365_v30, 5  ;;  %v18370_v30 = vld [vmem:[%s23720_s9 + $0x27c] sm:$0x1] }
 0x233   : > { %21428 = vmatprep.mubr.msk.bf16.mxu0 %vm1936_vm4, %v18624_v27  ;;  %v17694_v14 = vcombine.low %v23207_v20, %v25123_v41  ;;  %v9830_v27 = vrot.slane %v9828_v26, 4  ;;  %v25147_v20 = vld [vmem:[%s23720_s9 + $0xfc] sm:$0xf]  ;;  %v18628_v55 = vcombine.low %v9839_v57, %v9842_v8  ;;  %v9846_v58 = vrot.slane %v9844_v61, 4  ;;  %v18369_v41 = vld [vmem:[%s23720_s9 + $0x278] sm:$0xf] }
 0x234   : > { %29715 = vst [vmem:[#allocation9_spill] sm:$0xff] %v25147_v20  ;;  %v9845_v0 = vsel %vm24244_vm8, %v9843_v59, %v9844_v61  ;;  %v9855_v8 = vsel %vm24244_vm8, %v9853_v63, %v9854_v35 }
 0x235   : > { %v9832_v26 = vsel %vm24244_vm8, %v9830_v27, %v9831_v6  ;;  %v25153_v27 = vld [vmem:[%s23720_s9 + $0x108] sm:$0xf] }
 0x236   : > { %29716 = vst [vmem:[#allocation10_spill] sm:$0xff] %v25153_v27 }
 0x239   : > { %20845 = vmatmul.mubr.msk.bf16.gmra.mrb[44].mxu1 %vm1936_vm4, %v17693_v16  ;;  %v18535_v16 = vld [vmem:[%s23720_s9 + $0x26c] sm:$0xe] }
 0x23a   : > { %21429 = vmatmul.mubr.msk.bf16.gmra.mrb[108].mxu0 %vm1936_vm4, %v18625_v32  ;;  %20848 = vmatprep.mubr.msk.bf16.mxu1 %vm1936_vm4, %v17694_v14  ;;  %v25144_v32 = vld [vmem:[%s23720_s9 + $0xf8] sm:$0xf]  ;;  %v18627_v14 = vcombine.low %v9832_v26, %v9835_v3  ;;  %v18567_v53 = vrot.slane %v18535_v16, 9  ;;  %v9848_v26 = vsel %vm24244_vm8, %v9846_v58, %v9847_v21  ;;  %v9857_v3 = vrot.slane %v18369_v41, 5  ;;  %v18373_v16 = vld [vmem:[%s23720_s9 + $0x288] sm:$0xf] }
 0x23b   : > { %21432 = vmatprep.mubr.msk.bf16.mxu0 %vm1936_vm4, %v18626_v36  ;;  %29714 = vst [vmem:[#allocation8_spill] sm:$0xff] %v25144_v32  ;;  %v17695_v6 = vcombine.low %v25144_v32, %v25147_v20  ;;  %v23211_v36 = vld [vmem:[%s23720_s9 + $0x104] sm:$0xf]  ;;  %v23215_v41 = vld [vmem:[%s23720_s9 + $0x118] sm:$0xf]  ;;  %v9856_v58 = vrot.slane %v9854_v35, 4 }
 0x23c   : > { %v17696_v22 = vcombine.low %v23211_v36, %v25153_v27  ;;  %v18372_v20 = vld [vmem:[%s23720_s9 + $0x284] sm:$0xf]  ;;  %v9852_v57 = vsel %vm24244_vm8, %v18567_v53, %v9851_v25  ;;  %v25177_v36 = vld [vmem:[%s23720_s9 + $0x110] sm:$0xf]  ;;  %v9860_v21 = vrot.slane %v18370_v30, 5  ;;  %v9867_v27 = vrot.slane %v18373_v16, 5 }
 0x23d   : > { %v9864_v13 = vrot.slane %v18372_v20, 5  ;;  %v18630_v59 = vcombine.low %v9852_v57, %v9855_v8  ;;  %v9859_v20 = vrot.slane %v9857_v3, 4  ;;  %v18374_v32 = vld [vmem:[%s23720_s9 + $0x28c] sm:$0xf]  ;;  %v9858_v35 = vsel %vm24244_vm8, %v9856_v58, %v9857_v3  ;;  %v18375_v30 = vld [vmem:[%s23720_s9 + $0x290] sm:$0x1] }
 0x23e   : > { %v25201_v16 = vld [vmem:[%s23720_s9 + $0x120] sm:$0xf]  ;;  %v9873_v58 = vrot.slane %v18375_v30, 5  ;;  %v18087_v30 = vld [vmem:[%s29648_s1 + $0x6] sm:$0x3] }
 0x23f   : > { %v9866_v63 = vrot.slane %v9864_v13, 4  ;;  %29717 = vst [vmem:[#allocation11_spill] sm:$0xff] %v25201_v16 }
 0x241   : > { %20849 = vmatmul.mubr.msk.bf16.gmra.mrb[48].mxu1 %vm1936_vm4, %v17695_v6  ;;  %v18536_v6 = vld [vmem:[%s23720_s9 + $0x280] sm:$0xe]  ;;  %v9868_v8 = vsel %vm24244_vm8, %v9866_v63, %v9867_v27 }
 0x242   : > { %21433 = vmatmul.mubr.msk.bf16.gmra.mrb[112].mxu0 %vm1936_vm4, %v18627_v14  ;;  %20852 = vmatprep.mubr.msk.bf16.mxu1 %vm1936_vm4, %v17696_v22  ;;  %v25174_v14 = vld [vmem:[%s23720_s9 + $0x10c] sm:$0xf]  ;;  %v18629_v22 = vcombine.low %v9845_v0, %v9848_v26  ;;  %v18568_v53 = vrot.slane %v18536_v6, 9  ;;  %v9861_v0 = vsel %vm24244_vm8, %v9859_v20, %v9860_v21  ;;  %v9870_v26 = vrot.slane %v18374_v32, 5  ;;  %v25204_v6 = vld [vmem:[%s23720_s9 + $0x124] sm:$0xf] }
 0x243   : > { %21436 = vmatprep.mubr.msk.bf16.mxu0 %vm1936_vm4, %v18628_v55  ;;  %v17697_v61 = vcombine.low %v25174_v14, %v25177_v36  ;;  %v25183_v55 = vld [vmem:[%s23720_s9 + $0x11c] sm:$0xf]  ;;  %29718 = vst [vmem:[#allocation12_spill] sm:$0xff] %v25204_v6  ;;  %v18631_v3 = vcombine.low %v9858_v35, %v9861_v0  ;;  %v23223_v0 = vld [vmem:[%s23720_s9 + $0x140] sm:$0xf] }
 0x244   : > { %v17698_v25 = vcombine.low %v23215_v41, %v25183_v55  ;;  %v9865_v57 = vsel %vm24244_vm8, %v18568_v53, %v9864_v13  ;;  %v25210_v41 = vld [vmem:[%s23720_s9 + $0x130] sm:$0xf]  ;;  %v25225_v53 = vld [vmem:[%s23720_s9 + $0x138] sm:$0xf] }
 0x245   : > { %29719 = vst [vmem:[#allocation13_spill] sm:$0xff] %v25210_v41  ;;  %v18632_v13 = vcombine.low %v9865_v57, %v9868_v8  ;;  %29721 = vst [vmem:[#allocation15_spill] sm:$0xff] %v25225_v53  ;;  %v25231_v57 = vld [vmem:[%s23720_s9 + $0x144] sm:$0xf]  ;;  %v22940_v8 = vld [vmem:[%s23720_s9 + $0x28] sm:$0xff]  }
 0x246   : > { %29722 = vst [vmem:[#allocation16_spill] sm:$0xff] %v25231_v57 }
 0x249   : > { %20853 = vmatmul.mubr.msk.bf16.gmra.mrb[52].mxu1 %vm1936_vm4, %v17697_v61  ;;  %v17699_v61 = vcombine.low %v25201_v16, %v25204_v6  ;;  %v23003_v6 = vld [vmem:[%s23720_s9 + $0x168] sm:$0xff]  }
 0x24a   : > { %21437 = vmatmul.mubr.msk.bf16.gmra.mrb[116].mxu0 %vm1936_vm4, %v18629_v22  ;;  %20856 = vmatprep.mubr.msk.bf16.mxu1 %vm1936_vm4, %v17698_v25  ;;  %v23219_v22 = vld [vmem:[%s23720_s9 + $0x12c] sm:$0xf]  ;;  %v9869_v25 = vrot.slane %v9867_v27, 4  ;;  %v25222_v27 = vld [vmem:[%s23720_s9 + $0x134] sm:$0xf] }
 0x24b   : > { %21440 = vmatprep.mubr.msk.bf16.mxu0 %vm1936_vm4, %v18630_v59  ;;  %v17700_v32 = vcombine.low %v23219_v22, %v25210_v41  ;;  %v9872_v59 = vrot.slane %v9870_v26, 4  ;;  %29720 = vst [vmem:[#allocation14_spill] sm:$0xff] %v25222_v27  ;;  %v17701_v63 = vcombine.low %v25222_v27, %v25225_v53  ;;  %v25249_v22 = vld [vmem:[%s23720_s9 + $0x14c] sm:$0xf]  ;;  %v23289_v27 = vld [vmem:[%s23720_s9 + $0x24] sm:$0x1] }
 0x24c   : > { %v9871_v20 = vsel %vm24244_vm8, %v9869_v25, %v9870_v26  ;;  %v17702_v26 = vcombine.low %v23223_v0, %v25231_v57  ;;  %29724 = vst [vmem:[#allocation18_spill] sm:$0xff] %v25249_v22  ;;  %v23227_v25 = vld [vmem:[%s23720_s9 + $0x154] sm:$0xf]  ;;  %v22946_v0 = vld [vmem:[%s23720_s9 + $0x44] sm:$0xff]  }
 0x24d   : > { %v9874_v21 = vsel %vm24244_vm8, %v9872_v59, %v9873_v58  ;;  %v25257_v59 = vld [vmem:[%s23720_s9 + $0x158] sm:$0xf]  ;;  %v3743_v16 = vld [vmem:[%s23720_s9 + $0x28] sm:$0xe] }
 0x24e   : > { %v18633_v35 = vcombine.low %v9871_v20, %v9874_v21  ;;  %29725 = vst [vmem:[#allocation19_spill] sm:$0xff] %v25257_v59  ;;  %v17704_v58 = vcombine.low %v23227_v25, %v25257_v59  ;;  %v22944_v20 = vld [vmem:[%s23720_s9 + $0x3c] sm:$0xff]   ;;  %v23284_v59 = vld [vmem:[%s23720_s9 + $0x26c] sm:$0xf] }
 0x24f   : > { %v25267_v21 = vld [vmem:[%s23720_s9 + $0x15c] sm:$0xf] }
 0x250   : > { %29726 = vst [vmem:[#allocation20_spill] sm:$0xff] %v25267_v21 }
 0x251   : > { %20857 = vmatmul.mubr.msk.bf16.gmra.mrb[56].mxu1 %vm1936_vm4, %v17699_v61  ;;  %v25243_v61 = vand.u32 %v18087_v30, %v23696_v4  ;;  %v22948_v30 = vld [vmem:[%s23720_s9 + $0x50] sm:$0xff]  }
 0x252   : > { %21441 = vmatmul.mubr.msk.bf16.gmra.mrb[120].mxu0 %vm1936_vm4, %v18631_v3  ;;  %20860 = vmatprep.mubr.msk.bf16.mxu1 %vm1936_vm4, %v17700_v32  ;;  %v25246_v3 = vld [vmem:[%s23720_s9 + $0x148] sm:$0xf] }
 0x253   : > { %21444 = vmatprep.mubr.msk.bf16.mxu0 %vm1936_vm4, %v18632_v13  ;;  %29723 = vst [vmem:[#allocation17_spill] sm:$0xff] %v25246_v3  ;;  %v17703_v32 = vcombine.low %v25246_v3, %v25249_v22  ;;  %v22942_v13 = vld [vmem:[%s23720_s9 + $0x30] sm:$0xff]   ;;  %21058 = vmatprep.subr.bf16.mxu1 %v25243_v61 }
 0x254   : > { %v23000_v22 = vld [vmem:[%s23720_s9 + $0x154] sm:$0xff]  }
 0x259   : > { %20861 = vmatmul.mubr.msk.bf16.gmra.mrb[60].mxu1 %vm1936_vm4, %v17701_v63  ;;  %v25270_v63 = vld [vmem:[%s23720_s9 + $0x160] sm:$0xf] }
 0x25a   : > { %21445 = vmatmul.mubr.msk.bf16.gmra.mrb[124].mxu0 %vm1936_vm4, %v18633_v35  ;;  %20864 = vmatprep.mubr.msk.bf16.mxu1 %vm1936_vm4, %v17702_v26  ;;  %29727 = vst [vmem:[#allocation21_spill] sm:$0xff] %v25270_v63  ;;  %v17705_v35 = vcombine.low %v25267_v21, %v25270_v63  ;;  %v23231_v26 = vld [vmem:[%s23720_s9 + $0x168] sm:$0xf] }
 0x25b   : > { %21450 = vmatprep.mubr.msk.bf16.mxu0 %vm1936_vm4, %v22940_v8  ;;  %v25277_v8 = vld [vmem:[%s23720_s9 + $0x16c] sm:$0xf] }
 0x25c   : > { %29728 = vst [vmem:[#allocation22_spill] sm:$0xff] %v25277_v8  ;;  %v22998_v21 = vld [vmem:[%s23720_s9 + $0x148] sm:$0xff]  }
 0x261   : > { %20865 = vmatmul.mubr.msk.bf16.gmra.mrb[64].mxu1 %vm1936_vm4, %v17703_v32  ;;  %v25286_v32 = vld [vmem:[%s23720_s9 + $0x170] sm:$0xf] }
 0x262   : > { %21451 = vmatmul.mubr.msk.bf16.vlgmr.msra.gmra.mrb[0].mxu0 %vm1936_vm4, %v22942_v13  ;;  %20868 = vmatprep.mubr.msk.bf16.mxu1 %vm1936_vm4, %v17704_v58  ;;  %29729 = vst [vmem:[#allocation23_spill] sm:$0xff] %v25286_v32  ;;  %v23234_v13 = vld [vmem:[%s23720_s9 + $0x174] sm:$0xf]  ;;  %v22950_v58 = vld [vmem:[%s23720_s9 + $0x58] sm:$0xff]  }
 0x263   : > { %21579 = vmatpush3.bf16.msra.mxu0 %v25003_v34  ;;  %21454 = vmatprep.mubr.msk.bf16.mxu0 %vm1936_vm4, %v22944_v20  ;;  %v17706_v34 = vcombine.low %v23231_v26, %v25277_v8  ;;  %v17707_v25 = vcombine.low %v25286_v32, %v23234_v13  ;;  %v23235_v20 = vld [vmem:[%s23720_s9 + $0x17c] sm:$0xf]  ;;  %v22952_v8 = vld [vmem:[%s23720_s9 + $0x64] sm:$0xff]   ;;  %v22954_v13 = vld [vmem:[%s23720_s9 + $0x6c] sm:$0xff]  }
 0x269   : > { %20869 = vmatmul.mubr.msk.bf16.gmra.mrb[68].mxu1 %vm1936_vm4, %v17705_v35  ;;  %v23236_v35 = vld [vmem:[%s23720_s9 + $0x180] sm:$0xf] }
 0x26a   : > { %21455 = vmatmul.mubr.msk.bf16.gmra.mrb[4].mxu0 %vm1936_vm4, %v22946_v0  ;;  %20872 = vmatprep.mubr.msk.bf16.mxu1 %vm1936_vm4, %v17706_v34  ;;  %v17708_v26 = vcombine.low %v23235_v20, %v23236_v35  ;;  %v23237_v0 = vld [vmem:[%s23720_s9 + $0x184] sm:$0xf]  ;;  %v23238_v34 = vld [vmem:[%s23720_s9 + $0x188] sm:$0xf]  ;;  %v23239_v20 = vld [vmem:[%s23720_s9 + $0x190] sm:$0xf] }
 0x26b   : > { %21458 = vmatprep.mubr.msk.bf16.mxu0 %vm1936_vm4, %v22948_v30  ;;  %v17709_v30 = vcombine.low %v23237_v0, %v23238_v34  ;;  %v23240_v35 = vld [vmem:[%s23720_s9 + $0x194] sm:$0xf]  ;;  %v22958_v0 = vld [vmem:[%s23720_s9 + $0x80] sm:$0xff]  }
 0x26c   : > { %v17710_v32 = vcombine.low %v23239_v20, %v23240_v35  ;;  %v23243_v34 = vld [vmem:[%s23720_s9 + $0x1a4] sm:$0xf]  ;;  %v23244_v20 = vld [vmem:[%s23720_s9 + $0x1a8] sm:$0xf] }
 0x26d   : > { %v17712_v35 = vcombine.low %v23243_v34, %v23244_v20  ;;  %v23248_v34 = vld [vmem:[%s23720_s9 + $0x1bc] sm:$0xf] }
 0x271   : > { %20873 = vmatmul.mubr.msk.bf16.gmra.mrb[72].mxu1 %vm1936_vm4, %v17707_v25  ;;  %v22956_v25 = vld [vmem:[%s23720_s9 + $0x78] sm:$0xff]  }
 0x272   : > { %21459 = vmatmul.mubr.msk.bf16.gmra.mrb[8].mxu0 %vm1936_vm4, %v22950_v58  ;;  %20876 = vmatprep.mubr.msk.bf16.mxu1 %vm1936_vm4, %v17708_v26  ;;  %v23242_v58 = vld [vmem:[%s23720_s9 + $0x19c] sm:$0xf] }
 0x273   : > { %21462 = vmatprep.mubr.msk.bf16.mxu0 %vm1936_vm4, %v22952_v8  ;;  %v23241_v8 = vld [vmem:[%s23720_s9 + $0x198] sm:$0xf] }
 0x274   : > { %v17711_v26 = vcombine.low %v23241_v8, %v23242_v58  ;;  %v22962_v8 = vld [vmem:[%s23720_s9 + $0x94] sm:$0xff]  }
 0x275   : > { %v23247_v58 = vld [vmem:[%s23720_s9 + $0x1b8] sm:$0xf] }
 0x276   : > { %v17714_v20 = vcombine.low %v23247_v58, %v23248_v34  ;;  %v23252_v58 = vld [vmem:[%s23720_s9 + $0x1d0] sm:$0xf] }
 0x279   : > { %20877 = vmatmul.mubr.msk.bf16.gmra.mrb[76].mxu1 %vm1936_vm4, %v17709_v30  ;;  %v22960_v30 = vld [vmem:[%s23720_s9 + $0x8c] sm:$0xff]  }
 0x27a   : > { %21463 = vmatmul.mubr.msk.bf16.gmra.mrb[12].mxu0 %vm1936_vm4, %v22954_v13  ;;  %20880 = vmatprep.mubr.msk.bf16.mxu1 %vm1936_vm4, %v17710_v32  ;;  %v23245_v32 = vld [vmem:[%s23720_s9 + $0x1ac] sm:$0xf]  ;;  %v23246_v13 = vld [vmem:[%s23720_s9 + $0x1b0] sm:$0xf] }
 0x27b   : > { %21466 = vmatprep.mubr.msk.bf16.mxu0 %vm1936_vm4, %v22956_v25  ;;  %v17713_v25 = vcombine.low %v23245_v32, %v23246_v13  ;;  %v22966_v32 = vld [vmem:[%s23720_s9 + $0xa8] sm:$0xff]  }
 0x27c   : > { %v23251_v13 = vld [vmem:[%s23720_s9 + $0x1cc] sm:$0xf] }
 0x27d   : > { %v17716_v34 = vcombine.low %v23251_v13, %v23252_v58  ;;  %v23256_v13 = vld [vmem:[%s23720_s9 + $0x1e4] sm:$0xf] }
 0x281   : > { %20881 = vmatmul.mubr.msk.bf16.gmra.mrb[80].mxu1 %vm1936_vm4, %v17711_v26  ;;  %v22964_v26 = vld [vmem:[%s23720_s9 + $0xa0] sm:$0xff]  }
 0x282   : > { %21467 = vmatmul.mubr.msk.bf16.gmra.mrb[16].mxu0 %vm1936_vm4, %v22958_v0  ;;  %20884 = vmatprep.mubr.msk.bf16.mxu1 %vm1936_vm4, %v17712_v35  ;;  %v23249_v0 = vld [vmem:[%s23720_s9 + $0x1c0] sm:$0xf]  ;;  %v23250_v35 = vld [vmem:[%s23720_s9 + $0x1c4] sm:$0xf] }
 0x283   : > { %21470 = vmatprep.mubr.msk.bf16.mxu0 %vm1936_vm4, %v22960_v30  ;;  %v17715_v30 = vcombine.low %v23249_v0, %v23250_v35  ;;  %v22970_v0 = vld [vmem:[%s23720_s9 + $0xbc] sm:$0xff]  }
 0x284   : > { %v23255_v35 = vld [vmem:[%s23720_s9 + $0x1e0] sm:$0xf] }
 0x285   : > { %v17718_v58 = vcombine.low %v23255_v35, %v23256_v13  ;;  %v23260_v35 = vld [vmem:[%s23720_s9 + $0x1f8] sm:$0xf] }
 0x289   : > { %20885 = vmatmul.mubr.msk.bf16.gmra.mrb[84].mxu1 %vm1936_vm4, %v17713_v25  ;;  %v22968_v25 = vld [vmem:[%s23720_s9 + $0xb4] sm:$0xff]  }
 0x28a   : > { %21471 = vmatmul.mubr.msk.bf16.gmra.mrb[20].mxu0 %vm1936_vm4, %v22962_v8  ;;  %20888 = vmatprep.mubr.msk.bf16.mxu1 %vm1936_vm4, %v17714_v20  ;;  %v23253_v8 = vld [vmem:[%s23720_s9 + $0x1d4] sm:$0xf]  ;;  %v23254_v20 = vld [vmem:[%s23720_s9 + $0x1d8] sm:$0xf] }
 0x28b   : > { %21474 = vmatprep.mubr.msk.bf16.mxu0 %vm1936_vm4, %v22964_v26  ;;  %v17717_v26 = vcombine.low %v23253_v8, %v23254_v20  ;;  %v22974_v8 = vld [vmem:[%s23720_s9 + $0xd0] sm:$0xff]  }
 0x28c   : > { %v23259_v20 = vld [vmem:[%s23720_s9 + $0x1f4] sm:$0xf] }
 0x28d   : > { %v17720_v13 = vcombine.low %v23259_v20, %v23260_v35  ;;  %v23264_v20 = vld [vmem:[%s23720_s9 + $0x20c] sm:$0xf] }
 0x291   : > { %20889 = vmatmul.mubr.msk.bf16.gmra.mrb[88].mxu1 %vm1936_vm4, %v17715_v30  ;;  %v22972_v30 = vld [vmem:[%s23720_s9 + $0xc8] sm:$0xff]  }
 0x292   : > { %21475 = vmatmul.mubr.msk.bf16.gmra.mrb[24].mxu0 %vm1936_vm4, %v22966_v32  ;;  %20892 = vmatprep.mubr.msk.bf16.mxu1 %vm1936_vm4, %v17716_v34  ;;  %v23257_v32 = vld [vmem:[%s23720_s9 + $0x1e8] sm:$0xf]  ;;  %v23258_v34 = vld [vmem:[%s23720_s9 + $0x1ec] sm:$0xf] }
 0x293   : > { %21478 = vmatprep.mubr.msk.bf16.mxu0 %vm1936_vm4, %v22968_v25  ;;  %v17719_v25 = vcombine.low %v23257_v32, %v23258_v34  ;;  %v22978_v32 = vld [vmem:[%s23720_s9 + $0xe4] sm:$0xff]  }
 0x294   : > { %v23263_v34 = vld [vmem:[%s23720_s9 + $0x208] sm:$0xf] }
 0x295   : > { %v17722_v35 = vcombine.low %v23263_v34, %v23264_v20  ;;  %v23268_v34 = vld [vmem:[%s23720_s9 + $0x220] sm:$0xf] }
 0x299   : > { %20893 = vmatmul.mubr.msk.bf16.gmra.mrb[92].mxu1 %vm1936_vm4, %v17717_v26  ;;  %v22976_v26 = vld [vmem:[%s23720_s9 + $0xdc] sm:$0xff]  }
 0x29a   : > { %21479 = vmatmul.mubr.msk.bf16.gmra.mrb[28].mxu0 %vm1936_vm4, %v22970_v0  ;;  %20896 = vmatprep.mubr.msk.bf16.mxu1 %vm1936_vm4, %v17718_v58  ;;  %v23261_v0 = vld [vmem:[%s23720_s9 + $0x1fc] sm:$0xf]  ;;  %v23262_v58 = vld [vmem:[%s23720_s9 + $0x200] sm:$0xf] }
 0x29b   : > { %21482 = vmatprep.mubr.msk.bf16.mxu0 %vm1936_vm4, %v22972_v30  ;;  %v17721_v30 = vcombine.low %v23261_v0, %v23262_v58  ;;  %v22982_v0 = vld [vmem:[%s23720_s9 + $0xf8] sm:$0xff]  }
 0x29c   : > { %v23267_v58 = vld [vmem:[%s23720_s9 + $0x21c] sm:$0xf] }
 0x29d   : > { %v17724_v20 = vcombine.low %v23267_v58, %v23268_v34  ;;  %v23272_v58 = vld [vmem:[%s23720_s9 + $0x234] sm:$0xf] }
 0x2a1   : > { %20897 = vmatmul.mubr.msk.bf16.gmra.mrb[96].mxu1 %vm1936_vm4, %v17719_v25  ;;  %v22980_v25 = vld [vmem:[%s23720_s9 + $0xf0] sm:$0xff]  }
 0x2a2   : > { %21483 = vmatmul.mubr.msk.bf16.gmra.mrb[32].mxu0 %vm1936_vm4, %v22974_v8  ;;  %20900 = vmatprep.mubr.msk.bf16.mxu1 %vm1936_vm4, %v17720_v13  ;;  %v23265_v8 = vld [vmem:[%s23720_s9 + $0x210] sm:$0xf]  ;;  %v23266_v13 = vld [vmem:[%s23720_s9 + $0x214] sm:$0xf] }
 0x2a3   : > { %21486 = vmatprep.mubr.msk.bf16.mxu0 %vm1936_vm4, %v22976_v26  ;;  %v17723_v26 = vcombine.low %v23265_v8, %v23266_v13  ;;  %v22986_v8 = vld [vmem:[%s23720_s9 + $0x10c] sm:$0xff]  }
 0x2a4   : > { %v23271_v13 = vld [vmem:[%s23720_s9 + $0x230] sm:$0xf] }
 0x2a5   : > { %v17726_v34 = vcombine.low %v23271_v13, %v23272_v58  ;;  %v23276_v13 = vld [vmem:[%s23720_s9 + $0x248] sm:$0xf] }
 0x2a9   : > { %20901 = vmatmul.mubr.msk.bf16.gmra.mrb[100].mxu1 %vm1936_vm4, %v17721_v30  ;;  %v22984_v30 = vld [vmem:[%s23720_s9 + $0x104] sm:$0xff]  }
 0x2aa   : > { %21487 = vmatmul.mubr.msk.bf16.gmra.mrb[36].mxu0 %vm1936_vm4, %v22978_v32  ;;  %20904 = vmatprep.mubr.msk.bf16.mxu1 %vm1936_vm4, %v17722_v35  ;;  %v23269_v32 = vld [vmem:[%s23720_s9 + $0x224] sm:$0xf]  ;;  %v23270_v35 = vld [vmem:[%s23720_s9 + $0x228] sm:$0xf] }
 0x2ab   : > { %21490 = vmatprep.mubr.msk.bf16.mxu0 %vm1936_vm4, %v22980_v25  ;;  %v17725_v25 = vcombine.low %v23269_v32, %v23270_v35  ;;  %v22990_v32 = vld [vmem:[%s23720_s9 + $0x120] sm:$0xff]  }
 0x2ac   : > { %v23275_v35 = vld [vmem:[%s23720_s9 + $0x244] sm:$0xf] }
 0x2ad   : > { %v17728_v58 = vcombine.low %v23275_v35, %v23276_v13  ;;  %v23280_v35 = vld [vmem:[%s23720_s9 + $0x25c] sm:$0xf]  ;;  %v22996_v13 = vld [vmem:[%s23720_s9 + $0x140] sm:$0xff]  }
 0x2b1   : > { %20905 = vmatmul.mubr.msk.bf16.gmra.mrb[104].mxu1 %vm1936_vm4, %v17723_v26  ;;  %v22988_v26 = vld [vmem:[%s23720_s9 + $0x118] sm:$0xff]  }
 0x2b2   : > { %21491 = vmatmul.mubr.msk.bf16.gmra.mrb[40].mxu0 %vm1936_vm4, %v22982_v0  ;;  %20908 = vmatprep.mubr.msk.bf16.mxu1 %vm1936_vm4, %v17724_v20  ;;  %v23273_v0 = vld [vmem:[%s23720_s9 + $0x238] sm:$0xf]  ;;  %v23274_v20 = vld [vmem:[%s23720_s9 + $0x23c] sm:$0xf] }
 0x2b3   : > { %21494 = vmatprep.mubr.msk.bf16.mxu0 %vm1936_vm4, %v22984_v30  ;;  %v17727_v30 = vcombine.low %v23273_v0, %v23274_v20  ;;  %v22994_v0 = vld [vmem:[%s23720_s9 + $0x134] sm:$0xff]  }
 0x2b4   : > { %v23279_v20 = vld [vmem:[%s23720_s9 + $0x258] sm:$0xf] }
 0x2b9   : > { %20909 = vmatmul.mubr.msk.bf16.gmra.mrb[108].mxu1 %vm1936_vm4, %v17725_v25  ;;  %v22992_v25 = vld [vmem:[%s23720_s9 + $0x12c] sm:$0xff]  }
 0x2ba   : > { %21495 = vmatmul.mubr.msk.bf16.gmra.mrb[44].mxu0 %vm1936_vm4, %v22986_v8  ;;  %20912 = vmatprep.mubr.msk.bf16.mxu1 %vm1936_vm4, %v17726_v34  ;;  %v23277_v8 = vld [vmem:[%s23720_s9 + $0x24c] sm:$0xf]  ;;  %v23278_v34 = vld [vmem:[%s23720_s9 + $0x250] sm:$0xf] }
 0x2bb   : > { %21498 = vmatprep.mubr.msk.bf16.mxu0 %vm1936_vm4, %v22988_v26  ;;  %v17729_v26 = vcombine.low %v23277_v8, %v23278_v34  ;;  %v23282_v8 = vld [vmem:[%s23720_s9 + $0x260] sm:$0xf]  ;;  %v23283_v34 = vld [vmem:[%s23720_s9 + $0x264] sm:$0xf] }
 0x2bc   : > { %v17731_v63 = vcombine.low %v23282_v8, %v23283_v34  ;;  %v3855_v8 = vrot.slane %v24783_v45, 5  ;;  %v3858_v34 = vrot.slane %v24807_v15, 5  ;;  %v23287_v45 = vld [vmem:[%s23720_s9 + $0x274] sm:$0xf] }
 0x2be   : > { %v3857_v57 = vrot.slane %v3855_v8, 4  ;;  %v3860_v53 = vrot.slane %v3858_v34, 4 }
 0x2c1   : > { %20913 = vmatmul.mubr.msk.bf16.gmra.mrb[112].mxu1 %vm1936_vm4, %v17727_v30  ;;  %v17730_v30 = vcombine.low %v23279_v20, %v23280_v35  ;;  %v23285_v20 = vld [vmem:[%s23720_s9 + $0x270] sm:$0xf] }
 0x2c2   : > { %21499 = vmatmul.mubr.msk.bf16.gmra.mrb[48].mxu0 %vm1936_vm4, %v22990_v32  ;;  %20916 = vmatprep.mubr.msk.bf16.mxu1 %vm1936_vm4, %v17728_v58  ;;  %v23281_v32 = vld [vmem:[%s23720_s9 + $0x4] sm:$0xf]  ;;  %v17732_v35 = vcombine.low %v23284_v59, %v23285_v20  ;;  %v3861_v59 = vrot.slane %v24810_v2, 5 }
 0x2c3   : > { %21502 = vmatprep.mubr.msk.bf16.mxu0 %vm1936_vm4, %v22992_v25  ;;  %v3842_v58 = vrot.slane %v23281_v32, 5  ;;  %v3741_v25 = vld [vmem:[%s23720_s9] sm:$0xe]  ;;  %v3742_v32 = vld [vmem:[%s23720_s9 + $0x14] sm:$0xe] }
 0x2c4   : > { %v17799_v3 = vrot.slane %v3742_v32, 9 }
 0x2c9   : > { %20917 = vmatmul.mubr.msk.bf16.gmra.mrb[116].mxu1 %vm1936_vm4, %v17729_v26  ;;  %v17798_v26 = vrot.slane %v3741_v25, 9 }
 0x2ca   : > { %21503 = vmatmul.mubr.msk.bf16.gmra.mrb[52].mxu0 %vm1936_vm4, %v22994_v0  ;;  %20920 = vmatprep.mubr.msk.bf16.mxu1 %vm1936_vm4, %v17730_v30  ;;  %v3844_v0 = vrot.slane %v3842_v58, 4  ;;  %v3845_v30 = vrot.slane %v24772_v50, 5  ;;  %v23286_v50 = vld [vmem:[%s23720_s9 + $0x10] sm:$0x1] }
 0x2cb   : > { %21506 = vmatprep.mubr.msk.bf16.mxu0 %vm1936_vm4, %v22996_v13  ;;  %v3848_v13 = vrot.slane %v24775_v51, 5  ;;  %v3851_v25 = vrot.slane %v23286_v50, 5  ;;  %v3843_v51 = vsel %vm24244_vm8, %v17798_v26, %v3842_v58  ;;  %v3864_v50 = vrot.slane %v23289_v27, 5 }
 0x2cc   : > { %v3847_v20 = vrot.slane %v3845_v30, 4  ;;  %v3868_v58 = vrot.slane %v24816_v18, 5  ;;  %v3871_v26 = vrot.slane %v24837_v43, 5  ;;  %v3859_v18 = vsel %vm24244_vm8, %v3857_v57, %v3858_v34  ;;  %v23290_v57 = vld [vmem:[%s23720_s9 + $0x38] sm:$0x1] }
 0x2cd   : > { %v3850_v2 = vrot.slane %v3848_v13, 4  ;;  %v25452_v43 = vsel %vm24244_vm8, %v3860_v53, %v3861_v59  ;;  %v17800_v27 = vrot.slane %v3743_v16, 9  ;;  %v3877_v34 = vrot.slane %v23290_v57, 5  ;;  %v19308_v53 = vld [vmem:[%s29648_s1 + $0x10] sm:$0x3] }
 0x2ce   : > { %v25467_v16 = vand.u32 %v19308_v53, %v23696_v4 }
 0x2cf   : > { %v3852_v32 = vsel %vm24244_vm8, %v3850_v2, %v3851_v25  ;;  %v3884_v25 = vrot.slane %v24867_v1, 5  ;;  %v25478_v4 = vsel %vm24244_vm8, %v17800_v27, %v3868_v58  ;;  %v3745_v1 = vld [vmem:[%s23720_s9 + $0x50] sm:$0xe]  ;;  %v3900_v2 = vrot.slane %v24900_v39, 5 }
 0x2d0   : > { %29730 = vst [vmem:[#allocation24_spill] sm:$0xff] %v25467_v16  ;;  %21708 = vmatprep.subr.bf16.mxu0 %v25467_v16 }
 0x2d1   : > { %20921 = vmatmul.mubr.msk.bf16.gmra.mrb[120].mxu1 %vm1936_vm4, %v17731_v63  ;;  %v23288_v63 = vld [vmem:[%s23720_s9 + $0x278] sm:$0xf] }
 0x2d2   : > { %21507 = vmatmul.mubr.msk.bf16.gmra.mrb[56].mxu0 %vm1936_vm4, %v22998_v21  ;;  %20924 = vmatprep.mubr.msk.bf16.mxu1 %vm1936_vm4, %v17732_v35  ;;  %v3846_v21 = vsel %vm24244_vm8, %v3844_v0, %v3845_v30  ;;  %v17733_v15 = vcombine.low %v23287_v45, %v23288_v63  ;;  %v23002_v35 = vld [vmem:[%s23720_s9 + $0x15c] sm:$0xff]   ;;  %v3874_v0 = vrot.slane %v24840_v46, 5  ;;  %v3849_v30 = vsel %vm24244_vm8, %v3847_v20, %v3848_v13 }
 0x2d3   : > { %21510 = vmatprep.mubr.msk.bf16.mxu0 %vm1936_vm4, %v23000_v22  ;;  %v3863_v22 = vrot.slane %v3861_v59, 4  ;;  %v17831_v41 = vcombine.low %v3843_v51, %v3846_v21  ;;  %v3856_v45 = vsel %vm24244_vm8, %v17799_v3, %v3855_v8  ;;  %v3870_v3 = vrot.slane %v3868_v58, 4 }
 0x2d4   : > { %v3873_v13 = vrot.slane %v3871_v26, 4  ;;  %v3876_v8 = vrot.slane %v3874_v0, 4  ;;  %v3881_v59 = vrot.slane %v24846_v48, 5  ;;  %v3887_v51 = vrot.slane %v24870_v19, 5 }
 0x2d5   : > { %v25456_v46 = vsel %vm24244_vm8, %v3863_v22, %v3864_v50  ;;  %v3894_v21 = vrot.slane %v24876_v12, 5  ;;  %v3897_v63 = vrot.slane %v24897_v38, 5  ;;  %v17833_v20 = vcombine.low %v3856_v45, %v3859_v18  ;;  %v23005_v50 = vld [vmem:[%s23720_s9 + $0x17c] sm:$0xff]  }
 0x2d6   : > { %v17834_v48 = vcombine.low %v25452_v43, %v25456_v46  ;;  %v25485_v19 = vsel %vm24244_vm8, %v3870_v3, %v3871_v26  ;;  %v25489_v12 = vsel %vm24244_vm8, %v3873_v13, %v3874_v0  ;;  %v25493_v38 = vsel %vm24244_vm8, %v3876_v8, %v3877_v34  ;;  %v23292_v13 = vld [vmem:[%s23720_s9 + $0x60] sm:$0x1] }
 0x2d7   : > { %v3907_v22 = vrot.slane %v24906_v40, 5  ;;  %v3883_v58 = vrot.slane %v3881_v59, 4  ;;  %v3889_v26 = vrot.slane %v3887_v51, 4  ;;  %v17802_v18 = vrot.slane %v3745_v1, 9  ;;  %v23006_v1 = vld [vmem:[%s23720_s9 + $0x184] sm:$0xff]  }
 0x2d8   : > { %v3896_v27 = vrot.slane %v3894_v21, 4  ;;  %v3899_v3 = vrot.slane %v3897_v63, 4  ;;  %v3902_v0 = vrot.slane %v3900_v2, 4  ;;  %v3903_v8 = vrot.slane %v23292_v13, 5 }
 0x2d9   : > { %20925 = vmatmul.mubr.msk.bf16.gmra.mrb[124].mxu1 %vm1936_vm4, %v17733_v15  ;;  %v23004_v15 = vld [vmem:[%s23720_s9 + $0x170] sm:$0xff]   ;;  %v3910_v40 = vrot.slane %v24927_v9, 5  ;;  %v17835_v34 = vcombine.low %v25478_v4, %v25485_v19  ;;  %v17836_v53 = vcombine.low %v25489_v12, %v25493_v38  ;;  %v3920_v4 = vrot.slane %v24936_v24, 5 }
 0x2da   : > { %21511 = vmatmul.mubr.msk.bf16.gmra.mrb[60].mxu0 %vm1936_vm4, %v23002_v35  ;;  %20930 = vmatprep.mubr.msk.bf16.mxu1 %vm1936_vm4, %v17831_v41  ;;  %v17832_v41 = vcombine.low %v3849_v30, %v3852_v32  ;;  %v3746_v35 = vld [vmem:[%s23720_s9 + $0x64] sm:$0xe]  ;;  %v3886_v30 = vrot.slane %v3884_v25, 4  ;;  %v23291_v32 = vld [vmem:[%s23720_s9 + $0x4c] sm:$0x1]  ;;  %v25545_v24 = vsel %vm24244_vm8, %v3902_v0, %v3903_v8  ;;  %v3936_v0 = vrot.slane %v24990_v23, 5 }
 0x2db   : > { %21514 = vmatprep.mubr.msk.bf16.mxu0 %vm1936_vm4, %v23003_v6  ;;  %v3744_v6 = vld [vmem:[%s23720_s9 + $0x3c] sm:$0xe]  ;;  %v3890_v45 = vrot.slane %v23291_v32, 5  ;;  %v17803_v57 = vrot.slane %v3746_v35, 9  ;;  %v23293_v35 = vld [vmem:[%s23720_s9 + $0x74] sm:$0x1] }
 0x2dc   : > { %v17801_v39 = vrot.slane %v3744_v6, 9  ;;  %v3913_v6 = vrot.slane %v24930_v11, 5  ;;  %v3946_v23 = vrot.slane %v24999_v28, 5 }
 0x2dd   : > { %v25528_v11 = vsel %vm24244_vm8, %v3889_v26, %v3890_v45  ;;  %v25549_v19 = vsel %vm24244_vm8, %v17803_v57, %v3907_v22  ;;  %v3922_v45 = vrot.slane %v3920_v4, 4  ;;  %v3926_v26 = vrot.slane %v24960_v47, 5  ;;  %v3749_v57 = vld [vmem:[%s23720_s9 + $0xa0] sm:$0xe] }
 0x2de   : > { %v25513_v9 = vsel %vm24244_vm8, %v17801_v39, %v3881_v59  ;;  %v25532_v59 = vsel %vm24244_vm8, %v17802_v18, %v3894_v21  ;;  %v3912_v21 = vrot.slane %v3910_v40, 4  ;;  %v23007_v39 = vld [vmem:[%s23720_s9 + $0x190] sm:$0xff]  }
 0x2e0   : > { %v25580_v13 = vsel %vm24244_vm8, %v3912_v21, %v3913_v6 }
 0x2e1   : > { %20931 = vmatmul.mubr.msk.bf16.vlgmr.msra.gmra.mrb[0].mxu1 %vm1936_vm4, %v17832_v41  ;;  %v3909_v41 = vrot.slane %v3907_v22, 4  ;;  %v3933_v22 = vrot.slane %v24966_v54, 5 }
 0x2e2   : > { %21515 = vmatmul.mubr.msk.bf16.gmra.mrb[64].mxu0 %vm1936_vm4, %v23004_v15  ;;  %21059 = vmatpush3.bf16.msra.mxu1 %v25243_v61  ;;  %v25517_v61 = vsel %vm24244_vm8, %v3883_v58, %v3884_v25  ;;  %v25521_v15 = vsel %vm24244_vm8, %v3886_v30, %v3887_v51  ;;  %v25536_v25 = vsel %vm24244_vm8, %v3896_v27, %v3897_v63  ;;  %v3923_v30 = vrot.slane %v24957_v44, 5 }
 0x2e3   : > { %20934 = vmatprep.mubr.msk.bf16.mxu1 %vm1936_vm4, %v17833_v20  ;;  %21518 = vmatprep.mubr.msk.bf16.mxu0 %vm1936_vm4, %v23005_v50  ;;  %v3747_v20 = vld [vmem:[%s23720_s9 + $0x78] sm:$0xe]  ;;  %v25540_v51 = vsel %vm24244_vm8, %v3899_v3, %v3900_v2  ;;  %v3916_v50 = vrot.slane %v23293_v35, 5  ;;  %v25555_v63 = vsel %vm24244_vm8, %v3909_v41, %v3910_v40  ;;  %v3915_v2 = vrot.slane %v3913_v6, 4  ;;  %v3748_v3 = vld [vmem:[%s23720_s9 + $0x8c] sm:$0xe] }
 0x2e4   : > { %21838 = vmatprep.subr.bf16.mxu1 %v23704_v7  ;;  %v17804_v58 = vrot.slane %v3747_v20, 9  ;;  %v17837_v32 = vcombine.low %v25513_v9, %v25517_v61  ;;  %v17838_v18 = vcombine.low %v25521_v15, %v25528_v11  ;;  %v17839_v27 = vcombine.low %v25532_v59, %v25536_v25  ;;  %v23295_v61 = vld [vmem:[%s23720_s9 + $0x9c] sm:$0x1]  ;;  %v23015_v11 = vld [vmem:[%s23720_s9 + $0x1e0] sm:$0xff]   ;;  %v3756_v15 = vld [vmem:[%s23720_s9 + $0x12c] sm:$0xe] }
 0x2e5   : > { %v3939_v44 = vrot.slane %v24993_v17, 5  ;;  %v17840_v47 = vcombine.low %v25540_v51, %v25545_v24  ;;  %v17841_v54 = vcombine.low %v25549_v19, %v25555_v63  ;;  %v25587_v17 = vsel %vm24244_vm8, %v3915_v2, %v3916_v50  ;;  %v23009_v2 = vld [vmem:[%s23720_s9 + $0x1a4] sm:$0xff]  }
 0x2e6   : > { %v25591_v43 = vsel %vm24244_vm8, %v17804_v58, %v3920_v4  ;;  %v3925_v46 = vrot.slane %v3923_v30, 4  ;;  %v25597_v28 = vsel %vm24244_vm8, %v3922_v45, %v3923_v30  ;;  %v3928_v40 = vrot.slane %v3926_v26, 4  ;;  %v3750_v30 = vld [vmem:[%s23720_s9 + $0xb4] sm:$0xe] }
 0x2e7   : > { %v3935_v41 = vrot.slane %v3933_v22, 4  ;;  %v3938_v6 = vrot.slane %v3936_v0, 4  ;;  %v3941_v9 = vrot.slane %v3939_v44, 4  ;;  %v3942_v20 = vrot.slane %v23295_v61, 5  ;;  %v29731_v61 = vld [vmem:[#allocation7_spill] sm:$0xff] }
 0x2e8   : > { %v3949_v4 = vrot.slane %v25024_v56, 5  ;;  %v17806_v35 = vrot.slane %v3749_v57, 9  ;;  %v3948_v50 = vrot.slane %v3946_v23, 4  ;;  %v25608_v58 = vsel %vm24244_vm8, %v3925_v46, %v3926_v26  ;;  %v23296_v46 = vld [vmem:[%s23720_s9 + $0xb0] sm:$0x1] }
 0x2e9   : > { %20935 = vmatmul.mubr.msk.bf16.gmra.mrb[4].mxu1 %vm1936_vm4, %v17834_v48  ;;  %v23294_v48 = vld [vmem:[%s23720_s9 + $0x88] sm:$0x1]  ;;  %v3959_v45 = vrot.slane %v25033_v5, 5  ;;  %v3965_v56 = vrot.slane %v25057_v52, 5  ;;  %v25626_v26 = vsel %vm24244_vm8, %v3935_v41, %v3936_v0  ;;  %v25630_v5 = vsel %vm24244_vm8, %v3938_v6, %v3939_v44 }
 0x2ea   : > { %21519 = vmatmul.mubr.msk.bf16.gmra.mrb[68].mxu0 %vm1936_vm4, %v23006_v1  ;;  %20938 = vmatprep.mubr.msk.bf16.mxu1 %vm1936_vm4, %v17835_v34  ;;  %v3929_v8 = vrot.slane %v23294_v48, 5  ;;  %v17805_v34 = vrot.slane %v3748_v3, 9  ;;  %v23008_v1 = vld [vmem:[%s23720_s9 + $0x198] sm:$0xff]   ;;  %v3962_v3 = vrot.slane %v25054_v49, 5  ;;  %v25634_v49 = vsel %vm24244_vm8, %v3941_v9, %v3942_v20 }
 0x2eb   : > { %21522 = vmatprep.mubr.msk.bf16.mxu0 %vm1936_vm4, %v23007_v39  ;;  %v3952_v39 = vrot.slane %v25027_v62, 5  ;;  %v3951_v52 = vrot.slane %v3949_v4, 4  ;;  %v25648_v0 = vsel %vm24244_vm8, %v3948_v50, %v3949_v4  ;;  %v3961_v12 = vrot.slane %v3959_v45, 4  ;;  %v3751_v4 = vld [vmem:[%s23720_s9 + $0xc8] sm:$0xe]  ;;  %v23010_v50 = vld [vmem:[%s23720_s9 + $0x1ac] sm:$0xff]  }
 0x2ec   : > { %v25618_v57 = vsel %vm24244_vm8, %v3928_v40, %v3929_v8  ;;  %v25622_v62 = vsel %vm24244_vm8, %v17805_v34, %v3933_v22  ;;  %v3955_v8 = vrot.slane %v23296_v46, 5  ;;  %v25644_v22 = vsel %vm24244_vm8, %v17806_v35, %v3946_v23  ;;  %v23297_v34 = vld [vmem:[%s23720_s9 + $0xc4] sm:$0x1]  ;;  %v23299_v23 = vld [vmem:[%s23720_s9 + $0xec] sm:$0x1]  ;;  %v29739_v48 = vld [vmem:[#allocation14_spill] sm:$0xff] }
 0x2ed   : > { %v3954_v44 = vrot.slane %v3952_v39, 4  ;;  %v17807_v40 = vrot.slane %v3750_v30, 9  ;;  %v3964_v38 = vrot.slane %v3962_v3, 4  ;;  %v3968_v41 = vrot.slane %v23297_v34, 5  ;;  %v3752_v30 = vld [vmem:[%s23720_s9 + $0xdc] sm:$0xe] }
 0x2ee   : > { %v25664_v20 = vsel %vm24244_vm8, %v3951_v52, %v3952_v39  ;;  %v3978_v35 = vrot.slane %v25087_v33, 5  ;;  %v3988_v46 = vrot.slane %v25114_v29, 5  ;;  %v3991_v39 = vrot.slane %v25117_v31, 5  ;;  %v23011_v52 = vld [vmem:[%s23720_s9 + $0x1b8] sm:$0xff]  }
 0x2ef   : > { %v25685_v33 = vsel %vm24244_vm8, %v3961_v12, %v3962_v3  ;;  %v17808_v29 = vrot.slane %v3751_v4, 9  ;;  %v3998_v9 = vrot.slane %v29731_v61, 5  ;;  %v17809_v6 = vrot.slane %v3752_v30, 9  ;;  %v3753_v12 = vld [vmem:[%s23720_s9 + $0xf0] sm:$0xe] }
 0x2f0   : > { %v3994_v3 = vrot.slane %v23299_v23, 5  ;;  %v29733_v23 = vld [vmem:[#allocation9_spill] sm:$0xff]  ;;  %v4040_v21 = vrot.slane %v29739_v48, 5  ;;  %v29741_v48 = vcombine.low %v25580_v13, %v25587_v17  ;;  %v29744_v13 = vcombine.low %v25591_v43, %v25597_v28 }
 0x2f1   : > { %20939 = vmatmul.mubr.msk.bf16.gmra.mrb[8].mxu1 %vm1936_vm4, %v17836_v53  ;;  %v3967_v53 = vrot.slane %v3965_v56, 4  ;;  %v4004_v61 = vrot.slane %v29733_v23, 5  ;;  %v23302_v23 = vld [vmem:[%s23720_s9 + $0x128] sm:$0x1] }
 0x2f2   : > { %21523 = vmatmul.mubr.msk.bf16.gmra.mrb[72].mxu0 %vm1936_vm4, %v23008_v1  ;;  %20942 = vmatprep.mubr.msk.bf16.mxu1 %vm1936_vm4, %v17837_v32  ;;  %v3972_v32 = vrot.slane %v25063_v60, 5  ;;  %v3975_v1 = vrot.slane %v25084_v10, 5  ;;  %v3985_v60 = vrot.slane %v25093_v42, 5  ;;  %v25681_v10 = vsel %vm24244_vm8, %v17807_v40, %v3959_v45 }
 0x2f3   : > { %21526 = vmatprep.mubr.msk.bf16.mxu0 %vm1936_vm4, %v23009_v2  ;;  %v25672_v2 = vsel %vm24244_vm8, %v3954_v44, %v3955_v8  ;;  %v25689_v8 = vsel %vm24244_vm8, %v3964_v38, %v3965_v56  ;;  %v25693_v42 = vsel %vm24244_vm8, %v3967_v53, %v3968_v41  ;;  %v23298_v44 = vld [vmem:[%s23720_s9 + $0xd8] sm:$0x1]  ;;  %v3980_v40 = vrot.slane %v3978_v35, 4  ;;  %v29732_v41 = vld [vmem:[#allocation8_spill] sm:$0xff] }
 0x2f4   : > { %v3974_v31 = vrot.slane %v3972_v32, 4  ;;  %v3981_v34 = vrot.slane %v23298_v44, 5  ;;  %v3977_v45 = vrot.slane %v3975_v1, 4  ;;  %v3987_v56 = vrot.slane %v3985_v60, 4 }
 0x2f5   : > { %v3990_v38 = vrot.slane %v3988_v46, 4  ;;  %v3993_v53 = vrot.slane %v3991_v39, 4  ;;  %v4001_v4 = vrot.slane %v29732_v41, 5  ;;  %v25719_v59 = vsel %vm24244_vm8, %v17808_v29, %v3972_v32  ;;  %v29734_v32 = vld [vmem:[#allocation10_spill] sm:$0xff]  ;;  %v23012_v41 = vld [vmem:[%s23720_s9 + $0x1c0] sm:$0xff]  }
 0x2f6   : > { %v25723_v25 = vsel %vm24244_vm8, %v3974_v31, %v3975_v1  ;;  %v25727_v30 = vsel %vm24244_vm8, %v3977_v45, %v3978_v35  ;;  %v25735_v44 = vsel %vm24244_vm8, %v17809_v6, %v3985_v60  ;;  %v4011_v29 = vrot.slane %v29734_v32, 5  ;;  %v3754_v45 = vld [vmem:[%s23720_s9 + $0x104] sm:$0xe]  ;;  %v23013_v6 = vld [vmem:[%s23720_s9 + $0x1cc] sm:$0xff]   ;;  %v18955_v60 = vld [vmem:[%s23720_s9 + $0x28] sm:$0xf] }
 0x2f7   : > { %v25741_v1 = vsel %vm24244_vm8, %v3987_v56, %v3988_v46  ;;  %v25745_v31 = vsel %vm24244_vm8, %v3990_v38, %v3991_v39  ;;  %v25749_v35 = vsel %vm24244_vm8, %v3993_v53, %v3994_v3  ;;  %v4014_v56 = vrot.slane %v25174_v14, 5  ;;  %v3755_v39 = vld [vmem:[%s23720_s9 + $0x118] sm:$0xe]  ;;  %v18956_v14 = vld [vmem:[%s23720_s9 + $0x2c] sm:$0xf] }
 0x2f8   : > { %v4017_v53 = vrot.slane %v25177_v36, 5  ;;  %v17811_v32 = vrot.slane %v3754_v45, 9  ;;  %v12417_v19 = vshrl.u32 %v18955_v60, 16  ;;  %v12420_v63 = vshll.u32 %v18955_v60, 16 }
 0x2f9   : > { %20943 = vmatmul.mubr.msk.bf16.gmra.mrb[12].mxu1 %vm1936_vm4, %v17838_v18  ;;  %v4033_v18 = vrot.slane %v23302_v23, 5 }
 0x2fa   : > { %21527 = vmatmul.mubr.msk.bf16.gmra.mrb[76].mxu0 %vm1936_vm4, %v23010_v50  ;;  %20946 = vmatprep.mubr.msk.bf16.mxu1 %vm1936_vm4, %v17839_v27  ;;  %v17810_v27 = vrot.slane %v3753_v12, 9  ;;  %v4000_v50 = vrot.slane %v3998_v9, 4  ;;  %v23300_v12 = vld [vmem:[%s23720_s9 + $0x100] sm:$0x1]  ;;  %v12419_v7 = vrot.slane %v12417_v19, 4  ;;  %v12422_v16 = vrot.slane %v12420_v63, 5 }
 0x2fb   : > { %21530 = vmatprep.mubr.msk.bf16.mxu0 %vm1936_vm4, %v23011_v52  ;;  %v25731_v52 = vsel %vm24244_vm8, %v3980_v40, %v3981_v34  ;;  %v4003_v34 = vrot.slane %v4001_v4, 4  ;;  %v4006_v40 = vrot.slane %v4004_v61, 4  ;;  %v4007_v46 = vrot.slane %v23300_v12, 5  ;;  %v23303_v63 = vld [vmem:[%s23720_s9 + $0x13c] sm:$0x1] }
 0x2fc   : > { %v25761_v3 = vsel %vm24244_vm8, %v17810_v27, %v3998_v9  ;;  %v25765_v38 = vsel %vm24244_vm8, %v4000_v50, %v4001_v4  ;;  %v4013_v12 = vrot.slane %v4011_v29, 4  ;;  %v4024_v9 = vrot.slane %v25183_v55, 5  ;;  %v29736_v4 = vld [vmem:[#allocation11_spill] sm:$0xff]  ;;  %v29737_v50 = vld [vmem:[#allocation12_spill] sm:$0xff] }
 0x2fd   : > { %29735 = vst [vmem:[#allocation7_spill] sm:$0xff] %v25765_v38  ;;  %v25781_v36 = vsel %vm24244_vm8, %v4003_v34, %v4004_v61  ;;  %v4027_v27 = vrot.slane %v29736_v4, 5  ;;  %v4030_v45 = vrot.slane %v29737_v50, 5  ;;  %v25796_v24 = vsel %vm24244_vm8, %v4006_v40, %v4007_v46 }
 0x2fe   : > { %v4016_v55 = vrot.slane %v4014_v56, 4  ;;  %v17812_v34 = vrot.slane %v3755_v39, 9  ;;  %v25806_v40 = vsel %vm24244_vm8, %v4013_v12, %v4014_v56  ;;  %v12426_v46 = vshll.u32 %v18956_v14, 16  ;;  %v18957_v39 = vld [vmem:[%s23720_s9 + $0x30] sm:$0xf]  ;;  %v29740_v56 = vld [vmem:[#allocation15_spill] sm:$0xff] }
 0x2ff   : > { %v12430_v4 = vshrl.u32 %v18956_v14, 16  ;;  %v4026_v50 = vrot.slane %v4024_v9, 4  ;;  %v4029_v51 = vrot.slane %v4027_v27, 4  ;;  %v4043_v12 = vrot.slane %v29740_v56, 5 }
 0x300   : > { %v25813_v60 = vsel %vm24244_vm8, %v4016_v55, %v4017_v53  ;;  %v25825_v23 = vsel %vm24244_vm8, %v17812_v34, %v4024_v9  ;;  %v12436_v38 = vshll.u32 %v18957_v39, 16  ;;  %v17813_v34 = vrot.slane %v3756_v15, 9 }
 0x301   : > { %20947 = vmatmul.mubr.msk.bf16.gmra.mrb[16].mxu1 %vm1936_vm4, %v17840_v47  ;;  %v23301_v47 = vld [vmem:[%s23720_s9 + $0x114] sm:$0x1]  ;;  %v12432_v55 = vrot.slane %v12430_v4, 4  ;;  %v25840_v9 = vsel %vm24244_vm8, %v4029_v51, %v4030_v45  ;;  %v4045_v19 = vrot.slane %v4043_v12, 4  ;;  %v29745_v51 = vld [vmem:[#allocation16_spill] sm:$0xff]  ;;  %v12423_v43 = vor.u32 %v12422_v16, %v12419_v7  ;;  %v29747_v16 = vld [vmem:[#allocation18_spill] sm:$0xff] }
 0x302   : > { %21531 = vmatmul.mubr.msk.bf16.gmra.mrb[80].mxu0 %vm1936_vm4, %v23012_v41  ;;  %20950 = vmatprep.mubr.msk.bf16.mxu1 %vm1936_vm4, %v17841_v54  ;;  %v4020_v61 = vrot.slane %v23301_v47, 5  ;;  %v4019_v41 = vrot.slane %v4017_v53, 4  ;;  %v23014_v54 = vld [vmem:[%s23720_s9 + $0x1d4] sm:$0xff]   ;;  %v4032_v47 = vrot.slane %v4030_v45, 4  ;;  %v25827_v53 = vrot.slane %v12426_v46, 5  ;;  %29742 = vst [vmem:[#allocation8_spill] sm:$0xff] %v25840_v9 }
 0x303   : > { %21534 = vmatprep.mubr.msk.bf16.mxu0 %vm1936_vm4, %v23013_v6  ;;  %v25802_v6 = vsel %vm24244_vm8, %v17811_v32, %v4011_v29  ;;  %v29738_v29 = vld [vmem:[#allocation13_spill] sm:$0xff]  ;;  %v4046_v45 = vrot.slane %v23303_v63, 5  ;;  %v4050_v15 = vrot.slane %v29745_v51, 5  ;;  %v12424_v56 = vrot.slane %v12423_v43, 4 }
 0x304   : > { %v4037_v32 = vrot.slane %v29738_v29, 5  ;;  %v25821_v14 = vsel %vm24244_vm8, %v4019_v41, %v4020_v61  ;;  %v12440_v29 = vshrl.u32 %v18957_v39, 16  ;;  %v25836_v61 = vsel %vm24244_vm8, %v4026_v50, %v4027_v27  ;;  %v23016_v39 = vld [vmem:[%s23720_s9 + $0x1e8] sm:$0xff]   ;;  %v18958_v63 = vld [vmem:[%s23720_s9 + $0x34] sm:$0xf] }
 0x305   : > { %v25844_v41 = vsel %vm24244_vm8, %v4032_v47, %v4033_v18  ;;  %v4042_v27 = vrot.slane %v4040_v21, 4  ;;  %v12433_v4 = vor.u32 %v12432_v55, %v25827_v53  ;;  %v12438_v50 = vrot.slane %v12436_v38, 5  ;;  %v23017_v51 = vld [vmem:[%s23720_s9 + $0x1f4] sm:$0xff]  }
 0x306   : > { %29743 = vst [vmem:[#allocation9_spill] sm:$0xff] %v25844_v41  ;;  %v4039_v17 = vrot.slane %v4037_v32, 4  ;;  %v12442_v47 = vrot.slane %v12440_v29, 4  ;;  %v25872_v55 = vsel %vm24244_vm8, %v17813_v34, %v4037_v32  ;;  %v18961_v32 = vld [vmem:[%s23720_s9 + $0x40] sm:$0xf]  ;;  %v29752_v41 = vcombine.low %v25608_v58, %v25618_v57 }
 0x307   : > { %29748 = vst [vmem:[#allocation10_spill] sm:$0xff] %v25872_v55  ;;  %v25880_v29 = vsel %vm24244_vm8, %v4042_v27, %v4043_v12  ;;  %v12434_v34 = vrot.slane %v12433_v4, 4  ;;  %v23304_v27 = vld [vmem:[%s23720_s9 + $0x150] sm:$0x1]  ;;  %v12470_v4 = vshll.u32 %v18961_v32, 16  ;;  %v29759_v58 = vld [vmem:[#allocation19_spill] sm:$0xff] }
 0x308   : > { %v25876_v38 = vsel %vm24244_vm8, %v4039_v17, %v4040_v21  ;;  %29750 = vst [vmem:[#allocation12_spill] sm:$0xff] %v25880_v29  ;;  %v12443_v18 = vor.u32 %v12442_v47, %v12438_v50  ;;  %v12446_v21 = vshll.u32 %v18958_v63, 16  ;;  %v12450_v17 = vshrl.u32 %v18958_v63, 16  ;;  %v3758_v57 = vld [vmem:[%s23720_s9 + $0x154] sm:$0xe] }
 0x309   : > { %20951 = vmatmul.mubr.msk.bf16.gmra.mrb[20].mxu1 %vm1936_vm4, %v29741_v48  ;;  %29749 = vst [vmem:[#allocation11_spill] sm:$0xff] %v25876_v38  ;;  %v4052_v48 = vrot.slane %v4050_v15, 4  ;;  %v12474_v47 = vshrl.u32 %v18961_v32, 16  ;;  %v12429_v63 = vsel %vm23738_vm5, %v12424_v56, %v25827_v53  ;;  %v12439_v32 = vsel %vm23738_vm5, %v12434_v34, %v12438_v50  ;;  %v29760_v50 = vld [vmem:[#allocation20_spill] sm:$0xff] }
 0x30a   : > { %21535 = vmatmul.mubr.msk.bf16.gmra.mrb[84].mxu0 %vm1936_vm4, %v23014_v54  ;;  %20954 = vmatprep.mubr.msk.bf16.mxu1 %vm1936_vm4, %v29744_v13  ;;  %v29746_v54 = vld [vmem:[#allocation17_spill] sm:$0xff]  ;;  %v4056_v13 = vrot.slane %v29747_v16, 5  ;;  %v18960_v16 = vld [vmem:[%s23720_s9 + $0x3c] sm:$0xf]  ;;  %v25936_v34 = vrot.slane %v12470_v4, 5  ;;  %v25940_v29 = vcombine.low %v12429_v63, %v12439_v32  ;;  %v29762_v4 = vcombine.low %v25630_v5, %v25634_v49 }
 0x30b   : > { %21538 = vmatprep.mubr.msk.bf16.mxu0 %vm1936_vm4, %v23015_v11  ;;  %v4053_v46 = vrot.slane %v29746_v54, 5  ;;  %v3757_v11 = vld [vmem:[%s23720_s9 + $0x140] sm:$0xe]  ;;  %v25884_v54 = vsel %vm24244_vm8, %v4045_v19, %v4046_v45  ;;  %v4059_v19 = vrot.slane %v23304_v27, 5  ;;  %v12461_v45 = vshrl.u32 %v18960_v16, 16 }
 0x30c   : > { %29751 = vst [vmem:[#allocation13_spill] sm:$0xff] %v25884_v54  ;;  %v17814_v7 = vrot.slane %v3757_v11, 9  ;;  %v4058_v12 = vrot.slane %v4056_v13, 4  ;;  %v12464_v43 = vshll.u32 %v18960_v16, 16  ;;  %v29753_v11 = vcombine.low %v25622_v62, %v25626_v26  ;;  %v23018_v16 = vld [vmem:[%s23720_s9 + $0x1fc] sm:$0xff]   ;;  %29761 = vst [vmem:[#allocation18_spill] sm:$0xff] %v25940_v29 }
 0x30d   : > { %v4055_v28 = vrot.slane %v4053_v46, 4  ;;  %v25910_v62 = vsel %vm24244_vm8, %v4052_v48, %v4053_v46  ;;  %v25922_v27 = vrot.slane %v12443_v18, 4  ;;  %v23019_v46 = vld [vmem:[%s23720_s9 + $0x208] sm:$0xff]   ;;  %v12463_v56 = vrot.slane %v12461_v45, 4  ;;  %v18966_v45 = vld [vmem:[%s23720_s9 + $0x54] sm:$0xf] }
 0x30e   : > { %29755 = vst [vmem:[#allocation15_spill] sm:$0xff] %v25910_v62  ;;  %v25930_v48 = vsel %vm24244_vm8, %v4058_v12, %v4059_v19  ;;  %v4063_v54 = vrot.slane %v29759_v58, 5  ;;  %v4066_v18 = vrot.slane %v29760_v50, 5  ;;  %v18965_v50 = vld [vmem:[%s23720_s9 + $0x50] sm:$0xf]  ;;  %v17815_v32 = vrot.slane %v3758_v57, 9 }
 0x30f   : > { %29758 = vst [vmem:[#allocation17_spill] sm:$0xff] %v25930_v48  ;;  %v18964_v57 = vld [vmem:[%s23720_s9 + $0x4c] sm:$0x1]  ;;  %v12514_v29 = vshll.u32 %v18966_v45, 16  ;;  %v23021_v62 = vld [vmem:[%s23720_s9 + $0x21c] sm:$0xff]  }
 0x310   : > { %v4065_v5 = vrot.slane %v4063_v54, 4 }
 0x311   : > { %20955 = vmatmul.mubr.msk.bf16.gmra.mrb[24].mxu1 %vm1936_vm4, %v29752_v41  ;;  %v18959_v41 = vld [vmem:[%s23720_s9 + $0x38] sm:$0x1] }
 0x312   : > { %21539 = vmatmul.mubr.msk.bf16.gmra.mrb[88].mxu0 %vm1936_vm4, %v23016_v39  ;;  %20958 = vmatprep.mubr.msk.bf16.mxu1 %vm1936_vm4, %v29753_v11  ;;  %v25906_v39 = vsel %vm24244_vm8, %v17814_v7, %v4050_v15  ;;  %v25924_v15 = vrot.slane %v12446_v21, 5  ;;  %v12452_v7 = vrot.slane %v12450_v17, 4  ;;  %v18962_v11 = vld [vmem:[%s23720_s9 + $0x44] sm:$0xf]  ;;  %v12456_v53 = vshll.u32 %v18959_v41, 16 }
 0x313   : > { %21542 = vmatprep.mubr.msk.bf16.mxu0 %vm1936_vm4, %v23017_v51  ;;  %29754 = vst [vmem:[#allocation14_spill] sm:$0xff] %v25906_v39  ;;  %v25917_v51 = vsel %vm24244_vm8, %v4055_v28, %v4056_v13  ;;  %v12466_v28 = vrot.slane %v12464_v43, 5  ;;  %v18963_v13 = vld [vmem:[%s23720_s9 + $0x48] sm:$0xf]  ;;  %v12476_v21 = vrot.slane %v12474_v47, 4  ;;  %v12480_v12 = vshll.u32 %v18962_v11, 16 }
 0x314   : > { %29757 = vst [vmem:[#allocation16_spill] sm:$0xff] %v25917_v51  ;;  %v12484_v19 = vshrl.u32 %v18962_v11, 16  ;;  %v12453_v43 = vor.u32 %v12452_v7, %v25924_v15  ;;  %v12490_v41 = vshll.u32 %v18963_v13, 16  ;;  %v12494_v58 = vshrl.u32 %v18963_v13, 16  ;;  %v29764_v13 = vld [vmem:[#allocation21_spill] sm:$0xff]  ;;  %v29765_v47 = vld [vmem:[#allocation22_spill] sm:$0xff] }
 0x315   : > { %v25955_v63 = vrot.slane %v12456_v53, 5  ;;  %v12467_v7 = vor.u32 %v12466_v28, %v12463_v56  ;;  %v29763_v11 = vcombine.low %v25644_v22, %v25648_v0  ;;  %v12477_v49 = vor.u32 %v12476_v21, %v25936_v34  ;;  %v23020_v51 = vld [vmem:[%s23720_s9 + $0x210] sm:$0xff]  }
 0x316   : > { %v12482_v53 = vrot.slane %v12480_v12, 5  ;;  %v12486_v56 = vrot.slane %v12484_v19, 4  ;;  %v12505_v28 = vshrl.u32 %v18965_v50, 16  ;;  %v12508_v22 = vshll.u32 %v18965_v50, 16  ;;  %v23305_v50 = vld [vmem:[%s23720_s9 + $0x164] sm:$0x1] }
 0x317   : > { %v12454_v0 = vrot.slane %v12453_v43, 4  ;;  %v25966_v17 = vrot.slane %v12490_v41, 5  ;;  %v4076_v48 = vrot.slane %v29765_v47, 5  ;;  %v25973_v21 = vsel %vm24244_vm8, %v17815_v32, %v4063_v54 }
 0x318   : > { %v12518_v12 = vshrl.u32 %v18966_v45, 16  ;;  %v12478_v19 = vrot.slane %v12477_v49, 4  ;;  %v4072_v43 = vrot.slane %v23305_v50, 5  ;;  %v12500_v41 = vshll.u32 %v18964_v57, 16  ;;  %v29766_v45 = vld [vmem:[#allocation23_spill] sm:$0xff] }
 0x319   : > { %20959 = vmatmul.mubr.msk.bf16.gmra.mrb[28].mxu1 %vm1936_vm4, %v29762_v4  ;;  %v4069_v4 = vrot.slane %v29764_v13, 5  ;;  %v12468_v13 = vrot.slane %v12467_v7, 4  ;;  %v12487_v38 = vor.u32 %v12486_v56, %v12482_v53  ;;  %v12507_v55 = vrot.slane %v12505_v28, 4 }
 0x31a   : > { %21543 = vmatmul.mubr.msk.bf16.gmra.mrb[92].mxu0 %vm1936_vm4, %v23018_v16  ;;  %20962 = vmatprep.mubr.msk.bf16.mxu1 %vm1936_vm4, %v29763_v11  ;;  %v4068_v16 = vrot.slane %v4066_v18, 4  ;;  %v12496_v11 = vrot.slane %v12494_v58, 4  ;;  %v12510_v9 = vrot.slane %v12508_v22, 5  ;;  %v25979_v47 = vsel %vm24244_vm8, %v4065_v5, %v4066_v18  ;;  %v18967_v5 = vld [vmem:[%s23720_s9 + $0x58] sm:$0xf] }
 0x31b   : > { %21546 = vmatprep.mubr.msk.bf16.mxu0 %vm1936_vm4, %v23019_v46  ;;  %v3759_v46 = vld [vmem:[%s23720_s9 + $0x168] sm:$0xe]  ;;  %v4071_v39 = vrot.slane %v4069_v4, 4  ;;  %v4078_v32 = vrot.slane %v4076_v48, 4  ;;  %v4079_v7 = vrot.slane %v29766_v45, 5  ;;  %v29767_v49 = vcombine.low %v25664_v20, %v25672_v2 }
 0x31c   : > { %v17816_v58 = vrot.slane %v3759_v46, 9  ;;  %v12497_v54 = vor.u32 %v12496_v11, %v25966_v17  ;;  %v12459_v57 = vsel %vm23738_vm5, %v12454_v0, %v25955_v63  ;;  %v25993_v18 = vsel %vm24244_vm8, %v4068_v16, %v4069_v4  ;;  %v23306_v4 = vld [vmem:[%s23720_s9 + $0x174] sm:$0xf]  ;;  %v23022_v11 = vld [vmem:[%s23720_s9 + $0x224] sm:$0xff]  }
 0x31d   : > { %v25996_v56 = vrot.slane %v12514_v29, 5  ;;  %v12520_v28 = vrot.slane %v12518_v12, 4  ;;  %v29768_v20 = vcombine.low %v25681_v10, %v25685_v33  ;;  %v12473_v2 = vsel %vm23738_vm5, %v12468_v13, %v25936_v34  ;;  %v18968_v10 = vld [vmem:[%s23720_s9 + $0x5c] sm:$0xf]  ;;  %v23023_v12 = vld [vmem:[%s23720_s9 + $0x230] sm:$0xff]  }
 0x31e   : > { %v26010_v29 = vsel %vm24244_vm8, %v4071_v39, %v4072_v43  ;;  %v26012_v63 = vrot.slane %v12500_v41, 5  ;;  %v26015_v33 = vrot.slane %v12487_v38, 4  ;;  %v12511_v16 = vor.u32 %v12510_v9, %v12507_v55  ;;  %v18969_v41 = vld [vmem:[%s23720_s9 + $0x60] sm:$0x1]  ;;  %v18970_v45 = vld [vmem:[%s23720_s9 + $0x64] sm:$0xf] }
 0x31f   : > { %v4082_v34 = vrot.slane %v23306_v4, 5  ;;  %v12498_v22 = vrot.slane %v12497_v54, 4  ;;  %v12524_v39 = vshll.u32 %v18967_v5, 16  ;;  %v12528_v0 = vshrl.u32 %v18967_v5, 16 }
 0x320   : > { %v12521_v38 = vor.u32 %v12520_v28, %v25996_v56  ;;  %v4081_v46 = vrot.slane %v4079_v7, 4  ;;  %v12534_v13 = vshll.u32 %v18968_v10, 16  ;;  %v29769_v9 = vsel %vm23738_vm5, %v25922_v27, %v25924_v15  ;;  %v23307_v15 = vld [vmem:[%s23720_s9 + $0x178] sm:$0x1]  ;;  %v18971_v28 = vld [vmem:[%s23720_s9 + $0x68] sm:$0xf] }
 0x321   : > { %20963 = vmatmul.mubr.msk.bf16.gmra.mrb[32].mxu1 %vm1936_vm4, %v29767_v49  ;;  %v26034_v55 = vcombine.low %v29769_v9, %v12459_v57  ;;  %v12512_v54 = vrot.slane %v12511_v16, 4  ;;  %v4084_v27 = vrot.slane %v4082_v34, 4  ;;  %v12526_v57 = vrot.slane %v12524_v39, 5  ;;  %v18978_v49 = vld [vmem:[%s23720_s9 + $0x84] sm:$0xf] }
 0x322   : > { %21547 = vmatmul.mubr.msk.bf16.gmra.mrb[96].mxu0 %vm1936_vm4, %v23020_v51  ;;  %20966 = vmatprep.mubr.msk.bf16.mxu1 %vm1936_vm4, %v29768_v20  ;;  %v12483_v51 = vsel %vm23738_vm5, %v12478_v19, %v12482_v53  ;;  %v26024_v53 = vsel %vm24244_vm8, %v4078_v32, %v4079_v7  ;;  %v4085_v32 = vrot.slane %v23307_v15, 5  ;;  %v12503_v7 = vsel %vm23738_vm5, %v12498_v22, %v26012_v63  ;;  %v18972_v20 = vld [vmem:[%s23720_s9 + $0x6c] sm:$0xf] }
 0x323   : > { %21550 = vmatprep.mubr.msk.bf16.mxu0 %vm1936_vm4, %v23021_v62  ;;  %v26019_v62 = vsel %vm24244_vm8, %v17816_v58, %v4076_v48  ;;  %v12538_v48 = vshrl.u32 %v18968_v10, 16  ;;  %v26038_v50 = vcombine.low %v12473_v2, %v12483_v51  ;;  %v12493_v58 = vsel %vm23738_vm5, %v26015_v33, %v25966_v17  ;;  %v3760_v33 = vld [vmem:[%s23720_s9 + $0x17c] sm:$0xe] }
 0x324   : > { %v12530_v5 = vrot.slane %v12528_v0, 4  ;;  %v29770_v17 = vcombine.low %v25689_v8, %v25693_v42  ;;  %v12522_v2 = vrot.slane %v12521_v38, 4  ;;  %v26063_v51 = vsel %vm24244_vm8, %v4081_v46, %v4082_v34  ;;  %v23308_v42 = vld [vmem:[%s23720_s9 + $0x180] sm:$0xf]  ;;  %v18973_v34 = vld [vmem:[%s23720_s9 + $0x70] sm:$0xf] }
 0x325   : > { %v26065_v63 = vrot.slane %v12534_v13, 5  ;;  %v12540_v10 = vrot.slane %v12538_v48, 4  ;;  %v29771_v16 = vcombine.low %v25719_v59, %v25723_v25  ;;  %v12544_v8 = vshll.u32 %v18969_v41, 16 }
 0x326   : > { %v4089_v4 = vrot.slane %v23308_v42, 5  ;;  %v12549_v22 = vshrl.u32 %v18970_v45, 16  ;;  %v12552_v39 = vshll.u32 %v18970_v45, 16  ;;  %v12517_v0 = vsel %vm23738_vm5, %v12512_v54, %v25996_v56  ;;  %v23025_v56 = vld [vmem:[%s23720_s9 + $0x244] sm:$0xff]  }
 0x327   : > { %v26080_v59 = vsel %vm24244_vm8, %v4084_v27, %v4085_v32  ;;  %v12558_v25 = vshll.u32 %v18971_v28, 16  ;;  %v12531_v38 = vor.u32 %v12530_v5, %v12526_v57  ;;  %v17817_v46 = vrot.slane %v3760_v33, 9 }
 0x328   : > { %v12568_v13 = vshll.u32 %v18972_v20, 16  ;;  %v12572_v48 = vshrl.u32 %v18972_v20, 16  ;;  %v12527_v9 = vsel %vm23738_vm5, %v12522_v2, %v12526_v57  ;;  %v12541_v41 = vor.u32 %v12540_v10, %v26065_v63 }
 0x329   : > { %20967 = vmatmul.mubr.msk.bf16.gmra.mrb[36].mxu1 %vm1936_vm4, %v29770_v17  ;;  %v12578_v15 = vshll.u32 %v18973_v34, 16  ;;  %v12582_v45 = vshrl.u32 %v18973_v34, 16  ;;  %v4091_v54 = vrot.slane %v4089_v4, 4  ;;  %v23309_v17 = vld [vmem:[%s23720_s9 + $0x184] sm:$0xf]  ;;  %v12551_v32 = vrot.slane %v12549_v22, 4 }
 0x32a   : > { %21551 = vmatmul.mubr.msk.bf16.gmra.mrb[100].mxu0 %vm1936_vm4, %v23022_v11  ;;  %20970 = vmatprep.mubr.msk.bf16.mxu1 %vm1936_vm4, %v29771_v16  ;;  %v12562_v11 = vshrl.u32 %v18971_v28, 16  ;;  %v4092_v27 = vrot.slane %v23309_v17, 5  ;;  %v12554_v16 = vrot.slane %v12552_v39, 5  ;;  %v26088_v5 = vcombine.low %v12493_v58, %v12503_v7  ;;  %v18975_v22 = vld [vmem:[%s23720_s9 + $0x78] sm:$0xf] }
 0x32b   : > { %21554 = vmatprep.mubr.msk.bf16.mxu0 %vm1936_vm4, %v23023_v12  ;;  %v23024_v12 = vld [vmem:[%s23720_s9 + $0x238] sm:$0xff]   ;;  %v26092_v20 = vrot.slane %v12558_v25, 5  ;;  %v26094_v2 = vcombine.low %v12517_v0, %v12527_v9  ;;  %v26096_v10 = vrot.slane %v12531_v38, 4  ;;  %v26098_v33 = vrot.slane %v12568_v13, 5  ;;  %v18974_v38 = vld [vmem:[%s23720_s9 + $0x74] sm:$0x1] }
 0x32c   : > { %v12564_v57 = vrot.slane %v12562_v11, 4  ;;  %v12574_v42 = vrot.slane %v12572_v48, 4  ;;  %v29772_v58 = vcombine.low %v25727_v30, %v25731_v52  ;;  %v26106_v7 = vrot.slane %v12541_v41, 4  ;;  %v18976_v25 = vld [vmem:[%s23720_s9 + $0x7c] sm:$0xf] }
 0x32d   : > { %v26108_v39 = vrot.slane %v12544_v8, 5  ;;  %v26110_v34 = vrot.slane %v12578_v15, 5  ;;  %v12584_v0 = vrot.slane %v12582_v45, 4  ;;  %v29773_v11 = vcombine.low %v25735_v44, %v25741_v1  ;;  %v23310_v44 = vld [vmem:[%s23720_s9 + $0x188] sm:$0xf]  ;;  %v23026_v15 = vld [vmem:[%s23720_s9 + $0x24c] sm:$0xff]  }
 0x32e   : > { %v26120_v30 = vsel %vm24244_vm8, %v17817_v46, %v4089_v4  ;;  %v26124_v52 = vsel %vm24244_vm8, %v4091_v54, %v4092_v27  ;;  %v12555_v8 = vor.u32 %v12554_v16, %v12551_v32  ;;  %v12565_v13 = vor.u32 %v12564_v57, %v26092_v20  ;;  %v3761_v17 = vld [vmem:[%s23720_s9 + $0x190] sm:$0xe]  ;;  %v23311_v32 = vld [vmem:[%s23720_s9 + $0x194] sm:$0xf]  ;;  %v23027_v57 = vld [vmem:[%s23720_s9 + $0x258] sm:$0xff]  }
 0x32f   : > { %v4095_v1 = vrot.slane %v23310_v44, 5  ;;  %v12593_v48 = vshrl.u32 %v18975_v22, 16  ;;  %v12537_v4 = vsel %vm23738_vm5, %v26096_v10, %v26065_v63  ;;  %v12575_v46 = vor.u32 %v12574_v42, %v26098_v33  ;;  %v18977_v44 = vld [vmem:[%s23720_s9 + $0x80] sm:$0xf] }
 0x330   : > { %v12602_v9 = vshll.u32 %v18976_v25, 16  ;;  %v12606_v41 = vshrl.u32 %v18976_v25, 16  ;;  %v12547_v45 = vsel %vm23738_vm5, %v26106_v7, %v26108_v39  ;;  %v12588_v54 = vshll.u32 %v18974_v38, 16 }
 0x331   : > { %20971 = vmatmul.mubr.msk.bf16.gmra.mrb[40].mxu1 %vm1936_vm4, %v29772_v58  ;;  %v4102_v16 = vrot.slane %v23311_v32, 5  ;;  %v12556_v10 = vrot.slane %v12555_v8, 4  ;;  %v4094_v42 = vrot.slane %v4092_v27, 4  ;;  %v12566_v25 = vrot.slane %v12565_v13, 4 }
 0x332   : > { %21555 = vmatmul.mubr.msk.bf16.gmra.mrb[104].mxu0 %vm1936_vm4, %v23024_v12  ;;  %20974 = vmatprep.mubr.msk.bf16.mxu1 %vm1936_vm4, %v29773_v11  ;;  %v12596_v12 = vshll.u32 %v18975_v22, 16  ;;  %v23312_v22 = vld [vmem:[%s23720_s9 + $0x18c] sm:$0x1]  ;;  %v4097_v11 = vrot.slane %v4095_v1, 4  ;;  %v12595_v7 = vrot.slane %v12593_v48, 4  ;;  %v17818_v38 = vrot.slane %v3761_v17, 9 }
 0x333   : > { %21558 = vmatprep.mubr.msk.bf16.mxu0 %vm1936_vm4, %v23025_v56  ;;  %v12585_v56 = vor.u32 %v12584_v0, %v26110_v34  ;;  %v4098_v58 = vrot.slane %v23312_v22, 5  ;;  %v12576_v0 = vrot.slane %v12575_v46, 4  ;;  %v26147_v28 = vrot.slane %v12602_v9, 5  ;;  %v23313_v22 = vld [vmem:[%s23720_s9 + $0x198] sm:$0xf] }
 0x334   : > { %v12598_v39 = vrot.slane %v12596_v12, 5  ;;  %v12608_v32 = vrot.slane %v12606_v41, 4  ;;  %v29774_v43 = vcombine.low %v25745_v31, %v25749_v35  ;;  %v12590_v8 = vrot.slane %v12588_v54, 5  ;;  %v29775_v12 = vld [vmem:[#allocation7_spill] sm:$0xff] }
 0x335   : > { %v12586_v27 = vrot.slane %v12585_v56, 4  ;;  %v4104_v13 = vrot.slane %v4102_v16, 4  ;;  %v4105_v48 = vrot.slane %v23313_v22, 5  ;;  %v29776_v46 = vcombine.low %v25761_v3, %v29775_v12  ;;  %v23315_v22 = vld [vmem:[%s23720_s9 + $0x1a0] sm:$0x1] }
 0x336   : > { %v12561_v31 = vsel %vm23738_vm5, %v12556_v10, %v26092_v20  ;;  %v26166_v35 = vsel %vm24244_vm8, %v4094_v42, %v4095_v1  ;;  %v12616_v9 = vshrl.u32 %v18977_v44, 16  ;;  %v26170_v41 = vsel %vm24244_vm8, %v4097_v11, %v4098_v58  ;;  %v23029_v10 = vld [vmem:[%s23720_s9 + $0x26c] sm:$0xff]   ;;  %v23314_v58 = vld [vmem:[%s23720_s9 + $0x19c] sm:$0xf]  ;;  %v18982_v12 = vld [vmem:[%s23720_s9 + $0x94] sm:$0xf] }
 0x337   : > { %v12599_v3 = vor.u32 %v12598_v39, %v12595_v7  ;;  %v12626_v56 = vshrl.u32 %v18978_v49, 16  ;;  %v12571_v54 = vsel %vm23738_vm5, %v12566_v25, %v26098_v33  ;;  %v12581_v20 = vsel %vm23738_vm5, %v12576_v0, %v26110_v34  ;;  %v18980_v39 = vld [vmem:[%s23720_s9 + $0x8c] sm:$0xf] }
 0x338   : > { %v26180_v1 = vsel %vm24244_vm8, %v17818_v38, %v4102_v16  ;;  %v12609_v17 = vor.u32 %v12608_v32, %v26147_v28  ;;  %v26189_v33 = vsel %vm24244_vm8, %v4104_v13, %v4105_v48  ;;  %v4107_v42 = vrot.slane %v4105_v48, 4 }
 0x339   : > { %20975 = vmatmul.mubr.msk.bf16.gmra.mrb[44].mxu1 %vm1936_vm4, %v29774_v43  ;;  %v12612_v43 = vshll.u32 %v18977_v44, 16  ;;  %29777 = vst [vmem:[#allocation6_spill] sm:$0xff] %v26180_v1  ;;  %29778 = vst [vmem:[#allocation19_spill] sm:$0xff] %v26189_v33  ;;  %v4108_v34 = vrot.slane %v23314_v58, 5  ;;  %v26192_v25 = vcombine.low %v12537_v4, %v12547_v45  ;;  %v18979_v44 = vld [vmem:[%s23720_s9 + $0x88] sm:$0x1]  ;;  %v26198_v0 = vcombine.low %v12561_v31, %v12571_v54 }
 0x33a   : > { %21559 = vmatmul.mubr.msk.bf16.gmra.mrb[108].mxu0 %vm1936_vm4, %v23026_v15  ;;  %20978 = vmatprep.mubr.msk.bf16.mxu1 %vm1936_vm4, %v29776_v46  ;;  %v12622_v15 = vshll.u32 %v18978_v49, 16  ;;  %v12591_v49 = vsel %vm23738_vm5, %v12586_v27, %v12590_v8  ;;  %v12618_v7 = vrot.slane %v12616_v9, 4  ;;  %v12600_v38 = vrot.slane %v12599_v3, 4  ;;  %v18981_v8 = vld [vmem:[%s23720_s9 + $0x90] sm:$0xf] }
 0x33b   : > { %21562 = vmatprep.mubr.msk.bf16.mxu0 %vm1936_vm4, %v23027_v57  ;;  %v23028_v57 = vld [vmem:[%s23720_s9 + $0x260] sm:$0xff]   ;;  %v12614_v11 = vrot.slane %v12612_v43, 5  ;;  %v12628_v27 = vrot.slane %v12626_v56, 4  ;;  %v26203_v13 = vcombine.low %v12581_v20, %v12591_v49  ;;  %v12610_v45 = vrot.slane %v12609_v17, 4  ;;  %v29785_v1 = vld [vmem:[#allocation9_spill] sm:$0xff] }
 0x33c   : > { %v26200_v32 = vrot.slane %v12622_v15, 5  ;;  %v4111_v48 = vrot.slane %v23315_v22, 5  ;;  %v29779_v46 = vcombine.low %v25781_v36, %v25796_v24  ;;  %v26216_v31 = vsel %vm24244_vm8, %v4107_v42, %v4108_v34  ;;  %v18983_v15 = vld [vmem:[%s23720_s9 + $0x98] sm:$0xf]  ;;  %v3762_v54 = vld [vmem:[%s23720_s9 + $0x1a4] sm:$0xe] }
 0x33d   : > { %v4110_v43 = vrot.slane %v4108_v34, 4  ;;  %v12637_v9 = vshrl.u32 %v18980_v39, 16  ;;  %v12640_v3 = vshll.u32 %v18980_v39, 16  ;;  %v29780_v56 = vcombine.low %v25802_v6, %v25806_v40  ;;  %v23031_v39 = vld [vmem:[%s23720_s9 + $0x280] sm:$0xff]  }
 0x33e   : > { %v12619_v36 = vor.u32 %v12618_v7, %v12614_v11  ;;  %v12632_v24 = vshll.u32 %v18979_v44, 16  ;;  %v12646_v20 = vshll.u32 %v18981_v8, 16  ;;  %v12650_v17 = vshrl.u32 %v18981_v8, 16  ;;  %v23030_v7 = vld [vmem:[%s23720_s9 + $0x274] sm:$0xff]  }
 0x33f   : > { %v12629_v49 = vor.u32 %v12628_v27, %v26200_v32  ;;  %v12656_v42 = vshll.u32 %v18982_v12, 16  ;;  %v12660_v6 = vshrl.u32 %v18982_v12, 16  ;;  %v12615_v40 = vsel %vm23738_vm5, %v12610_v45, %v12614_v11  ;;  %v23317_v12 = vld [vmem:[%s23720_s9 + $0x1ac] sm:$0xf] }
 0x340   : > { %v12666_v34 = vshll.u32 %v18983_v15, 16  ;;  %v12670_v44 = vshrl.u32 %v18983_v15, 16  ;;  %v26236_v8 = vsel %vm24244_vm8, %v4110_v43, %v4111_v48  ;;  %v12642_v27 = vrot.slane %v12640_v3, 5  ;;  %v18984_v3 = vld [vmem:[%s23720_s9 + $0x9c] sm:$0x1] }
 0x341   : > { %20979 = vmatmul.mubr.msk.bf16.gmra.mrb[48].mxu1 %vm1936_vm4, %v29779_v46  ;;  %v26238_v22 = vrot.slane %v12619_v36, 4  ;;  %v4118_v46 = vrot.slane %v23317_v12, 5  ;;  %v26241_v11 = vrot.slane %v12646_v20, 5  ;;  %v12652_v45 = vrot.slane %v12650_v17, 4 }
 0x342   : > { %21563 = vmatmul.mubr.msk.bf16.gmra.mrb[112].mxu0 %vm1936_vm4, %v23028_v57  ;;  %20982 = vmatprep.mubr.msk.bf16.mxu1 %vm1936_vm4, %v29780_v56  ;;  %v12605_v57 = vsel %vm23738_vm5, %v12600_v38, %v26147_v28  ;;  %v17819_v28 = vrot.slane %v3762_v54, 9  ;;  %v12639_v38 = vrot.slane %v12637_v9, 4  ;;  %v18985_v56 = vld [vmem:[%s23720_s9 + $0xa0] sm:$0xf]  ;;  %v26244_v15 = vrot.slane %v12629_v49, 4 }
 0x343   : > { %21566 = vmatprep.mubr.msk.bf16.mxu0 %vm1936_vm4, %v23029_v10  ;;  %v23316_v10 = vld [vmem:[%s23720_s9 + $0x1a8] sm:$0xf]  ;;  %v26248_v4 = vrot.slane %v12656_v42, 5  ;;  %v12662_v48 = vrot.slane %v12660_v6, 4  ;;  %v26250_v43 = vcombine.low %v12605_v57, %v12615_v40  ;;  %v26253_v36 = vrot.slane %v12666_v34, 5 }
 0x344   : > { %v4115_v58 = vrot.slane %v23316_v10, 5  ;;  %v26246_v10 = vrot.slane %v12632_v24, 5  ;;  %v12672_v54 = vrot.slane %v12670_v44, 4  ;;  %v29782_v20 = vcombine.low %v25813_v60, %v25821_v14  ;;  %v18986_v57 = vld [vmem:[%s23720_s9 + $0xa4] sm:$0xf] }
 0x345   : > { %29781 = vst [vmem:[#allocation20_spill] sm:$0xff] %v26250_v43  ;;  %v12643_v17 = vor.u32 %v12642_v27, %v12639_v38  ;;  %v12681_v49 = vshrl.u32 %v18985_v56, 16  ;;  %v12684_v42 = vshll.u32 %v18985_v56, 16  ;;  %v29783_v6 = vcombine.low %v25825_v23, %v25836_v61  ;;  %v23032_v38 = vld [vmem:[%s23720_s9 + $0x288] sm:$0xff]  }
 0x346   : > { %v4117_v9 = vrot.slane %v4115_v58, 4  ;;  %v26262_v24 = vsel %vm24244_vm8, %v17819_v28, %v4115_v58  ;;  %v12653_v14 = vor.u32 %v12652_v45, %v26241_v11  ;;  %v4120_v40 = vrot.slane %v4118_v46, 4  ;;  %v23318_v58 = vld [vmem:[%s23720_s9 + $0x1b0] sm:$0xf] }
 0x347   : > { %v4121_v34 = vrot.slane %v23318_v58, 5  ;;  %v12635_v23 = vsel %vm23738_vm5, %v26244_v15, %v26246_v10  ;;  %v12663_v61 = vor.u32 %v12662_v48, %v26248_v4  ;;  %v12676_v44 = vshll.u32 %v18984_v3, 16  ;;  %v23320_v15 = vld [vmem:[%s23720_s9 + $0x1b4] sm:$0x1]  ;;  %v18987_v48 = vld [vmem:[%s23720_s9 + $0xa8] sm:$0xf] }
 0x348   : > { %v26286_v27 = vsel %vm24244_vm8, %v4117_v9, %v4118_v46  ;;  %v12673_v12 = vor.u32 %v12672_v54, %v26253_v36  ;;  %v12690_v45 = vshll.u32 %v18986_v57, 16  ;;  %v12694_v56 = vshrl.u32 %v18986_v57, 16  ;;  %v23033_v58 = vld [vmem:[%s23720_s9 + $0x294] sm:$0xff]   ;;  %v18988_v9 = vld [vmem:[%s23720_s9 + $0xac] sm:$0xf] }
 0x349   : > { %20983 = vmatmul.mubr.msk.bf16.gmra.mrb[52].mxu1 %vm1936_vm4, %v29782_v20  ;;  %v12644_v20 = vrot.slane %v12643_v17, 4  ;;  %v4124_v10 = vrot.slane %v23320_v15, 5  ;;  %v12686_v3 = vrot.slane %v12684_v42, 5  ;;  %v12654_v16 = vrot.slane %v12653_v14, 4  ;;  %v23321_v57 = vld [vmem:[%s23720_s9 + $0x1c0] sm:$0xf] }
 0x34a   : > { %21567 = vmatmul.mubr.msk.bf16.gmra.mrb[116].mxu0 %vm1936_vm4, %v23030_v7  ;;  %20986 = vmatprep.mubr.msk.bf16.mxu1 %vm1936_vm4, %v29783_v6  ;;  %v3763_v7 = vld [vmem:[%s23720_s9 + $0x1b8] sm:$0xe]  ;;  %v12683_v6 = vrot.slane %v12681_v49, 4  ;;  %v4123_v63 = vrot.slane %v4121_v34, 4  ;;  %v12664_v19 = vrot.slane %v12663_v61, 4  ;;  %v12678_v54 = vrot.slane %v12676_v44, 5 }
 0x34b   : > { %21570 = vmatprep.mubr.msk.bf16.mxu0 %vm1936_vm4, %v23031_v39  ;;  %v23319_v39 = vld [vmem:[%s23720_s9 + $0x1bc] sm:$0xf]  ;;  %v17820_v46 = vrot.slane %v3763_v7, 9  ;;  %v4131_v43 = vrot.slane %v23321_v57, 5  ;;  %v12674_v17 = vrot.slane %v12673_v12, 4  ;;  %v26298_v33 = vrot.slane %v12690_v45, 5 }
 0x34c   : > { %v4128_v28 = vrot.slane %v23319_v39, 5  ;;  %v26294_v39 = vsel %vm24244_vm8, %v4120_v40, %v4121_v34  ;;  %v12696_v15 = vrot.slane %v12694_v56, 4  ;;  %v12700_v49 = vshll.u32 %v18987_v48, 16  ;;  %v29784_v42 = vld [vmem:[#allocation8_spill] sm:$0xff]  ;;  %v29787_v7 = vld [vmem:[#allocation10_spill] sm:$0xff]  ;;  %v29788_v57 = vld [vmem:[#allocation11_spill] sm:$0xff] }
 0x34d   : > { %v29786_v14 = vcombine.low %v29784_v42, %v29785_v1  ;;  %v12687_v40 = vor.u32 %v12686_v3, %v12683_v6  ;;  %v12704_v34 = vshrl.u32 %v18987_v48, 16  ;;  %v12710_v61 = vshll.u32 %v18988_v9, 16 }
 0x34e   : > { %v4130_v60 = vrot.slane %v4128_v28, 4  ;;  %v12714_v44 = vshrl.u32 %v18988_v9, 16  ;;  %v29789_v12 = vcombine.low %v29787_v7, %v29788_v57  ;;  %v12649_v1 = vsel %vm23738_vm5, %v12644_v20, %v26241_v11  ;;  %v23034_v20 = vld [vmem:[%s23720_s9 + $0x29c] sm:$0xff]  }
 0x34f   : > { %v26318_v45 = vsel %vm24244_vm8, %v4123_v63, %v4124_v10  ;;  %v12669_v56 = vsel %vm23738_vm5, %v12664_v19, %v26253_v36  ;;  %v26325_v48 = vsel %vm24244_vm8, %v17820_v46, %v4128_v28  ;;  %v4133_v11 = vrot.slane %v4131_v43, 4  ;;  %v23322_v19 = vld [vmem:[%s23720_s9 + $0x1c4] sm:$0xf]  ;;  %v18989_v10 = vld [vmem:[%s23720_s9 + $0xb0] sm:$0x1] }
 0x350   : > { %29790 = vst [vmem:[#allocation21_spill] sm:$0xff] %v26325_v48  ;;  %v26329_v6 = vsel %vm24244_vm8, %v4130_v60, %v4131_v43  ;;  %v12697_v63 = vor.u32 %v12696_v15, %v26298_v33  ;;  %v4134_v36 = vrot.slane %v23322_v19, 5  ;;  %v26338_v28 = vrot.slane %v12687_v40, 4  ;;  %v18990_v15 = vld [vmem:[%s23720_s9 + $0xb4] sm:$0xf] }
 0x351   : > { %20987 = vmatmul.mubr.msk.bf16.gmra.mrb[56].mxu1 %vm1936_vm4, %v29786_v14  ;;  %29791 = vst [vmem:[#allocation22_spill] sm:$0xff] %v26329_v6  ;;  %v12706_v60 = vrot.slane %v12704_v34, 4  ;;  %v26341_v3 = vrot.slane %v12710_v61, 5  ;;  %v12716_v43 = vrot.slane %v12714_v44, 4  ;;  %v29792_v46 = vsel %vm23738_vm5, %v26238_v22, %v26200_v32  ;;  %v23323_v32 = vld [vmem:[%s23720_s9 + $0x1c8] sm:$0x1] }
 0x352   : > { %21571 = vmatmul.mubr.msk.bf16.gmra.mrb[120].mxu0 %vm1936_vm4, %v23032_v38  ;;  %20990 = vmatprep.mubr.msk.bf16.mxu1 %vm1936_vm4, %v29789_v12  ;;  %v12659_v38 = vsel %vm23738_vm5, %v12654_v16, %v26248_v4  ;;  %v12679_v16 = vsel %vm23738_vm5, %v12674_v17, %v12678_v54  ;;  %v26335_v4 = vrot.slane %v12700_v49, 5  ;;  %v26350_v9 = vcombine.low %v29792_v46, %v12635_v23  ;;  %v18991_v23 = vld [vmem:[%s23720_s9 + $0xb8] sm:$0xf]  ;;  %v18992_v40 = vld [vmem:[%s23720_s9 + $0xbc] sm:$0xf]  ;;  %v29794_v12 = vld [vmem:[#allocation12_spill] sm:$0xff] }
 0x353   : > { %21574 = vmatprep.mubr.msk.bf16.mxu0 %vm1936_vm4, %v23033_v58  ;;  %v26354_v17 = vcombine.low %v12649_v1, %v12659_v38  ;;  %v26359_v42 = vcombine.low %v12669_v56, %v12679_v16  ;;  %v4137_v22 = vrot.slane %v23323_v32, 5  ;;  %v12698_v34 = vrot.slane %v12697_v63, 4  ;;  %v18993_v57 = vld [vmem:[%s23720_s9 + $0xc0] sm:$0xf]  ;;  %v29795_v1 = vld [vmem:[#allocation13_spill] sm:$0xff] }
 0x354   : > { %v26368_v61 = vsel %vm24244_vm8, %v4133_v11, %v4134_v36  ;;  %v4136_v44 = vrot.slane %v4134_v36, 4  ;;  %v12720_v7 = vshll.u32 %v18989_v10, 16  ;;  %v29796_v38 = vcombine.low %v29794_v12, %v29795_v1  ;;  %v3764_v63 = vld [vmem:[%s23720_s9 + $0x1cc] sm:$0xe]  ;;  %v23324_v19 = vld [vmem:[%s23720_s9 + $0x1d0] sm:$0xf] }
 0x355   : > { %29793 = vst [vmem:[#allocation23_spill] sm:$0xff] %v26359_v42  ;;  %v12693_v56 = vsel %vm23738_vm5, %v26338_v28, %v26298_v33  ;;  %v12707_v16 = vor.u32 %v12706_v60, %v26335_v4  ;;  %v12717_v11 = vor.u32 %v12716_v43, %v26341_v3  ;;  %v4141_v36 = vrot.slane %v23324_v19, 5  ;;  %v29797_v10 = vld [vmem:[#allocation14_spill] sm:$0xff]  ;;  %v29798_v46 = vld [vmem:[#allocation15_spill] sm:$0xff]  ;;  %v18996_v42 = vld [vmem:[%s23720_s9 + $0xcc] sm:$0xf] }
 0x356   : > { %v29799_v32 = vcombine.low %v29797_v10, %v29798_v46  ;;  %v29800_v12 = vld [vmem:[#allocation18_spill] sm:$0xff]  ;;  %v12728_v1 = vshll.u32 %v18990_v15, 16  ;;  %v12734_v33 = vshll.u32 %v18991_v23, 16  ;;  %v12738_v28 = vshrl.u32 %v18991_v23, 16  ;;  %v23325_v23 = vld [vmem:[%s23720_s9 + $0x1d4] sm:$0xf] }
 0x357   : > { %v12744_v60 = vshll.u32 %v18992_v40, 16  ;;  %v12754_v43 = vshll.u32 %v18993_v57, 16  ;;  %v12758_v14 = vshrl.u32 %v18993_v57, 16  ;;  %v12703_v19 = vsel %vm23738_vm5, %v12698_v34, %v26335_v4 }
 0x358   : > { %v26395_v10 = vsel %vm24244_vm8, %v4136_v44, %v4137_v22  ;;  %v12722_v46 = vrot.slane %v12720_v7, 5  ;;  %v4143_v49 = vrot.slane %v4141_v36, 4  ;;  %v4144_v54 = vrot.slane %v23325_v23, 5 }
 0x359   : > { %20991 = vmatmul.mubr.msk.bf16.gmra.mrb[60].mxu1 %vm1936_vm4, %v29796_v38  ;;  %v12748_v38 = vshrl.u32 %v18992_v40, 16  ;;  %v18995_v40 = vld [vmem:[%s23720_s9 + $0xc8] sm:$0xf]  ;;  %v12730_v6 = vrot.slane %v12728_v1, 5  ;;  %v26399_v57 = vrot.slane %v12734_v33, 5  ;;  %v12740_v48 = vrot.slane %v12738_v28, 4 }
 0x35a   : > { %21575 = vmatmul.mubr.msk.bf16.gmra.mrb[124].mxu0 %vm1936_vm4, %v23034_v20  ;;  %20994 = vmatprep.mubr.msk.bf16.mxu1 %vm1936_vm4, %v29799_v32  ;;  %v12725_v20 = vshrl.u32 %v18990_v15, 16  ;;  %v17821_v32 = vrot.slane %v3764_v63, 9  ;;  %v12718_v15 = vrot.slane %v12717_v11, 4  ;;  %v26402_v4 = vrot.slane %v12744_v60, 5  ;;  %v18994_v11 = vld [vmem:[%s23720_s9 + $0xc4] sm:$0x1] }
 0x35b   : > { %21580 = vmatprep.mubr.msk.bf16.mxu0 %vm1936_vm4, %v29800_v12  ;;  %v12708_v12 = vrot.slane %v12707_v16, 4  ;;  %v12750_v34 = vrot.slane %v12748_v38, 4  ;;  %v26404_v22 = vrot.slane %v12754_v43, 5  ;;  %v12760_v44 = vrot.slane %v12758_v14, 4  ;;  %v29802_v1 = vld [vmem:[#allocation16_spill] sm:$0xff]  ;;  %v29803_v33 = vld [vmem:[#allocation17_spill] sm:$0xff] }
 0x35c   : > { %v12727_v58 = vrot.slane %v12725_v20, 4  ;;  %v26410_v16 = vsel %vm24244_vm8, %v17821_v32, %v4141_v36  ;;  %v12769_v63 = vshrl.u32 %v18995_v40, 16  ;;  %v12772_v20 = vshll.u32 %v18995_v40, 16  ;;  %v29806_v43 = vld [vmem:[#allocation24_spill] sm:$0xff] }
 0x35d   : > { %29801 = vst [vmem:[#allocation7_spill] sm:$0xff] %v26410_v16  ;;  %v29804_v28 = vcombine.low %v29802_v1, %v29803_v33  ;;  %v12713_v14 = vsel %vm23738_vm5, %v12708_v12, %v26341_v3  ;;  %v26424_v60 = vsel %vm24244_vm8, %v4143_v49, %v4144_v54  ;;  %v12778_v36 = vshll.u32 %v18996_v42, 16  ;;  %v23326_v49 = vld [vmem:[%s23720_s9 + $0x1d8] sm:$0xf] }
 0x35e   : > { %29805 = vst [vmem:[#allocation8_spill] sm:$0xff] %v26424_v60  ;;  %v12782_v38 = vshrl.u32 %v18996_v42, 16  ;;  %v29807_v32 = vcombine.low %v25973_v21, %v25979_v47  ;;  %v12731_v23 = vor.u32 %v12730_v6, %v12727_v58  ;;  %v12741_v3 = vor.u32 %v12740_v48, %v26399_v57  ;;  %v3765_v6 = vld [vmem:[%s23720_s9 + $0x1e0] sm:$0xe]  ;;  %v23327_v48 = vld [vmem:[%s23720_s9 + $0x1e4] sm:$0xf] }
 0x35f   : > { %v4147_v12 = vrot.slane %v23326_v49, 5  ;;  %v26437_v42 = vcombine.low %v12693_v56, %v12703_v19  ;;  %v12751_v40 = vor.u32 %v12750_v34, %v26402_v4  ;;  %v12761_v21 = vor.u32 %v12760_v44, %v26404_v22  ;;  %v18997_v56 = vld [vmem:[%s23720_s9 + $0xd0] sm:$0xf]  ;;  %v18998_v49 = vld [vmem:[%s23720_s9 + $0xd4] sm:$0xf] }
 0x360   : > { %v12764_v47 = vshll.u32 %v18994_v11, 16  ;;  %v4154_v58 = vrot.slane %v23327_v48, 5  ;;  %v12774_v1 = vrot.slane %v12772_v20, 5  ;;  %v26448_v19 = vrot.slane %v12778_v36, 5  ;;  %v23329_v20 = vld [vmem:[%s23720_s9 + $0x1e8] sm:$0xf] }
 0x361   : > { %20995 = vmatmul.mubr.msk.bf16.gmra.mrb[64].mxu1 %vm1936_vm4, %v29804_v28  ;;  %v12784_v34 = vrot.slane %v12782_v38, 4  ;;  %v12732_v44 = vrot.slane %v12731_v23, 4  ;;  %v12742_v28 = vrot.slane %v12741_v3, 4  ;;  %v4149_v11 = vrot.slane %v4147_v12, 4 }
 0x362   : > { %21581 = vmatmul.mubr.msk.bf16.vlgmr.msra.gmra.mrb[0].mxu0 %vm1936_vm4, %v26034_v55  ;;  %20998 = vmatprep.mubr.msk.bf16.mxu1 %vm1936_vm4, %v29807_v32  ;;  %v12723_v55 = vsel %vm23738_vm5, %v12718_v15, %v12722_v46  ;;  %v12771_v15 = vrot.slane %v12769_v63, 4  ;;  %v12752_v46 = vrot.slane %v12751_v40, 4  ;;  %v12762_v7 = vrot.slane %v12761_v21, 4  ;;  %v19001_v21 = vld [vmem:[%s23720_s9 + $0xe0] sm:$0xf] }
 0x363   : > { %21709 = vmatpush3.bf16.msra.mxu0 %v29806_v43  ;;  %21584 = vmatprep.mubr.msk.bf16.mxu0 %vm1936_vm4, %v26038_v50  ;;  %v26445_v33 = vcombine.low %v12713_v14, %v12723_v55  ;;  %v4146_v50 = vrot.slane %v4144_v54, 4  ;;  %v23328_v43 = vld [vmem:[%s23720_s9 + $0x1dc] sm:$0x1]  ;;  %v12766_v60 = vrot.slane %v12764_v47, 5  ;;  %v17822_v48 = vrot.slane %v3765_v6, 9 }
 0x364   : > { %v4150_v32 = vrot.slane %v23328_v43, 5  ;;  %v4156_v63 = vrot.slane %v4154_v58, 4  ;;  %v4157_v14 = vrot.slane %v23329_v20, 5  ;;  %v12775_v55 = vor.u32 %v12774_v1, %v12771_v15  ;;  %v23331_v20 = vld [vmem:[%s23720_s9 + $0x1f0] sm:$0x1] }
 0x365   : > { %v12788_v16 = vshll.u32 %v18997_v56, 16  ;;  %v29808_v54 = vcombine.low %v25993_v18, %v26010_v29  ;;  %v12785_v36 = vor.u32 %v12784_v34, %v26448_v19  ;;  %v12792_v38 = vshrl.u32 %v18997_v56, 16 }
 0x366   : > { %v12798_v23 = vshll.u32 %v18998_v49, 16  ;;  %v12802_v3 = vshrl.u32 %v18998_v49, 16  ;;  %v29809_v40 = vcombine.low %v26019_v62, %v26024_v53  ;;  %v12737_v18 = vsel %vm23738_vm5, %v12732_v44, %v26399_v57 }
 0x367   : > { %v26471_v29 = vsel %vm24244_vm8, %v4146_v50, %v4147_v12  ;;  %v12747_v62 = vsel %vm23738_vm5, %v12742_v28, %v26402_v4  ;;  %v12757_v53 = vsel %vm23738_vm5, %v12752_v46, %v26404_v22  ;;  %v26487_v57 = vsel %vm24244_vm8, %v17822_v48, %v4154_v58  ;;  %v19000_v12 = vld [vmem:[%s23720_s9 + $0xdc] sm:$0xf]  ;;  %v23330_v4 = vld [vmem:[%s23720_s9 + $0x1ec] sm:$0xf] }
 0x368   : > { %v26493_v47 = vsel %vm24244_vm8, %v4156_v63, %v4157_v14  ;;  %v12776_v6 = vrot.slane %v12775_v55, 4  ;;  %v12790_v15 = vrot.slane %v12788_v16, 5  ;;  %v4160_v1 = vrot.slane %v23330_v4, 5 }
 0x369   : > { %20999 = vmatmul.mubr.msk.bf16.gmra.mrb[68].mxu1 %vm1936_vm4, %v29808_v54  ;;  %v12786_v50 = vrot.slane %v12785_v36, 4  ;;  %v12794_v22 = vrot.slane %v12792_v38, 4  ;;  %v26496_v46 = vrot.slane %v12798_v23, 5  ;;  %v12813_v58 = vshrl.u32 %v19000_v12, 16  ;;  %v19003_v54 = vld [vmem:[%s23720_s9 + $0xe8] sm:$0xf] }
 0x36a   : > { %21585 = vmatmul.mubr.msk.bf16.gmra.mrb[4].mxu0 %vm1936_vm4, %v26088_v5  ;;  %21002 = vmatprep.mubr.msk.bf16.mxu1 %vm1936_vm4, %v29809_v40  ;;  %v26475_v5 = vsel %vm24244_vm8, %v4149_v11, %v4150_v32  ;;  %v12816_v56 = vshll.u32 %v19000_v12, 16  ;;  %v12822_v34 = vshll.u32 %v19001_v21, 16  ;;  %v12826_v44 = vshrl.u32 %v19001_v21, 16  ;;  %v19002_v32 = vld [vmem:[%s23720_s9 + $0xe4] sm:$0xf] }
 0x36b   : > { %21588 = vmatprep.mubr.msk.bf16.mxu0 %vm1936_vm4, %v26094_v2  ;;  %v12767_v2 = vsel %vm23738_vm5, %v12762_v7, %v12766_v60  ;;  %v12804_v7 = vrot.slane %v12802_v3, 4  ;;  %v18999_v60 = vld [vmem:[%s23720_s9 + $0xd8] sm:$0x1]  ;;  %v26499_v28 = vcombine.low %v12737_v18, %v12747_v62  ;;  %v17878_v16 = vcombine.low %v26471_v29, %v26475_v5 }
 0x36c   : > { %v26503_v11 = vcombine.low %v12757_v53, %v12767_v2  ;;  %v17879_v43 = vcombine.low %v26487_v57, %v26493_v47  ;;  %v12781_v49 = vsel %vm23738_vm5, %v12776_v6, %v26448_v19  ;;  %v4159_v48 = vrot.slane %v4157_v14, 4  ;;  %v3766_v14 = vld [vmem:[%s23720_s9 + $0x1f4] sm:$0xe]  ;;  %v23332_v21 = vld [vmem:[%s23720_s9 + $0x1f8] sm:$0xf] }
 0x36d   : > { %v4162_v63 = vrot.slane %v4160_v1, 4  ;;  %v4163_v55 = vrot.slane %v23331_v20, 5  ;;  %v29810_v36 = vcombine.low %v26063_v51, %v26080_v59  ;;  %v12791_v38 = vsel %vm23738_vm5, %v12786_v50, %v12790_v15 }
 0x36e   : > { %v12795_v23 = vor.u32 %v12794_v22, %v12790_v15  ;;  %v12805_v3 = vor.u32 %v12804_v7, %v26496_v46  ;;  %v12808_v19 = vshll.u32 %v18999_v60, 16  ;;  %v29811_v40 = vcombine.low %v26120_v30, %v26124_v52  ;;  %v23333_v22 = vld [vmem:[%s23720_s9 + $0x1fc] sm:$0xf]  ;;  %v19005_v60 = vld [vmem:[%s23720_s9 + $0xf0] sm:$0xf] }
 0x36f   : > { %v12815_v51 = vrot.slane %v12813_v58, 4  ;;  %v12818_v59 = vrot.slane %v12816_v56, 5  ;;  %v12828_v18 = vrot.slane %v12826_v44, 4  ;;  %v12832_v62 = vshll.u32 %v19002_v32, 16 }
 0x370   : > { %v12836_v53 = vshrl.u32 %v19002_v32, 16  ;;  %v12842_v2 = vshll.u32 %v19003_v54, 16  ;;  %v12846_v12 = vshrl.u32 %v19003_v54, 16  ;;  %v26533_v30 = vsel %vm24244_vm8, %v4159_v48, %v4160_v1  ;;  %v19006_v32 = vld [vmem:[%s23720_s9 + $0xf4] sm:$0xf] }
 0x371   : > { %21003 = vmatmul.mubr.msk.bf16.gmra.mrb[72].mxu1 %vm1936_vm4, %v29810_v36  ;;  %v26537_v52 = vsel %vm24244_vm8, %v4162_v63, %v4163_v55  ;;  %v4167_v6 = vrot.slane %v23332_v21, 5  ;;  %v26540_v15 = vcombine.low %v12781_v49, %v12791_v38  ;;  %v12796_v4 = vrot.slane %v12795_v23, 4  ;;  %v19004_v36 = vld [vmem:[%s23720_s9 + $0xec] sm:$0x1] }
 0x372   : > { %21589 = vmatmul.mubr.msk.bf16.gmra.mrb[8].mxu0 %vm1936_vm4, %v26192_v25  ;;  %21006 = vmatprep.mubr.msk.bf16.mxu1 %vm1936_vm4, %v29811_v40  ;;  %v26529_v25 = vrot.slane %v12822_v34, 5  ;;  %v12810_v50 = vrot.slane %v12808_v19, 5  ;;  %v4170_v7 = vrot.slane %v23333_v22, 5  ;;  %v12806_v58 = vrot.slane %v12805_v3, 4  ;;  %v23334_v34 = vld [vmem:[%s23720_s9 + $0x200] sm:$0xf] }
 0x373   : > { %21592 = vmatprep.mubr.msk.bf16.mxu0 %vm1936_vm4, %v26198_v0  ;;  %v17823_v0 = vrot.slane %v3766_v14, 9  ;;  %v12819_v56 = vor.u32 %v12818_v59, %v12815_v51  ;;  %v4173_v44 = vrot.slane %v23334_v34, 5  ;;  %v12834_v48 = vrot.slane %v12832_v62, 5  ;;  %v3767_v14 = vld [vmem:[%s23720_s9 + $0x208] sm:$0xe]  ;;  %v29813_v62 = vld [vmem:[#allocation6_spill] sm:$0xff] }
 0x374   : > { %v12829_v1 = vor.u32 %v12828_v18, %v26529_v25  ;;  %v12838_v63 = vrot.slane %v12836_v53, 4  ;;  %v26547_v20 = vrot.slane %v12842_v2, 5  ;;  %v12848_v49 = vrot.slane %v12846_v12, 4  ;;  %v23335_v40 = vld [vmem:[%s23720_s9 + $0x20c] sm:$0xf]  ;;  %v29814_v53 = vld [vmem:[#allocation19_spill] sm:$0xff] }
 0x375   : > { %v26551_v55 = vsel %vm24244_vm8, %v17823_v0, %v4167_v6  ;;  %v4169_v54 = vrot.slane %v4167_v6, 4  ;;  %v12857_v38 = vshrl.u32 %v19005_v60, 16  ;;  %v12860_v23 = vshll.u32 %v19005_v60, 16  ;;  %v23336_v0 = vld [vmem:[%s23720_s9 + $0x204] sm:$0x1] }
 0x376   : > { %v29812_v3 = vcombine.low %v26166_v35, %v26170_v41  ;;  %v12801_v19 = vsel %vm23738_vm5, %v12796_v4, %v26496_v46  ;;  %v4180_v51 = vrot.slane %v23335_v40, 5  ;;  %v12866_v59 = vshll.u32 %v19006_v32, 16  ;;  %v29816_v35 = vld [vmem:[#allocation20_spill] sm:$0xff] }
 0x377   : > { %v12870_v18 = vshrl.u32 %v19006_v32, 16  ;;  %v29815_v2 = vcombine.low %v29813_v62, %v29814_v53  ;;  %v12820_v41 = vrot.slane %v12819_v56, 4  ;;  %v4172_v12 = vrot.slane %v4170_v7, 4  ;;  %v23337_v62 = vld [vmem:[%s23720_s9 + $0x210] sm:$0xf] }
 0x378   : > { %v4176_v46 = vrot.slane %v23336_v0, 5  ;;  %v4175_v21 = vrot.slane %v4173_v44, 4  ;;  %v12839_v6 = vor.u32 %v12838_v63, %v12834_v48  ;;  %v12849_v4 = vor.u32 %v12848_v49, %v26547_v20  ;;  %v19007_v56 = vld [vmem:[%s23720_s9 + $0xf8] sm:$0xf] }
 0x379   : > { %21007 = vmatmul.mubr.msk.bf16.gmra.mrb[76].mxu1 %vm1936_vm4, %v29812_v3  ;;  %v12852_v22 = vshll.u32 %v19004_v36, 16  ;;  %v12811_v60 = vsel %vm23738_vm5, %v12806_v58, %v12810_v50  ;;  %v17824_v34 = vrot.slane %v3767_v14, 9  ;;  %v12859_v32 = vrot.slane %v12857_v38, 4 }
 0x37a   : > { %21593 = vmatmul.mubr.msk.bf16.gmra.mrb[12].mxu0 %vm1936_vm4, %v26203_v13  ;;  %21010 = vmatprep.mubr.msk.bf16.mxu1 %vm1936_vm4, %v29815_v2  ;;  %v12830_v13 = vrot.slane %v12829_v1, 4  ;;  %v12862_v3 = vrot.slane %v12860_v23, 5  ;;  %v4182_v40 = vrot.slane %v4180_v51, 4  ;;  %v4183_v53 = vrot.slane %v23337_v62, 5 }
 0x37b   : > { %21596 = vmatprep.mubr.msk.bf16.mxu0 %vm1936_vm4, %v29816_v35  ;;  %v26577_v2 = vrot.slane %v12866_v59, 5  ;;  %v12872_v1 = vrot.slane %v12870_v18, 4  ;;  %v26581_v35 = vsel %vm24244_vm8, %v4169_v54, %v4170_v7  ;;  %v12825_v63 = vsel %vm23738_vm5, %v12820_v41, %v26529_v25  ;;  %v23338_v18 = vld [vmem:[%s23720_s9 + $0x214] sm:$0xf]  ;;  %v23345_v41 = vld [vmem:[%s23720_s9 + $0x238] sm:$0xf] }
 0x37c   : > { %v12835_v50 = vsel %vm23738_vm5, %v12830_v13, %v12834_v48  ;;  %v26590_v58 = vsel %vm24244_vm8, %v4172_v12, %v4173_v44  ;;  %v26594_v49 = vsel %vm24244_vm8, %v4175_v21, %v4176_v46  ;;  %v26596_v36 = vrot.slane %v12839_v6, 4  ;;  %v19008_v13 = vld [vmem:[%s23720_s9 + $0xfc] sm:$0xf]  ;;  %v19009_v12 = vld [vmem:[%s23720_s9 + $0x100] sm:$0x1] }
 0x37d   : > { %v26598_v7 = vrot.slane %v12849_v4, 4  ;;  %v26600_v54 = vrot.slane %v12852_v22, 5  ;;  %v26604_v38 = vcombine.low %v12801_v19, %v12811_v60  ;;  %v12863_v48 = vor.u32 %v12862_v3, %v12859_v32  ;;  %v19010_v46 = vld [vmem:[%s23720_s9 + $0x104] sm:$0xf]  ;;  %v19011_v21 = vld [vmem:[%s23720_s9 + $0x108] sm:$0xf] }
 0x37e   : > { %v12876_v23 = vshll.u32 %v19007_v56, 16  ;;  %v29817_v44 = vcombine.low %v26216_v31, %v26236_v8  ;;  %v26614_v14 = vsel %vm24244_vm8, %v17824_v34, %v4180_v51  ;;  %v26618_v19 = vsel %vm24244_vm8, %v4182_v40, %v4183_v53  ;;  %v23339_v60 = vld [vmem:[%s23720_s9 + $0x218] sm:$0x1]  ;;  %v19012_v32 = vld [vmem:[%s23720_s9 + $0x10c] sm:$0xf] }
 0x37f   : > { %v12873_v59 = vor.u32 %v12872_v1, %v26577_v2  ;;  %v4186_v31 = vrot.slane %v23338_v18, 5  ;;  %v29818_v8 = vcombine.low %v26262_v24, %v26286_v27  ;;  %v26630_v51 = vcombine.low %v12825_v63, %v12835_v50  ;;  %v19013_v1 = vld [vmem:[%s23720_s9 + $0x110] sm:$0xf] }
 0x380   : > { %v12845_v24 = vsel %vm23738_vm5, %v26596_v36, %v26547_v20  ;;  %v12855_v27 = vsel %vm23738_vm5, %v26598_v7, %v26600_v54  ;;  %v12880_v0 = vshrl.u32 %v19007_v56, 16  ;;  %v12864_v4 = vrot.slane %v12863_v48, 4 }
 0x381   : > { %21011 = vmatmul.mubr.msk.bf16.gmra.mrb[80].mxu1 %vm1936_vm4, %v29817_v44  ;;  %v12878_v22 = vrot.slane %v12876_v23, 5  ;;  %v4189_v34 = vrot.slane %v23339_v60, 5  ;;  %v12874_v20 = vrot.slane %v12873_v59, 4  ;;  %v4188_v3 = vrot.slane %v4186_v31, 4 }
 0x382   : > { %21597 = vmatmul.mubr.msk.bf16.gmra.mrb[16].mxu0 %vm1936_vm4, %v26350_v9  ;;  %21014 = vmatprep.mubr.msk.bf16.mxu1 %vm1936_vm4, %v29818_v8  ;;  %v12886_v40 = vshll.u32 %v19008_v13, 16  ;;  %v12890_v62 = vshrl.u32 %v19008_v13, 16  ;;  %v12901_v63 = vshrl.u32 %v19010_v46, 16  ;;  %v12904_v50 = vshll.u32 %v19010_v46, 16  ;;  %v29820_v13 = vld [vmem:[#allocation23_spill] sm:$0xff]  ;;  %v29821_v46 = vld [vmem:[#allocation21_spill] sm:$0xff] }
 0x383   : > { %21600 = vmatprep.mubr.msk.bf16.mxu0 %vm1936_vm4, %v26354_v17  ;;  %v4185_v17 = vrot.slane %v4183_v53, 4  ;;  %v12910_v53 = vshll.u32 %v19011_v21, 16  ;;  %v12914_v56 = vshrl.u32 %v19011_v21, 16  ;;  %v12882_v7 = vrot.slane %v12880_v0, 4  ;;  %v26673_v0 = vld [vmem:[%s23720_s9 + $0x21c] sm:$0xe] }
 0x384   : > { %v12920_v54 = vshll.u32 %v19012_v32, 16  ;;  %v12924_v48 = vshrl.u32 %v19012_v32, 16  ;;  %v12869_v23 = vsel %vm23738_vm5, %v12864_v4, %v26577_v2  ;;  %v12896_v44 = vshll.u32 %v19009_v12, 16 }
 0x385   : > { %v26653_v36 = vsel %vm24244_vm8, %v4185_v17, %v4186_v31  ;;  %v12930_v59 = vshll.u32 %v19013_v1, 16  ;;  %v12934_v18 = vshrl.u32 %v19013_v1, 16  ;;  %v29819_v8 = vcombine.low %v26294_v39, %v26318_v45  ;;  %v29822_v39 = vld [vmem:[#allocation22_spill] sm:$0xff] }
 0x386   : > { %v12879_v31 = vsel %vm23738_vm5, %v12874_v20, %v12878_v22  ;;  %v26668_v17 = vsel %vm24244_vm8, %v4188_v3, %v4189_v34  ;;  %v26670_v2 = vrot.slane %v12886_v40, 5  ;;  %v12892_v12 = vrot.slane %v12890_v62, 4  ;;  %v23340_v20 = vld [vmem:[%s23720_s9 + $0x220] sm:$0xf] }
 0x387   : > { %v29823_v45 = vcombine.low %v29821_v46, %v29822_v39  ;;  %v12903_v21 = vrot.slane %v12901_v63, 4  ;;  %v12906_v4 = vrot.slane %v12904_v50, 5  ;;  %v26681_v60 = vrot.slane %v12910_v53, 5 }
 0x388   : > { %v12916_v34 = vrot.slane %v12914_v56, 4  ;;  %v12883_v32 = vor.u32 %v12882_v7, %v12878_v22  ;;  %v4193_v3 = vrot.slane %v23340_v20, 5  ;;  %v26684_v40 = vrot.slane %v12920_v54, 5  ;;  %v23341_v7 = vld [vmem:[%s23720_s9 + $0x224] sm:$0xf] }
 0x389   : > { %21015 = vmatmul.mubr.msk.bf16.gmra.mrb[84].mxu1 %vm1936_vm4, %v29819_v8  ;;  %v12926_v62 = vrot.slane %v12924_v48, 4  ;;  %v26686_v1 = vcombine.low %v12845_v24, %v12855_v27  ;;  %v17825_v8 = vrot.slane %v26673_v0, 9  ;;  %v26690_v63 = vrot.slane %v12930_v59, 5  ;;  %v19015_v24 = vld [vmem:[%s23720_s9 + $0x118] sm:$0xf] }
 0x38a   : > { %21601 = vmatmul.mubr.msk.bf16.gmra.mrb[20].mxu0 %vm1936_vm4, %v29820_v13  ;;  %21018 = vmatprep.mubr.msk.bf16.mxu1 %vm1936_vm4, %v29823_v45  ;;  %v12936_v50 = vrot.slane %v12934_v18, 4  ;;  %v26692_v53 = vcombine.low %v12869_v23, %v12879_v31  ;;  %v12893_v56 = vor.u32 %v12892_v12, %v26670_v2  ;;  %v4196_v54 = vrot.slane %v23341_v7, 5  ;;  %v23342_v59 = vld [vmem:[%s23720_s9 + $0x228] sm:$0xf]  ;;  %v19016_v18 = vld [vmem:[%s23720_s9 + $0x11c] sm:$0xf] }
 0x38b   : > { %21604 = vmatprep.mubr.msk.bf16.mxu0 %vm1936_vm4, %v26437_v42  ;;  %v19014_v42 = vld [vmem:[%s23720_s9 + $0x114] sm:$0x1]  ;;  %v26699_v27 = vrot.slane %v12896_v44, 5  ;;  %v12907_v48 = vor.u32 %v12906_v4, %v12903_v21  ;;  %v12917_v13 = vor.u32 %v12916_v34, %v26681_v60  ;;  %v4199_v0 = vrot.slane %v23342_v59, 5  ;;  %v3769_v12 = vld [vmem:[%s23720_s9 + $0x230] sm:$0xe] }
 0x38c   : > { %v12884_v23 = vrot.slane %v12883_v32, 4  ;;  %v4195_v31 = vrot.slane %v4193_v3, 4  ;;  %v12927_v46 = vor.u32 %v12926_v62, %v26684_v40  ;;  %v12940_v39 = vshll.u32 %v19014_v42, 16  ;;  %v23343_v20 = vld [vmem:[%s23720_s9 + $0x234] sm:$0xf]  ;;  %v29825_v42 = vld [vmem:[#allocation7_spill] sm:$0xff] }
 0x38d   : > { %v12937_v45 = vor.u32 %v12936_v50, %v26690_v63  ;;  %v4206_v7 = vrot.slane %v23343_v20, 5  ;;  %v12945_v22 = vshrl.u32 %v19015_v24, 16  ;;  %v12948_v44 = vshll.u32 %v19015_v24, 16  ;;  %v29826_v50 = vld [vmem:[#allocation8_spill] sm:$0xff] }
 0x38e   : > { %v29824_v21 = vcombine.low %v26368_v61, %v26395_v10  ;;  %v12894_v4 = vrot.slane %v12893_v56, 4  ;;  %v4198_v34 = vrot.slane %v4196_v54, 4  ;;  %v12954_v32 = vshll.u32 %v19016_v18, 16  ;;  %v23344_v20 = vld [vmem:[%s23720_s9 + $0x22c] sm:$0x1] }
 0x38f   : > { %v12958_v62 = vshrl.u32 %v19016_v18, 16  ;;  %v29827_v59 = vcombine.low %v29825_v42, %v29826_v50  ;;  %v12908_v24 = vrot.slane %v12907_v48, 4  ;;  %v12918_v61 = vrot.slane %v12917_v13, 4  ;;  %v19017_v13 = vld [vmem:[%s23720_s9 + $0x120] sm:$0xf] }
 0x390   : > { %v4201_v10 = vrot.slane %v4199_v0, 4  ;;  %v12928_v6 = vrot.slane %v12927_v46, 4  ;;  %v17826_v56 = vrot.slane %v3769_v12, 9  ;;  %v4209_v18 = vrot.slane %v23345_v41, 5  ;;  %v19021_v12 = vld [vmem:[%s23720_s9 + $0x130] sm:$0xf] }
 0x391   : > { %21019 = vmatmul.mubr.msk.bf16.gmra.mrb[88].mxu1 %vm1936_vm4, %v29824_v21  ;;  %v4202_v21 = vrot.slane %v23344_v20, 5  ;;  %v12938_v9 = vrot.slane %v12937_v45, 4  ;;  %v4208_v25 = vrot.slane %v4206_v7, 4  ;;  %v12947_v42 = vrot.slane %v12945_v22, 4 }
 0x392   : > { %21605 = vmatmul.mubr.msk.bf16.gmra.mrb[24].mxu0 %vm1936_vm4, %v26445_v33  ;;  %21022 = vmatprep.mubr.msk.bf16.mxu1 %vm1936_vm4, %v29827_v59  ;;  %v12942_v33 = vrot.slane %v12940_v39, 5  ;;  %v12950_v50 = vrot.slane %v12948_v44, 5  ;;  %v26727_v48 = vsel %vm24244_vm8, %v17825_v8, %v4193_v3  ;;  %v26730_v59 = vrot.slane %v12954_v32, 5  ;;  %v19018_v8 = vld [vmem:[%s23720_s9 + $0x124] sm:$0xf] }
 0x393   : > { %21608 = vmatprep.mubr.msk.bf16.mxu0 %vm1936_vm4, %v26499_v28  ;;  %v12889_v28 = vsel %vm23738_vm5, %v12884_v23, %v26670_v2  ;;  %v12960_v46 = vrot.slane %v12958_v62, 4  ;;  %v12899_v41 = vsel %vm23738_vm5, %v12894_v4, %v26699_v27  ;;  %v26737_v22 = vsel %vm24244_vm8, %v4195_v31, %v4196_v54  ;;  %v23346_v4 = vld [vmem:[%s23720_s9 + $0x23c] sm:$0xf]  ;;  %v23347_v32 = vld [vmem:[%s23720_s9 + $0x240] sm:$0x1] }
 0x394   : > { %v12913_v2 = vsel %vm23738_vm5, %v12908_v24, %v26681_v60  ;;  %v26744_v3 = vsel %vm24244_vm8, %v4198_v34, %v4199_v0  ;;  %v12923_v23 = vsel %vm23738_vm5, %v12918_v61, %v26684_v40  ;;  %v26752_v27 = vsel %vm24244_vm8, %v4201_v10, %v4202_v21  ;;  %v19022_v24 = vld [vmem:[%s23720_s9 + $0x134] sm:$0xf] }
 0x395   : > { %v12933_v54 = vsel %vm23738_vm5, %v12928_v6, %v26690_v63  ;;  %v26759_v60 = vsel %vm24244_vm8, %v17826_v56, %v4206_v7  ;;  %v12943_v0 = vsel %vm23738_vm5, %v12938_v9, %v12942_v33  ;;  %v26765_v31 = vsel %vm24244_vm8, %v4208_v25, %v4209_v18  ;;  %v19023_v33 = vld [vmem:[%s23720_s9 + $0x138] sm:$0xf]  ;;  %v3770_v56 = vld [vmem:[%s23720_s9 + $0x244] sm:$0xe] }
 0x396   : > { %v12951_v40 = vor.u32 %v12950_v50, %v12947_v42  ;;  %v12964_v39 = vshll.u32 %v19017_v13, 16  ;;  %v12961_v6 = vor.u32 %v12960_v46, %v26730_v59  ;;  %v12968_v9 = vshrl.u32 %v19017_v13, 16  ;;  %v23348_v46 = vld [vmem:[%s23720_s9 + $0x248] sm:$0xf] }
 0x397   : > { %v12974_v63 = vshll.u32 %v19018_v8, 16  ;;  %v12978_v25 = vshrl.u32 %v19018_v8, 16  ;;  %v26780_v29 = vcombine.low %v12889_v28, %v12899_v41  ;;  %v17885_v5 = vcombine.low %v26727_v48, %v26737_v22 }
 0x398   : > { %v26788_v45 = vcombine.low %v12933_v54, %v12943_v0  ;;  %v17887_v57 = vcombine.low %v26759_v60, %v26765_v31  ;;  %v4211_v47 = vrot.slane %v4209_v18, 4  ;;  %v26795_v7 = vrot.slane %v12951_v40, 4 }
 0x399   : > { %21023 = vmatmul.mubr.msk.bf16.gmra.mrb[92].mxu1 %vm1936_vm4, %v17878_v16  ;;  %v17886_v16 = vcombine.low %v26744_v3, %v26752_v27  ;;  %v26797_v44 = vrot.slane %v12964_v39, 5  ;;  %v4212_v34 = vrot.slane %v23346_v4, 5  ;;  %v4215_v62 = vrot.slane %v23347_v32, 5  ;;  %v23357_v27 = vld [vmem:[%s23720_s9 + $0x274] sm:$0xf] }
 0x39a   : > { %21609 = vmatmul.mubr.msk.bf16.gmra.mrb[28].mxu0 %vm1936_vm4, %v26503_v11  ;;  %21026 = vmatprep.mubr.msk.bf16.mxu1 %vm1936_vm4, %v17879_v43  ;;  %v26786_v11 = vcombine.low %v12913_v2, %v12923_v23  ;;  %v19019_v43 = vld [vmem:[%s23720_s9 + $0x128] sm:$0x1]  ;;  %v12962_v61 = vrot.slane %v12961_v6, 4  ;;  %v12970_v10 = vrot.slane %v12968_v9, 4  ;;  %v26802_v20 = vrot.slane %v12974_v63, 5 }
 0x39b   : > { %21612 = vmatprep.mubr.msk.bf16.mxu0 %vm1936_vm4, %v26540_v15  ;;  %v19020_v15 = vld [vmem:[%s23720_s9 + $0x12c] sm:$0xf]  ;;  %v12980_v21 = vrot.slane %v12978_v25, 4  ;;  %v12998_v50 = vshll.u32 %v19021_v12, 16  ;;  %v13002_v28 = vshrl.u32 %v19021_v12, 16  ;;  %v26808_v13 = vsel %vm24244_vm8, %v4211_v47, %v4212_v34 }
 0x39c   : > { %v12989_v18 = vshrl.u32 %v19020_v15, 16  ;;  %v12992_v42 = vshll.u32 %v19020_v15, 16  ;;  %v4219_v41 = vrot.slane %v23348_v46, 5  ;;  %v13008_v2 = vshll.u32 %v19022_v24, 16  ;;  %v23349_v25 = vld [vmem:[%s23720_s9 + $0x24c] sm:$0xf] }
 0x39d   : > { %v13012_v8 = vshrl.u32 %v19022_v24, 16  ;;  %v4214_v23 = vrot.slane %v4212_v34, 4  ;;  %v12984_v54 = vshll.u32 %v19019_v43, 16  ;;  %v13018_v0 = vshll.u32 %v19023_v33, 16  ;;  %v23350_v34 = vld [vmem:[%s23720_s9 + $0x250] sm:$0xf] }
 0x39e   : > { %v13022_v40 = vshrl.u32 %v19023_v33, 16  ;;  %v29828_v39 = vcombine.low %v26533_v30, %v26537_v52  ;;  %v12971_v6 = vor.u32 %v12970_v10, %v26797_v44  ;;  %v12981_v9 = vor.u32 %v12980_v21, %v26802_v20  ;;  %v23351_v46 = vld [vmem:[%s23720_s9 + $0x254] sm:$0x1] }
 0x39f   : > { %v17827_v63 = vrot.slane %v3770_v56, 9  ;;  %v4222_v47 = vrot.slane %v23349_v25, 5  ;;  %v29829_v43 = vcombine.low %v26551_v55, %v26581_v35  ;;  %v12991_v30 = vrot.slane %v12989_v18, 4 }
 0x3a0   : > { %v12994_v52 = vrot.slane %v12992_v42, 5  ;;  %v26826_v15 = vrot.slane %v12998_v50, 5  ;;  %v4221_v12 = vrot.slane %v4219_v41, 4  ;;  %v26828_v4 = vrot.slane %v13008_v2, 5  ;;  %v19024_v42 = vld [vmem:[%s23720_s9 + $0x13c] sm:$0x1] }
 0x3a1   : > { %21027 = vmatmul.mubr.msk.bf16.gmra.mrb[96].mxu1 %vm1936_vm4, %v29828_v39  ;;  %v4225_v32 = vrot.slane %v23350_v34, 5  ;;  %v13014_v24 = vrot.slane %v13012_v8, 4  ;;  %v12957_v55 = vsel %vm23738_vm5, %v26795_v7, %v26730_v59  ;;  %v12967_v35 = vsel %vm23738_vm5, %v12962_v61, %v26797_v44  ;;  %v19025_v61 = vld [vmem:[%s23720_s9 + $0x140] sm:$0xf] }
 0x3a2   : > { %21613 = vmatmul.mubr.msk.bf16.gmra.mrb[32].mxu0 %vm1936_vm4, %v26604_v38  ;;  %21030 = vmatprep.mubr.msk.bf16.mxu1 %vm1936_vm4, %v29829_v43  ;;  %v13004_v38 = vrot.slane %v13002_v28, 4  ;;  %v13024_v10 = vrot.slane %v13022_v40, 4  ;;  %v26842_v21 = vsel %vm24244_vm8, %v4214_v23, %v4215_v62  ;;  %v12972_v33 = vrot.slane %v12971_v6, 4  ;;  %v19026_v40 = vld [vmem:[%s23720_s9 + $0x144] sm:$0xf] }
 0x3a3   : > { %21616 = vmatprep.mubr.msk.bf16.mxu0 %vm1936_vm4, %v26630_v51  ;;  %v26838_v51 = vrot.slane %v13018_v0, 5  ;;  %v12982_v56 = vrot.slane %v12981_v9, 4  ;;  %v12986_v18 = vrot.slane %v12984_v54, 5  ;;  %v26847_v59 = vsel %vm24244_vm8, %v17827_v63, %v4219_v41  ;;  %v19027_v43 = vld [vmem:[%s23720_s9 + $0x148] sm:$0xf] }
 0x3a4   : > { %v12995_v7 = vor.u32 %v12994_v52, %v12991_v30  ;;  %v13005_v50 = vor.u32 %v13004_v38, %v26826_v15  ;;  %v4224_v44 = vrot.slane %v4222_v47, 4  ;;  %v26853_v28 = vsel %vm24244_vm8, %v4221_v12, %v4222_v47  ;;  %v23352_v52 = vld [vmem:[%s23720_s9 + $0x25c] sm:$0xf] }
 0x3a5   : > { %v4227_v62 = vrot.slane %v4225_v32, 4  ;;  %v4228_v2 = vrot.slane %v23351_v46, 5  ;;  %v13015_v8 = vor.u32 %v13014_v24, %v26828_v4  ;;  %v26857_v23 = vcombine.low %v12957_v55, %v12967_v35  ;;  %v23353_v46 = vld [vmem:[%s23720_s9 + $0x260] sm:$0xf] }
 0x3a6   : > { %v17888_v41 = vcombine.low %v26808_v13, %v26842_v21  ;;  %v13025_v54 = vor.u32 %v13024_v10, %v26838_v51  ;;  %v13028_v0 = vshll.u32 %v19024_v42, 16  ;;  %v29830_v39 = vcombine.low %v26590_v58, %v26594_v49 }
 0x3a7   : > { %v12977_v6 = vsel %vm23738_vm5, %v12972_v33, %v26802_v20  ;;  %v12987_v9 = vsel %vm23738_vm5, %v12982_v56, %v12986_v18  ;;  %v13033_v63 = vshrl.u32 %v19025_v61, 16  ;;  %v13036_v25 = vshll.u32 %v19025_v61, 16  ;;  %v19028_v33 = vld [vmem:[%s23720_s9 + $0x14c] sm:$0xf] }
 0x3a8   : > { %v29831_v47 = vcombine.low %v26614_v14, %v26618_v19  ;;  %v17889_v58 = vcombine.low %v26847_v59, %v26853_v28  ;;  %v12996_v49 = vrot.slane %v12995_v7, 4  ;;  %v26884_v20 = vsel %vm24244_vm8, %v4224_v44, %v4225_v32  ;;  %v3771_v19 = vld [vmem:[%s23720_s9 + $0x258] sm:$0xe]  ;;  %v19030_v44 = vld [vmem:[%s23720_s9 + $0x154] sm:$0xf] }
 0x3a9   : > { %21031 = vmatmul.mubr.msk.bf16.gmra.mrb[100].mxu1 %vm1936_vm4, %v29830_v39  ;;  %v26889_v30 = vsel %vm24244_vm8, %v4227_v62, %v4228_v2  ;;  %v13016_v14 = vrot.slane %v13015_v8, 4  ;;  %v13042_v38 = vshll.u32 %v19026_v40, 16  ;;  %v26893_v12 = vcombine.low %v12977_v6, %v12987_v9 }
 0x3aa   : > { %21617 = vmatmul.mubr.msk.bf16.gmra.mrb[36].mxu0 %vm1936_vm4, %v26686_v1  ;;  %21034 = vmatprep.mubr.msk.bf16.mxu1 %vm1936_vm4, %v29831_v47  ;;  %v13006_v1 = vrot.slane %v13005_v50, 4  ;;  %v13026_v34 = vrot.slane %v13025_v54, 4  ;;  %v13030_v24 = vrot.slane %v13028_v0, 5  ;;  %v13046_v55 = vshrl.u32 %v19026_v40, 16 }
 0x3ab   : > { %21620 = vmatprep.mubr.msk.bf16.mxu0 %vm1936_vm4, %v26692_v53  ;;  %v4232_v53 = vrot.slane %v23352_v52, 5  ;;  %v13035_v32 = vrot.slane %v13033_v63, 4  ;;  %v13038_v35 = vrot.slane %v13036_v25, 5  ;;  %v13052_v10 = vshll.u32 %v19027_v43, 16 }
 0x3ac   : > { %v13056_v56 = vshrl.u32 %v19027_v43, 16  ;;  %v13001_v18 = vsel %vm23738_vm5, %v12996_v49, %v26826_v15  ;;  %v13011_v42 = vsel %vm23738_vm5, %v13006_v1, %v26828_v4  ;;  %v17890_v7 = vcombine.low %v26884_v20, %v26889_v30  ;;  %v19031_v15 = vld [vmem:[%s23720_s9 + $0x158] sm:$0xf]  ;;  %v23354_v43 = vld [vmem:[%s23720_s9 + $0x264] sm:$0xf] }
 0x3ad   : > { %v17828_v50 = vrot.slane %v3771_v19, 9  ;;  %v13021_v61 = vsel %vm23738_vm5, %v13016_v14, %v26838_v51  ;;  %v4234_v62 = vrot.slane %v4232_v53, 4  ;;  %v4235_v2 = vrot.slane %v23353_v46, 5 }
 0x3ae   : > { %v26909_v8 = vrot.slane %v13042_v38, 5  ;;  %v13031_v54 = vsel %vm23738_vm5, %v13026_v34, %v13030_v24  ;;  %v13048_v4 = vrot.slane %v13046_v55, 4  ;;  %v13062_v0 = vshll.u32 %v19028_v33, 16  ;;  %v19033_v38 = vld [vmem:[%s23720_s9 + $0x160] sm:$0xf] }
 0x3af   : > { %v13066_v40 = vshrl.u32 %v19028_v33, 16  ;;  %v29832_v39 = vcombine.low %v26653_v36, %v26668_v17  ;;  %v26920_v51 = vcombine.low %v13001_v18, %v13011_v42  ;;  %v13039_v6 = vor.u32 %v13038_v35, %v13035_v32  ;;  %v19029_v36 = vld [vmem:[%s23720_s9 + $0x150] sm:$0x1]  ;;  %v23355_v24 = vld [vmem:[%s23720_s9 + $0x268] sm:$0x1] }
 0x3b0   : > { %v26922_v9 = vrot.slane %v13052_v10, 5  ;;  %v13058_v63 = vrot.slane %v13056_v56, 4  ;;  %v13077_v17 = vshrl.u32 %v19030_v44, 16  ;;  %v13086_v25 = vshll.u32 %v19031_v15, 16  ;;  %v3772_v35 = vld [vmem:[%s23720_s9 + $0x26c] sm:$0xe] }
 0x3b1   : > { %21035 = vmatmul.mubr.msk.bf16.gmra.mrb[104].mxu1 %vm1936_vm4, %v29832_v39  ;;  %v13090_v47 = vshrl.u32 %v19031_v15, 16  ;;  %v26931_v49 = vcombine.low %v13021_v61, %v13031_v54  ;;  %v26935_v1 = vsel %vm24244_vm8, %v17828_v50, %v4232_v53  ;;  %v26939_v48 = vsel %vm24244_vm8, %v4234_v62, %v4235_v2  ;;  %v23356_v15 = vld [vmem:[%s23720_s9 + $0x270] sm:$0xf] }
 0x3b2   : > { %21621 = vmatmul.mubr.msk.bf16.gmra.mrb[40].mxu0 %vm1936_vm4, %v26780_v29  ;;  %21038 = vmatprep.mubr.msk.bf16.mxu1 %vm1936_vm4, %v17885_v5  ;;  %v13080_v29 = vshll.u32 %v19030_v44, 16  ;;  %v4237_v22 = vrot.slane %v4235_v2, 4  ;;  %v19032_v5 = vld [vmem:[%s23720_s9 + $0x15c] sm:$0xf]  ;;  %v4238_v14 = vrot.slane %v23354_v43, 5  ;;  %v26944_v19 = vrot.slane %v13062_v0, 5 }
 0x3b3   : > { %21624 = vmatprep.mubr.msk.bf16.mxu0 %vm1936_vm4, %v26786_v11  ;;  %v13049_v11 = vor.u32 %v13048_v4, %v26909_v8  ;;  %v13068_v52 = vrot.slane %v13066_v40, 4  ;;  %v26947_v34 = vrot.slane %v13039_v6, 4  ;;  %v4241_v53 = vrot.slane %v23355_v24, 5  ;;  %v19035_v6 = vld [vmem:[%s23720_s9 + $0x168] sm:$0xf] }
 0x3b4   : > { %v13059_v55 = vor.u32 %v13058_v63, %v26922_v9  ;;  %v13072_v32 = vshll.u32 %v19029_v36, 16  ;;  %v13079_v10 = vrot.slane %v13077_v17, 4  ;;  %v13082_v33 = vrot.slane %v13080_v29, 5  ;;  %v19034_v17 = vld [vmem:[%s23720_s9 + $0x164] sm:$0x1] }
 0x3b5   : > { %v26952_v56 = vrot.slane %v13086_v25, 5  ;;  %v13092_v18 = vrot.slane %v13090_v47, 4  ;;  %v13096_v42 = vshll.u32 %v19032_v5, 16  ;;  %v13100_v50 = vshrl.u32 %v19032_v5, 16 }
 0x3b6   : > { %v13106_v44 = vshll.u32 %v19033_v38, 16  ;;  %v13110_v61 = vshrl.u32 %v19033_v38, 16  ;;  %v26954_v62 = vrot.slane %v13049_v11, 4  ;;  %v26958_v46 = vsel %vm24244_vm8, %v4237_v22, %v4238_v14  ;;  %v23358_v38 = vld [vmem:[%s23720_s9 + $0x278] sm:$0xf] }
 0x3b7   : > { %v13069_v2 = vor.u32 %v13068_v52, %v26944_v19  ;;  %v4245_v54 = vrot.slane %v23356_v15, 5  ;;  %v13045_v4 = vsel %vm23738_vm5, %v26947_v34, %v26909_v8  ;;  %v4240_v0 = vrot.slane %v4238_v14, 4  ;;  %v19036_v8 = vld [vmem:[%s23720_s9 + $0x16c] sm:$0xf] }
 0x3b8   : > { %v26972_v40 = vrot.slane %v13072_v32, 5  ;;  %v17829_v39 = vrot.slane %v3772_v35, 9  ;;  %v13060_v3 = vrot.slane %v13059_v55, 4  ;;  %v13093_v63 = vor.u32 %v13092_v18, %v26952_v56 }
 0x3b9   : > { %21039 = vmatmul.mubr.msk.bf16.gmra.mrb[108].mxu1 %vm1936_vm4, %v17886_v16  ;;  %v4248_v16 = vrot.slane %v23357_v27, 5  ;;  %v13098_v36 = vrot.slane %v13096_v42, 5  ;;  %v13102_v29 = vrot.slane %v13100_v50, 4  ;;  %v26985_v25 = vrot.slane %v13106_v44, 5  ;;  %v23359_v50 = vld [vmem:[%s23720_s9 + $0x27c] sm:$0x1] }
 0x3ba   : > { %21625 = vmatmul.mubr.msk.bf16.gmra.mrb[44].mxu0 %vm1936_vm4, %v26788_v45  ;;  %21042 = vmatprep.mubr.msk.bf16.mxu1 %vm1936_vm4, %v17887_v57  ;;  %v13083_v45 = vor.u32 %v13082_v33, %v13079_v10  ;;  %v13112_v47 = vrot.slane %v13110_v61, 4  ;;  %v13070_v60 = vrot.slane %v13069_v2, 4  ;;  %v4247_v31 = vrot.slane %v4245_v54, 4  ;;  %v19037_v33 = vld [vmem:[%s23720_s9 + $0x170] sm:$0xf] }
 0x3bb   : > { %21628 = vmatprep.mubr.msk.bf16.mxu0 %vm1936_vm4, %v26857_v23  ;;  %v13121_v57 = vshrl.u32 %v19035_v6, 16  ;;  %v13124_v22 = vshll.u32 %v19035_v6, 16  ;;  %v13055_v23 = vsel %vm23738_vm5, %v26954_v62, %v26922_v9  ;;  %v26993_v5 = vsel %vm24244_vm8, %v4240_v0, %v4241_v53  ;;  %v19038_v2 = vld [vmem:[%s23720_s9 + $0x174] sm:$0xf] }
 0x3bc   : > { %v13130_v11 = vshll.u32 %v19036_v8, 16  ;;  %v13134_v43 = vshrl.u32 %v19036_v8, 16  ;;  %v13084_v14 = vrot.slane %v13083_v45, 4  ;;  %v13094_v52 = vrot.slane %v13093_v63, 4 }
 0x3bd   : > { %v4251_v34 = vrot.slane %v23358_v38, 5  ;;  %v13116_v24 = vshll.u32 %v19034_v17, 16  ;;  %v13065_v55 = vsel %vm23738_vm5, %v13060_v3, %v26944_v19  ;;  %v27001_v9 = vsel %vm24244_vm8, %v17829_v39, %v4245_v54  ;;  %v19039_v3 = vld [vmem:[%s23720_s9 + $0x178] sm:$0x1] }
 0x3be   : > { %v13103_v32 = vor.u32 %v13102_v29, %v13098_v36  ;;  %v13113_v53 = vor.u32 %v13112_v47, %v26985_v25  ;;  %v13075_v35 = vsel %vm23738_vm5, %v13070_v60, %v26972_v40  ;;  %v27009_v10 = vsel %vm24244_vm8, %v4247_v31, %v4248_v16  ;;  %v19042_v29 = vld [vmem:[%s23720_s9 + $0x184] sm:$0xf]  ;;  %v19043_v47 = vld [vmem:[%s23720_s9 + $0x188] sm:$0xf] }
 0x3bf   : > { %v13123_v18 = vrot.slane %v13121_v57, 4  ;;  %v13126_v42 = vrot.slane %v13124_v22, 5  ;;  %v4250_v19 = vrot.slane %v4248_v16, 4  ;;  %v4254_v44 = vrot.slane %v23359_v50, 5  ;;  %v19040_v16 = vld [vmem:[%s23720_s9 + $0x17c] sm:$0xf] }
 0x3c0   : > { %v27019_v61 = vrot.slane %v13130_v11, 5  ;;  %v13136_v62 = vrot.slane %v13134_v43, 4  ;;  %v13089_v13 = vsel %vm23738_vm5, %v13084_v14, %v26952_v56  ;;  %v13099_v21 = vsel %vm23738_vm5, %v13094_v52, %v13098_v36  ;;  %v19046_v14 = vld [vmem:[%s23720_s9 + $0x194] sm:$0xf] }
 0x3c1   : > { %21043 = vmatmul.mubr.msk.bf16.gmra.mrb[112].mxu1 %vm1936_vm4, %v17888_v41  ;;  %v4253_v41 = vrot.slane %v4251_v34, 4  ;;  %v27035_v15 = vrot.slane %v13103_v32, 4  ;;  %v27037_v59 = vrot.slane %v13113_v53, 4  ;;  %v13140_v28 = vshll.u32 %v19037_v33, 16  ;;  %v19047_v53 = vld [vmem:[%s23720_s9 + $0x198] sm:$0xf] }
 0x3c2   : > { %21629 = vmatmul.mubr.msk.bf16.gmra.mrb[48].mxu0 %vm1936_vm4, %v26893_v12  ;;  %21046 = vmatprep.mubr.msk.bf16.mxu1 %vm1936_vm4, %v17889_v58  ;;  %v27033_v12 = vrot.slane %v13116_v24, 5  ;;  %v13144_v58 = vshrl.u32 %v19037_v33, 16  ;;  %v19144_v54 = vcombine.low %v13045_v4, %v13055_v23  ;;  %v13127_v0 = vor.u32 %v13126_v42, %v13123_v18  ;;  %v19045_v23 = vld [vmem:[%s23720_s9 + $0x190] sm:$0xf] }
 0x3c3   : > { %21632 = vmatprep.mubr.msk.bf16.mxu0 %vm1936_vm4, %v26920_v51  ;;  %v17891_v51 = vcombine.low %v26935_v1, %v26939_v48  ;;  %v13150_v56 = vshll.u32 %v19038_v2, 16  ;;  %v17892_v40 = vcombine.low %v26958_v46, %v26993_v5  ;;  %v17893_v39 = vcombine.low %v27001_v9, %v27009_v10  ;;  %v19041_v46 = vld [vmem:[%s23720_s9 + $0x180] sm:$0xf] }
 0x3c4   : > { %v13137_v6 = vor.u32 %v13136_v62, %v27019_v61  ;;  %v13154_v27 = vshrl.u32 %v19038_v2, 16  ;;  %v19145_v45 = vcombine.low %v13065_v55, %v13075_v35  ;;  %v19146_v63 = vcombine.low %v13089_v13, %v13099_v21 }
 0x3c5   : > { %v27050_v1 = vsel %vm24244_vm8, %v4250_v19, %v4251_v34  ;;  %v27054_v48 = vsel %vm24244_vm8, %v4253_v41, %v4254_v44  ;;  %v13109_v4 = vsel %vm23738_vm5, %v27035_v15, %v26985_v25  ;;  %v13119_v8 = vsel %vm23738_vm5, %v27037_v59, %v27033_v12 }
 0x3c6   : > { %v13142_v36 = vrot.slane %v13140_v28, 5  ;;  %v13146_v17 = vrot.slane %v13144_v58, 4  ;;  %v13128_v60 = vrot.slane %v13127_v0, 4  ;;  %v27067_v31 = vrot.slane %v13150_v56, 5 }
 0x3c7   : > { %v13160_v57 = vshll.u32 %v19039_v3, 16  ;;  %v13165_v22 = vshrl.u32 %v19040_v16, 16  ;;  %v13138_v25 = vrot.slane %v13137_v6, 4  ;;  %v13156_v5 = vrot.slane %v13154_v27, 4  ;;  %v19048_v3 = vld [vmem:[%s23720_s9 + $0x19c] sm:$0xf] }
 0x3c8   : > { %v13168_v11 = vshll.u32 %v19040_v16, 16  ;;  %v13174_v43 = vshll.u32 %v19041_v46, 16  ;;  %v13178_v52 = vshrl.u32 %v19041_v46, 16  ;;  %v13184_v38 = vshll.u32 %v19042_v29, 16 }
 0x3c9   : > { %21047 = vmatmul.mubr.msk.bf16.gmra.mrb[116].mxu1 %vm1936_vm4, %v17890_v7  ;;  %v13188_v34 = vshrl.u32 %v19042_v29, 16  ;;  %v13194_v24 = vshll.u32 %v19043_v47, 16  ;;  %v13147_v20 = vor.u32 %v13146_v17, %v13142_v36  ;;  %v13198_v30 = vshrl.u32 %v19043_v47, 16 }
 0x3ca   : > { %21633 = vmatmul.mubr.msk.bf16.gmra.mrb[52].mxu0 %vm1936_vm4, %v26931_v49  ;;  %21050 = vmatprep.mubr.msk.bf16.mxu1 %vm1936_vm4, %v17891_v51  ;;  %v13209_v7 = vshrl.u32 %v19045_v23, 16  ;;  %v13212_v55 = vshll.u32 %v19045_v23, 16  ;;  %v13133_v49 = vsel %vm23738_vm5, %v13128_v60, %v27019_v61  ;;  %v13167_v32 = vrot.slane %v13165_v22, 4  ;;  %v19044_v61 = vld [vmem:[%s23720_s9 + $0x18c] sm:$0x1] }
 0x3cb   : > { %21636 = vmatprep.mubr.msk.bf16.mxu0 %vm1936_vm4, %v19144_v54  ;;  %v13218_v35 = vshll.u32 %v19046_v14, 16  ;;  %v13222_v33 = vshrl.u32 %v19046_v14, 16  ;;  %v13143_v18 = vsel %vm23738_vm5, %v13138_v25, %v13142_v36  ;;  %v13157_v42 = vor.u32 %v13156_v5, %v27067_v31  ;;  %v19051_v36 = vld [vmem:[%s23720_s9 + $0x1a8] sm:$0xf] }
 0x3cc   : > { %v13170_v19 = vrot.slane %v13168_v11, 5  ;;  %v27086_v50 = vrot.slane %v13174_v43, 5  ;;  %v13180_v44 = vrot.slane %v13178_v52, 4  ;;  %v27088_v62 = vrot.slane %v13184_v38, 5 }
 0x3cd   : > { %v13190_v2 = vrot.slane %v13188_v34, 4  ;;  %v27090_v13 = vrot.slane %v13194_v24, 5  ;;  %v13200_v21 = vrot.slane %v13198_v30, 4  ;;  %v13211_v41 = vrot.slane %v13209_v7, 4  ;;  %v19049_v34 = vld [vmem:[%s23720_s9 + $0x1a0] sm:$0x1] }
 0x3ce   : > { %v13214_v12 = vrot.slane %v13212_v55, 5  ;;  %v13228_v15 = vshll.u32 %v19047_v53, 16  ;;  %v17894_v59 = vcombine.low %v27050_v1, %v27054_v48  ;;  %v27095_v28 = vrot.slane %v13218_v35, 5  ;;  %v19052_v7 = vld [vmem:[%s23720_s9 + $0x1ac] sm:$0xf] }
 0x3cf   : > { %v13224_v58 = vrot.slane %v13222_v33, 4  ;;  %v13232_v51 = vshrl.u32 %v19047_v53, 16  ;;  %v19147_v54 = vcombine.low %v13109_v4, %v13119_v8  ;;  %v13148_v0 = vrot.slane %v13147_v20, 4 }
 0x3d0   : > { %v13162_v56 = vrot.slane %v13160_v57, 5  ;;  %v13171_v6 = vor.u32 %v13170_v19, %v13167_v32  ;;  %v19148_v27 = vcombine.low %v13133_v49, %v13143_v18  ;;  %v13158_v16 = vrot.slane %v13157_v42, 4  ;;  %v23035_v57 = vld [vmem:[%s23720_s9 + $0x14] sm:$0xff]   ;;  %v19053_v18 = vld [vmem:[%s23720_s9 + $0x1b0] sm:$0xf] }
 0x3d1   : > { %21051 = vmatmul.mubr.msk.bf16.gmra.mrb[120].mxu1 %vm1936_vm4, %v17892_v40  ;;  %v13181_v1 = vor.u32 %v13180_v44, %v27086_v50  ;;  %v13204_v40 = vshll.u32 %v19044_v61, 16  ;;  %v13191_v48 = vor.u32 %v13190_v2, %v27088_v62  ;;  %v13201_v46 = vor.u32 %v13200_v21, %v27090_v13  ;;  %v19055_v2 = vld [vmem:[%s23720_s9 + $0x1b8] sm:$0xf]  ;;  %v19056_v61 = vld [vmem:[%s23720_s9 + $0x1bc] sm:$0xf] }
 0x3d2   : > { %21637 = vmatmul.mubr.msk.bf16.gmra.mrb[56].mxu0 %vm1936_vm4, %v19145_v45  ;;  %21054 = vmatprep.mubr.msk.bf16.mxu1 %vm1936_vm4, %v17893_v39  ;;  %v19050_v45 = vld [vmem:[%s23720_s9 + $0x1a4] sm:$0xf]  ;;  %v13215_v4 = vor.u32 %v13214_v12, %v13211_v41  ;;  %v13230_v8 = vrot.slane %v13228_v15, 5  ;;  %v13225_v9 = vor.u32 %v13224_v58, %v27095_v28  ;;  %v13234_v10 = vrot.slane %v13232_v51, 4  ;;  %v23036_v15 = vld [vmem:[%s23720_s9 + $0x1c] sm:$0xff]  }
 0x3d3   : > { %21640 = vmatprep.mubr.msk.bf16.mxu0 %vm1936_vm4, %v19146_v63  ;;  %v13238_v39 = vshll.u32 %v19048_v3, 16  ;;  %v13242_v63 = vshrl.u32 %v19048_v3, 16  ;;  %v13153_v17 = vsel %vm23738_vm5, %v13148_v0, %v27067_v31  ;;  %v13172_v29 = vrot.slane %v13171_v6, 4 }
 0x3d4   : > { %v13253_v47 = vshrl.u32 %v19050_v45, 16  ;;  %v13256_v60 = vshll.u32 %v19050_v45, 16  ;;  %v13163_v22 = vsel %vm23738_vm5, %v13158_v16, %v13162_v56  ;;  %v13182_v23 = vrot.slane %v13181_v1, 4 }
 0x3d5   : > { %v13262_v25 = vshll.u32 %v19051_v36, 16  ;;  %v13266_v5 = vshrl.u32 %v19051_v36, 16  ;;  %v13192_v11 = vrot.slane %v13191_v48, 4  ;;  %v13202_v43 = vrot.slane %v13201_v46, 4  ;;  %v19058_v36 = vld [vmem:[%s23720_s9 + $0x1c4] sm:$0xf] }
 0x3d6   : > { %v13206_v14 = vrot.slane %v13204_v40, 5  ;;  %v13216_v52 = vrot.slane %v13215_v4, 4  ;;  %v13226_v38 = vrot.slane %v13225_v9, 4  ;;  %v13235_v24 = vor.u32 %v13234_v10, %v13230_v8  ;;  %v19054_v4 = vld [vmem:[%s23720_s9 + $0x1b4] sm:$0x1] }
 0x3d7   : > { %v27118_v31 = vrot.slane %v13238_v39, 5  ;;  %v13244_v20 = vrot.slane %v13242_v63, 4  ;;  %v19149_v30 = vcombine.low %v13153_v17, %v13163_v22  ;;  %v13255_v55 = vrot.slane %v13253_v47, 4  ;;  %v19060_v17 = vld [vmem:[%s23720_s9 + $0x1cc] sm:$0xf] }
 0x3d8   : > { %v13258_v49 = vrot.slane %v13256_v60, 5  ;;  %v13177_v32 = vsel %vm23738_vm5, %v13172_v29, %v27086_v50  ;;  %v13187_v53 = vsel %vm23738_vm5, %v13182_v23, %v27088_v62  ;;  %v27131_v35 = vrot.slane %v13262_v25, 5  ;;  %v29833_v29 = vld [vmem:[#allocation5_spill] sm:$0xff] }
 0x3d9   : > { %21055 = vmatmul.mubr.msk.bf16.gmra.mrb[124].mxu1 %vm1936_vm4, %v17894_v59  ;;  %v13268_v33 = vrot.slane %v13266_v5, 4  ;;  %v13197_v42 = vsel %vm23738_vm5, %v13192_v11, %v27090_v13  ;;  %v13207_v19 = vsel %vm23738_vm5, %v13202_v43, %v13206_v14  ;;  %v13221_v50 = vsel %vm23738_vm5, %v13216_v52, %v27095_v28  ;;  %v23037_v28 = vld [vmem:[%s23720_s9 + $0x28] sm:$0xff]   ;;  %v19061_v23 = vld [vmem:[%s23720_s9 + $0x1d0] sm:$0xf] }
 0x3da   : > { %21641 = vmatmul.mubr.msk.bf16.gmra.mrb[60].mxu0 %vm1936_vm4, %v19147_v54  ;;  %21060 = vmatprep.mubr.msk.bf16.mxu1 %vm1936_vm4, %v23035_v57  ;;  %v13248_v44 = vshll.u32 %v19049_v34, 16  ;;  %v13231_v62 = vsel %vm23738_vm5, %v13226_v38, %v13230_v8  ;;  %v27146_v21 = vrot.slane %v13235_v24, 4  ;;  %v13245_v41 = vor.u32 %v13244_v20, %v27118_v31  ;;  %v19057_v8 = vld [vmem:[%s23720_s9 + $0x1c0] sm:$0xf]  ;;  %v23038_v24 = vld [vmem:[%s23720_s9 + $0x30] sm:$0xff]  }
 0x3db   : > { %21644 = vmatprep.mubr.msk.bf16.mxu0 %vm1936_vm4, %v19148_v27  ;;  %v13272_v12 = vshll.u32 %v19052_v7, 16  ;;  %v13259_v13 = vor.u32 %v13258_v49, %v13255_v55  ;;  %v13276_v59 = vshrl.u32 %v19052_v7, 16  ;;  %v13282_v58 = vshll.u32 %v19053_v18, 16  ;;  %v23039_v49 = vld [vmem:[%s23720_s9 + $0x3c] sm:$0xff]  }
 0x3dc   : > { %v13286_v51 = vshrl.u32 %v19053_v18, 16  ;;  %v13269_v54 = vor.u32 %v13268_v33, %v27131_v35  ;;  %v13297_v0 = vshrl.u32 %v19055_v2, 16  ;;  %v13300_v56 = vshll.u32 %v19055_v2, 16  ;;  %v19059_v2 = vld [vmem:[%s23720_s9 + $0x1c8] sm:$0x1] }
 0x3dd   : > { %v13306_v6 = vshll.u32 %v19056_v61, 16  ;;  %v19150_v3 = vcombine.low %v13177_v32, %v13187_v53  ;;  %v19151_v27 = vcombine.low %v13197_v42, %v13207_v19  ;;  %v13250_v16 = vrot.slane %v13248_v44, 5 }
 0x3de   : > { %v13310_v1 = vshrl.u32 %v19056_v61, 16  ;;  %v19152_v40 = vcombine.low %v13221_v50, %v13231_v62  ;;  %v13241_v45 = vsel %vm23738_vm5, %v27146_v21, %v27118_v31  ;;  %v13246_v48 = vrot.slane %v13245_v41, 4 }
 0x3df   : > { %v13274_v46 = vrot.slane %v13272_v12, 5  ;;  %v13260_v9 = vrot.slane %v13259_v13, 4  ;;  %v13278_v10 = vrot.slane %v13276_v59, 4  ;;  %v27161_v39 = vrot.slane %v13282_v58, 5 }
 0x3e0   : > { %v13288_v63 = vrot.slane %v13286_v51, 4  ;;  %v13270_v47 = vrot.slane %v13269_v54, 4  ;;  %v13299_v60 = vrot.slane %v13297_v0, 4  ;;  %v13302_v57 = vrot.slane %v13300_v56, 5 }
 0x3e1   : > { %21061 = vmatmul.mubr.msk.bf16.vlgmr.msra.gmra.mrb[0].mxu1 %vm1936_vm4, %v23036_v15  ;;  %v27166_v22 = vrot.slane %v13306_v6, 5  ;;  %v13312_v25 = vrot.slane %v13310_v1, 4  ;;  %v13316_v5 = vshll.u32 %v19057_v8, 16  ;;  %v13320_v11 = vshrl.u32 %v19057_v8, 16 }
 0x3e2   : > { %21645 = vmatmul.mubr.msk.bf16.gmra.mrb[64].mxu0 %vm1936_vm4, %v19149_v30  ;;  %21839 = vmatpush3.bf16.msra.mxu1 %v29833_v29  ;;  %v13326_v43 = vshll.u32 %v19058_v36, 16  ;;  %v13251_v14 = vsel %vm23738_vm5, %v13246_v48, %v13250_v16  ;;  %v13330_v52 = vshrl.u32 %v19058_v36, 16  ;;  %v13341_v38 = vshrl.u32 %v19060_v17, 16  ;;  %v19062_v30 = vld [vmem:[%s23720_s9 + $0x1d4] sm:$0xf] }
 0x3e3   : > { %21064 = vmatprep.mubr.msk.bf16.mxu1 %vm1936_vm4, %v23037_v28  ;;  %21648 = vmatprep.mubr.msk.bf16.mxu0 %vm1936_vm4, %v19150_v3  ;;  %v13344_v34 = vshll.u32 %v19060_v17, 16  ;;  %v13279_v31 = vor.u32 %v13278_v10, %v13274_v46  ;;  %v13292_v20 = vshll.u32 %v19054_v4, 16  ;;  %v13350_v7 = vshll.u32 %v19061_v23, 16  ;;  %v19063_v28 = vld [vmem:[%s23720_s9 + $0x1d8] sm:$0xf] }
 0x3e4   : > { %v13354_v55 = vshrl.u32 %v19061_v23, 16  ;;  %v13265_v32 = vsel %vm23738_vm5, %v13260_v9, %v27131_v35  ;;  %v13275_v53 = vsel %vm23738_vm5, %v13270_v47, %v13274_v46  ;;  %v13289_v33 = vor.u32 %v13288_v63, %v27161_v39  ;;  %v19065_v3 = vld [vmem:[%s23720_s9 + $0x1e0] sm:$0xf]  ;;  %v19066_v46 = vld [vmem:[%s23720_s9 + $0x1e4] sm:$0xf]  ;;  %v23041_v9 = vld [vmem:[%s23720_s9 + $0x50] sm:$0xff]  }
 0x3e5   : > { %v13303_v18 = vor.u32 %v13302_v57, %v13299_v60  ;;  %v13313_v42 = vor.u32 %v13312_v25, %v27166_v22  ;;  %v27182_v19 = vrot.slane %v13316_v5, 5  ;;  %v13322_v50 = vrot.slane %v13320_v11, 4 }
 0x3e6   : > { %v27184_v44 = vrot.slane %v13326_v43, 5  ;;  %v13332_v61 = vrot.slane %v13330_v52, 4  ;;  %v13343_v62 = vrot.slane %v13341_v38, 4  ;;  %v13346_v21 = vrot.slane %v13344_v34, 5 }
 0x3e7   : > { %v13360_v41 = vshll.u32 %v19062_v30, 16  ;;  %v27189_v35 = vrot.slane %v13350_v7, 5  ;;  %v13356_v12 = vrot.slane %v13354_v55, 4  ;;  %v13364_v15 = vshrl.u32 %v19062_v30, 16  ;;  %v19068_v55 = vld [vmem:[%s23720_s9 + $0x1ec] sm:$0xf] }
 0x3e8   : > { %v19153_v13 = vcombine.low %v13241_v45, %v13251_v14  ;;  %v13280_v59 = vrot.slane %v13279_v31, 4  ;;  %v13290_v58 = vrot.slane %v13289_v33, 4  ;;  %v13294_v51 = vrot.slane %v13292_v20, 5  ;;  %v19064_v14 = vld [vmem:[%s23720_s9 + $0x1dc] sm:$0x1] }
 0x3e9   : > { %21065 = vmatmul.mubr.msk.bf16.gmra.mrb[4].mxu1 %vm1936_vm4, %v23038_v24  ;;  %v19154_v54 = vcombine.low %v13265_v32, %v13275_v53  ;;  %v13304_v0 = vrot.slane %v13303_v18, 4  ;;  %v13314_v56 = vrot.slane %v13313_v42, 4  ;;  %v13336_v6 = vshll.u32 %v19059_v2, 16  ;;  %v19067_v20 = vld [vmem:[%s23720_s9 + $0x1e8] sm:$0xf]  ;;  %v23042_v42 = vld [vmem:[%s23720_s9 + $0x58] sm:$0xff]  }
 0x3ea   : > { %21649 = vmatmul.mubr.msk.bf16.gmra.mrb[68].mxu0 %vm1936_vm4, %v19151_v27  ;;  %21068 = vmatprep.mubr.msk.bf16.mxu1 %vm1936_vm4, %v23039_v49  ;;  %v13323_v27 = vor.u32 %v13322_v50, %v27182_v19  ;;  %v13333_v16 = vor.u32 %v13332_v61, %v27184_v44  ;;  %v13347_v1 = vor.u32 %v13346_v21, %v13343_v62  ;;  %v13362_v48 = vrot.slane %v13360_v41, 5  ;;  %v19070_v18 = vld [vmem:[%s23720_s9 + $0x1f4] sm:$0xf]  ;;  %v19071_v62 = vld [vmem:[%s23720_s9 + $0x1f8] sm:$0xf]  ;;  %v23043_v21 = vld [vmem:[%s23720_s9 + $0x64] sm:$0xff]  }
 0x3eb   : > { %21652 = vmatprep.mubr.msk.bf16.mxu0 %vm1936_vm4, %v19152_v40  ;;  %v23040_v40 = vld [vmem:[%s23720_s9 + $0x44] sm:$0xff]   ;;  %v13357_v45 = vor.u32 %v13356_v12, %v27189_v35  ;;  %v13366_v4 = vrot.slane %v13364_v15, 4  ;;  %v13370_v8 = vshll.u32 %v19063_v28, 16  ;;  %v13374_v36 = vshrl.u32 %v19063_v28, 16 }
 0x3ec   : > { %v13285_v10 = vsel %vm23738_vm5, %v13280_v59, %v27161_v39  ;;  %v13295_v63 = vsel %vm23738_vm5, %v13290_v58, %v13294_v51  ;;  %v13385_v17 = vshrl.u32 %v19065_v3, 16  ;;  %v13388_v29 = vshll.u32 %v19065_v3, 16 }
 0x3ed   : > { %v13309_v47 = vsel %vm23738_vm5, %v13304_v0, %v27166_v22  ;;  %v13338_v60 = vrot.slane %v13336_v6, 5  ;;  %v13394_v57 = vshll.u32 %v19066_v46, 16  ;;  %v13398_v23 = vshrl.u32 %v19066_v46, 16 }
 0x3ee   : > { %v13319_v25 = vsel %vm23738_vm5, %v13314_v56, %v27182_v19  ;;  %v13324_v5 = vrot.slane %v13323_v27, 4  ;;  %v13334_v11 = vrot.slane %v13333_v16, 4  ;;  %v13348_v39 = vrot.slane %v13347_v1, 4  ;;  %v19072_v27 = vld [vmem:[%s23720_s9 + $0x1fc] sm:$0xf] }
 0x3ef   : > { %v13358_v43 = vrot.slane %v13357_v45, 4  ;;  %v13367_v52 = vor.u32 %v13366_v4, %v13362_v48  ;;  %v27215_v22 = vrot.slane %v13370_v8, 5  ;;  %v13376_v38 = vrot.slane %v13374_v36, 4  ;;  %v19073_v16 = vld [vmem:[%s23720_s9 + $0x200] sm:$0xf] }
 0x3f0   : > { %v13387_v34 = vrot.slane %v13385_v17, 4  ;;  %v13390_v24 = vrot.slane %v13388_v29, 5  ;;  %v19155_v31 = vcombine.low %v13285_v10, %v13295_v63  ;;  %v27220_v30 = vrot.slane %v13394_v57, 5  ;;  %v19075_v45 = vld [vmem:[%s23720_s9 + $0x208] sm:$0xf]  ;;  %v23044_v57 = vld [vmem:[%s23720_s9 + $0x6c] sm:$0xff]  }
 0x3f1   : > { %21069 = vmatmul.mubr.msk.bf16.gmra.mrb[8].mxu1 %vm1936_vm4, %v23040_v40  ;;  %v13400_v7 = vrot.slane %v13398_v23, 4  ;;  %v19156_v49 = vcombine.low %v13309_v47, %v13319_v25  ;;  %v13329_v32 = vsel %vm23738_vm5, %v13324_v5, %v27184_v44  ;;  %v13339_v53 = vsel %vm23738_vm5, %v13334_v11, %v13338_v60  ;;  %v19076_v10 = vld [vmem:[%s23720_s9 + $0x20c] sm:$0xf]  ;;  %v19069_v63 = vld [vmem:[%s23720_s9 + $0x1f0] sm:$0x1] }
 0x3f2   : > { %21653 = vmatmul.mubr.msk.bf16.gmra.mrb[72].mxu0 %vm1936_vm4, %v19153_v13  ;;  %21072 = vmatprep.mubr.msk.bf16.mxu1 %vm1936_vm4, %v23041_v9  ;;  %v13380_v33 = vshll.u32 %v19064_v14, 16  ;;  %v13353_v19 = vsel %vm23738_vm5, %v13348_v39, %v27189_v35  ;;  %v13363_v50 = vsel %vm23738_vm5, %v13358_v43, %v13362_v48  ;;  %v27235_v2 = vrot.slane %v13367_v52, 4  ;;  %v23045_v39 = vld [vmem:[%s23720_s9 + $0x78] sm:$0xff]  }
 0x3f3   : > { %21656 = vmatprep.mubr.msk.bf16.mxu0 %vm1936_vm4, %v19154_v54  ;;  %v13377_v61 = vor.u32 %v13376_v38, %v27215_v22  ;;  %v13391_v44 = vor.u32 %v13390_v24, %v13387_v34  ;;  %v13404_v41 = vshll.u32 %v19067_v20, 16  ;;  %v13408_v12 = vshrl.u32 %v19067_v20, 16  ;;  %v19077_v20 = vld [vmem:[%s23720_s9 + $0x210] sm:$0xf] }
 0x3f4   : > { %v13414_v15 = vshll.u32 %v19068_v55, 16  ;;  %v13401_v13 = vor.u32 %v13400_v7, %v27220_v30  ;;  %v13418_v59 = vshrl.u32 %v19068_v55, 16  ;;  %v13429_v58 = vshrl.u32 %v19070_v18, 16 }
 0x3f5   : > { %v13432_v35 = vshll.u32 %v19070_v18, 16  ;;  %v19157_v51 = vcombine.low %v13329_v32, %v13339_v53  ;;  %v13438_v28 = vshll.u32 %v19071_v62, 16  ;;  %v13442_v54 = vshrl.u32 %v19071_v62, 16  ;;  %v19078_v53 = vld [vmem:[%s23720_s9 + $0x214] sm:$0xf] }
 0x3f6   : > { %v19158_v0 = vcombine.low %v13353_v19, %v13363_v50  ;;  %v13373_v56 = vsel %vm23738_vm5, %v27235_v2, %v27215_v22  ;;  %v13378_v6 = vrot.slane %v13377_v61, 4  ;;  %v13382_v3 = vrot.slane %v13380_v33, 5  ;;  %v19074_v33 = vld [vmem:[%s23720_s9 + $0x204] sm:$0x1] }
 0x3f7   : > { %v13392_v1 = vrot.slane %v13391_v44, 4  ;;  %v13406_v48 = vrot.slane %v13404_v41, 5  ;;  %v13410_v46 = vrot.slane %v13408_v12, 4  ;;  %v27251_v40 = vrot.slane %v13414_v15, 5 }
 0x3f8   : > { %v13402_v4 = vrot.slane %v13401_v13, 4  ;;  %v13420_v8 = vrot.slane %v13418_v59, 4  ;;  %v13431_v36 = vrot.slane %v13429_v58, 4  ;;  %v13434_v9 = vrot.slane %v13432_v35, 5  ;;  %v19080_v35 = vld [vmem:[%s23720_s9 + $0x21c] sm:$0xf] }
 0x3f9   : > { %21073 = vmatmul.mubr.msk.bf16.gmra.mrb[12].mxu1 %vm1936_vm4, %v23042_v42  ;;  %v27256_v17 = vrot.slane %v13438_v28, 5  ;;  %v13444_v29 = vrot.slane %v13442_v54, 4  ;;  %v13448_v47 = vshll.u32 %v19072_v27, 16  ;;  %v13452_v60 = vshrl.u32 %v19072_v27, 16  ;;  %v23047_v27 = vld [vmem:[%s23720_s9 + $0x8c] sm:$0xff]  }
 0x3fa   : > { %21657 = vmatmul.mubr.msk.bf16.gmra.mrb[76].mxu0 %vm1936_vm4, %v19155_v31  ;;  %21076 = vmatprep.mubr.msk.bf16.mxu1 %vm1936_vm4, %v23043_v21  ;;  %v13458_v23 = vshll.u32 %v19073_v16, 16  ;;  %v13462_v25 = vshrl.u32 %v19073_v16, 16  ;;  %v13473_v5 = vshrl.u32 %v19075_v45, 16  ;;  %v13476_v11 = vshll.u32 %v19075_v45, 16 }
 0x3fb   : > { %21660 = vmatprep.mubr.msk.bf16.mxu0 %vm1936_vm4, %v19156_v49  ;;  %v13383_v43 = vsel %vm23738_vm5, %v13378_v6, %v13382_v3  ;;  %v13411_v14 = vor.u32 %v13410_v46, %v13406_v48  ;;  %v13482_v52 = vshll.u32 %v19076_v10, 16  ;;  %v13486_v22 = vshrl.u32 %v19076_v10, 16  ;;  %v19081_v3 = vld [vmem:[%s23720_s9 + $0x220] sm:$0xf]  ;;  %v19079_v46 = vld [vmem:[%s23720_s9 + $0x218] sm:$0x1] }
 0x3fc   : > { %v13397_v38 = vsel %vm23738_vm5, %v13392_v1, %v27220_v30  ;;  %v13407_v34 = vsel %vm23738_vm5, %v13402_v4, %v13406_v48  ;;  %v13421_v24 = vor.u32 %v13420_v8, %v27251_v40  ;;  %v13424_v31 = vshll.u32 %v19069_v63, 16 }
 0x3fd   : > { %v13435_v7 = vor.u32 %v13434_v9, %v13431_v36  ;;  %v13445_v55 = vor.u32 %v13444_v29, %v27256_v17  ;;  %v27270_v49 = vrot.slane %v13448_v47, 5  ;;  %v13454_v32 = vrot.slane %v13452_v60, 4 }
 0x3fe   : > { %v27276_v30 = vrot.slane %v13458_v23, 5  ;;  %v13464_v18 = vrot.slane %v13462_v25, 4  ;;  %v13475_v42 = vrot.slane %v13473_v5, 4  ;;  %v13478_v19 = vrot.slane %v13476_v11, 5  ;;  %v19082_v23 = vld [vmem:[%s23720_s9 + $0x224] sm:$0xf] }
 0x3ff   : > { %v27280_v50 = vrot.slane %v13482_v52, 5  ;;  %v13488_v2 = vrot.slane %v13486_v22, 4  ;;  %v13492_v61 = vshll.u32 %v19077_v20, 16  ;;  %v13496_v62 = vshrl.u32 %v19077_v20, 16  ;;  %v23048_v20 = vld [vmem:[%s23720_s9 + $0x94] sm:$0xff]  }
 0x400   : > { %v19159_v21 = vcombine.low %v13373_v56, %v13383_v43  ;;  %v13412_v44 = vrot.slane %v13411_v14, 4  ;;  %v13502_v41 = vshll.u32 %v19078_v53, 16  ;;  %v13506_v12 = vshrl.u32 %v19078_v53, 16  ;;  %v19083_v43 = vld [vmem:[%s23720_s9 + $0x228] sm:$0xf] }
 0x401   : > { %21077 = vmatmul.mubr.msk.bf16.gmra.mrb[16].mxu1 %vm1936_vm4, %v23044_v57  ;;  %v19160_v15 = vcombine.low %v13397_v38, %v13407_v34  ;;  %v13422_v13 = vrot.slane %v13421_v24, 4  ;;  %v13426_v59 = vrot.slane %v13424_v31, 5  ;;  %v13468_v58 = vshll.u32 %v19074_v33, 16 }
 0x402   : > { %21661 = vmatmul.mubr.msk.bf16.gmra.mrb[80].mxu0 %vm1936_vm4, %v19157_v51  ;;  %21080 = vmatprep.mubr.msk.bf16.mxu1 %vm1936_vm4, %v23045_v39  ;;  %v23046_v51 = vld [vmem:[%s23720_s9 + $0x80] sm:$0xff]   ;;  %v13436_v28 = vrot.slane %v13435_v7, 4  ;;  %v13446_v54 = vrot.slane %v13445_v55, 4  ;;  %v13465_v6 = vor.u32 %v13464_v18, %v27276_v30  ;;  %v13479_v16 = vor.u32 %v13478_v19, %v13475_v42  ;;  %v19085_v19 = vld [vmem:[%s23720_s9 + $0x230] sm:$0xf] }
 0x403   : > { %21664 = vmatprep.mubr.msk.bf16.mxu0 %vm1936_vm4, %v19158_v0  ;;  %v13455_v0 = vor.u32 %v13454_v32, %v27270_v49  ;;  %v13489_v56 = vor.u32 %v13488_v2, %v27280_v50  ;;  %v27289_v1 = vrot.slane %v13492_v61, 5  ;;  %v13498_v48 = vrot.slane %v13496_v62, 4  ;;  %v23049_v32 = vld [vmem:[%s23720_s9 + $0xa0] sm:$0xff]  }
 0x404   : > { %v27292_v45 = vrot.slane %v13502_v41, 5  ;;  %v13508_v4 = vrot.slane %v13506_v12, 4  ;;  %v13517_v8 = vshrl.u32 %v19080_v35, 16  ;;  %v13520_v36 = vshll.u32 %v19080_v35, 16 }
 0x405   : > { %v13417_v9 = vsel %vm23738_vm5, %v13412_v44, %v27251_v40  ;;  %v13427_v10 = vsel %vm23738_vm5, %v13422_v13, %v13426_v59  ;;  %v13526_v63 = vshll.u32 %v19081_v3, 16  ;;  %v13530_v29 = vshrl.u32 %v19081_v3, 16 }
 0x406   : > { %v13441_v47 = vsel %vm23738_vm5, %v13436_v28, %v27256_v17  ;;  %v13451_v60 = vsel %vm23738_vm5, %v13446_v54, %v27270_v49  ;;  %v13456_v57 = vrot.slane %v13455_v0, 4  ;;  %v13470_v40 = vrot.slane %v13468_v58, 5  ;;  %v19087_v0 = vld [vmem:[%s23720_s9 + $0x238] sm:$0xf] }
 0x407   : > { %v13466_v25 = vrot.slane %v13465_v6, 4  ;;  %v13480_v5 = vrot.slane %v13479_v16, 4  ;;  %v13490_v11 = vrot.slane %v13489_v56, 4  ;;  %v13512_v39 = vshll.u32 %v19079_v46, 16  ;;  %v19090_v46 = vld [vmem:[%s23720_s9 + $0x244] sm:$0xf] }
 0x408   : > { %v13499_v17 = vor.u32 %v13498_v48, %v27289_v1  ;;  %v13509_v14 = vor.u32 %v13508_v4, %v27292_v45  ;;  %v13519_v52 = vrot.slane %v13517_v8, 4  ;;  %v13522_v22 = vrot.slane %v13520_v36, 5  ;;  %v23050_v4 = vld [vmem:[%s23720_s9 + $0xa8] sm:$0xff]  }
 0x409   : > { %21081 = vmatmul.mubr.msk.bf16.gmra.mrb[20].mxu1 %vm1936_vm4, %v23046_v51  ;;  %v27313_v38 = vrot.slane %v13526_v63, 5  ;;  %v13532_v34 = vrot.slane %v13530_v29, 4  ;;  %v13536_v24 = vshll.u32 %v19082_v23, 16  ;;  %v13540_v31 = vshrl.u32 %v19082_v23, 16  ;;  %v23051_v63 = vld [vmem:[%s23720_s9 + $0xb4] sm:$0xff]  }
 0x40a   : > { %21665 = vmatmul.mubr.msk.bf16.gmra.mrb[84].mxu0 %vm1936_vm4, %v19159_v21  ;;  %21084 = vmatprep.mubr.msk.bf16.mxu1 %vm1936_vm4, %v23047_v27  ;;  %v19161_v7 = vcombine.low %v13417_v9, %v13427_v10  ;;  %v13546_v55 = vshll.u32 %v19083_v43, 16  ;;  %v13550_v49 = vshrl.u32 %v19083_v43, 16  ;;  %v19162_v53 = vcombine.low %v13441_v47, %v13451_v60  ;;  %v19088_v27 = vld [vmem:[%s23720_s9 + $0x23c] sm:$0xf]  ;;  %v19091_v10 = vld [vmem:[%s23720_s9 + $0x248] sm:$0xf] }
 0x40b   : > { %21668 = vmatprep.mubr.msk.bf16.mxu0 %vm1936_vm4, %v19160_v15  ;;  %v13461_v33 = vsel %vm23738_vm5, %v13456_v57, %v27276_v30  ;;  %v13471_v18 = vsel %vm23738_vm5, %v13466_v25, %v13470_v40  ;;  %v13485_v42 = vsel %vm23738_vm5, %v13480_v5, %v27280_v50  ;;  %v13495_v2 = vsel %vm23738_vm5, %v13490_v11, %v27289_v1  ;;  %v19086_v15 = vld [vmem:[%s23720_s9 + $0x234] sm:$0xf]  ;;  %v19084_v50 = vld [vmem:[%s23720_s9 + $0x22c] sm:$0x1] }
 0x40c   : > { %v27329_v61 = vrot.slane %v13499_v17, 4  ;;  %v27331_v62 = vrot.slane %v13509_v14, 4  ;;  %v27333_v21 = vrot.slane %v13512_v39, 5  ;;  %v13523_v44 = vor.u32 %v13522_v22, %v13519_v52  ;;  %v19092_v43 = vld [vmem:[%s23720_s9 + $0x24c] sm:$0xf] }
 0x40d   : > { %v13533_v30 = vor.u32 %v13532_v34, %v27313_v38  ;;  %v27336_v41 = vrot.slane %v13536_v24, 5  ;;  %v13542_v12 = vrot.slane %v13540_v31, 4  ;;  %v27342_v13 = vrot.slane %v13546_v55, 5 }
 0x40e   : > { %v13552_v59 = vrot.slane %v13550_v49, 4  ;;  %v13561_v58 = vshrl.u32 %v19085_v19, 16  ;;  %v13564_v35 = vshll.u32 %v19085_v19, 16  ;;  %v19163_v51 = vcombine.low %v13461_v33, %v13471_v18  ;;  %v19089_v49 = vld [vmem:[%s23720_s9 + $0x240] sm:$0x1] }
 0x40f   : > { %v19164_v28 = vcombine.low %v13485_v42, %v13495_v2  ;;  %v13505_v54 = vsel %vm23738_vm5, %v27329_v61, %v27292_v45  ;;  %v13570_v6 = vshll.u32 %v19086_v15, 16  ;;  %v13574_v3 = vshrl.u32 %v19086_v15, 16  ;;  %v23052_v2 = vld [vmem:[%s23720_s9 + $0xbc] sm:$0xff]  }
 0x410   : > { %v13515_v16 = vsel %vm23738_vm5, %v27331_v62, %v27333_v21  ;;  %v13524_v56 = vrot.slane %v13523_v44, 4  ;;  %v13543_v1 = vor.u32 %v13542_v12, %v27336_v41  ;;  %v13556_v48 = vshll.u32 %v19084_v50, 16 }
 0x411   : > { %21085 = vmatmul.mubr.msk.bf16.gmra.mrb[24].mxu1 %vm1936_vm4, %v23048_v20  ;;  %v13534_v8 = vrot.slane %v13533_v30, 4  ;;  %v13553_v45 = vor.u32 %v13552_v59, %v27342_v13  ;;  %v13563_v36 = vrot.slane %v13561_v58, 4  ;;  %v13566_v9 = vrot.slane %v13564_v35, 5  ;;  %v19093_v30 = vld [vmem:[%s23720_s9 + $0x250] sm:$0xf] }
 0x412   : > { %21669 = vmatmul.mubr.msk.bf16.gmra.mrb[88].mxu0 %vm1936_vm4, %v19161_v7  ;;  %21088 = vmatprep.mubr.msk.bf16.mxu1 %vm1936_vm4, %v23049_v32  ;;  %v13580_v29 = vshll.u32 %v19087_v0, 16  ;;  %v13584_v47 = vshrl.u32 %v19087_v0, 16  ;;  %v13590_v60 = vshll.u32 %v19088_v27, 16  ;;  %v13594_v57 = vshrl.u32 %v19088_v27, 16  ;;  %v19095_v58 = vld [vmem:[%s23720_s9 + $0x258] sm:$0xf] }
 0x413   : > { %21672 = vmatprep.mubr.msk.bf16.mxu0 %vm1936_vm4, %v19162_v53  ;;  %v27362_v40 = vrot.slane %v13570_v6, 5  ;;  %v13576_v23 = vrot.slane %v13574_v3, 4  ;;  %v13605_v25 = vshrl.u32 %v19090_v46, 16  ;;  %v13608_v5 = vshll.u32 %v19090_v46, 16  ;;  %v19096_v3 = vld [vmem:[%s23720_s9 + $0x25c] sm:$0xf] }
 0x414   : > { %v13529_v11 = vsel %vm23738_vm5, %v13524_v56, %v27313_v38  ;;  %v13544_v39 = vrot.slane %v13543_v1, 4  ;;  %v13614_v17 = vshll.u32 %v19091_v10, 16  ;;  %v13618_v14 = vshrl.u32 %v19091_v10, 16 }
 0x415   : > { %v13539_v52 = vsel %vm23738_vm5, %v13534_v8, %v27336_v41  ;;  %v13554_v22 = vrot.slane %v13553_v45, 4  ;;  %v13558_v34 = vrot.slane %v13556_v48, 5  ;;  %v13567_v24 = vor.u32 %v13566_v9, %v13563_v36  ;;  %v23053_v41 = vld [vmem:[%s23720_s9 + $0xc8] sm:$0xff]   ;;  %v19097_v8 = vld [vmem:[%s23720_s9 + $0x260] sm:$0xf] }
 0x416   : > { %v13582_v38 = vrot.slane %v13580_v29, 5  ;;  %v13586_v31 = vrot.slane %v13584_v47, 4  ;;  %v27375_v20 = vrot.slane %v13590_v60, 5  ;;  %v13596_v7 = vrot.slane %v13594_v57, 4 }
 0x417   : > { %v13577_v55 = vor.u32 %v13576_v23, %v27362_v40  ;;  %v13607_v32 = vrot.slane %v13605_v25, 4  ;;  %v13610_v53 = vrot.slane %v13608_v5, 5  ;;  %v13624_v33 = vshll.u32 %v19092_v43, 16  ;;  %v19094_v23 = vld [vmem:[%s23720_s9 + $0x254] sm:$0x1] }
 0x418   : > { %v27379_v18 = vrot.slane %v13614_v17, 5  ;;  %v13620_v42 = vrot.slane %v13618_v14, 4  ;;  %v13628_v19 = vshrl.u32 %v19092_v43, 16  ;;  %v19165_v61 = vcombine.low %v13505_v54, %v13515_v16  ;;  %v23055_v43 = vld [vmem:[%s23720_s9 + $0xdc] sm:$0xff]  }
 0x419   : > { %21089 = vmatmul.mubr.msk.bf16.gmra.mrb[28].mxu1 %vm1936_vm4, %v23050_v4  ;;  %v19166_v62 = vcombine.low %v13529_v11, %v13539_v52  ;;  %v13549_v21 = vsel %vm23738_vm5, %v13544_v39, %v27342_v13  ;;  %v13559_v44 = vsel %vm23738_vm5, %v13554_v22, %v13558_v34  ;;  %v13568_v12 = vrot.slane %v13567_v24, 4  ;;  %v19100_v22 = vld [vmem:[%s23720_s9 + $0x26c] sm:$0xf] }
 0x41a   : > { %21673 = vmatmul.mubr.msk.bf16.gmra.mrb[92].mxu0 %vm1936_vm4, %v19163_v51  ;;  %21092 = vmatprep.mubr.msk.bf16.mxu1 %vm1936_vm4, %v23051_v63  ;;  %v13587_v15 = vor.u32 %v13586_v31, %v13582_v38  ;;  %v13597_v50 = vor.u32 %v13596_v7, %v27375_v20  ;;  %v13600_v59 = vshll.u32 %v19089_v49, 16  ;;  %v13578_v35 = vrot.slane %v13577_v55, 4  ;;  %v23054_v63 = vld [vmem:[%s23720_s9 + $0xd0] sm:$0xff]  }
 0x41b   : > { %21676 = vmatprep.mubr.msk.bf16.mxu0 %vm1936_vm4, %v19164_v28  ;;  %v13611_v51 = vor.u32 %v13610_v53, %v13607_v32  ;;  %v27391_v28 = vrot.slane %v13624_v33, 5  ;;  %v13621_v54 = vor.u32 %v13620_v42, %v27379_v18  ;;  %v13630_v13 = vrot.slane %v13628_v19, 4  ;;  %v19101_v7 = vld [vmem:[%s23720_s9 + $0x270] sm:$0xf] }
 0x41c   : > { %v13634_v0 = vshll.u32 %v19093_v30, 16  ;;  %v13638_v6 = vshrl.u32 %v19093_v30, 16  ;;  %v19167_v27 = vcombine.low %v13549_v21, %v13559_v44  ;;  %v13649_v16 = vshrl.u32 %v19095_v58, 16 }
 0x41d   : > { %v13652_v56 = vshll.u32 %v19095_v58, 16  ;;  %v13573_v1 = vsel %vm23738_vm5, %v13568_v12, %v27362_v40  ;;  %v13588_v48 = vrot.slane %v13587_v15, 4  ;;  %v13598_v46 = vrot.slane %v13597_v50, 4  ;;  %v19098_v40 = vld [vmem:[%s23720_s9 + $0x264] sm:$0xf]  ;;  %v23057_v50 = vld [vmem:[%s23720_s9 + $0xf0] sm:$0xff]  }
 0x41e   : > { %v13602_v4 = vrot.slane %v13600_v59, 5  ;;  %v13583_v45 = vsel %vm23738_vm5, %v13578_v35, %v13582_v38  ;;  %v13612_v36 = vrot.slane %v13611_v51, 4  ;;  %v13658_v9 = vshll.u32 %v19096_v3, 16  ;;  %v23056_v12 = vld [vmem:[%s23720_s9 + $0xe4] sm:$0xff]   ;;  %v19102_v51 = vld [vmem:[%s23720_s9 + $0x274] sm:$0xf] }
 0x41f   : > { %v13662_v10 = vshrl.u32 %v19096_v3, 16  ;;  %v13622_v29 = vrot.slane %v13621_v54, 4  ;;  %v13631_v47 = vor.u32 %v13630_v13, %v27391_v28  ;;  %v27407_v60 = vrot.slane %v13634_v0, 5  ;;  %v19105_v3 = vld [vmem:[%s23720_s9 + $0x280] sm:$0xf] }
 0x420   : > { %v13640_v57 = vrot.slane %v13638_v6, 4  ;;  %v13651_v25 = vrot.slane %v13649_v16, 4  ;;  %v13654_v5 = vrot.slane %v13652_v56, 5  ;;  %v13668_v11 = vshll.u32 %v19097_v8, 16  ;;  %v19103_v6 = vld [vmem:[%s23720_s9 + $0x278] sm:$0xf] }
 0x421   : > { %21093 = vmatmul.mubr.msk.bf16.gmra.mrb[32].mxu1 %vm1936_vm4, %v23052_v2  ;;  %v13672_v39 = vshrl.u32 %v19097_v8, 16  ;;  %v19168_v17 = vcombine.low %v13573_v1, %v13583_v45  ;;  %v13593_v14 = vsel %vm23738_vm5, %v13588_v48, %v27375_v20  ;;  %v13603_v52 = vsel %vm23738_vm5, %v13598_v46, %v13602_v4  ;;  %v19106_v48 = vld [vmem:[%s23720_s9 + $0x284] sm:$0xf] }
 0x422   : > { %21677 = vmatmul.mubr.msk.bf16.gmra.mrb[96].mxu0 %vm1936_vm4, %v19165_v61  ;;  %21096 = vmatprep.mubr.msk.bf16.mxu1 %vm1936_vm4, %v23053_v41  ;;  %v27418_v34 = vrot.slane %v13658_v9, 5  ;;  %v13664_v24 = vrot.slane %v13662_v10, 4  ;;  %v13678_v38 = vshll.u32 %v19098_v40, 16  ;;  %v13682_v31 = vshrl.u32 %v19098_v40, 16 }
 0x423   : > { %21680 = vmatprep.mubr.msk.bf16.mxu0 %vm1936_vm4, %v19166_v62  ;;  %v13617_v55 = vsel %vm23738_vm5, %v13612_v36, %v27379_v18  ;;  %v13627_v49 = vsel %vm23738_vm5, %v13622_v29, %v27391_v28  ;;  %v13641_v20 = vor.u32 %v13640_v57, %v27407_v60  ;;  %v13644_v32 = vshll.u32 %v19094_v23, 16  ;;  %v19099_v18 = vld [vmem:[%s23720_s9 + $0x268] sm:$0x1] }
 0x424   : > { %v27430_v53 = vrot.slane %v13631_v47, 4  ;;  %v13655_v33 = vor.u32 %v13654_v5, %v13651_v25  ;;  %v27432_v42 = vrot.slane %v13668_v11, 5  ;;  %v13674_v19 = vrot.slane %v13672_v39, 4 }
 0x425   : > { %v13693_v2 = vshrl.u32 %v19100_v22, 16  ;;  %v13696_v61 = vshll.u32 %v19100_v22, 16  ;;  %v13702_v62 = vshll.u32 %v19101_v7, 16  ;;  %v13706_v21 = vshrl.u32 %v19101_v7, 16  ;;  %v19107_v7 = vld [vmem:[%s23720_s9 + $0x288] sm:$0xf] }
 0x426   : > { %v13665_v44 = vor.u32 %v13664_v24, %v27418_v34  ;;  %v27438_v30 = vrot.slane %v13678_v38, 5  ;;  %v13684_v41 = vrot.slane %v13682_v31, 4  ;;  %v19169_v15 = vcombine.low %v13593_v14, %v13603_v52  ;;  %v23058_v38 = vld [vmem:[%s23720_s9 + $0xf8] sm:$0xff]  }
 0x427   : > { %v19170_v59 = vcombine.low %v13617_v55, %v13627_v49  ;;  %v13642_v58 = vrot.slane %v13641_v20, 4  ;;  %v13646_v35 = vrot.slane %v13644_v32, 5  ;;  %v13637_v28 = vsel %vm23738_vm5, %v27430_v53, %v27407_v60  ;;  %v23059_v20 = vld [vmem:[%s23720_s9 + $0x104] sm:$0xff]  }
 0x428   : > { %v13656_v54 = vrot.slane %v13655_v33, 4  ;;  %v13675_v13 = vor.u32 %v13674_v19, %v27432_v42  ;;  %v13688_v0 = vshll.u32 %v19099_v18, 16  ;;  %v13698_v16 = vrot.slane %v13696_v61, 5  ;;  %v19108_v19 = vld [vmem:[%s23720_s9 + $0x28c] sm:$0xf] }
 0x429   : > { %21097 = vmatmul.mubr.msk.bf16.gmra.mrb[36].mxu1 %vm1936_vm4, %v23054_v63  ;;  %v27450_v56 = vrot.slane %v13702_v62, 5  ;;  %v13708_v1 = vrot.slane %v13706_v21, 4  ;;  %v13666_v46 = vrot.slane %v13665_v44, 4  ;;  %v13685_v4 = vor.u32 %v13684_v41, %v27438_v30  ;;  %v19110_v41 = vld [vmem:[%s23720_s9 + $0x294] sm:$0xf] }
 0x42a   : > { %21681 = vmatmul.mubr.msk.bf16.gmra.mrb[100].mxu0 %vm1936_vm4, %v19167_v27  ;;  %21100 = vmatprep.mubr.msk.bf16.mxu1 %vm1936_vm4, %v23055_v43  ;;  %v13695_v27 = vrot.slane %v13693_v2, 4  ;;  %v13712_v8 = vshll.u32 %v19102_v51, 16  ;;  %v13716_v45 = vshrl.u32 %v19102_v51, 16  ;;  %v13722_v36 = vshll.u32 %v19103_v6, 16 }
 0x42b   : > { %21684 = vmatprep.mubr.msk.bf16.mxu0 %vm1936_vm4, %v19168_v17  ;;  %v13726_v9 = vshrl.u32 %v19103_v6, 16  ;;  %v13737_v10 = vshrl.u32 %v19105_v3, 16  ;;  %v13740_v63 = vshll.u32 %v19105_v3, 16  ;;  %v13647_v29 = vsel %vm23738_vm5, %v13642_v58, %v13646_v35  ;;  %v19104_v17 = vld [vmem:[%s23720_s9 + $0x27c] sm:$0x1] }
 0x42c   : > { %v13661_v47 = vsel %vm23738_vm5, %v13656_v54, %v27418_v34  ;;  %v13746_v60 = vshll.u32 %v19106_v48, 16  ;;  %v13750_v57 = vshrl.u32 %v19106_v48, 16  ;;  %v13676_v40 = vrot.slane %v13675_v13, 4  ;;  %v23060_v48 = vld [vmem:[%s23720_s9 + $0x10c] sm:$0xff]  }
 0x42d   : > { %v13690_v23 = vrot.slane %v13688_v0, 5  ;;  %v13699_v25 = vor.u32 %v13698_v16, %v13695_v27  ;;  %v13709_v5 = vor.u32 %v13708_v1, %v27450_v56  ;;  %v13671_v11 = vsel %vm23738_vm5, %v13666_v46, %v27432_v42 }
 0x42e   : > { %v13686_v39 = vrot.slane %v13685_v4, 4  ;;  %v13714_v43 = vrot.slane %v13712_v8, 5  ;;  %v13718_v14 = vrot.slane %v13716_v45, 4  ;;  %v27468_v52 = vrot.slane %v13722_v36, 5  ;;  %v23061_v45 = vld [vmem:[%s23720_s9 + $0x118] sm:$0xff]  }
 0x42f   : > { %v13728_v22 = vrot.slane %v13726_v9, 4  ;;  %v13739_v34 = vrot.slane %v13737_v10, 4  ;;  %v13742_v24 = vrot.slane %v13740_v63, 5  ;;  %v19171_v31 = vcombine.low %v13637_v28, %v13647_v29  ;;  %v19109_v9 = vld [vmem:[%s23720_s9 + $0x290] sm:$0x1] }
 0x430   : > { %v27472_v55 = vrot.slane %v13746_v60, 5  ;;  %v13752_v49 = vrot.slane %v13750_v57, 4  ;;  %v19172_v32 = vcombine.low %v13661_v47, %v13671_v11  ;;  %v13700_v53 = vrot.slane %v13699_v25, 4  ;;  %v19112_v10 = vld [vmem:[%s23720_s9 + $0x29c] sm:$0xf] }
 0x431   : > { %21101 = vmatmul.mubr.msk.bf16.gmra.mrb[40].mxu1 %vm1936_vm4, %v23056_v12  ;;  %v13710_v33 = vrot.slane %v13709_v5, 4  ;;  %v13732_v42 = vshll.u32 %v19104_v17, 16  ;;  %v13681_v18 = vsel %vm23738_vm5, %v13676_v40, %v27438_v30  ;;  %v13691_v2 = vsel %vm23738_vm5, %v13686_v39, %v13690_v23  ;;  %v19111_v12 = vld [vmem:[%s23720_s9 + $0x298] sm:$0xf]  ;;  %v19113_v57 = vld [vmem:[%s23720_s9 + $0x2a0] sm:$0xf] }
 0x432   : > { %21685 = vmatmul.mubr.msk.bf16.gmra.mrb[104].mxu0 %vm1936_vm4, %v19169_v15  ;;  %21104 = vmatprep.mubr.msk.bf16.mxu1 %vm1936_vm4, %v23057_v50  ;;  %v13719_v61 = vor.u32 %v13718_v14, %v13714_v43  ;;  %v13729_v62 = vor.u32 %v13728_v22, %v27468_v52  ;;  %v13743_v21 = vor.u32 %v13742_v24, %v13739_v34  ;;  %v13756_v44 = vshll.u32 %v19107_v7, 16 }
 0x433   : > { %21688 = vmatprep.mubr.msk.bf16.mxu0 %vm1936_vm4, %v19170_v59  ;;  %v13753_v15 = vor.u32 %v13752_v49, %v27472_v55  ;;  %v13760_v50 = vshrl.u32 %v19107_v7, 16  ;;  %v13766_v59 = vshll.u32 %v19108_v19, 16  ;;  %v13770_v30 = vshrl.u32 %v19108_v19, 16 }
 0x434   : > { %v19173_v58 = vcombine.low %v13681_v18, %v13691_v2  ;;  %v13705_v35 = vsel %vm23738_vm5, %v13700_v53, %v27450_v56  ;;  %v13715_v51 = vsel %vm23738_vm5, %v13710_v33, %v13714_v43  ;;  %v13734_v28 = vrot.slane %v13732_v42, 5 }
 0x435   : > { %v13781_v54 = vshrl.u32 %v19110_v41, 16  ;;  %v13784_v13 = vshll.u32 %v19110_v41, 16  ;;  %v13790_v0 = vshll.u32 %v19111_v12, 16  ;;  %v13794_v6 = vshrl.u32 %v19111_v12, 16 }
 0x436   : > { %v13720_v3 = vrot.slane %v13719_v61, 4  ;;  %v13730_v27 = vrot.slane %v13729_v62, 4  ;;  %v13744_v16 = vrot.slane %v13743_v21, 4  ;;  %v13758_v1 = vrot.slane %v13756_v44, 5  ;;  %v19114_v61 = vld [vmem:[%s23720_s9 + $0x2a4] sm:$0x1] }
 0x437   : > { %v13754_v46 = vrot.slane %v13753_v15, 4  ;;  %v13762_v4 = vrot.slane %v13760_v50, 4  ;;  %v13768_v56 = vrot.slane %v13766_v59, 5  ;;  %v13772_v8 = vrot.slane %v13770_v30, 4  ;;  %v23360_v59 = vld [vmem:[%s23720_s9 + $0x2c] sm:$0xf] }
 0x438   : > { %v19174_v36 = vcombine.low %v13705_v35, %v13715_v51  ;;  %v13783_v63 = vrot.slane %v13781_v54, 4  ;;  %v13786_v29 = vrot.slane %v13784_v13, 5  ;;  %v13792_v47 = vrot.slane %v13790_v0, 5  ;;  %v23064_v54 = vld [vmem:[%s23720_s9 + $0x134] sm:$0xff]   ;;  %v23065_v0 = vld [vmem:[%s23720_s9 + $0x140] sm:$0xff]  }
 0x439   : > { %21105 = vmatmul.mubr.msk.bf16.gmra.mrb[44].mxu1 %vm1936_vm4, %v23058_v38  ;;  %v13796_v60 = vrot.slane %v13794_v6, 4  ;;  %v13725_v40 = vsel %vm23738_vm5, %v13720_v3, %v27468_v52  ;;  %v13735_v23 = vsel %vm23738_vm5, %v13730_v27, %v13734_v28  ;;  %v13749_v25 = vsel %vm23738_vm5, %v13744_v16, %v27472_v55  ;;  %v19244_v28 = vld [vmem:[%s23720_s9 + $0x28] sm:$0xe] }
 0x43a   : > { %21689 = vmatmul.mubr.msk.bf16.gmra.mrb[108].mxu0 %vm1936_vm4, %v19171_v31  ;;  %21108 = vmatprep.mubr.msk.bf16.mxu1 %vm1936_vm4, %v23059_v20  ;;  %v13759_v5 = vsel %vm23738_vm5, %v13754_v46, %v13758_v1  ;;  %v13763_v11 = vor.u32 %v13762_v4, %v13758_v1  ;;  %v13773_v39 = vor.u32 %v13772_v8, %v13768_v56  ;;  %v13776_v43 = vshll.u32 %v19109_v9, 16  ;;  %v23062_v31 = vld [vmem:[%s23720_s9 + $0x120] sm:$0xff]   ;;  %v23362_v46 = vld [vmem:[%s23720_s9 + $0x30] sm:$0xf] }
 0x43b   : > { %21692 = vmatprep.mubr.msk.bf16.mxu0 %vm1936_vm4, %v19172_v32  ;;  %v13800_v17 = vshll.u32 %v19112_v10, 16  ;;  %v13804_v14 = vshrl.u32 %v19112_v10, 16  ;;  %v13810_v52 = vshll.u32 %v19113_v57, 16  ;;  %v13814_v22 = vshrl.u32 %v19113_v57, 16  ;;  %v23063_v32 = vld [vmem:[%s23720_s9 + $0x12c] sm:$0xff]  }
 0x43c   : > { %v13787_v34 = vor.u32 %v13786_v29, %v13783_v63  ;;  %v13797_v24 = vor.u32 %v13796_v60, %v13792_v47  ;;  %v19175_v38 = vcombine.low %v13725_v40, %v13735_v23  ;;  %v19176_v7 = vcombine.low %v13749_v25, %v13759_v5  ;;  %v23364_v63 = vld [vmem:[%s23720_s9 + $0x40] sm:$0xf]  ;;  %v19245_v57 = vld [vmem:[%s23720_s9 + $0x3c] sm:$0xe]  ;;  %v23365_v23 = vld [vmem:[%s23720_s9 + $0x164] sm:$0x1] }
 0x43d   : > { %v13764_v55 = vrot.slane %v13763_v11, 4  ;;  %v13774_v49 = vrot.slane %v13773_v39, 4  ;;  %v13778_v20 = vrot.slane %v13776_v43, 5  ;;  %v13802_v53 = vrot.slane %v13800_v17, 5  ;;  %v23066_v5 = vld [vmem:[%s23720_s9 + $0x148] sm:$0xff]  }
 0x43e   : > { %v13806_v33 = vrot.slane %v13804_v14, 4  ;;  %v13812_v42 = vrot.slane %v13810_v52, 5  ;;  %v13816_v19 = vrot.slane %v13814_v22, 4  ;;  %v13788_v18 = vrot.slane %v13787_v34, 4  ;;  %v23366_v17 = vld [vmem:[%s23720_s9 + $0x38] sm:$0x1] }
 0x43f   : > { %v13798_v2 = vrot.slane %v13797_v24, 4  ;;  %v13769_v62 = vsel %vm23738_vm5, %v13764_v55, %v13768_v56  ;;  %v13779_v21 = vsel %vm23738_vm5, %v13774_v49, %v13778_v20  ;;  %v13820_v12 = vshll.u32 %v19114_v61, 16  ;;  %v23067_v52 = vld [vmem:[%s23720_s9 + $0x154] sm:$0xff]   ;;  %v23368_v55 = vld [vmem:[%s23720_s9 + $0x48] sm:$0xf] }
 0x440   : > { %v13807_v44 = vor.u32 %v13806_v33, %v13802_v53  ;;  %v13817_v41 = vor.u32 %v13816_v19, %v13812_v42  ;;  %v13793_v15 = vsel %vm23738_vm5, %v13788_v18, %v13792_v47  ;;  %v15080_v30 = vrot.slane %v23360_v59, 5  ;;  %v23369_v20 = vld [vmem:[%s23720_s9 + $0x15c] sm:$0xf]  ;;  %v19246_v18 = vld [vmem:[%s23720_s9 + $0x50] sm:$0xe] }
 0x441   : > { %21109 = vmatmul.mubr.msk.bf16.gmra.mrb[48].mxu1 %vm1936_vm4, %v23060_v48  ;;  %v13803_v50 = vsel %vm23738_vm5, %v13798_v2, %v13802_v53  ;;  %v19177_v13 = vcombine.low %v13769_v62, %v13779_v21  ;;  %v13822_v16 = vrot.slane %v13820_v12, 5  ;;  %v19276_v1 = vrot.slane %v19244_v28, 9  ;;  %v23370_v2 = vld [vmem:[%s23720_s9 + $0x54] sm:$0xf] }
 0x442   : > { %21693 = vmatmul.mubr.msk.bf16.gmra.mrb[112].mxu0 %vm1936_vm4, %v19173_v58  ;;  %21112 = vmatprep.mubr.msk.bf16.mxu1 %vm1936_vm4, %v23061_v45  ;;  %v23361_v58 = vld [vmem:[%s23720_s9 + $0x160] sm:$0xf]  ;;  %v19178_v6 = vcombine.low %v13793_v15, %v13803_v50  ;;  %v13808_v3 = vrot.slane %v13807_v44, 4  ;;  %v13818_v27 = vrot.slane %v13817_v41, 4  ;;  %v15082_v48 = vrot.slane %v15080_v30, 4 }
 0x443   : > { %21696 = vmatprep.mubr.msk.bf16.mxu0 %vm1936_vm4, %v19174_v36  ;;  %v7531_v35 = vshll.u32 %v23361_v58, 16  ;;  %v7535_v51 = vshrl.u32 %v23361_v58, 16  ;;  %v15083_v4 = vrot.slane %v23362_v46, 5  ;;  %v23363_v45 = vld [vmem:[%s23720_s9 + $0x34] sm:$0xf]  ;;  %v15093_v29 = vrot.slane %v23364_v63, 5 }
 0x444   : > { %v15086_v36 = vrot.slane %v23363_v45, 5  ;;  %v13813_v9 = vsel %vm23738_vm5, %v13808_v3, %v13812_v42  ;;  %v13823_v10 = vsel %vm23738_vm5, %v13818_v27, %v13822_v16  ;;  %v15081_v47 = vsel %vm24244_vm8, %v19276_v1, %v15080_v30  ;;  %v23371_v15 = vld [vmem:[%s23720_s9 + $0x4c] sm:$0x1]  ;;  %v23374_v16 = vld [vmem:[%s23720_s9 + $0x68] sm:$0xf] }
 0x445   : > { %v27534_v56 = vrot.slane %v7531_v35, 5  ;;  %v7537_v8 = vrot.slane %v7535_v51, 4  ;;  %v15084_v60 = vsel %vm24244_vm8, %v15082_v48, %v15083_v4  ;;  %v7541_v25 = vshll.u32 %v23365_v23, 16  ;;  %v23068_v51 = vld [vmem:[%s23720_s9 + $0x15c] sm:$0xff]   ;;  %v23069_v27 = vld [vmem:[%s23720_s9 + $0x168] sm:$0xff]  }
 0x446   : > { %v19179_v11 = vcombine.low %v13813_v9, %v13823_v10  ;;  %v15085_v39 = vrot.slane %v15083_v4, 4  ;;  %v15088_v43 = vrot.slane %v15086_v36, 4  ;;  %v15089_v14 = vrot.slane %v23366_v17, 5  ;;  %v23375_v48 = vld [vmem:[%s23720_s9 + $0x6c] sm:$0xf] }
 0x447   : > { %v7538_v40 = vor.u32 %v7537_v8, %v27534_v56  ;;  %v19309_v22 = vcombine.low %v15081_v47, %v15084_v60  ;;  %v19277_v34 = vrot.slane %v19245_v57, 9  ;;  %v15095_v24 = vrot.slane %v15093_v29, 4  ;;  %v23376_v9 = vld [vmem:[%s23720_s9 + $0x70] sm:$0xf]  ;;  %v23378_v60 = vld [vmem:[%s23720_s9 + $0x7c] sm:$0xf] }
 0x448   : > { %v15099_v49 = vrot.slane %v23368_v55, 5  ;;  %v7525_v53 = vshrl.u32 %v23369_v20, 16  ;;  %v15087_v42 = vsel %vm24244_vm8, %v15085_v39, %v15086_v36  ;;  %v15090_v19 = vsel %vm24244_vm8, %v15088_v43, %v15089_v14  ;;  %v19247_v36 = vld [vmem:[%s23720_s9 + $0x64] sm:$0xe]  ;;  %v23070_v55 = vld [vmem:[%s23720_s9 + $0x170] sm:$0xff]  }
 0x449   : > { %21113 = vmatmul.mubr.msk.bf16.gmra.mrb[52].mxu1 %vm1936_vm4, %v23062_v31  ;;  %v7539_v33 = vrot.slane %v7538_v40, 4  ;;  %v15106_v61 = vrot.slane %v23370_v2, 5  ;;  %v15094_v62 = vsel %vm24244_vm8, %v19277_v34, %v15093_v29  ;;  %v15102_v50 = vrot.slane %v23371_v15, 5  ;;  %v23377_v29 = vld [vmem:[%s23720_s9 + $0x60] sm:$0x1] }
 0x44a   : > { %21697 = vmatmul.mubr.msk.bf16.gmra.mrb[116].mxu0 %vm1936_vm4, %v19175_v38  ;;  %21116 = vmatprep.mubr.msk.bf16.mxu1 %vm1936_vm4, %v23063_v32  ;;  %v23367_v38 = vld [vmem:[%s23720_s9 + $0x44] sm:$0xf]  ;;  %v7521_v32 = vshll.u32 %v23369_v20, 16  ;;  %v7527_v41 = vrot.slane %v7525_v53, 4  ;;  %v19310_v59 = vcombine.low %v15087_v42, %v15090_v19  ;;  %v15101_v30 = vrot.slane %v15099_v49, 4 }
 0x44b   : > { %21700 = vmatprep.mubr.msk.bf16.mxu0 %vm1936_vm4, %v19176_v7  ;;  %v15096_v31 = vrot.slane %v23367_v38, 5  ;;  %v7543_v7 = vrot.slane %v7541_v25, 5  ;;  %v19278_v58 = vrot.slane %v19246_v18, 9  ;;  %v15119_v1 = vrot.slane %v23374_v16, 5  ;;  %v23381_v2 = vld [vmem:[%s23720_s9 + $0x84] sm:$0xf] }
 0x44c   : > { %v27573_v44 = vrot.slane %v7521_v32, 5  ;;  %v15122_v46 = vrot.slane %v23375_v48, 5  ;;  %v15125_v10 = vrot.slane %v23376_v9, 5  ;;  %v15103_v63 = vsel %vm24244_vm8, %v15101_v30, %v15102_v50  ;;  %v23383_v50 = vld [vmem:[%s23720_s9 + $0x94] sm:$0xf] }
 0x44d   : > { %v15097_v21 = vsel %vm24244_vm8, %v15095_v24, %v15096_v31  ;;  %v15098_v12 = vrot.slane %v15096_v31, 4  ;;  %v7544_v8 = vsel %vm23738_vm5, %v7539_v33, %v7543_v7  ;;  %v15115_v47 = vrot.slane %v23377_v29, 5  ;;  %v23380_v24 = vld [vmem:[%s23720_s9 + $0x80] sm:$0xf]  ;;  %v23072_v29 = vld [vmem:[%s23720_s9 + $0x184] sm:$0xff]  }
 0x44e   : > { %v7528_v35 = vor.u32 %v7527_v41, %v27573_v44  ;;  %v19311_v28 = vcombine.low %v15094_v62, %v15097_v21  ;;  %v15132_v57 = vrot.slane %v23378_v60, 5  ;;  %v15107_v23 = vsel %vm24244_vm8, %v19278_v58, %v15106_v61  ;;  %v23071_v33 = vld [vmem:[%s23720_s9 + $0x17c] sm:$0xff]   ;;  %v19249_v41 = vld [vmem:[%s23720_s9 + $0x8c] sm:$0xe] }
 0x44f   : > { %v15100_v45 = vsel %vm24244_vm8, %v15098_v12, %v15099_v49  ;;  %v19279_v43 = vrot.slane %v19247_v36, 9  ;;  %v15121_v17 = vrot.slane %v15119_v1, 4  ;;  %v15124_v14 = vrot.slane %v15122_v46, 4  ;;  %v23382_v12 = vld [vmem:[%s23720_s9 + $0x90] sm:$0xf] }
 0x450   : > { %v7529_v4 = vrot.slane %v7528_v35, 4  ;;  %v15135_v38 = vrot.slane %v23380_v24, 5  ;;  %v15134_v7 = vrot.slane %v15132_v57, 4  ;;  %v19312_v49 = vcombine.low %v15100_v45, %v15103_v63  ;;  %v23389_v60 = vld [vmem:[%s23720_s9 + $0x9c] sm:$0x1] }
 0x451   : > { %21117 = vmatmul.mubr.msk.bf16.gmra.mrb[56].mxu1 %vm1936_vm4, %v23064_v54  ;;  %v15108_v54 = vrot.slane %v15106_v61, 4  ;;  %v27621_v42 = vsel %vm24244_vm8, %v19279_v43, %v15119_v1  ;;  %v27625_v19 = vsel %vm24244_vm8, %v15121_v17, %v15122_v46  ;;  %v27629_v18 = vsel %vm24244_vm8, %v15124_v14, %v15125_v10  ;;  %v23388_v1 = vld [vmem:[%s23720_s9 + $0xac] sm:$0xf]  ;;  %v19251_v43 = vld [vmem:[%s23720_s9 + $0xb4] sm:$0xe] }
 0x452   : > { %21701 = vmatmul.mubr.msk.bf16.gmra.mrb[120].mxu0 %vm1936_vm4, %v19177_v13  ;;  %21120 = vmatprep.mubr.msk.bf16.mxu1 %vm1936_vm4, %v23065_v0  ;;  %v23372_v13 = vld [vmem:[%s23720_s9 + $0x58] sm:$0xf]  ;;  %v7534_v40 = vsel %vm23738_vm5, %v7529_v4, %v27534_v56  ;;  %v15138_v61 = vrot.slane %v23381_v2, 5  ;;  %v15137_v21 = vrot.slane %v15135_v38, 4  ;;  %v15145_v15 = vrot.slane %v23382_v12, 5 }
 0x453   : > { %21704 = vmatprep.mubr.msk.bf16.mxu0 %vm1936_vm4, %v19178_v6  ;;  %v15109_v0 = vrot.slane %v23372_v13, 5  ;;  %v23373_v6 = vld [vmem:[%s23720_s9 + $0x5c] sm:$0xf]  ;;  %v27601_v39 = vcombine.low %v7534_v40, %v7544_v8  ;;  %v27647_v35 = vsel %vm24244_vm8, %v15134_v7, %v15135_v38  ;;  %v15164_v48 = vrot.slane %v23388_v1, 5  ;;  %v23391_v17 = vld [vmem:[%s23720_s9 + $0xb8] sm:$0xf] }
 0x454   : > { %v15112_v3 = vrot.slane %v23373_v6, 5  ;;  %v23386_v6 = vld [vmem:[%s23720_s9 + $0xa4] sm:$0xf]  ;;  %v19315_v46 = vcombine.low %v27621_v42, %v27625_v19  ;;  %v15140_v8 = vrot.slane %v15138_v61, 4  ;;  %v19281_v45 = vrot.slane %v19249_v41, 9 }
 0x455   : > { %v15111_v25 = vrot.slane %v15109_v0, 4  ;;  %29834 = vst [vmem:[#allocation9_spill] sm:$0xff] %v27601_v39  ;;  %v15110_v56 = vsel %vm24244_vm8, %v15108_v54, %v15109_v0  ;;  %v23385_v54 = vld [vmem:[%s23720_s9 + $0x88] sm:$0x1]  ;;  %v19250_v0 = vld [vmem:[%s23720_s9 + $0xa0] sm:$0xe]  ;;  %v27667_v9 = vsel %vm24244_vm8, %v15137_v21, %v15138_v61 }
 0x456   : > { %v19313_v20 = vcombine.low %v15107_v23, %v15110_v56  ;;  %v15141_v13 = vrot.slane %v23385_v54, 5  ;;  %v19282_v40 = vrot.slane %v19250_v0, 9  ;;  %v23390_v23 = vld [vmem:[%s23720_s9 + $0xb0] sm:$0x1]  ;;  %v15166_v56 = vrot.slane %v15164_v48, 4 }
 0x457   : > { %v27612_v32 = vsel %vm24244_vm8, %v15111_v25, %v15112_v3  ;;  %v15167_v25 = vrot.slane %v23390_v23, 5  ;;  %v15171_v14 = vrot.slane %v23391_v17, 5  ;;  %v23392_v24 = vld [vmem:[%s23720_s9 + $0xbc] sm:$0xf]  ;;  %v19283_v61 = vrot.slane %v19251_v43, 9 }
 0x458   : > { %v15174_v38 = vrot.slane %v23392_v24, 5  ;;  %v23396_v21 = vld [vmem:[%s23720_s9 + $0xd4] sm:$0xf]  ;;  %v23400_v17 = vld [vmem:[%s23720_s9 + $0xe4] sm:$0xf] }
 0x459   : > { %21121 = vmatmul.mubr.msk.bf16.gmra.mrb[60].mxu1 %vm1936_vm4, %v23066_v5  ;;  %v15114_v5 = vrot.slane %v15112_v3, 4  ;;  %v15158_v3 = vrot.slane %v23386_v6, 5  ;;  %v15190_v41 = vrot.slane %v23396_v21, 5  ;;  %v23404_v21 = vld [vmem:[%s23720_s9 + $0xfc] sm:$0xf] }
 0x45a   : > { %21705 = vmatmul.mubr.msk.bf16.gmra.mrb[124].mxu0 %vm1936_vm4, %v19179_v11  ;;  %21124 = vmatprep.mubr.msk.bf16.mxu1 %vm1936_vm4, %v23067_v52  ;;  %v19248_v11 = vld [vmem:[%s23720_s9 + $0x78] sm:$0xe]  ;;  %v15127_v52 = vrot.slane %v15125_v10, 4  ;;  %v15147_v10 = vrot.slane %v15145_v15, 4 }
 0x45b   : > { %21710 = vmatprep.mubr.msk.bf16.mxu0 %vm1936_vm4, %v19309_v22  ;;  %v23379_v22 = vld [vmem:[%s23720_s9 + $0x74] sm:$0x1]  ;;  %v19280_v31 = vrot.slane %v19248_v11, 9  ;;  %v27616_v53 = vsel %vm24244_vm8, %v15114_v5, %v15115_v47  ;;  %v15160_v5 = vrot.slane %v15158_v3, 4  ;;  %v27702_v2 = vsel %vm24244_vm8, %v19282_v40, %v15158_v3  ;;  %v23075_v40 = vld [vmem:[%s23720_s9 + $0x1a4] sm:$0xff]  }
 0x45c   : > { %v15128_v34 = vrot.slane %v23379_v22, 5  ;;  %v19314_v30 = vcombine.low %v27612_v32, %v27616_v53  ;;  %v27677_v22 = vsel %vm24244_vm8, %v15140_v8, %v15141_v13  ;;  %v23394_v32 = vld [vmem:[%s23720_s9 + $0xcc] sm:$0xf] }
 0x45d   : > { %v27643_v58 = vsel %vm24244_vm8, %v19280_v31, %v15132_v57  ;;  %v15154_v57 = vrot.slane %v23389_v60, 5  ;;  %v23393_v31 = vld [vmem:[%s23720_s9 + $0xc0] sm:$0xf]  ;;  %v15184_v53 = vrot.slane %v23394_v32, 5  ;;  %v19318_v0 = vcombine.low %v27667_v9, %v27677_v22  ;;  %v23403_v32 = vld [vmem:[%s23720_s9 + $0xf8] sm:$0xf] }
 0x45e   : > { %v27634_v62 = vsel %vm24244_vm8, %v15127_v52, %v15128_v34  ;;  %v19317_v36 = vcombine.low %v27643_v58, %v27647_v35  ;;  %v23073_v52 = vld [vmem:[%s23720_s9 + $0x190] sm:$0xff]   ;;  %v27681_v34 = vsel %vm24244_vm8, %v19281_v45, %v15145_v15  ;;  %v15177_v7 = vrot.slane %v23393_v31, 5  ;;  %v23399_v45 = vld [vmem:[%s23720_s9 + $0xe0] sm:$0xf] }
 0x45f   : > { %v19316_v4 = vcombine.low %v27629_v18, %v27634_v62  ;;  %v15186_v3 = vrot.slane %v15184_v53, 4  ;;  %v27738_v60 = vsel %vm24244_vm8, %v19283_v61, %v15171_v14  ;;  %v19254_v61 = vld [vmem:[%s23720_s9 + $0xf0] sm:$0xe]  ;;  %v23406_v62 = vld [vmem:[%s23720_s9 + $0xec] sm:$0x1] }
 0x461   : > { %21125 = vmatmul.mubr.msk.bf16.gmra.mrb[64].mxu1 %vm1936_vm4, %v23068_v51  ;;  %v23384_v51 = vld [vmem:[%s23720_s9 + $0x98] sm:$0xf] }
 0x462   : > { %21711 = vmatmul.mubr.msk.bf16.vlgmr.msra.gmra.mrb[0].mxu0 %vm1936_vm4, %v19310_v59  ;;  %21128 = vmatprep.mubr.msk.bf16.mxu1 %vm1936_vm4, %v23069_v27  ;;  %v15148_v59 = vrot.slane %v23383_v50, 5  ;;  %v23387_v27 = vld [vmem:[%s23720_s9 + $0xa8] sm:$0xf]  ;;  %v27717_v50 = vsel %vm24244_vm8, %v15166_v56, %v15167_v25 }
 0x463   : > { %21714 = vmatprep.mubr.msk.bf16.mxu0 %vm1936_vm4, %v19311_v28  ;;  %v15151_v28 = vrot.slane %v23384_v51, 5  ;;  %v15161_v16 = vrot.slane %v23387_v27, 5  ;;  %v15179_v51 = vrot.slane %v15177_v7, 4 }
 0x464   : > { %v15150_v63 = vrot.slane %v15148_v59, 4 }
 0x465   : > { %v15153_v47 = vrot.slane %v15151_v28, 4  ;;  %v15163_v11 = vrot.slane %v15161_v16, 4  ;;  %v27709_v12 = vsel %vm24244_vm8, %v15160_v5, %v15161_v16  ;;  %v19253_v16 = vld [vmem:[%s23720_s9 + $0xdc] sm:$0xe] }
 0x467   : > { %v27698_v19 = vsel %vm24244_vm8, %v15153_v47, %v15154_v57  ;;  %v27713_v15 = vsel %vm24244_vm8, %v15163_v11, %v15164_v48  ;;  %v15192_v48 = vrot.slane %v15190_v41, 4  ;;  %v19285_v11 = vrot.slane %v19253_v16, 9 }
 0x468   : > { %v19322_v47 = vcombine.low %v27713_v15, %v27717_v50 }
 0x469   : > { %21129 = vmatmul.mubr.msk.bf16.gmra.mrb[68].mxu1 %vm1936_vm4, %v23070_v55  ;;  %v27687_v55 = vsel %vm24244_vm8, %v15147_v10, %v15148_v59  ;;  %v15173_v59 = vrot.slane %v15171_v14, 4  ;;  %v15197_v10 = vrot.slane %v23399_v45, 5  ;;  %v15200_v14 = vrot.slane %v23400_v17, 5  ;;  %v23076_v45 = vld [vmem:[%s23720_s9 + $0x1ac] sm:$0xff]  }
 0x46a   : > { %21715 = vmatmul.mubr.msk.bf16.gmra.mrb[4].mxu0 %vm1936_vm4, %v19312_v49  ;;  %21132 = vmatprep.mubr.msk.bf16.mxu1 %vm1936_vm4, %v23071_v33  ;;  %v27691_v49 = vsel %vm24244_vm8, %v15150_v63, %v15151_v28  ;;  %v23395_v33 = vld [vmem:[%s23720_s9 + $0xd0] sm:$0xf]  ;;  %v23397_v28 = vld [vmem:[%s23720_s9 + $0xc4] sm:$0x1]  ;;  %v19319_v6 = vcombine.low %v27681_v34, %v27687_v55  ;;  %v23074_v63 = vld [vmem:[%s23720_s9 + $0x198] sm:$0xff]  }
 0x46b   : > { %21718 = vmatprep.mubr.msk.bf16.mxu0 %vm1936_vm4, %v19313_v20  ;;  %v19252_v20 = vld [vmem:[%s23720_s9 + $0xc8] sm:$0xe]  ;;  %v15187_v42 = vrot.slane %v23395_v33, 5  ;;  %v15180_v54 = vrot.slane %v23397_v28, 5  ;;  %v19320_v1 = vcombine.low %v27691_v49, %v27698_v19  ;;  %v27742_v57 = vsel %vm24244_vm8, %v15173_v59, %v15174_v38  ;;  %v23407_v28 = vld [vmem:[%s23720_s9 + $0x10c] sm:$0xf] }
 0x46c   : > { %v19284_v13 = vrot.slane %v19252_v20, 9  ;;  %v15199_v31 = vrot.slane %v15197_v10, 4  ;;  %v19323_v33 = vcombine.low %v27738_v60, %v27742_v57  ;;  %v23405_v59 = vld [vmem:[%s23720_s9 + $0x108] sm:$0xf]  ;;  %v27800_v58 = vsel %vm24244_vm8, %v19285_v11, %v15197_v10  ;;  %v19257_v55 = vld [vmem:[%s23720_s9 + $0x12c] sm:$0xe] }
 0x46d   : > { %v15189_v27 = vrot.slane %v15187_v42, 4  ;;  %v27751_v25 = vsel %vm24244_vm8, %v15179_v51, %v15180_v54  ;;  %v27759_v56 = vsel %vm24244_vm8, %v15186_v3, %v15187_v42  ;;  %v19255_v51 = vld [vmem:[%s23720_s9 + $0x104] sm:$0xe]  ;;  %v15226_v54 = vrot.slane %v23407_v28, 5  ;;  %v19256_v28 = vld [vmem:[%s23720_s9 + $0x118] sm:$0xe] }
 0x46e   : > { %v27755_v5 = vsel %vm24244_vm8, %v19284_v13, %v15184_v53  ;;  %v15213_v53 = vrot.slane %v23403_v32, 5  ;;  %v23408_v13 = vld [vmem:[%s23720_s9 + $0x110] sm:$0xf]  ;;  %v15202_v35 = vrot.slane %v15200_v14, 4  ;;  %v27804_v16 = vsel %vm24244_vm8, %v15199_v31, %v15200_v14  ;;  %v19259_v49 = vld [vmem:[%s23720_s9 + $0x154] sm:$0xe] }
 0x46f   : > { %v27763_v43 = vsel %vm24244_vm8, %v15189_v27, %v15190_v41  ;;  %v15216_v41 = vrot.slane %v23404_v21, 5  ;;  %v15229_v3 = vrot.slane %v23408_v13, 5  ;;  %v19287_v10 = vrot.slane %v19255_v51, 9  ;;  %v23410_v21 = vld [vmem:[%s23720_s9 + $0x114] sm:$0x1] }
 0x470   : > { %v23412_v13 = vld [vmem:[%s23720_s9 + $0x120] sm:$0xf]  ;;  %v23423_v19 = vld [vmem:[%s23720_s9 + $0x158] sm:$0xf] }
 0x471   : > { %21133 = vmatmul.mubr.msk.bf16.gmra.mrb[72].mxu1 %vm1936_vm4, %v23072_v29  ;;  %v19321_v29 = vcombine.low %v27702_v2, %v27709_v12  ;;  %v15231_v32 = vrot.slane %v15229_v3, 4  ;;  %v15239_v27 = vrot.slane %v23412_v13, 5  ;;  %v23426_v31 = vld [vmem:[%s23720_s9 + $0x158] sm:$0xf] }
 0x472   : > { %21719 = vmatmul.mubr.msk.bf16.gmra.mrb[8].mxu0 %vm1936_vm4, %v19314_v30  ;;  %21136 = vmatprep.mubr.msk.bf16.mxu1 %vm1936_vm4, %v23073_v52  ;;  %v15176_v30 = vrot.slane %v15174_v38, 4  ;;  %v23401_v52 = vld [vmem:[%s23720_s9 + $0xe8] sm:$0xf]  ;;  %v7511_v2 = vshll.u32 %v23426_v31, 16  ;;  %v7515_v12 = vshrl.u32 %v23426_v31, 16 }
 0x473   : > { %21722 = vmatprep.mubr.msk.bf16.mxu0 %vm1936_vm4, %v19315_v46  ;;  %v23398_v46 = vld [vmem:[%s23720_s9 + $0xd8] sm:$0x1]  ;;  %v15203_v24 = vrot.slane %v23401_v52, 5 }
 0x474   : > { %v15193_v8 = vrot.slane %v23398_v46, 5  ;;  %v27747_v23 = vsel %vm24244_vm8, %v15176_v30, %v15177_v7  ;;  %v23402_v7 = vld [vmem:[%s23720_s9 + $0xf4] sm:$0xf]  ;;  %v15223_v30 = vrot.slane %v23405_v59, 5  ;;  %v23077_v52 = vld [vmem:[%s23720_s9 + $0x1b8] sm:$0xff]   ;;  %v15232_v59 = vrot.slane %v23410_v21, 5 }
 0x475   : > { %v15210_v20 = vrot.slane %v23402_v7, 5  ;;  %v15228_v7 = vrot.slane %v15226_v54, 4 }
 0x476   : > { %v27769_v38 = vsel %vm24244_vm8, %v15192_v48, %v15193_v8  ;;  %v19286_v48 = vrot.slane %v19254_v61, 9  ;;  %v15215_v8 = vrot.slane %v15213_v53, 4  ;;  %v15225_v11 = vrot.slane %v15223_v30, 4 }
 0x477   : > { %v15212_v46 = vrot.slane %v15210_v20, 4  ;;  %v27815_v61 = vsel %vm24244_vm8, %v15202_v35, %v15203_v24  ;;  %v27860_v9 = vsel %vm24244_vm8, %v15228_v7, %v15229_v3  ;;  %v27864_v22 = vsel %vm24244_vm8, %v15231_v32, %v15232_v59  ;;  %v23414_v35 = vld [vmem:[%s23720_s9 + $0x128] sm:$0x1] }
 0x478   : > { %v27826_v21 = vsel %vm24244_vm8, %v19286_v48, %v15210_v20  ;;  %v15245_v34 = vrot.slane %v23414_v35, 5  ;;  %v23419_v32 = vld [vmem:[%s23720_s9 + $0x148] sm:$0xf]  ;;  %v18296_v48 = vld [vmem:[%s23720_s9 + $0x154] sm:$0xf] }
 0x479   : > { %21137 = vmatmul.mubr.msk.bf16.gmra.mrb[76].mxu1 %vm1936_vm4, %v23074_v63  ;;  %v15218_v63 = vrot.slane %v15216_v41, 4  ;;  %v15265_v59 = vrot.slane %v23419_v32, 5  ;;  %v7502_v3 = vshrl.u32 %v18296_v48, 16 }
 0x47a   : > { %21723 = vmatmul.mubr.msk.bf16.gmra.mrb[12].mxu0 %vm1936_vm4, %v19316_v4  ;;  %21140 = vmatprep.mubr.msk.bf16.mxu1 %vm1936_vm4, %v23075_v40  ;;  %v15206_v4 = vrot.slane %v23406_v62, 5  ;;  %v23409_v40 = vld [vmem:[%s23720_s9 + $0x100] sm:$0x1]  ;;  %v23411_v62 = vld [vmem:[%s23720_s9 + $0x11c] sm:$0xf] }
 0x47b   : > { %21726 = vmatprep.mubr.msk.bf16.mxu0 %vm1936_vm4, %v19317_v36  ;;  %v15205_v36 = vrot.slane %v15203_v24, 4  ;;  %v15219_v17 = vrot.slane %v23409_v40, 5  ;;  %v15236_v14 = vrot.slane %v23411_v62, 5  ;;  %v23413_v40 = vld [vmem:[%s23720_s9 + $0x124] sm:$0xf]  ;;  %v27830_v62 = vsel %vm24244_vm8, %v15212_v46, %v15213_v53 }
 0x47c   : > { %v15242_v51 = vrot.slane %v23413_v40, 5  ;;  %v27834_v24 = vsel %vm24244_vm8, %v15215_v8, %v15216_v41  ;;  %v27847_v53 = vsel %vm24244_vm8, %v19287_v10, %v15223_v30  ;;  %v27851_v41 = vsel %vm24244_vm8, %v15225_v11, %v15226_v54  ;;  %v23416_v46 = vld [vmem:[%s23720_s9 + $0x134] sm:$0xf]  ;;  %v19258_v11 = vld [vmem:[%s23720_s9 + $0x140] sm:$0xe]  ;;  %v23079_v40 = vld [vmem:[%s23720_s9 + $0x1cc] sm:$0xff]  }
 0x47d   : > { %v27822_v18 = vsel %vm24244_vm8, %v15205_v36, %v15206_v4  ;;  %v27843_v20 = vsel %vm24244_vm8, %v15218_v63, %v15219_v17  ;;  %v15238_v30 = vrot.slane %v15236_v14, 4  ;;  %v15241_v4 = vrot.slane %v15239_v27, 4  ;;  %v23078_v17 = vld [vmem:[%s23720_s9 + $0x1c0] sm:$0xff]  }
 0x47e   : > { %v15244_v54 = vrot.slane %v15242_v51, 4  ;;  %v15252_v8 = vrot.slane %v23416_v46, 5 }
 0x47f   : > { %v27897_v32 = vsel %vm24244_vm8, %v15241_v4, %v15242_v51  ;;  %v15267_v51 = vrot.slane %v15265_v59, 4  ;;  %v23422_v4 = vld [vmem:[%s23720_s9 + $0x150] sm:$0x1] }
 0x481   : > { %21141 = vmatmul.mubr.msk.bf16.gmra.mrb[80].mxu1 %vm1936_vm4, %v23076_v45  ;;  %v23417_v45 = vld [vmem:[%s23720_s9 + $0x138] sm:$0xf] }
 0x482   : > { %21727 = vmatmul.mubr.msk.bf16.gmra.mrb[16].mxu0 %vm1936_vm4, %v19318_v0  ;;  %21144 = vmatprep.mubr.msk.bf16.mxu1 %vm1936_vm4, %v23077_v52  ;;  %v19288_v0 = vrot.slane %v19256_v28, 9  ;;  %v15255_v63 = vrot.slane %v23417_v45, 5  ;;  %v23418_v52 = vld [vmem:[%s23720_s9 + $0x144] sm:$0xf]  ;;  %v23420_v28 = vld [vmem:[%s23720_s9 + $0x14c] sm:$0xf] }
 0x483   : > { %21730 = vmatprep.mubr.msk.bf16.mxu0 %vm1936_vm4, %v19319_v6  ;;  %v23415_v6 = vld [vmem:[%s23720_s9 + $0x130] sm:$0xf]  ;;  %v15262_v7 = vrot.slane %v23418_v52, 5  ;;  %v15268_v13 = vrot.slane %v23420_v28, 5  ;;  %v19289_v45 = vrot.slane %v19257_v55, 9  ;;  %v27893_v52 = vsel %vm24244_vm8, %v15238_v30, %v15239_v27 }
 0x484   : > { %v15249_v36 = vrot.slane %v23415_v6, 5  ;;  %v27889_v46 = vsel %vm24244_vm8, %v19288_v0, %v15236_v14  ;;  %v27901_v28 = vsel %vm24244_vm8, %v15244_v54, %v15245_v34  ;;  %v15254_v6 = vrot.slane %v15252_v8, 4  ;;  %v23421_v14 = vld [vmem:[%s23720_s9 + $0x13c] sm:$0x1] }
 0x485   : > { %v15257_v10 = vrot.slane %v15255_v63, 4  ;;  %v15258_v0 = vrot.slane %v23421_v14, 5  ;;  %v19290_v55 = vrot.slane %v19258_v11, 9  ;;  %v15264_v27 = vrot.slane %v15262_v7, 4  ;;  %v23425_v14 = vld [vmem:[%s23720_s9 + $0x160] sm:$0xf] }
 0x486   : > { %v15251_v35 = vrot.slane %v15249_v36, 4  ;;  %v15270_v30 = vrot.slane %v15268_v13, 4  ;;  %v15271_v54 = vrot.slane %v23422_v4, 5  ;;  %v27918_v34 = vsel %vm24244_vm8, %v19289_v45, %v15249_v36 }
 0x487   : > { %v15281_v4 = vrot.slane %v23425_v14, 5  ;;  %v27931_v36 = vsel %vm24244_vm8, %v15254_v6, %v15255_v63  ;;  %v27935_v45 = vsel %vm24244_vm8, %v15257_v10, %v15258_v0  ;;  %v27944_v31 = vsel %vm24244_vm8, %v15264_v27, %v15265_v59 }
 0x488   : > { %v27952_v63 = vsel %vm24244_vm8, %v15270_v30, %v15271_v54  ;;  %v19291_v10 = vrot.slane %v19259_v49, 9  ;;  %v7504_v59 = vrot.slane %v7502_v3, 4  ;;  %v27956_v14 = vrot.slane %v7511_v2, 5  ;;  %v23428_v49 = vld [vmem:[%s23720_s9 + $0x16c] sm:$0xf] }
 0x489   : > { %21145 = vmatmul.mubr.msk.bf16.gmra.mrb[84].mxu1 %vm1936_vm4, %v23078_v17  ;;  %v23424_v17 = vld [vmem:[%s23720_s9 + $0x15c] sm:$0xf]  ;;  %v15288_v42 = vrot.slane %v23428_v49, 5  ;;  %v23082_v49 = vld [vmem:[%s23720_s9 + $0x1e8] sm:$0xff]  }
 0x48a   : > { %21731 = vmatmul.mubr.msk.bf16.gmra.mrb[20].mxu0 %vm1936_vm4, %v19320_v1  ;;  %21148 = vmatprep.mubr.msk.bf16.mxu1 %vm1936_vm4, %v23079_v40  ;;  %v15275_v1 = vrot.slane %v23423_v19, 5  ;;  %v15278_v11 = vrot.slane %v23424_v17, 5  ;;  %v7505_v40 = vshll.u32 %v18296_v48, 16  ;;  %v27939_v19 = vsel %vm24244_vm8, %v19290_v55, %v15262_v7  ;;  %v23080_v48 = vld [vmem:[%s23720_s9 + $0x1d4] sm:$0xff]   ;;  %v23427_v55 = vld [vmem:[%s23720_s9 + $0x164] sm:$0x1] }
 0x48b   : > { %21734 = vmatprep.mubr.msk.bf16.mxu0 %vm1936_vm4, %v19321_v29  ;;  %v27927_v29 = vsel %vm24244_vm8, %v15251_v35, %v15252_v8  ;;  %v27948_v8 = vsel %vm24244_vm8, %v15267_v51, %v15268_v13  ;;  %v23081_v35 = vld [vmem:[%s23720_s9 + $0x1e0] sm:$0xff]   ;;  %v15283_v7 = vrot.slane %v15281_v4, 4  ;;  %v15284_v17 = vrot.slane %v23427_v55, 5  ;;  %v18301_v55 = vld [vmem:[%s23720_s9 + $0x168] sm:$0xf] }
 0x48c   : > { %v15277_v6 = vrot.slane %v15275_v1, 4  ;;  %v15280_v0 = vrot.slane %v15278_v11, 4  ;;  %v7507_v27 = vrot.slane %v7505_v40, 5  ;;  %v7517_v13 = vrot.slane %v7515_v12, 4  ;;  %v19260_v12 = vld [vmem:[%s23720_s9 + $0x168] sm:$0xe] }
 0x48d   : > { %v27985_v15 = vsel %vm24244_vm8, %v19291_v10, %v15275_v1  ;;  %v19292_v10 = vrot.slane %v19260_v12, 9  ;;  %v23430_v2 = vld [vmem:[%s23720_s9 + $0x16c] sm:$0xf]  ;;  %v23431_v40 = vld [vmem:[%s23720_s9 + $0x170] sm:$0xf] }
 0x48e   : > { %v27989_v50 = vsel %vm24244_vm8, %v15277_v6, %v15278_v11  ;;  %v7508_v60 = vor.u32 %v7507_v27, %v7504_v59  ;;  %v7518_v57 = vor.u32 %v7517_v13, %v27956_v14  ;;  %v7546_v11 = vshrl.u32 %v18301_v55, 16  ;;  %v23432_v27 = vld [vmem:[%s23720_s9 + $0x174] sm:$0xf] }
 0x48f   : > { %29835 = vst [vmem:[#allocation10_spill] sm:$0xff] %v27989_v50  ;;  %v7549_v6 = vshll.u32 %v18301_v55, 16  ;;  %v7565_v3 = vshll.u32 %v23431_v40, 16  ;;  %v15294_v13 = vrot.slane %v23432_v27, 5  ;;  %v19261_v50 = vld [vmem:[%s23720_s9 + $0x17c] sm:$0xe] }
 0x490   : > { %v7509_v30 = vrot.slane %v7508_v60, 4  ;;  %v7519_v51 = vrot.slane %v7518_v57, 4  ;;  %v7548_v27 = vrot.slane %v7546_v11, 4  ;;  %v18306_v55 = vld [vmem:[%s23720_s9 + $0x17c] sm:$0xf] }
 0x491   : > { %21149 = vmatmul.mubr.msk.bf16.gmra.mrb[88].mxu1 %vm1936_vm4, %v23080_v48  ;;  %v27997_v48 = vsel %vm24244_vm8, %v15283_v7, %v15284_v17  ;;  %v7569_v7 = vshrl.u32 %v23431_v40, 16  ;;  %v23083_v17 = vld [vmem:[%s23720_s9 + $0x1f4] sm:$0xff]   ;;  %v28013_v40 = vsel %vm24244_vm8, %v19292_v10, %v15288_v42  ;;  %v7551_v39 = vrot.slane %v7549_v6, 5 }
 0x492   : > { %21735 = vmatmul.mubr.msk.bf16.gmra.mrb[24].mxu0 %vm1936_vm4, %v19322_v47  ;;  %21152 = vmatprep.mubr.msk.bf16.mxu1 %vm1936_vm4, %v23081_v35  ;;  %v27993_v47 = vsel %vm24244_vm8, %v15280_v0, %v15281_v4  ;;  %v15290_v35 = vrot.slane %v15288_v42, 4  ;;  %v7555_v4 = vshll.u32 %v23430_v2, 16  ;;  %v7559_v0 = vshrl.u32 %v23430_v2, 16 }
 0x493   : > { %21738 = vmatprep.mubr.msk.bf16.mxu0 %vm1936_vm4, %v19323_v33  ;;  %v23429_v33 = vld [vmem:[%s23720_s9 + $0x170] sm:$0xf]  ;;  %v28027_v42 = vrot.slane %v7565_v3, 5  ;;  %v7571_v10 = vrot.slane %v7569_v7, 4  ;;  %v7514_v3 = vsel %vm23738_vm5, %v7509_v30, %v27956_v14  ;;  %v7590_v7 = vshrl.u32 %v18306_v55, 16 }
 0x494   : > { %v15291_v1 = vrot.slane %v23429_v33, 5  ;;  %v23433_v33 = vld [vmem:[%s23720_s9 + $0x174] sm:$0xf]  ;;  %v28025_v60 = vrot.slane %v7555_v4, 5  ;;  %v7561_v57 = vrot.slane %v7559_v0, 4  ;;  %v7552_v0 = vor.u32 %v7551_v39, %v7548_v27 }
 0x495   : > { %v7575_v54 = vshll.u32 %v23433_v33, 16  ;;  %v7579_v12 = vshrl.u32 %v23433_v33, 16  ;;  %v29837_v33 = vcombine.low %v27747_v23, %v27751_v25  ;;  %v23434_v23 = vld [vmem:[%s23720_s9 + $0x178] sm:$0x1]  ;;  %v23436_v14 = vld [vmem:[%s23720_s9 + $0x184] sm:$0xf] }
 0x496   : > { %v15293_v2 = vrot.slane %v15291_v1, 4  ;;  %v28017_v59 = vsel %vm24244_vm8, %v15290_v35, %v15291_v1  ;;  %v29838_v1 = vcombine.low %v27755_v5, %v27759_v56  ;;  %v15296_v35 = vrot.slane %v15294_v13, 4 }
 0x497   : > { %29836 = vst [vmem:[#allocation11_spill] sm:$0xff] %v28017_v59  ;;  %v15297_v25 = vrot.slane %v23434_v23, 5  ;;  %v28036_v11 = vrot.slane %v7575_v54, 5  ;;  %v7581_v6 = vrot.slane %v7579_v12, 4  ;;  %v7524_v5 = vsel %vm23738_vm5, %v7519_v51, %v27573_v44  ;;  %v23084_v12 = vld [vmem:[%s23720_s9 + $0x1fc] sm:$0xff]   ;;  %v23085_v51 = vld [vmem:[%s23720_s9 + $0x208] sm:$0xff]  }
 0x498   : > { %v19293_v54 = vrot.slane %v19261_v50, 9  ;;  %v15304_v30 = vrot.slane %v23436_v14, 5  ;;  %v23437_v23 = vld [vmem:[%s23720_s9 + $0x178] sm:$0x1]  ;;  %v28055_v56 = vsel %vm24244_vm8, %v15293_v2, %v15294_v13  ;;  %v23439_v14 = vld [vmem:[%s23720_s9 + $0x180] sm:$0xf] }
 0x499   : > { %21153 = vmatmul.mubr.msk.bf16.gmra.mrb[92].mxu1 %vm1936_vm4, %v23082_v49  ;;  %v23435_v49 = vld [vmem:[%s23720_s9 + $0x180] sm:$0xf]  ;;  %v7585_v44 = vshll.u32 %v23437_v23, 16  ;;  %v28059_v39 = vsel %vm24244_vm8, %v15296_v35, %v15297_v25  ;;  %v7582_v50 = vor.u32 %v7581_v6, %v28036_v11  ;;  %v7603_v23 = vshrl.u32 %v23439_v14, 16 }
 0x49a   : > { %21739 = vmatmul.mubr.msk.bf16.gmra.mrb[28].mxu0 %vm1936_vm4, %v29837_v33  ;;  %21156 = vmatprep.mubr.msk.bf16.mxu1 %vm1936_vm4, %v23083_v17  ;;  %v15301_v4 = vrot.slane %v23435_v49, 5  ;;  %v7593_v17 = vshll.u32 %v18306_v55, 16  ;;  %v7562_v33 = vor.u32 %v7561_v57, %v28025_v60  ;;  %v23438_v55 = vld [vmem:[%s23720_s9 + $0x188] sm:$0xf]  ;;  %v28063_v57 = vcombine.low %v7514_v3, %v7524_v5 }
 0x49b   : > { %21742 = vmatprep.mubr.msk.bf16.mxu0 %vm1936_vm4, %v29838_v1  ;;  %v7572_v1 = vor.u32 %v7571_v10, %v28027_v42  ;;  %v15307_v27 = vrot.slane %v23438_v55, 5  ;;  %v7599_v10 = vshll.u32 %v23439_v14, 16  ;;  %v7553_v59 = vrot.slane %v7552_v0, 4 }
 0x49c   : > { %v15303_v49 = vrot.slane %v15301_v4, 4  ;;  %v28068_v13 = vsel %vm24244_vm8, %v19293_v54, %v15301_v4  ;;  %v7592_v2 = vrot.slane %v7590_v7, 4  ;;  %v7595_v35 = vrot.slane %v7593_v17, 5  ;;  %v23441_v17 = vld [vmem:[%s23720_s9 + $0x184] sm:$0xf] }
 0x49d   : > { %29839 = vst [vmem:[#allocation12_spill] sm:$0xff] %v28068_v13  ;;  %v29840_v25 = vcombine.low %v27763_v43, %v27769_v38  ;;  %v7563_v6 = vrot.slane %v7562_v33, 4  ;;  %v7573_v3 = vrot.slane %v7572_v1, 4  ;;  %v7587_v5 = vrot.slane %v7585_v44, 5  ;;  %v23440_v43 = vld [vmem:[%s23720_s9 + $0x18c] sm:$0x1] }
 0x49e   : > { %v15306_v0 = vrot.slane %v15304_v30, 4  ;;  %v29841_v4 = vcombine.low %v27800_v58, %v27804_v16  ;;  %v7583_v54 = vrot.slane %v7582_v50, 4  ;;  %v15309_v7 = vrot.slane %v15307_v27, 4  ;;  %v19262_v1 = vld [vmem:[%s23720_s9 + $0x190] sm:$0xe] }
 0x49f   : > { %v15310_v38 = vrot.slane %v23440_v43, 5  ;;  %v28082_v55 = vrot.slane %v7599_v10, 5  ;;  %v7605_v33 = vrot.slane %v7603_v23, 4  ;;  %v23442_v44 = vld [vmem:[%s23720_s9 + $0x194] sm:$0xf]  ;;  %v7613_v14 = vshrl.u32 %v23441_v17, 16 }
 0x4a0   : > { %v28088_v58 = vsel %vm24244_vm8, %v15303_v49, %v15304_v30  ;;  %v7596_v16 = vor.u32 %v7595_v35, %v7592_v2  ;;  %v23443_v50 = vld [vmem:[%s23720_s9 + $0x188] sm:$0xf]  ;;  %v23086_v43 = vld [vmem:[%s23720_s9 + $0x210] sm:$0xff]   ;;  %v7558_v10 = vsel %vm23738_vm5, %v7553_v59, %v28025_v60  ;;  %v7568_v23 = vsel %vm23738_vm5, %v7563_v6, %v28027_v42  ;;  %v23087_v49 = vld [vmem:[%s23720_s9 + $0x21c] sm:$0xff]  }
 0x4a1   : > { %21157 = vmatmul.mubr.msk.bf16.gmra.mrb[96].mxu1 %vm1936_vm4, %v23084_v12  ;;  %v7609_v12 = vshll.u32 %v23441_v17, 16  ;;  %29842 = vst [vmem:[#allocation13_spill] sm:$0xff] %v28088_v58  ;;  %v7578_v17 = vsel %vm23738_vm5, %v7573_v3, %v28036_v11  ;;  %v28103_v30 = vsel %vm24244_vm8, %v15306_v0, %v15307_v27  ;;  %v7588_v2 = vsel %vm23738_vm5, %v7583_v54, %v7587_v5  ;;  %v18311_v42 = vld [vmem:[%s23720_s9 + $0x190] sm:$0xf]  ;;  %v23444_v11 = vld [vmem:[%s23720_s9 + $0x198] sm:$0xf] }
 0x4a2   : > { %21743 = vmatmul.mubr.msk.bf16.gmra.mrb[32].mxu0 %vm1936_vm4, %v29840_v25  ;;  %21160 = vmatprep.mubr.msk.bf16.mxu1 %vm1936_vm4, %v23085_v51  ;;  %v15314_v51 = vrot.slane %v23442_v44, 5  ;;  %v7619_v25 = vshll.u32 %v23443_v50, 16  ;;  %29843 = vst [vmem:[#allocation14_spill] sm:$0xff] %v28103_v30  ;;  %v28110_v35 = vsel %vm24244_vm8, %v15309_v7, %v15310_v38  ;;  %v19294_v60 = vrot.slane %v19262_v1, 9  ;;  %v23457_v13 = vld [vmem:[%s23720_s9 + $0x1b0] sm:$0xf] }
 0x4a3   : > { %21746 = vmatprep.mubr.msk.bf16.mxu0 %vm1936_vm4, %v29841_v4  ;;  %v7623_v4 = vshrl.u32 %v23443_v50, 16  ;;  %29844 = vst [vmem:[#allocation15_spill] sm:$0xff] %v28110_v35  ;;  %v28112_v59 = vrot.slane %v7609_v12, 5  ;;  %v7606_v6 = vor.u32 %v7605_v33, %v28082_v55  ;;  %v15317_v3 = vrot.slane %v23444_v11, 5 }
 0x4a4   : > { %v15316_v44 = vrot.slane %v15314_v51, 4  ;;  %v7615_v50 = vrot.slane %v7613_v14, 4  ;;  %v28119_v0 = vrot.slane %v7596_v16, 4  ;;  %v28121_v5 = vrot.slane %v7619_v25, 5  ;;  %v23445_v25 = vld [vmem:[%s23720_s9 + $0x18c] sm:$0x1] }
 0x4a5   : > { %v7625_v54 = vrot.slane %v7623_v4, 4  ;;  %v29845_v7 = vcombine.low %v27815_v61, %v27822_v18  ;;  %v28128_v38 = vcombine.low %v7558_v10, %v7568_v23  ;;  %v7634_v33 = vshrl.u32 %v18311_v42, 16  ;;  %v23449_v61 = vld [vmem:[%s23720_s9 + $0x19c] sm:$0xf] }
 0x4a6   : > { %v7637_v1 = vshll.u32 %v18311_v42, 16  ;;  %v29846_v14 = vcombine.low %v27826_v21, %v27830_v62  ;;  %v28137_v18 = vcombine.low %v7578_v17, %v7588_v2  ;;  %v28143_v16 = vsel %vm24244_vm8, %v19294_v60, %v15314_v51  ;;  %v23446_v17 = vld [vmem:[%s23720_s9 + $0x19c] sm:$0xf]  ;;  %v23447_v2 = vld [vmem:[%s23720_s9 + $0x194] sm:$0xf]  ;;  %v23088_v42 = vld [vmem:[%s23720_s9 + $0x224] sm:$0xff]  }
 0x4a7   : > { %29848 = vst [vmem:[#allocation16_spill] sm:$0xff] %v28143_v16  ;;  %v7629_v4 = vshll.u32 %v23445_v25, 16  ;;  %v28150_v21 = vsel %vm24244_vm8, %v15316_v44, %v15317_v3  ;;  %v7616_v62 = vor.u32 %v7615_v50, %v28112_v59  ;;  %v15319_v10 = vrot.slane %v15317_v3, 4  ;;  %v23448_v50 = vld [vmem:[%s23720_s9 + $0x198] sm:$0xf] }
 0x4a8   : > { %29847 = vst [vmem:[#allocation18_spill] sm:$0xff] %v28137_v18  ;;  %29849 = vst [vmem:[#allocation17_spill] sm:$0xff] %v28150_v21  ;;  %v7626_v23 = vor.u32 %v7625_v54, %v28121_v5  ;;  %v7643_v60 = vshll.u32 %v23447_v2, 16  ;;  %v7639_v44 = vrot.slane %v7637_v1, 5  ;;  %v7647_v11 = vshrl.u32 %v23447_v2, 16 }
 0x4a9   : > { %21161 = vmatmul.mubr.msk.bf16.gmra.mrb[100].mxu1 %vm1936_vm4, %v23086_v43  ;;  %v28146_v43 = vrot.slane %v7606_v6, 4  ;;  %v7636_v6 = vrot.slane %v7634_v33, 4  ;;  %v7653_v3 = vshll.u32 %v23448_v50, 16  ;;  %v7657_v25 = vshrl.u32 %v23448_v50, 16  ;;  %v23450_v2 = vld [vmem:[%s23720_s9 + $0x1a0] sm:$0x1] }
 0x4aa   : > { %21747 = vmatmul.mubr.msk.bf16.gmra.mrb[36].mxu0 %vm1936_vm4, %v29845_v7  ;;  %21164 = vmatprep.mubr.msk.bf16.mxu1 %vm1936_vm4, %v23087_v49  ;;  %v15320_v49 = vrot.slane %v23446_v17, 5  ;;  %v23089_v7 = vld [vmem:[%s23720_s9 + $0x230] sm:$0xff]   ;;  %v7663_v54 = vshll.u32 %v23449_v61, 16  ;;  %v7667_v12 = vshrl.u32 %v23449_v61, 16  ;;  %v28170_v33 = vrot.slane %v7616_v62, 4 }
 0x4ab   : > { %21750 = vmatprep.mubr.msk.bf16.mxu0 %vm1936_vm4, %v29846_v14  ;;  %v28172_v1 = vrot.slane %v7629_v4, 5  ;;  %v15323_v27 = vrot.slane %v23450_v2, 5  ;;  %v19263_v51 = vld [vmem:[%s23720_s9 + $0x1a4] sm:$0xe]  ;;  %v28176_v35 = vrot.slane %v7626_v23, 4  ;;  %v28182_v14 = vrot.slane %v7643_v60, 5 }
 0x4ac   : > { %v28180_v50 = vsel %vm24244_vm8, %v15319_v10, %v15320_v49  ;;  %v15322_v61 = vrot.slane %v15320_v49, 4  ;;  %v18316_v21 = vld [vmem:[%s23720_s9 + $0x1a4] sm:$0xf]  ;;  %v29850_v4 = vcombine.low %v27834_v24, %v27843_v20  ;;  %v7640_v62 = vor.u32 %v7639_v44, %v7636_v6  ;;  %v23451_v17 = vld [vmem:[%s23720_s9 + $0x1a8] sm:$0xf] }
 0x4ad   : > { %v7649_v2 = vrot.slane %v7647_v11, 4  ;;  %v28190_v23 = vrot.slane %v7653_v3, 5  ;;  %v15327_v16 = vrot.slane %v23451_v17, 5  ;;  %v29851_v10 = vcombine.low %v27847_v53, %v27851_v41  ;;  %v23452_v44 = vld [vmem:[%s23720_s9 + $0x1a8] sm:$0xf] }
 0x4ae   : > { %v19295_v49 = vrot.slane %v19263_v51, 9  ;;  %v7659_v60 = vrot.slane %v7657_v25, 4  ;;  %v28198_v24 = vrot.slane %v7663_v54, 5  ;;  %v7669_v20 = vrot.slane %v7667_v12, 4  ;;  %v23090_v25 = vld [vmem:[%s23720_s9 + $0x238] sm:$0xff]  }
 0x4af   : > { %v7681_v6 = vshll.u32 %v18316_v21, 16  ;;  %v7687_v11 = vshll.u32 %v23452_v44, 16  ;;  %v7691_v3 = vshrl.u32 %v23452_v44, 16  ;;  %v7622_v53 = vsel %vm23738_vm5, %v28170_v33, %v28121_v5  ;;  %v23454_v33 = vld [vmem:[%s23720_s9 + $0x1a0] sm:$0x1] }
 0x4b0   : > { %v7632_v41 = vsel %vm23738_vm5, %v28176_v35, %v28172_v1  ;;  %v28213_v12 = vsel %vm24244_vm8, %v15322_v61, %v15323_v27  ;;  %v28219_v54 = vrot.slane %v7640_v62, 4  ;;  %v15329_v5 = vrot.slane %v15327_v16, 4  ;;  %v23091_v1 = vld [vmem:[%s23720_s9 + $0x244] sm:$0xff]   ;;  %v23455_v62 = vld [vmem:[%s23720_s9 + $0x1b0] sm:$0xf] }
 0x4b1   : > { %21165 = vmatmul.mubr.msk.bf16.gmra.mrb[104].mxu1 %vm1936_vm4, %v23088_v42  ;;  %v7678_v42 = vshrl.u32 %v18316_v21, 16  ;;  %v23453_v21 = vld [vmem:[%s23720_s9 + $0x1ac] sm:$0xf]  ;;  %v28228_v27 = vsel %vm24244_vm8, %v19295_v49, %v15327_v16  ;;  %v7660_v61 = vor.u32 %v7659_v60, %v28190_v23  ;;  %v7670_v44 = vor.u32 %v7669_v20, %v28198_v24 }
 0x4b2   : > { %21751 = vmatmul.mubr.msk.bf16.gmra.mrb[40].mxu0 %vm1936_vm4, %v29850_v4  ;;  %21168 = vmatprep.mubr.msk.bf16.mxu1 %vm1936_vm4, %v23089_v7  ;;  %v15330_v51 = vrot.slane %v23453_v21, 5  ;;  %v7650_v4 = vor.u32 %v7649_v2, %v28182_v14  ;;  %v15333_v21 = vrot.slane %v23455_v62, 5  ;;  %v28235_v30 = vrot.slane %v7687_v11, 5  ;;  %v23456_v18 = vld [vmem:[%s23720_s9 + $0x1ac] sm:$0xf] }
 0x4b3   : > { %21754 = vmatprep.mubr.msk.bf16.mxu0 %vm1936_vm4, %v29851_v10  ;;  %v7673_v10 = vshll.u32 %v23454_v33, 16  ;;  %v7680_v2 = vrot.slane %v7678_v42, 4  ;;  %v7693_v33 = vrot.slane %v7691_v3, 4  ;;  %v7701_v58 = vshrl.u32 %v23456_v18, 16 }
 0x4b4   : > { %v28201_v17 = vpop.f32.mrb[0].mxu1  ;;  %v7707_v16 = vshll.u32 %v23457_v13, 16  ;;  %v7711_v49 = vshrl.u32 %v23457_v13, 16  ;;  %v29856_v60 = vcombine.low %v27860_v9, %v27864_v22  ;;  %v7651_v20 = vrot.slane %v7650_v4, 4  ;;  %v23458_v22 = vld [vmem:[%s23720_s9 + $0x1b4] sm:$0x1] }
 0x4b5   : > { %29852 = vst [vmem:[#allocation24_spill] sm:$0xff] %v28201_v17  ;;  %v28216_v7 = vpop.f32.mrb[1].mxu1  ;;  %v7683_v17 = vrot.slane %v7681_v6, 5  ;;  %v28246_v42 = vsel %vm24244_vm8, %v15329_v5, %v15330_v51  ;;  %v7675_v6 = vrot.slane %v7673_v10, 5  ;;  %v15332_v11 = vrot.slane %v15330_v51, 4 }
 0x4b6   : > { %29853 = vst [vmem:[#allocation6_spill] sm:$0xff] %v28216_v7  ;;  %v28223_v35 = vpop.f32.mrb[2].mxu1  ;;  %v7661_v13 = vrot.slane %v7660_v61, 4  ;;  %v7671_v3 = vrot.slane %v7670_v44, 4  ;;  %v15335_v9 = vrot.slane %v15333_v21, 4  ;;  %v29858_v4 = vsel %vm23738_vm5, %v28146_v43, %v28112_v59 }
 0x4b7   : > { %29854 = vst [vmem:[#allocation19_spill] sm:$0xff] %v28223_v35  ;;  %v28233_v7 = vpop.f32.mrb[3].mxu1  ;;  %v7697_v35 = vshll.u32 %v23456_v18, 16  ;;  %v29857_v18 = vcombine.low %v27889_v46, %v27893_v52  ;;  %v29859_v51 = vsel %vm23738_vm5, %v28119_v0, %v28082_v55  ;;  %v28266_v46 = vcombine.low %v7622_v53, %v7632_v41  ;;  %v23092_v55 = vld [vmem:[%s23720_s9 + $0x24c] sm:$0xff]  }
 0x4b8   : > { %29855 = vst [vmem:[#allocation20_spill] sm:$0xff] %v28233_v7  ;;  %v28264_v5 = vcombine.low %v29859_v51, %v29858_v4  ;;  %v7684_v52 = vor.u32 %v7683_v17, %v7680_v2  ;;  %v7694_v10 = vor.u32 %v7693_v33, %v28235_v30  ;;  %v7703_v44 = vrot.slane %v7701_v58, 4  ;;  %v23462_v51 = vld [vmem:[%s23720_s9 + $0x1c4] sm:$0xf]  ;;  %v23095_v4 = vld [vmem:[%s23720_s9 + $0x26c] sm:$0xff]  }
 0x4b9   : > { %21169 = vmatmul.mubr.msk.bf16.gmra.mrb[108].mxu1 %vm1936_vm4, %v23090_v25  ;;  %v15336_v25 = vrot.slane %v23458_v22, 5  ;;  %v28271_v61 = vrot.slane %v7697_v35, 5  ;;  %v28273_v59 = vrot.slane %v7707_v16, 5  ;;  %v7713_v43 = vrot.slane %v7711_v49, 4  ;;  %v23093_v35 = vld [vmem:[%s23720_s9 + $0x258] sm:$0xff]  }
 0x4ba   : > { %21755 = vmatmul.mubr.msk.bf16.gmra.mrb[44].mxu0 %vm1936_vm4, %v29856_v60  ;;  %21172 = vmatprep.mubr.msk.bf16.mxu1 %vm1936_vm4, %v23091_v1  ;;  %v7646_v17 = vsel %vm23738_vm5, %v28219_v54, %v28182_v14  ;;  %v7656_v58 = vsel %vm23738_vm5, %v7651_v20, %v28190_v23  ;;  %v7666_v2 = vsel %vm23738_vm5, %v7661_v13, %v28198_v24  ;;  %v19264_v54 = vld [vmem:[%s23720_s9 + $0x1b8] sm:$0xe]  ;;  %v7685_v60 = vrot.slane %v7684_v52, 4  ;;  %v23460_v13 = vld [vmem:[%s23720_s9 + $0x1b4] sm:$0x1] }
 0x4bb   : > { %21758 = vmatprep.mubr.msk.bf16.mxu0 %vm1936_vm4, %v29857_v18  ;;  %v7676_v33 = vsel %vm23738_vm5, %v7671_v3, %v7675_v6  ;;  %v28299_v14 = vsel %vm24244_vm8, %v15332_v11, %v15333_v21  ;;  %v28303_v23 = vsel %vm24244_vm8, %v15335_v9, %v15336_v25  ;;  %v18321_v16 = vld [vmem:[%s23720_s9 + $0x1b8] sm:$0xf]  ;;  %v7695_v20 = vrot.slane %v7694_v10, 4  ;;  %v23459_v18 = vld [vmem:[%s23720_s9 + $0x1bc] sm:$0xf] }
 0x4bc   : > { %v28269_v1 = vpop.f32.mrb[4].mxu1  ;;  %v15340_v24 = vrot.slane %v23459_v18, 5  ;;  %v7717_v22 = vshll.u32 %v23460_v13, 16  ;;  %v28311_v6 = vcombine.low %v7646_v17, %v7656_v58  ;;  %v23461_v21 = vld [vmem:[%s23720_s9 + $0x1c0] sm:$0xf]  ;;  %v7704_v3 = vor.u32 %v7703_v44, %v28271_v61 }
 0x4bd   : > { %29860 = vst [vmem:[#allocation23_spill] sm:$0xff] %v28269_v1  ;;  %v28275_v62 = vpop.f32.mrb[5].mxu1  ;;  %v15343_v11 = vrot.slane %v23461_v21, 5  ;;  %v7714_v9 = vor.u32 %v7713_v43, %v28273_v59  ;;  %v29864_v25 = vcombine.low %v27897_v32, %v27901_v28  ;;  %v15346_v52 = vrot.slane %v23462_v51, 5  ;;  %v23463_v28 = vld [vmem:[%s23720_s9 + $0x1bc] sm:$0xf] }
 0x4be   : > { %29861 = vst [vmem:[#allocation21_spill] sm:$0xff] %v28275_v62  ;;  %v28289_v41 = vpop.f32.mrb[6].mxu1  ;;  %v7722_v10 = vshrl.u32 %v18321_v16, 16  ;;  %v7725_v17 = vshll.u32 %v18321_v16, 16  ;;  %v29865_v44 = vcombine.low %v27918_v34, %v27927_v29  ;;  %v28329_v43 = vcombine.low %v7666_v2, %v7676_v33  ;;  %v23464_v13 = vld [vmem:[%s23720_s9 + $0x1c8] sm:$0x1] }
 0x4bf   : > { %29862 = vst [vmem:[#allocation22_spill] sm:$0xff] %v28289_v41  ;;  %v28307_v49 = vpop.f32.mrb[7].mxu1  ;;  %v19296_v32 = vrot.slane %v19264_v54, 9  ;;  %v7735_v58 = vshrl.u32 %v23463_v28, 16  ;;  %v7690_v16 = vsel %vm23738_vm5, %v7685_v60, %v28235_v30  ;;  %v15342_v34 = vrot.slane %v15340_v24, 4  ;;  %v23094_v30 = vld [vmem:[%s23720_s9 + $0x260] sm:$0xff]  }
 0x4c0   : > { %29863 = vst [vmem:[#allocation7_spill] sm:$0xff] %v28307_v49  ;;  %v7719_v29 = vrot.slane %v7717_v22, 5  ;;  %v7705_v2 = vrot.slane %v7704_v3, 4  ;;  %v7715_v33 = vrot.slane %v7714_v9, 4  ;;  %v15345_v54 = vrot.slane %v15343_v11, 4 }
 0x4c1   : > { %21173 = vmatmul.mubr.msk.bf16.gmra.mrb[112].mxu1 %vm1936_vm4, %v23092_v55  ;;  %v7731_v55 = vshll.u32 %v23463_v28, 16  ;;  %v15349_v21 = vrot.slane %v23464_v13, 5  ;;  %v15348_v60 = vrot.slane %v15346_v52, 4  ;;  %v7727_v28 = vrot.slane %v7725_v17, 5  ;;  %v23466_v53 = vld [vmem:[%s23720_s9 + $0x1d0] sm:$0xf] }
 0x4c2   : > { %21759 = vmatmul.mubr.msk.bf16.gmra.mrb[48].mxu0 %vm1936_vm4, %v29864_v25  ;;  %21176 = vmatprep.mubr.msk.bf16.mxu1 %vm1936_vm4, %v23093_v35  ;;  %v7700_v35 = vsel %vm23738_vm5, %v7695_v20, %v28271_v61  ;;  %v19265_v25 = vld [vmem:[%s23720_s9 + $0x1cc] sm:$0xe]  ;;  %v23465_v61 = vld [vmem:[%s23720_s9 + $0x1c0] sm:$0xf]  ;;  %v7737_v9 = vrot.slane %v7735_v58, 4  ;;  %v15353_v0 = vrot.slane %v23466_v53, 5  ;;  %v7710_v53 = vsel %vm23738_vm5, %v7705_v2, %v28273_v59 }
 0x4c3   : > { %21762 = vmatprep.mubr.msk.bf16.mxu0 %vm1936_vm4, %v29865_v44  ;;  %v7724_v44 = vrot.slane %v7722_v10, 4  ;;  %v7741_v20 = vshll.u32 %v23465_v61, 16  ;;  %v28349_v3 = vrot.slane %v7731_v55, 5  ;;  %v7745_v13 = vshrl.u32 %v23465_v61, 16  ;;  %v23467_v17 = vld [vmem:[%s23720_s9 + $0x1c4] sm:$0xf] }
 0x4c4   : > { %v28338_v18 = vpop.f32.mrb[8].mxu1  ;;  %v28360_v10 = vsel %vm24244_vm8, %v15342_v34, %v15343_v11  ;;  %v7755_v49 = vshrl.u32 %v23467_v17, 16  ;;  %v28363_v55 = vcombine.low %v7690_v16, %v7700_v35  ;;  %v7720_v58 = vsel %vm23738_vm5, %v7715_v33, %v7719_v29  ;;  %v23468_v29 = vld [vmem:[%s23720_s9 + $0x1d4] sm:$0xf] }
 0x4c5   : > { %29866 = vst [vmem:[#allocation8_spill] sm:$0xff] %v28338_v18  ;;  %v28342_v51 = vpop.f32.mrb[9].mxu1  ;;  %29871 = vst [vmem:[#allocation28_spill] sm:$0xff] %v28360_v10  ;;  %v29874_v11 = vcombine.low %v27931_v36, %v27935_v45  ;;  %v28382_v16 = vsel %vm24244_vm8, %v15348_v60, %v15349_v21  ;;  %v7728_v59 = vor.u32 %v7727_v28, %v7724_v44  ;;  %v28384_v35 = vrot.slane %v7741_v20, 5  ;;  %v23470_v44 = vld [vmem:[%s23720_s9 + $0x1d0] sm:$0xf] }
 0x4c6   : > { %29867 = vst [vmem:[#allocation5_spill] sm:$0xff] %v28342_v51  ;;  %v28346_v22 = vpop.f32.mrb[10].mxu1  ;;  %v28356_v51 = vsel %vm24244_vm8, %v19296_v32, %v15340_v24  ;;  %29872 = vst [vmem:[#allocation29_spill] sm:$0xff] %v28363_v55  ;;  %v28372_v24 = vsel %vm24244_vm8, %v15345_v54, %v15346_v52  ;;  %v18326_v32 = vld [vmem:[%s23720_s9 + $0x1cc] sm:$0xf]  ;;  %v19297_v34 = vrot.slane %v19265_v25, 9  ;;  %v29876_v52 = vcombine.low %v27939_v19, %v27944_v31 }
 0x4c7   : > { %29868 = vst [vmem:[#allocation25_spill] sm:$0xff] %v28346_v22  ;;  %v28352_v18 = vpop.f32.mrb[11].mxu1  ;;  %29870 = vst [vmem:[#allocation27_spill] sm:$0xff] %v28356_v51  ;;  %v7751_v22 = vshll.u32 %v23467_v17, 16  ;;  %v7738_v36 = vor.u32 %v7737_v9, %v28349_v3  ;;  %v15355_v45 = vrot.slane %v15353_v0, 4  ;;  %v15356_v2 = vrot.slane %v23468_v29, 5 }
 0x4c8   : > { %29869 = vst [vmem:[#allocation26_spill] sm:$0xff] %v28352_v18  ;;  %29873 = vst [vmem:[#allocation30_spill] sm:$0xff] %v28372_v24  ;;  %v7747_v33 = vrot.slane %v7745_v13, 4  ;;  %v7757_v21 = vrot.slane %v7755_v49, 4  ;;  %v7769_v25 = vshll.u32 %v18326_v32, 16  ;;  %v7775_v28 = vshll.u32 %v23470_v44, 16 }
 0x4c9   : > { %21177 = vmatmul.mubr.msk.bf16.gmra.mrb[116].mxu1 %vm1936_vm4, %v23094_v30  ;;  %29875 = vst [vmem:[#allocation31_spill] sm:$0xff] %v28382_v16  ;;  %v28393_v54 = vrot.slane %v7751_v22, 5  ;;  %v7766_v30 = vshrl.u32 %v18326_v32, 16  ;;  %v23469_v31 = vld [vmem:[%s23720_s9 + $0x1d8] sm:$0xf]  ;;  %v7779_v61 = vshrl.u32 %v23470_v44, 16  ;;  %v28404_v22 = vcombine.low %v7710_v53, %v7720_v58 }
 0x4ca   : > { %21763 = vmatmul.mubr.msk.bf16.gmra.mrb[52].mxu0 %vm1936_vm4, %v29874_v11  ;;  %21180 = vmatprep.mubr.msk.bf16.mxu1 %vm1936_vm4, %v23095_v4  ;;  %v15359_v4 = vrot.slane %v23469_v31, 5  ;;  %v23096_v9 = vld [vmem:[%s23720_s9 + $0x274] sm:$0xff]   ;;  %v7729_v13 = vrot.slane %v7728_v59, 4  ;;  %v28410_v17 = vsel %vm24244_vm8, %v19297_v34, %v15353_v0  ;;  %v23097_v11 = vld [vmem:[%s23720_s9 + $0x280] sm:$0xff]   ;;  %v28417_v29 = vsel %vm24244_vm8, %v15355_v45, %v15356_v2  ;;  %v23471_v53 = vld [vmem:[%s23720_s9 + $0x1c8] sm:$0x1] }
 0x4cb   : > { %21766 = vmatprep.mubr.msk.bf16.mxu0 %vm1936_vm4, %v29876_v52  ;;  %29879 = vst [vmem:[#allocation34_spill] sm:$0xff] %v28404_v22  ;;  %29880 = vst [vmem:[#allocation35_spill] sm:$0xff] %v28410_v17  ;;  %v7739_v52 = vrot.slane %v7738_v36, 4  ;;  %v7761_v58 = vshll.u32 %v23471_v53, 16  ;;  %v15358_v31 = vrot.slane %v15356_v2, 4  ;;  %v7748_v59 = vor.u32 %v7747_v33, %v28384_v35  ;;  %v29910_v55 = vld [vmem:[#allocation18_spill] sm:$0xff] }
 0x4cc   : > { %v28395_v60 = vpop.f32.mrb[12].mxu1  ;;  %29882 = vst [vmem:[#allocation37_spill] sm:$0xff] %v28417_v29  ;;  %v7758_v0 = vor.u32 %v7757_v21, %v28393_v54  ;;  %v7768_v34 = vrot.slane %v7766_v30, 4  ;;  %v7771_v49 = vrot.slane %v7769_v25, 5  ;;  %v15361_v19 = vrot.slane %v15359_v4, 4 }
 0x4cd   : > { %29877 = vst [vmem:[#allocation32_spill] sm:$0xff] %v28395_v60  ;;  %v28401_v20 = vpop.f32.mrb[13].mxu1  ;;  %v23472_v36 = vld [vmem:[%s23720_s9 + $0x1dc] sm:$0x1]  ;;  %v7781_v45 = vrot.slane %v7779_v61, 4  ;;  %v29884_v2 = vcombine.low %v27948_v8, %v27952_v63  ;;  %v7734_v8 = vsel %vm23738_vm5, %v7729_v13, %v28349_v3  ;;  %v7744_v63 = vsel %vm23738_vm5, %v7739_v52, %v28384_v35 }
 0x4ce   : > { %29878 = vst [vmem:[#allocation33_spill] sm:$0xff] %v28401_v20  ;;  %v28412_v32 = vpop.f32.mrb[14].mxu1  ;;  %v28425_v20 = vrot.slane %v7775_v28, 5  ;;  %v23473_v53 = vld [vmem:[%s23720_s9 + $0x1d4] sm:$0xf]  ;;  %v29885_v28 = vld [vmem:[#allocation10_spill] sm:$0xff] }
 0x4cf   : > { %29881 = vst [vmem:[#allocation36_spill] sm:$0xff] %v28412_v32  ;;  %v28420_v44 = vpop.f32.mrb[15].mxu1  ;;  %v15362_v32 = vrot.slane %v23472_v36, 5  ;;  %v19266_v33 = vld [vmem:[%s23720_s9 + $0x1e0] sm:$0xe]  ;;  %v7789_v21 = vshrl.u32 %v23473_v53, 16  ;;  %v29886_v61 = vcombine.low %v27985_v15, %v29885_v28  ;;  %v28456_v15 = vsel %vm24244_vm8, %v15358_v31, %v15359_v4 }
 0x4d0   : > { %29883 = vst [vmem:[#allocation38_spill] sm:$0xff] %v28420_v44  ;;  %v7785_v44 = vshll.u32 %v23473_v53, 16  ;;  %v23474_v30 = vld [vmem:[%s23720_s9 + $0x1d8] sm:$0xf]  ;;  %v28448_v36 = vrot.slane %v7761_v58, 5  ;;  %29887 = vst [vmem:[#allocation10_spill] sm:$0xff] %v28456_v15  ;;  %v7772_v53 = vor.u32 %v7771_v49, %v7768_v34  ;;  %v7782_v52 = vor.u32 %v7781_v45, %v28425_v20 }
 0x4d1   : > { %21181 = vmatmul.mubr.msk.bf16.gmra.mrb[120].mxu1 %vm1936_vm4, %v23096_v9  ;;  %v7795_v25 = vshll.u32 %v23474_v30, 16  ;;  %v7799_v60 = vshrl.u32 %v23474_v30, 16  ;;  %v18331_v3 = vld [vmem:[%s23720_s9 + $0x1e0] sm:$0xf]  ;;  %v28463_v35 = vsel %vm24244_vm8, %v15361_v19, %v15362_v32  ;;  %v19298_v58 = vrot.slane %v19266_v33, 9  ;;  %v23098_v28 = vld [vmem:[%s23720_s9 + $0x288] sm:$0xff]  }
 0x4d2   : > { %21767 = vmatmul.mubr.msk.bf16.gmra.mrb[56].mxu0 %vm1936_vm4, %v29884_v2  ;;  %21184 = vmatprep.mubr.msk.bf16.mxu1 %vm1936_vm4, %v23097_v11  ;;  %v28450_v11 = vrot.slane %v7748_v59, 4  ;;  %v28452_v2 = vrot.slane %v7758_v0, 4  ;;  %29889 = vst [vmem:[#allocation40_spill] sm:$0xff] %v28463_v35  ;;  %v23475_v59 = vld [vmem:[%s23720_s9 + $0x1e4] sm:$0xf]  ;;  %v7791_v4 = vrot.slane %v7789_v21, 4  ;;  %v28476_v9 = vcombine.low %v7734_v8, %v7744_v63 }
 0x4d3   : > { %21770 = vmatprep.mubr.msk.bf16.mxu0 %vm1936_vm4, %v29886_v61  ;;  %v15366_v30 = vrot.slane %v23475_v59, 5  ;;  %v28470_v61 = vrot.slane %v7785_v44, 5  ;;  %v28472_v49 = vrot.slane %v7795_v25, 5  ;;  %v7801_v31 = vrot.slane %v7799_v60, 4  ;;  %v23476_v19 = vld [vmem:[%s23720_s9 + $0x1e8] sm:$0xf] }
 0x4d4   : > { %v28459_v13 = vpop.f32.mrb[16].mxu1  ;;  %29892 = vst [vmem:[#allocation43_spill] sm:$0xff] %v28476_v9  ;;  %v15369_v32 = vrot.slane %v23476_v19, 5  ;;  %v7810_v45 = vshrl.u32 %v18331_v3, 16  ;;  %v7813_v33 = vshll.u32 %v18331_v3, 16  ;;  %v28491_v25 = vrot.slane %v7772_v53, 4 }
 0x4d5   : > { %29888 = vst [vmem:[#allocation39_spill] sm:$0xff] %v28459_v13  ;;  %v28467_v0 = vpop.f32.mrb[17].mxu1  ;;  %v28493_v8 = vrot.slane %v7782_v52, 4  ;;  %v28497_v63 = vsel %vm24244_vm8, %v19298_v58, %v15366_v30  ;;  %v15368_v3 = vrot.slane %v15366_v30, 4  ;;  %v23477_v19 = vld [vmem:[%s23720_s9 + $0x1dc] sm:$0x1]  ;;  %v29894_v60 = vcombine.low %v27993_v47, %v27997_v48 }
 0x4d6   : > { %29890 = vst [vmem:[#allocation41_spill] sm:$0xff] %v28467_v0  ;;  %v28474_v34 = vpop.f32.mrb[18].mxu1  ;;  %v7805_v44 = vshll.u32 %v23477_v19, 16  ;;  %v7792_v53 = vor.u32 %v7791_v4, %v28470_v61  ;;  %v7802_v52 = vor.u32 %v7801_v31, %v28472_v49  ;;  %v23478_v21 = vld [vmem:[%s23720_s9 + $0x1e4] sm:$0xf]  ;;  %v29901_v15 = vld [vmem:[#allocation9_spill] sm:$0xff] }
 0x4d7   : > { %29891 = vst [vmem:[#allocation42_spill] sm:$0xff] %v28474_v34  ;;  %v28479_v59 = vpop.f32.mrb[19].mxu1  ;;  %v7823_v58 = vshrl.u32 %v23478_v21, 16  ;;  %v29895_v30 = vld [vmem:[#allocation11_spill] sm:$0xff]  ;;  %v23479_v47 = vld [vmem:[%s23720_s9 + $0x1ec] sm:$0xf] }
 0x4d8   : > { %29893 = vst [vmem:[#allocation44_spill] sm:$0xff] %v28479_v59  ;;  %v7819_v59 = vshll.u32 %v23478_v21, 16  ;;  %v29896_v19 = vcombine.low %v28013_v40, %v29895_v30  ;;  %v15372_v48 = vrot.slane %v23479_v47, 5  ;;  %v7815_v34 = vrot.slane %v7813_v33, 5  ;;  %v23480_v4 = vld [vmem:[%s23720_s9 + $0x1e8] sm:$0xf] }
 0x4d9   : > { %21185 = vmatmul.mubr.msk.bf16.gmra.mrb[124].mxu1 %vm1936_vm4, %v23098_v28  ;;  %v15371_v28 = vrot.slane %v15369_v32, 4  ;;  %v7829_v0 = vshll.u32 %v23480_v4, 16  ;;  %v7833_v31 = vshrl.u32 %v23480_v4, 16  ;;  %v23481_v13 = vld [vmem:[%s23720_s9 + $0x1ec] sm:$0xf]  ;;  %v28531_v33 = vrot.slane %v7805_v44, 5 }
 0x4da   : > { %21771 = vmatmul.mubr.msk.bf16.gmra.mrb[60].mxu0 %vm1936_vm4, %v29894_v60  ;;  %21254 = vmatprep.mubr.msk.bf16.mxu1 %vm1936_vm4, %v28063_v57  ;;  %v7812_v60 = vrot.slane %v7810_v45, 4  ;;  %v7839_v18 = vshll.u32 %v23481_v13, 16  ;;  %v7843_v21 = vshrl.u32 %v23481_v13, 16  ;;  %v28529_v45 = vsel %vm24244_vm8, %v15368_v3, %v15369_v32  ;;  %v18336_v13 = vld [vmem:[%s23720_s9 + $0x1f4] sm:$0xf] }
 0x4db   : > { %21774 = vmatprep.mubr.msk.bf16.mxu0 %vm1936_vm4, %v29896_v19  ;;  %v28536_v19 = vrot.slane %v7792_v53, 4  ;;  %v28538_v47 = vrot.slane %v7802_v52, 4  ;;  %v28540_v4 = vrot.slane %v7819_v59, 5  ;;  %v7825_v40 = vrot.slane %v7823_v58, 4  ;;  %v23482_v44 = vld [vmem:[%s23720_s9 + $0x1f0] sm:$0x1] }
 0x4dc   : > { %v28517_v41 = vpop.f32.mrb[20].mxu1  ;;  %v28546_v57 = vsel %vm24244_vm8, %v15371_v28, %v15372_v48  ;;  %v15374_v32 = vrot.slane %v15372_v48, 4  ;;  %v15375_v3 = vrot.slane %v23482_v44, 5  ;;  %v7816_v62 = vor.u32 %v7815_v34, %v7812_v60  ;;  %v19267_v1 = vld [vmem:[%s23720_s9 + $0x1f4] sm:$0xe] }
 0x4dd   : > { %29897 = vst [vmem:[#allocation11_spill] sm:$0xff] %v28517_v41  ;;  %v28534_v30 = vpop.f32.mrb[21].mxu1  ;;  %v28552_v52 = vrot.slane %v7829_v0, 5  ;;  %v7835_v59 = vrot.slane %v7833_v31, 4  ;;  %v7845_v58 = vrot.slane %v7843_v21, 4  ;;  %v7854_v7 = vshrl.u32 %v18336_v13, 16 }
 0x4de   : > { %29898 = vst [vmem:[#allocation45_spill] sm:$0xff] %v28534_v30  ;;  %v28542_v41 = vpop.f32.mrb[22].mxu1  ;;  %v28554_v30 = vrot.slane %v7839_v18, 5  ;;  %v23483_v35 = vld [vmem:[%s23720_s9 + $0x1f8] sm:$0xf]  ;;  %v29902_v34 = vcombine.low %v28055_v56, %v28059_v39  ;;  %v29903_v56 = vld [vmem:[#allocation12_spill] sm:$0xff]  ;;  %v28581_v21 = vsel %vm24244_vm8, %v15374_v32, %v15375_v3 }
 0x4df   : > { %29899 = vst [vmem:[#allocation46_spill] sm:$0xff] %v28542_v41  ;;  %v28550_v53 = vpop.f32.mrb[23].mxu1  ;;  %v7857_v41 = vshll.u32 %v18336_v13, 16  ;;  %v7863_v28 = vshll.u32 %v23483_v35, 16  ;;  %v7867_v48 = vshrl.u32 %v23483_v35, 16  ;;  %v7826_v35 = vor.u32 %v7825_v40, %v28540_v4  ;;  %v29904_v39 = vld [vmem:[#allocation13_spill] sm:$0xff] }
 0x4e0   : > { %29900 = vst [vmem:[#allocation47_spill] sm:$0xff] %v28550_v53  ;;  %v23484_v60 = vld [vmem:[%s23720_s9 + $0x1f8] sm:$0xf]  ;;  %v29905_v31 = vcombine.low %v29903_v56, %v29904_v39  ;;  %v19299_v13 = vrot.slane %v19267_v1, 9  ;;  %v23485_v44 = vld [vmem:[%s23720_s9 + $0x1fc] sm:$0xf] }
 0x4e1   : > { %21255 = vmatmul.mubr.msk.bf16.vlgmr.msra.gmra.mrb[64].mxu1 %vm1936_vm4, %v29901_v15  ;;  %v15379_v15 = vrot.slane %v23484_v60, 5  ;;  %v23486_v18 = vld [vmem:[%s23720_s9 + $0x1f0] sm:$0x1]  ;;  %v28585_v0 = vrot.slane %v7816_v62, 4  ;;  %v7836_v60 = vor.u32 %v7835_v59, %v28552_v52  ;;  %v23487_v53 = vld [vmem:[%s23720_s9 + $0x200] sm:$0xf] }
 0x4e2   : > { %21775 = vmatmul.mubr.msk.bf16.gmra.mrb[64].mxu0 %vm1936_vm4, %v29902_v34  ;;  %21258 = vmatprep.mubr.msk.bf16.mxu1 %vm1936_vm4, %v28128_v38  ;;  %v15382_v34 = vrot.slane %v23485_v44, 5  ;;  %v7849_v40 = vshll.u32 %v23486_v18, 16  ;;  %v7846_v38 = vor.u32 %v7845_v58, %v28554_v30  ;;  %v15385_v56 = vrot.slane %v23487_v53, 5  ;;  %v23488_v29 = vld [vmem:[%s23720_s9 + $0x1fc] sm:$0xf] }
 0x4e3   : > { %21778 = vmatprep.mubr.msk.bf16.mxu0 %vm1936_vm4, %v29905_v31  ;;  %v7856_v31 = vrot.slane %v7854_v7, 4  ;;  %v7859_v32 = vrot.slane %v7857_v41, 5  ;;  %v28592_v3 = vrot.slane %v7863_v28, 5  ;;  %v7869_v1 = vrot.slane %v7867_v48, 4  ;;  %v23490_v24 = vld [vmem:[%s23720_s9 + $0x204] sm:$0x1] }
 0x4e4   : > { %v28590_v39 = vpop.f32.mrb[24].mxu1  ;;  %v7827_v18 = vrot.slane %v7826_v35, 4  ;;  %v15381_v62 = vrot.slane %v15379_v15, 4  ;;  %v7873_v17 = vshll.u32 %v23488_v29, 16  ;;  %v7877_v59 = vshrl.u32 %v23488_v29, 16 }
 0x4e5   : > { %29906 = vst [vmem:[#allocation9_spill] sm:$0xff] %v28590_v39  ;;  %v28594_v44 = vpop.f32.mrb[25].mxu1  ;;  %v7851_v53 = vrot.slane %v7849_v40, 5  ;;  %v15384_v9 = vrot.slane %v15382_v34, 4  ;;  %v23489_v39 = vld [vmem:[%s23720_s9 + $0x200] sm:$0xf]  ;;  %v28605_v22 = vsel %vm24244_vm8, %v19299_v13, %v15379_v15  ;;  %v7860_v29 = vor.u32 %v7859_v32, %v7856_v31 }
 0x4e6   : > { %29907 = vst [vmem:[#allocation12_spill] sm:$0xff] %v28594_v44  ;;  %v28597_v58 = vpop.f32.mrb[26].mxu1  ;;  %v7883_v7 = vshll.u32 %v23489_v39, 16  ;;  %v7887_v41 = vshrl.u32 %v23489_v39, 16  ;;  %v7837_v48 = vrot.slane %v7836_v60, 4  ;;  %v7847_v16 = vrot.slane %v7846_v38, 4 }
 0x4e7   : > { %29908 = vst [vmem:[#allocation13_spill] sm:$0xff] %v28597_v58  ;;  %v28600_v28 = vpop.f32.mrb[27].mxu1  ;;  %v15387_v44 = vrot.slane %v15385_v56, 4  ;;  %v15388_v35 = vrot.slane %v23490_v24, 5  ;;  %v7870_v58 = vor.u32 %v7869_v1, %v28592_v3  ;;  %v19268_v10 = vld [vmem:[%s23720_s9 + $0x208] sm:$0xe]  ;;  %v7822_v24 = vsel %vm23738_vm5, %v28585_v0, %v28540_v4 }
 0x4e8   : > { %29909 = vst [vmem:[#allocation48_spill] sm:$0xff] %v28600_v28  ;;  %v23491_v40 = vld [vmem:[%s23720_s9 + $0x20c] sm:$0xf]  ;;  %v29911_v39 = vld [vmem:[#allocation14_spill] sm:$0xff]  ;;  %v29912_v28 = vld [vmem:[#allocation15_spill] sm:$0xff]  ;;  %v28622_v15 = vsel %vm24244_vm8, %v15381_v62, %v15382_v34  ;;  %v7875_v13 = vrot.slane %v7873_v17, 5  ;;  %v7832_v1 = vsel %vm23738_vm5, %v7827_v18, %v28552_v52  ;;  %v28635_v4 = vsel %vm24244_vm8, %v15384_v9, %v15385_v56 }
 0x4e9   : > { %v15392_v51 = vrot.slane %v23491_v40, 5  ;;  %21259 = vmatmul.mubr.msk.bf16.gmra.mrb[68].mxu1 %vm1936_vm4, %v29910_v55  ;;  %v29913_v60 = vcombine.low %v29911_v39, %v29912_v28  ;;  %v7879_v38 = vrot.slane %v7877_v59, 4  ;;  %v29914_v55 = vld [vmem:[#allocation16_spill] sm:$0xff]  ;;  %v29915_v31 = vld [vmem:[#allocation17_spill] sm:$0xff]  ;;  %v28637_v0 = vrot.slane %v7883_v7, 5 }
 0x4ea   : > { %21262 = vmatprep.mubr.msk.bf16.mxu1 %vm1936_vm4, %v28264_v5  ;;  %v29916_v32 = vcombine.low %v29914_v55, %v29915_v31  ;;  %v7889_v17 = vrot.slane %v7887_v41, 4  ;;  %v7842_v5 = vsel %vm23738_vm5, %v7837_v48, %v28554_v30  ;;  %v7852_v34 = vsel %vm23738_vm5, %v7847_v16, %v7851_v53  ;;  %v23492_v7 = vld [vmem:[%s23720_s9 + $0x210] sm:$0xf] }
 0x4eb   : > { %21779 = vmatmul.mubr.msk.bf16.gmra.mrb[68].mxu0 %vm1936_vm4, %v29913_v60  ;;  %v28646_v62 = vsel %vm24244_vm8, %v15387_v44, %v15388_v35  ;;  %v19300_v59 = vrot.slane %v19268_v10, 9  ;;  %v7861_v9 = vrot.slane %v7860_v29, 4  ;;  %v7871_v56 = vrot.slane %v7870_v58, 4  ;;  %v18341_v29 = vld [vmem:[%s23720_s9 + $0x208] sm:$0xf] }
 0x4ec   : > { %21782 = vmatprep.mubr.msk.bf16.mxu0 %vm1936_vm4, %v29916_v32  ;;  %v28648_v52 = vpop.f32.mrb[28].mxu1  ;;  %v15394_v18 = vrot.slane %v15392_v51, 4  ;;  %v15395_v41 = vrot.slane %v23492_v7, 5  ;;  %v29917_v16 = vsel %vm23738_vm5, %v28452_v2, %v28448_v36  ;;  %v29918_v10 = vsel %vm23738_vm5, %v28450_v11, %v28393_v54 }
 0x4ed   : > { %v28651_v28 = vpop.f32.mrb[29].mxu1  ;;  %v28663_v30 = vcombine.low %v29918_v10, %v29917_v16  ;;  %v29919_v44 = vsel %vm23738_vm5, %v28493_v8, %v28470_v61  ;;  %v29920_v58 = vsel %vm23738_vm5, %v28491_v25, %v28425_v20  ;;  %v7880_v2 = vor.u32 %v7879_v38, %v7875_v13  ;;  %v23493_v8 = vld [vmem:[%s23720_s9 + $0x204] sm:$0x1]  ;;  %v23498_v10 = vld [vmem:[%s23720_s9 + $0x218] sm:$0x1] }
 0x4ee   : > { %v28675_v53 = vcombine.low %v29920_v58, %v29919_v44  ;;  %v28679_v48 = vpop.f32.mrb[30].mxu1  ;;  %v29921_v54 = vsel %vm23738_vm5, %v28538_v47, %v28531_v33  ;;  %v29922_v11 = vsel %vm23738_vm5, %v28536_v19, %v28472_v49  ;;  %v7890_v25 = vor.u32 %v7889_v17, %v28637_v0  ;;  %v23506_v49 = vld [vmem:[%s23720_s9 + $0x22c] sm:$0x1] }
 0x4ef   : > { %v28691_v61 = vcombine.low %v29922_v11, %v29921_v54  ;;  %v7893_v35 = vshll.u32 %v23493_v8, 16  ;;  %v28698_v40 = vpop.f32.mrb[31].mxu1  ;;  %v28700_v39 = vcombine.low %v7822_v24, %v7832_v1  ;;  %v28704_v47 = vcombine.low %v7842_v5, %v7852_v34  ;;  %v23496_v34 = vld [vmem:[%s23720_s9 + $0x210] sm:$0xf]  ;;  %v18346_v8 = vld [vmem:[%s23720_s9 + $0x21c] sm:$0xf] }
 0x4f0   : > { %29923 = vst [vmem:[#allocation18_spill] sm:$0xff] %v28698_v40  ;;  %v7866_v19 = vsel %vm23738_vm5, %v7861_v9, %v28592_v3  ;;  %v7876_v60 = vsel %vm23738_vm5, %v7871_v56, %v7875_v13  ;;  %v28715_v24 = vsel %vm24244_vm8, %v19300_v59, %v15392_v51  ;;  %v28719_v38 = vsel %vm24244_vm8, %v15394_v18, %v15395_v41  ;;  %v23494_v13 = vld [vmem:[%s23720_s9 + $0x214] sm:$0xf] }
 0x4f1   : > { %21263 = vmatmul.mubr.msk.bf16.gmra.mrb[72].mxu1 %vm1936_vm4, %v28266_v46  ;;  %v29924_v55 = vcombine.low %v28180_v50, %v28213_v12  ;;  %v7881_v3 = vrot.slane %v7880_v2, 4  ;;  %v15398_v31 = vrot.slane %v23494_v13, 5  ;;  %v7898_v32 = vshrl.u32 %v18341_v29, 16  ;;  %v23495_v50 = vld [vmem:[%s23720_s9 + $0x20c] sm:$0xf] }
 0x4f2   : > { %v7901_v51 = vshll.u32 %v18341_v29, 16  ;;  %21266 = vmatprep.mubr.msk.bf16.mxu1 %vm1936_vm4, %v28311_v6  ;;  %v29925_v1 = vcombine.low %v28228_v27, %v28246_v42  ;;  %v7891_v46 = vrot.slane %v7890_v25, 4  ;;  %v7895_v17 = vrot.slane %v7893_v35, 5  ;;  %v23497_v56 = vld [vmem:[%s23720_s9 + $0x214] sm:$0xf] }
 0x4f3   : > { %21783 = vmatmul.mubr.msk.bf16.gmra.mrb[72].mxu0 %vm1936_vm4, %v29924_v55  ;;  %v7907_v12 = vshll.u32 %v23495_v50, 16  ;;  %v7911_v5 = vshrl.u32 %v23495_v50, 16  ;;  %v7917_v59 = vshll.u32 %v23496_v34, 16  ;;  %v7921_v9 = vshrl.u32 %v23496_v34, 16  ;;  %v23499_v55 = vld [vmem:[%s23720_s9 + $0x220] sm:$0xf] }
 0x4f4   : > { %21786 = vmatprep.mubr.msk.bf16.mxu0 %vm1936_vm4, %v29925_v1  ;;  %v7927_v18 = vshll.u32 %v23497_v56, 16  ;;  %v7931_v7 = vshrl.u32 %v23497_v56, 16  ;;  %v28737_v16 = vpop.f32.mrb[32].mxu1  ;;  %v28739_v6 = vcombine.low %v7866_v19, %v7876_v60  ;;  %v15397_v42 = vrot.slane %v15395_v41, 4  ;;  %v19269_v60 = vld [vmem:[%s23720_s9 + $0x21c] sm:$0xe] }
 0x4f5   : > { %29926 = vst [vmem:[#allocation14_spill] sm:$0xff] %v28737_v16  ;;  %v15401_v44 = vrot.slane %v23498_v10, 5  ;;  %v28744_v58 = vpop.f32.mrb[33].mxu1  ;;  %v7886_v2 = vsel %vm23738_vm5, %v7881_v3, %v28637_v0  ;;  %v15400_v54 = vrot.slane %v15398_v31, 4  ;;  %v7900_v11 = vrot.slane %v7898_v32, 4 }
 0x4f6   : > { %29927 = vst [vmem:[#allocation15_spill] sm:$0xff] %v28744_v58  ;;  %v7903_v25 = vrot.slane %v7901_v51, 5  ;;  %v28750_v35 = vpop.f32.mrb[34].mxu1  ;;  %v7896_v29 = vsel %vm23738_vm5, %v7891_v46, %v7895_v17  ;;  %v28754_v19 = vrot.slane %v7907_v12, 5  ;;  %v7913_v41 = vrot.slane %v7911_v5, 4 }
 0x4f7   : > { %29928 = vst [vmem:[#allocation16_spill] sm:$0xff] %v28750_v35  ;;  %v15405_v13 = vrot.slane %v23499_v55, 5  ;;  %v28758_v1 = vpop.f32.mrb[35].mxu1  ;;  %v28760_v50 = vrot.slane %v7917_v59, 5  ;;  %v7923_v0 = vrot.slane %v7921_v9, 4  ;;  %v28762_v3 = vrot.slane %v7927_v18, 5 }
 0x4f8   : > { %29929 = vst [vmem:[#allocation17_spill] sm:$0xff] %v28758_v1  ;;  %v7933_v32 = vrot.slane %v7931_v7, 4  ;;  %v7942_v51 = vshrl.u32 %v18346_v8, 16  ;;  %v7945_v34 = vshll.u32 %v18346_v8, 16  ;;  %v23500_v56 = vld [vmem:[%s23720_s9 + $0x220] sm:$0xf]  ;;  %v29930_v17 = vcombine.low %v28299_v14, %v28303_v23 }
 0x4f9   : > { %v7951_v10 = vshll.u32 %v23500_v56, 16  ;;  %v7955_v46 = vshrl.u32 %v23500_v56, 16  ;;  %21267 = vmatmul.mubr.msk.bf16.gmra.mrb[76].mxu1 %vm1936_vm4, %v28329_v43  ;;  %v28773_v12 = vsel %vm24244_vm8, %v15397_v42, %v15398_v31  ;;  %v28777_v5 = vsel %vm24244_vm8, %v15400_v54, %v15401_v44  ;;  %v29931_v18 = vld [vmem:[#allocation29_spill] sm:$0xff]  ;;  %v29932_v43 = vld [vmem:[#allocation27_spill] sm:$0xff]  ;;  %v29933_v7 = vld [vmem:[#allocation28_spill] sm:$0xff] }
 0x4fa   : > { %v7904_v59 = vor.u32 %v7903_v25, %v7900_v11  ;;  %v19301_v9 = vrot.slane %v19269_v60, 9  ;;  %21270 = vmatprep.mubr.msk.bf16.mxu1 %vm1936_vm4, %v29931_v18  ;;  %v29934_v8 = vcombine.low %v29932_v43, %v29933_v7  ;;  %v28785_v14 = vcombine.low %v7886_v2, %v7896_v29  ;;  %v23501_v42 = vld [vmem:[%s23720_s9 + $0x224] sm:$0xf]  ;;  %v23502_v11 = vld [vmem:[%s23720_s9 + $0x218] sm:$0x1] }
 0x4fb   : > { %21787 = vmatmul.mubr.msk.bf16.gmra.mrb[76].mxu0 %vm1936_vm4, %v29930_v17  ;;  %v7914_v23 = vor.u32 %v7913_v41, %v28754_v19  ;;  %v15407_v31 = vrot.slane %v15405_v13, 4  ;;  %v15408_v55 = vrot.slane %v23501_v42, 5  ;;  %v7924_v44 = vor.u32 %v7923_v0, %v28760_v50  ;;  %v23503_v60 = vld [vmem:[%s23720_s9 + $0x228] sm:$0xf]  ;;  %v23517_v35 = vld [vmem:[%s23720_s9 + $0x24c] sm:$0xf] }
 0x4fc   : > { %21790 = vmatprep.mubr.msk.bf16.mxu0 %vm1936_vm4, %v29934_v8  ;;  %v7934_v54 = vor.u32 %v7933_v32, %v28762_v3  ;;  %v7937_v25 = vshll.u32 %v23502_v11, 16  ;;  %v15411_v56 = vrot.slane %v23503_v60, 5  ;;  %v28793_v17 = vpop.f32.mrb[36].mxu1  ;;  %v7944_v18 = vrot.slane %v7942_v51, 4  ;;  %v23504_v32 = vld [vmem:[%s23720_s9 + $0x224] sm:$0xf] }
 0x4fd   : > { %29935 = vst [vmem:[#allocation29_spill] sm:$0xff] %v28793_v17  ;;  %v7947_v2 = vrot.slane %v7945_v34, 5  ;;  %v28795_v29 = vrot.slane %v7951_v10, 5  ;;  %v7957_v41 = vrot.slane %v7955_v46, 4  ;;  %v28797_v43 = vpop.f32.mrb[37].mxu1  ;;  %v7905_v7 = vrot.slane %v7904_v59, 4 }
 0x4fe   : > { %29936 = vst [vmem:[#allocation27_spill] sm:$0xff] %v28797_v43  ;;  %v28801_v0 = vsel %vm24244_vm8, %v19301_v9, %v15405_v13  ;;  %v7961_v8 = vshll.u32 %v23504_v32, 16  ;;  %v7965_v42 = vshrl.u32 %v23504_v32, 16  ;;  %v28804_v11 = vpop.f32.mrb[38].mxu1  ;;  %v7915_v60 = vrot.slane %v7914_v23, 4  ;;  %v29941_v43 = vld [vmem:[#allocation31_spill] sm:$0xff] }
 0x4ff   : > { %29937 = vst [vmem:[#allocation28_spill] sm:$0xff] %v28804_v11  ;;  %v28808_v51 = vsel %vm24244_vm8, %v15407_v31, %v15408_v55  ;;  %v23505_v34 = vld [vmem:[%s23720_s9 + $0x228] sm:$0xf]  ;;  %v28811_v59 = vpop.f32.mrb[39].mxu1  ;;  %v7925_v27 = vrot.slane %v7924_v44, 4  ;;  %v15410_v13 = vrot.slane %v15408_v55, 4  ;;  %v7948_v36 = vor.u32 %v7947_v2, %v7944_v18 }
 0x500   : > { %v7971_v10 = vshll.u32 %v23505_v34, 16  ;;  %v7975_v46 = vshrl.u32 %v23505_v34, 16  ;;  %29938 = vst [vmem:[#allocation49_spill] sm:$0xff] %v28811_v59  ;;  %v15413_v9 = vrot.slane %v15411_v56, 4  ;;  %v15414_v33 = vrot.slane %v23506_v49, 5  ;;  %v29939_v11 = vld [vmem:[#allocation34_spill] sm:$0xff] }
 0x501   : > { %v7935_v32 = vrot.slane %v7934_v54, 4  ;;  %v7939_v20 = vrot.slane %v7937_v25, 5  ;;  %v7958_v23 = vor.u32 %v7957_v41, %v28795_v29  ;;  %21271 = vmatmul.mubr.msk.bf16.gmra.mrb[80].mxu1 %vm1936_vm4, %v29939_v11  ;;  %v29940_v31 = vld [vmem:[#allocation30_spill] sm:$0xff]  ;;  %v7963_v55 = vrot.slane %v7961_v8, 5  ;;  %v19270_v34 = vld [vmem:[%s23720_s9 + $0x230] sm:$0xe] }
 0x502   : > { %v29942_v17 = vcombine.low %v29940_v31, %v29941_v43  ;;  %v23507_v49 = vld [vmem:[%s23720_s9 + $0x234] sm:$0xf]  ;;  %v7967_v25 = vrot.slane %v7965_v42, 4  ;;  %v29943_v18 = vld [vmem:[#allocation43_spill] sm:$0xff]  ;;  %v7920_v43 = vsel %vm23738_vm5, %v7915_v60, %v28760_v50  ;;  %v28837_v8 = vrot.slane %v7971_v10, 5 }
 0x503   : > { %v15418_v54 = vrot.slane %v23507_v49, 5  ;;  %21274 = vmatprep.mubr.msk.bf16.mxu1 %vm1936_vm4, %v29943_v18  ;;  %v29944_v2 = vld [vmem:[#allocation35_spill] sm:$0xff]  ;;  %v29945_v41 = vld [vmem:[#allocation37_spill] sm:$0xff]  ;;  %v7977_v42 = vrot.slane %v7975_v46, 4  ;;  %v7930_v49 = vsel %vm23738_vm5, %v7925_v27, %v28762_v3  ;;  %v28846_v18 = vsel %vm24244_vm8, %v15410_v13, %v15411_v56  ;;  %v23508_v3 = vld [vmem:[%s23720_s9 + $0x238] sm:$0xf] }
 0x504   : > { %21791 = vmatmul.mubr.msk.bf16.gmra.mrb[80].mxu0 %vm1936_vm4, %v29942_v17  ;;  %v29946_v11 = vcombine.low %v29944_v2, %v29945_v41  ;;  %v7910_v17 = vsel %vm23738_vm5, %v7905_v7, %v28754_v19  ;;  %v28850_v19 = vsel %vm24244_vm8, %v15413_v9, %v15414_v33  ;;  %v18351_v50 = vld [vmem:[%s23720_s9 + $0x230] sm:$0xf]  ;;  %v28853_v7 = vpop.f32.mrb[40].mxu1  ;;  %v7940_v60 = vsel %vm23738_vm5, %v7935_v32, %v7939_v20  ;;  %v23516_v1 = vld [vmem:[%s23720_s9 + $0x248] sm:$0xf] }
 0x505   : > { %29947 = vst [vmem:[#allocation34_spill] sm:$0xff] %v28853_v7  ;;  %v7949_v10 = vrot.slane %v7948_v36, 4  ;;  %v7959_v46 = vrot.slane %v7958_v23, 4  ;;  %v19302_v2 = vrot.slane %v19270_v34, 9  ;;  %v28857_v41 = vpop.f32.mrb[41].mxu1  ;;  %v15420_v27 = vrot.slane %v15418_v54, 4 }
 0x506   : > { %21794 = vmatprep.mubr.msk.bf16.mxu0 %vm1936_vm4, %v29946_v11  ;;  %29948 = vst [vmem:[#allocation30_spill] sm:$0xff] %v28857_v41  ;;  %v15421_v56 = vrot.slane %v23508_v3, 5  ;;  %v7968_v13 = vor.u32 %v7967_v25, %v7963_v55  ;;  %v23509_v11 = vld [vmem:[%s23720_s9 + $0x22c] sm:$0x1]  ;;  %v28861_v9 = vpop.f32.mrb[42].mxu1  ;;  %v28863_v31 = vcombine.low %v7910_v17, %v7920_v43  ;;  %v7978_v44 = vor.u32 %v7977_v42, %v28837_v8 }
 0x507   : > { %v7981_v33 = vshll.u32 %v23509_v11, 16  ;;  %29949 = vst [vmem:[#allocation31_spill] sm:$0xff] %v28861_v9  ;;  %v7986_v20 = vshrl.u32 %v18351_v50, 16  ;;  %v7989_v36 = vshll.u32 %v18351_v50, 16  ;;  %v28866_v32 = vpop.f32.mrb[43].mxu1  ;;  %v28868_v23 = vcombine.low %v7930_v49, %v7940_v60  ;;  %v29951_v50 = vld [vmem:[#allocation10_spill] sm:$0xff] }
 0x508   : > { %29950 = vst [vmem:[#allocation43_spill] sm:$0xff] %v28866_v32  ;;  %v23510_v3 = vld [vmem:[%s23720_s9 + $0x234] sm:$0xf]  ;;  %v7954_v11 = vsel %vm23738_vm5, %v7949_v10, %v28795_v29  ;;  %v7964_v17 = vsel %vm23738_vm5, %v7959_v46, %v7963_v55  ;;  %v28880_v43 = vsel %vm24244_vm8, %v19302_v2, %v15418_v54  ;;  %v23511_v42 = vld [vmem:[%s23720_s9 + $0x23c] sm:$0xf]  ;;  %v29952_v60 = vld [vmem:[#allocation40_spill] sm:$0xff]  ;;  %v28891_v29 = vsel %vm24244_vm8, %v15420_v27, %v15421_v56 }
 0x509   : > { %v7995_v25 = vshll.u32 %v23510_v3, 16  ;;  %v7999_v41 = vshrl.u32 %v23510_v3, 16  ;;  %v15424_v49 = vrot.slane %v23511_v42, 5  ;;  %21275 = vmatmul.mubr.msk.bf16.gmra.mrb[84].mxu1 %vm1936_vm4, %v28663_v30  ;;  %v29953_v3 = vcombine.low %v29951_v50, %v29952_v60  ;;  %v23512_v50 = vld [vmem:[%s23720_s9 + $0x238] sm:$0xf] }
 0x50a   : > { %v7969_v55 = vrot.slane %v7968_v13, 4  ;;  %v7983_v54 = vrot.slane %v7981_v33, 5  ;;  %v15423_v10 = vrot.slane %v15421_v56, 4  ;;  %21278 = vmatprep.mubr.msk.bf16.mxu1 %vm1936_vm4, %v28675_v53  ;;  %v29954_v46 = vcombine.low %v28497_v63, %v28529_v45  ;;  %v18356_v27 = vld [vmem:[%s23720_s9 + $0x244] sm:$0xf] }
 0x50b   : > { %v7979_v30 = vrot.slane %v7978_v44, 4  ;;  %v7988_v2 = vrot.slane %v7986_v20, 4  ;;  %v7991_v42 = vrot.slane %v7989_v36, 5  ;;  %v8005_v60 = vshll.u32 %v23512_v50, 16  ;;  %v23513_v33 = vld [vmem:[%s23720_s9 + $0x240] sm:$0x1] }
 0x50c   : > { %21795 = vmatmul.mubr.msk.bf16.gmra.mrb[84].mxu0 %vm1936_vm4, %v29953_v3  ;;  %v28901_v13 = vcombine.low %v7954_v11, %v7964_v17  ;;  %v15427_v56 = vrot.slane %v23513_v33, 5  ;;  %v28904_v3 = vrot.slane %v7995_v25, 5  ;;  %v8001_v53 = vrot.slane %v7999_v41, 4  ;;  %v19271_v34 = vld [vmem:[%s23720_s9 + $0x244] sm:$0xe]  ;;  %v28907_v32 = vpop.f32.mrb[44].mxu1 }
 0x50d   : > { %21798 = vmatprep.mubr.msk.bf16.mxu0 %vm1936_vm4, %v29954_v46  ;;  %29955 = vst [vmem:[#allocation35_spill] sm:$0xff] %v28907_v32  ;;  %v15426_v63 = vrot.slane %v15424_v49, 4  ;;  %v8009_v45 = vshrl.u32 %v23512_v50, 16  ;;  %v23514_v46 = vld [vmem:[%s23720_s9 + $0x23c] sm:$0xf]  ;;  %v28910_v36 = vpop.f32.mrb[45].mxu1  ;;  %v7974_v41 = vsel %vm23738_vm5, %v7969_v55, %v28837_v8  ;;  %v7984_v50 = vsel %vm23738_vm5, %v7979_v30, %v7983_v54 }
 0x50e   : > { %v8015_v44 = vshll.u32 %v23514_v46, 16  ;;  %v8019_v20 = vshrl.u32 %v23514_v46, 16  ;;  %29956 = vst [vmem:[#allocation37_spill] sm:$0xff] %v28910_v36  ;;  %v8030_v9 = vshrl.u32 %v18356_v27, 16  ;;  %v8033_v11 = vshll.u32 %v18356_v27, 16  ;;  %v28913_v25 = vpop.f32.mrb[46].mxu1 }
 0x50f   : > { %v23515_v17 = vld [vmem:[%s23720_s9 + $0x248] sm:$0xf]  ;;  %29957 = vst [vmem:[#allocation10_spill] sm:$0xff] %v28913_v25  ;;  %v7992_v32 = vor.u32 %v7991_v42, %v7988_v2  ;;  %v28920_v46 = vrot.slane %v8005_v60, 5  ;;  %v28922_v36 = vpop.f32.mrb[47].mxu1  ;;  %v8002_v27 = vor.u32 %v8001_v53, %v28904_v3  ;;  %v19303_v59 = vrot.slane %v19271_v34, 9 }
 0x510   : > { %v8039_v7 = vshll.u32 %v23515_v17, 16  ;;  %v8043_v33 = vshrl.u32 %v23515_v17, 16  ;;  %v15431_v17 = vrot.slane %v23516_v1, 5  ;;  %v15434_v58 = vrot.slane %v23517_v35, 5  ;;  %v23518_v8 = vld [vmem:[%s23720_s9 + $0x250] sm:$0xf] }
 0x511   : > { %v8011_v25 = vrot.slane %v8009_v45, 4  ;;  %v28927_v16 = vrot.slane %v8015_v44, 5  ;;  %v8021_v40 = vrot.slane %v8019_v20, 4  ;;  %v15437_v55 = vrot.slane %v23518_v8, 5  ;;  %21279 = vmatmul.mubr.msk.bf16.gmra.mrb[88].mxu1 %vm1936_vm4, %v28691_v61 }
 0x512   : > { %v29958_v54 = vcombine.low %v28546_v57, %v28581_v21  ;;  %v8032_v34 = vrot.slane %v8030_v9, 4  ;;  %v8035_v30 = vrot.slane %v8033_v11, 5  ;;  %v28936_v1 = vrot.slane %v8039_v7, 5  ;;  %21282 = vmatprep.mubr.msk.bf16.mxu1 %vm1936_vm4, %v28700_v39  ;;  %v23519_v39 = vld [vmem:[%s23720_s9 + $0x240] sm:$0x1] }
 0x513   : > { %v8045_v35 = vrot.slane %v8043_v33, 4  ;;  %v29959_v2 = vcombine.low %v28605_v22, %v28622_v15  ;;  %v28948_v57 = vsel %vm24244_vm8, %v15423_v10, %v15424_v49  ;;  %v28952_v21 = vsel %vm24244_vm8, %v15426_v63, %v15427_v56 }
 0x514   : > { %21799 = vmatmul.mubr.msk.bf16.gmra.mrb[88].mxu0 %vm1936_vm4, %v29958_v54  ;;  %v7993_v7 = vrot.slane %v7992_v32, 4  ;;  %v28954_v9 = vcombine.low %v7974_v41, %v7984_v50  ;;  %v28958_v22 = vsel %vm24244_vm8, %v19303_v59, %v15431_v17  ;;  %v15433_v15 = vrot.slane %v15431_v17, 4  ;;  %v28961_v60 = vpop.f32.mrb[48].mxu1  ;;  %v23520_v59 = vld [vmem:[%s23720_s9 + $0x254] sm:$0x1] }
 0x515   : > { %21802 = vmatprep.mubr.msk.bf16.mxu0 %vm1936_vm4, %v29959_v2  ;;  %v8025_v42 = vshll.u32 %v23519_v39, 16  ;;  %v8003_v49 = vrot.slane %v8002_v27, 4  ;;  %v8012_v10 = vor.u32 %v8011_v25, %v28920_v46  ;;  %v8022_v56 = vor.u32 %v8021_v40, %v28927_v16  ;;  %v28965_v53 = vpop.f32.mrb[49].mxu1  ;;  %v23521_v41 = vld [vmem:[%s23720_s9 + $0x24c] sm:$0xf] }
 0x516   : > { %v15436_v32 = vrot.slane %v15434_v58, 4  ;;  %v15439_v63 = vrot.slane %v15437_v55, 4  ;;  %v15440_v45 = vrot.slane %v23520_v59, 5  ;;  %v8036_v44 = vor.u32 %v8035_v30, %v8032_v34  ;;  %v28969_v11 = vpop.f32.mrb[50].mxu1  ;;  %v19272_v50 = vld [vmem:[%s23720_s9 + $0x258] sm:$0xe] }
 0x517   : > { %v8046_v20 = vor.u32 %v8045_v35, %v28936_v1  ;;  %v7998_v33 = vsel %vm23738_vm5, %v7993_v7, %v28904_v3  ;;  %v8049_v25 = vshll.u32 %v23521_v41, 16  ;;  %v23522_v40 = vld [vmem:[%s23720_s9 + $0x25c] sm:$0xf]  ;;  %v8053_v17 = vshrl.u32 %v23521_v41, 16  ;;  %v28977_v8 = vpop.f32.mrb[51].mxu1 }
 0x518   : > { %v15444_v27 = vrot.slane %v23522_v40, 5  ;;  %v28981_v54 = vsel %vm24244_vm8, %v15433_v15, %v15434_v58  ;;  %v8027_v34 = vrot.slane %v8025_v42, 5  ;;  %v23523_v30 = vld [vmem:[%s23720_s9 + $0x250] sm:$0xf]  ;;  %v8008_v3 = vsel %vm23738_vm5, %v8003_v49, %v28920_v46 }
 0x519   : > { %v8059_v35 = vshll.u32 %v23523_v30, 16  ;;  %v8063_v2 = vshrl.u32 %v23523_v30, 16  ;;  %v8013_v7 = vrot.slane %v8012_v10, 4  ;;  %v8023_v39 = vrot.slane %v8022_v56, 4  ;;  %21283 = vmatmul.mubr.msk.bf16.gmra.mrb[92].mxu1 %vm1936_vm4, %v28704_v47 }
 0x51a   : > { %v28989_v59 = vsel %vm24244_vm8, %v15436_v32, %v15437_v55  ;;  %v29960_v58 = vcombine.low %v28635_v4, %v28646_v62  ;;  %v28999_v15 = vsel %vm24244_vm8, %v15439_v63, %v15440_v45  ;;  %v8037_v46 = vrot.slane %v8036_v44, 4  ;;  %21286 = vmatprep.mubr.msk.bf16.mxu1 %vm1936_vm4, %v28739_v6  ;;  %v23524_v62 = vld [vmem:[%s23720_s9 + $0x260] sm:$0xf]  ;;  %v18361_v44 = vld [vmem:[%s23720_s9 + $0x258] sm:$0xf] }
 0x51b   : > { %v8047_v42 = vrot.slane %v8046_v20, 4  ;;  %v19304_v49 = vrot.slane %v19272_v50, 9  ;;  %v29961_v55 = vcombine.low %v28715_v24, %v28719_v38  ;;  %v8051_v47 = vrot.slane %v8049_v25, 5 }
 0x51c   : > { %21803 = vmatmul.mubr.msk.bf16.gmra.mrb[92].mxu0 %vm1936_vm4, %v29960_v58  ;;  %v15446_v4 = vrot.slane %v15444_v27, 4  ;;  %v15447_v10 = vrot.slane %v23524_v62, 5  ;;  %v8055_v56 = vrot.slane %v8053_v17, 4  ;;  %v29012_v45 = vrot.slane %v8059_v35, 5  ;;  %v29015_v20 = vpop.f32.mrb[52].mxu1 }
 0x51d   : > { %21806 = vmatprep.mubr.msk.bf16.mxu0 %vm1936_vm4, %v29961_v55  ;;  %v8065_v6 = vrot.slane %v8063_v2, 4  ;;  %v29017_v24 = vcombine.low %v7998_v33, %v8008_v3  ;;  %v8018_v38 = vsel %vm23738_vm5, %v8013_v7, %v28927_v16  ;;  %v8028_v41 = vsel %vm23738_vm5, %v8023_v39, %v8027_v34  ;;  %v29026_v50 = vpop.f32.mrb[53].mxu1  ;;  %v23525_v17 = vld [vmem:[%s23720_s9 + $0x254] sm:$0x1] }
 0x51e   : > { %v8042_v40 = vsel %vm23738_vm5, %v8037_v46, %v28936_v1  ;;  %v8052_v33 = vsel %vm23738_vm5, %v8047_v42, %v8051_v47  ;;  %v29035_v16 = vsel %vm24244_vm8, %v19304_v49, %v15444_v27  ;;  %v8069_v34 = vshll.u32 %v23525_v17, 16  ;;  %v29038_v30 = vpop.f32.mrb[54].mxu1  ;;  %v23526_v27 = vld [vmem:[%s23720_s9 + $0x25c] sm:$0xf]  ;;  %v23527_v49 = vld [vmem:[%s23720_s9 + $0x260] sm:$0xf] }
 0x51f   : > { %29962 = vst [vmem:[#allocation40_spill] sm:$0xff] %v29038_v30  ;;  %v29042_v35 = vsel %vm24244_vm8, %v15446_v4, %v15447_v10  ;;  %v8056_v2 = vor.u32 %v8055_v56, %v8051_v47  ;;  %v8074_v3 = vshrl.u32 %v18361_v44, 16  ;;  %v8077_v1 = vshll.u32 %v18361_v44, 16  ;;  %v29044_v7 = vpop.f32.mrb[55].mxu1  ;;  %v23528_v17 = vld [vmem:[%s23720_s9 + $0x264] sm:$0xf] }
 0x520   : > { %29963 = vst [vmem:[#allocation50_spill] sm:$0xff] %v29044_v7  ;;  %v29046_v39 = vcombine.low %v8018_v38, %v8028_v41  ;;  %v8066_v58 = vor.u32 %v8065_v6, %v29012_v45  ;;  %v8083_v46 = vshll.u32 %v23526_v27, 16  ;;  %v8087_v42 = vshrl.u32 %v23526_v27, 16  ;;  %v18366_v27 = vld [vmem:[%s23720_s9 + $0x26c] sm:$0xf] }
 0x521   : > { %v8093_v55 = vshll.u32 %v23527_v49, 16  ;;  %v8097_v62 = vshrl.u32 %v23527_v49, 16  ;;  %v8103_v4 = vshll.u32 %v23528_v17, 16  ;;  %v8107_v25 = vshrl.u32 %v23528_v17, 16  ;;  %21287 = vmatmul.mubr.msk.bf16.gmra.mrb[96].mxu1 %vm1936_vm4, %v28785_v14 }
 0x522   : > { %v29964_v47 = vcombine.low %v28773_v12, %v28777_v5  ;;  %v29058_v56 = vcombine.low %v8042_v40, %v8052_v33  ;;  %v29062_v44 = vrot.slane %v8069_v34, 5  ;;  %v15449_v38 = vrot.slane %v15447_v10, 4  ;;  %21290 = vmatprep.mubr.msk.bf16.mxu1 %vm1936_vm4, %v28863_v31  ;;  %v23529_v5 = vld [vmem:[%s23720_s9 + $0x264] sm:$0xf]  ;;  %v23530_v34 = vld [vmem:[%s23720_s9 + $0x268] sm:$0x1] }
 0x523   : > { %v29965_v14 = vcombine.low %v28801_v0, %v28808_v51  ;;  %v29070_v12 = vrot.slane %v8056_v2, 4  ;;  %v15450_v41 = vrot.slane %v23529_v5, 5  ;;  %v8076_v40 = vrot.slane %v8074_v3, 4  ;;  %v23531_v5 = vld [vmem:[%s23720_s9 + $0x270] sm:$0xf] }
 0x524   : > { %21807 = vmatmul.mubr.msk.bf16.gmra.mrb[96].mxu0 %vm1936_vm4, %v29964_v47  ;;  %v8079_v33 = vrot.slane %v8077_v1, 5  ;;  %v29074_v49 = vrot.slane %v8066_v58, 4  ;;  %v15453_v10 = vrot.slane %v23530_v34, 5  ;;  %v29077_v17 = vrot.slane %v8083_v46, 5  ;;  %v19273_v47 = vld [vmem:[%s23720_s9 + $0x26c] sm:$0xe] }
 0x525   : > { %21810 = vmatprep.mubr.msk.bf16.mxu0 %vm1936_vm4, %v29965_v14  ;;  %v8089_v31 = vrot.slane %v8087_v42, 4  ;;  %v29080_v6 = vpop.f32.mrb[56].mxu1  ;;  %v29082_v0 = vrot.slane %v8093_v55, 5  ;;  %v8099_v51 = vrot.slane %v8097_v62, 4  ;;  %v29084_v2 = vrot.slane %v8103_v4, 5 }
 0x526   : > { %29966 = vst [vmem:[#allocation51_spill] sm:$0xff] %v29080_v6  ;;  %v8109_v3 = vrot.slane %v8107_v25, 4  ;;  %v29086_v1 = vpop.f32.mrb[57].mxu1  ;;  %v8118_v58 = vshrl.u32 %v18366_v27, 16  ;;  %v8121_v14 = vshll.u32 %v18366_v27, 16  ;;  %v8127_v34 = vshll.u32 %v23531_v5, 16 }
 0x527   : > { %29967 = vst [vmem:[#allocation52_spill] sm:$0xff] %v29086_v1  ;;  %v8131_v46 = vshrl.u32 %v23531_v5, 16  ;;  %v29089_v42 = vpop.f32.mrb[58].mxu1  ;;  %v29093_v55 = vsel %vm24244_vm8, %v15449_v38, %v15450_v41  ;;  %v15452_v62 = vrot.slane %v15450_v41, 4  ;;  %v8080_v4 = vor.u32 %v8079_v33, %v8076_v40  ;;  %v23532_v5 = vld [vmem:[%s23720_s9 + $0x270] sm:$0xf] }
 0x528   : > { %29968 = vst [vmem:[#allocation53_spill] sm:$0xff] %v29089_v42  ;;  %v19305_v63 = vrot.slane %v19273_v47, 9  ;;  %v29095_v25 = vpop.f32.mrb[59].mxu1  ;;  %v8090_v32 = vor.u32 %v8089_v31, %v29077_v17  ;;  %v15457_v61 = vrot.slane %v23532_v5, 5  ;;  %v23533_v42 = vld [vmem:[%s23720_s9 + $0x274] sm:$0xf]  ;;  %v8100_v6 = vor.u32 %v8099_v51, %v29082_v0 }
 0x529   : > { %29969 = vst [vmem:[#allocation54_spill] sm:$0xff] %v29095_v25  ;;  %v15460_v1 = vrot.slane %v23533_v42, 5  ;;  %v8110_v38 = vor.u32 %v8109_v3, %v29084_v2  ;;  %v23534_v41 = vld [vmem:[%s23720_s9 + $0x268] sm:$0x1]  ;;  %v23535_v33 = vld [vmem:[%s23720_s9 + $0x278] sm:$0xf]  ;;  %21291 = vmatmul.mubr.msk.bf16.gmra.mrb[100].mxu1 %vm1936_vm4, %v28868_v23  ;;  %v29970_v27 = vcombine.low %v28846_v18, %v28850_v19  ;;  %v29971_v3 = vcombine.low %v28880_v43, %v28891_v29 }
 0x52a   : > { %v8113_v40 = vshll.u32 %v23534_v41, 16  ;;  %v15463_v47 = vrot.slane %v23535_v33, 5  ;;  %v8120_v31 = vrot.slane %v8118_v58, 4  ;;  %v8123_v5 = vrot.slane %v8121_v14, 5  ;;  %21294 = vmatprep.mubr.msk.bf16.mxu1 %vm1936_vm4, %v28901_v13  ;;  %v23536_v43 = vld [vmem:[%s23720_s9 + $0x274] sm:$0xf] }
 0x52b   : > { %v29114_v42 = vrot.slane %v8127_v34, 5  ;;  %v8133_v51 = vrot.slane %v8131_v46, 4  ;;  %v8072_v18 = vsel %vm23738_vm5, %v29074_v49, %v29062_v44  ;;  %v29128_v19 = vsel %vm24244_vm8, %v15452_v62, %v15453_v10  ;;  %v23537_v10 = vld [vmem:[%s23720_s9 + $0x27c] sm:$0x1]  ;;  %v23539_v25 = vld [vmem:[%s23720_s9 + $0x278] sm:$0xf] }
 0x52c   : > { %21811 = vmatmul.mubr.msk.bf16.gmra.mrb[100].mxu0 %vm1936_vm4, %v29970_v27  ;;  %v8081_v23 = vrot.slane %v8080_v4, 4  ;;  %v29132_v58 = vsel %vm24244_vm8, %v19305_v63, %v15457_v61  ;;  %v8091_v13 = vrot.slane %v8090_v32, 4  ;;  %v15459_v14 = vrot.slane %v15457_v61, 4  ;;  %v29135_v46 = vpop.f32.mrb[60].mxu1  ;;  %v19274_v61 = vld [vmem:[%s23720_s9 + $0x280] sm:$0xe] }
 0x52d   : > { %21814 = vmatprep.mubr.msk.bf16.mxu0 %vm1936_vm4, %v29971_v3  ;;  %v8137_v29 = vshll.u32 %v23536_v43, 16  ;;  %v8141_v34 = vshrl.u32 %v23536_v43, 16  ;;  %29972 = vst [vmem:[#allocation55_spill] sm:$0xff] %v29135_v46  ;;  %v8101_v44 = vrot.slane %v8100_v6, 4  ;;  %v15462_v49 = vrot.slane %v15460_v1, 4  ;;  %v29138_v4 = vpop.f32.mrb[61].mxu1 }
 0x52e   : > { %v15465_v27 = vrot.slane %v15463_v47, 4  ;;  %v15466_v62 = vrot.slane %v23537_v10, 5  ;;  %v8111_v41 = vrot.slane %v8110_v38, 4  ;;  %v8115_v63 = vrot.slane %v8113_v40, 5  ;;  %v29142_v3 = vpop.f32.mrb[62].mxu1 }
 0x52f   : > { %v8124_v33 = vor.u32 %v8123_v5, %v8120_v31  ;;  %v8134_v32 = vor.u32 %v8133_v51, %v29114_v42  ;;  %v8086_v43 = vsel %vm23738_vm5, %v8081_v23, %v29077_v17  ;;  %v23538_v46 = vld [vmem:[%s23720_s9 + $0x284] sm:$0xf]  ;;  %v8147_v7 = vshll.u32 %v23539_v25, 16  ;;  %v29149_v30 = vpop.f32.mrb[63].mxu1 }
 0x530   : > { %v15470_v6 = vrot.slane %v23538_v46, 5  ;;  %v8151_v10 = vshrl.u32 %v23539_v25, 16  ;;  %v8096_v38 = vsel %vm23738_vm5, %v8091_v13, %v29082_v0  ;;  %v29156_v40 = vsel %vm24244_vm8, %v15459_v14, %v15460_v1 }
 0x531   : > { %v8139_v31 = vrot.slane %v8137_v29, 5  ;;  %v8143_v5 = vrot.slane %v8141_v34, 4  ;;  %v8106_v17 = vsel %vm23738_vm5, %v8101_v44, %v29084_v2  ;;  %v29163_v25 = vsel %vm24244_vm8, %v15462_v49, %v15463_v47  ;;  %21295 = vmatmul.mubr.msk.bf16.gmra.mrb[104].mxu1 %vm1936_vm4, %v28954_v9  ;;  %v23540_v47 = vld [vmem:[%s23720_s9 + $0x27c] sm:$0x1]  ;;  %v23541_v34 = vld [vmem:[%s23720_s9 + $0x288] sm:$0xf] }
 0x532   : > { %v29167_v51 = vsel %vm24244_vm8, %v15465_v27, %v15466_v62  ;;  %v19306_v0 = vrot.slane %v19274_v61, 9  ;;  %v29973_v1 = vcombine.low %v28948_v57, %v28952_v21  ;;  %v8116_v2 = vsel %vm23738_vm5, %v8111_v41, %v8115_v63  ;;  %21298 = vmatprep.mubr.msk.bf16.mxu1 %vm1936_vm4, %v29017_v24  ;;  %v29976_v41 = vld [vmem:[#allocation24_spill] sm:$0xff] }
 0x533   : > { %v8125_v23 = vrot.slane %v8124_v33, 4  ;;  %v8135_v13 = vrot.slane %v8134_v32, 4  ;;  %v8157_v14 = vshll.u32 %v23540_v47, 16  ;;  %v29974_v29 = vcombine.low %v28958_v22, %v28981_v54  ;;  %v23542_v47 = vld [vmem:[%s23720_s9 + $0x28c] sm:$0xf] }
 0x534   : > { %21815 = vmatmul.mubr.msk.bf16.gmra.mrb[104].mxu0 %vm1936_vm4, %v29973_v1  ;;  %v15472_v9 = vrot.slane %v15470_v6, 4  ;;  %v15473_v57 = vrot.slane %v23541_v34, 5  ;;  %v29185_v21 = vrot.slane %v8147_v7, 5  ;;  %v8153_v46 = vrot.slane %v8151_v10, 4  ;;  %v29201_v7 = vld [vmem:[%s29649_s2] ss:$0 sm:$0xff] }
 0x535   : > { %21818 = vmatprep.mubr.msk.bf16.mxu0 %vm1936_vm4, %v29974_v29  ;;  %v29975_v44 = vsel %vm23738_vm5, %v29070_v12, %v29012_v45  ;;  %v19366_v24 = vcombine.low %v29093_v55, %v29128_v19  ;;  %v19367_v22 = vcombine.low %v29132_v58, %v29156_v40  ;;  %v8144_v54 = vor.u32 %v8143_v5, %v8139_v31  ;;  %v21712_v27 = vpop.f32.mrb[0].mxu0  ;;  %v18371_v10 = vld [vmem:[%s23720_s9 + $0x280] sm:$0xf]  ;;  %v29979_v34 = vld [vmem:[#allocation20_spill] sm:$0xff] }
 0x536   : > { %v29192_v49 = vcombine.low %v29975_v44, %v8072_v18  ;;  %v29203_v62 = vcombine.low %v8086_v43, %v8096_v38  ;;  %v29205_v45 = vcombine.low %v8106_v17, %v8116_v2  ;;  %v19368_v12 = vcombine.low %v29163_v25, %v29167_v51  ;;  %v15917_v33 = vpop.f32.mrb[1].mxu0  ;;  %v29977_v38 = vld [vmem:[#allocation6_spill] sm:$0xff]  ;;  %v29978_v2 = vld [vmem:[#allocation19_spill] sm:$0xff]  ;;  %v29986_v58 = vld [vmem:[#allocation8_spill] sm:$0xff] }
 0x537   : > { %v29211_v18 = vsel %vm24244_vm8, %v19306_v0, %v15470_v6  ;;  %v21840_v63 = vadd.f32 %v21712_v27, %v29976_v41  ;;  %v8130_v32 = vsel %vm23738_vm5, %v8125_v23, %v29114_v42  ;;  %v8140_v61 = vsel %vm23738_vm5, %v8135_v13, %v8139_v31  ;;  %v21713_v6 = vpop.f32.mrb[2].mxu0  ;;  %v23543_v41 = vld [vmem:[%s23720_s9 + $0x284] sm:$0xf]  ;;  %v23550_v51 = vld [vmem:[%s23720_s9 + $0x2a0] sm:$0xf] }
 0x538   : > { %v29219_v43 = vrot.slane %v8157_v14, 5  ;;  %v21841_v5 = vadd.f32 %v15917_v33, %v29977_v38  ;;  %v29226_v17 = vsel %vm24244_vm8, %v15472_v9, %v15473_v57  ;;  %v8154_v0 = vor.u32 %v8153_v46, %v29185_v21  ;;  %v15920_v23 = vpop.f32.mrb[3].mxu0 }
 0x539   : > { %v15475_v1 = vrot.slane %v15473_v57, 4  ;;  %v16565_v42 = vadd.f32 %v21840_v63, %v29201_v7  ;;  %v21842_v31 = vadd.f32 %v21713_v6, %v29978_v2  ;;  %v8145_v13 = vrot.slane %v8144_v54, 4  ;;  %21299 = vmatmul.mubr.msk.bf16.gmra.mrb[108].mxu1 %vm1936_vm4, %v29046_v39  ;;  %v23544_v39 = vld [vmem:[%s23720_s9 + $0x290] sm:$0x1] }
 0x53a   : > { %v15476_v14 = vrot.slane %v23542_v47, 5  ;;  %v16563_v29 = vadd.f32 %v21841_v5, %v29201_v7  ;;  %v21843_v44 = vadd.f32 %v15920_v23, %v29979_v34  ;;  %v8162_v27 = vshrl.u32 %v18371_v10, 16  ;;  %21302 = vmatprep.mubr.msk.bf16.mxu1 %vm1936_vm4, %v29058_v56  ;;  %v29982_v34 = vld [vmem:[#allocation23_spill] sm:$0xff] }
 0x53b   : > { %v8165_v9 = vshll.u32 %v18371_v10, 16  ;;  %v16566_v57 = vadd.f32 %v21842_v31, %v29201_v7  ;;  %v29980_v46 = vcombine.low %v28989_v59, %v28999_v15  ;;  %v29245_v54 = vcombine.low %v8130_v32, %v8140_v61 }
 0x53c   : > { %v8171_v63 = vshll.u32 %v23543_v41, 16  ;;  %v8175_v33 = vshrl.u32 %v23543_v41, 16  ;;  %v16564_v10 = vadd.f32 %v21843_v44, %v29201_v7  ;;  %v29981_v38 = vcombine.low %v29035_v16, %v29042_v35  ;;  %v29983_v41 = vld [vmem:[#allocation21_spill] sm:$0xff] }
 0x53d   : > { %21819 = vmatmul.mubr.msk.bf16.gmra.mrb[108].mxu0 %vm1936_vm4, %v29980_v46  ;;  %v19369_v59 = vcombine.low %v29211_v18, %v29226_v17  ;;  %v8155_v15 = vrot.slane %v8154_v0, 4  ;;  %v15479_v32 = vrot.slane %v23544_v39, 5  ;;  %v16693_v61 = vmax.f32 %v16565_v42, 0.0  ;;  %v21716_v16 = vpop.f32.mrb[4].mxu0 }
 0x53e   : > { %21822 = vmatprep.mubr.msk.bf16.mxu0 %vm1936_vm4, %v29981_v38  ;;  %v16694_v5 = vmax.f32 %v16566_v57, 0.0  ;;  %v8150_v6 = vsel %vm23738_vm5, %v8145_v13, %v29185_v21  ;;  %v15478_v2 = vrot.slane %v15476_v14, 4  ;;  %v16691_v56 = vmax.f32 %v16563_v29, 0.0  ;;  %v15933_v0 = vpop.f32.mrb[5].mxu0  ;;  %v23545_v29 = vld [vmem:[%s23720_s9 + $0x288] sm:$0xf] }
 0x53f   : > { %v16692_v31 = vmax.f32 %v16564_v10, 0.0  ;;  %v8164_v35 = vrot.slane %v8162_v27, 4  ;;  %v8167_v23 = vrot.slane %v8165_v9, 5  ;;  %v21844_v44 = vadd.f32 %v21716_v16, %v29982_v34  ;;  %v21717_v21 = vpop.f32.mrb[6].mxu0  ;;  %v23546_v16 = vld [vmem:[%s23720_s9 + $0x298] sm:$0xf] }
 0x540   : > { %v19708_v47 = vpack.c.bf16 %v16694_v5, %v16693_v61  ;;  %v29262_v46 = vrot.slane %v8171_v63, 5  ;;  %v8177_v42 = vrot.slane %v8175_v33, 4  ;;  %v21845_v38 = vadd.f32 %v15933_v0, %v29983_v41  ;;  %v29984_v63 = vld [vmem:[#allocation22_spill] sm:$0xff]  ;;  %v15936_v10 = vpop.f32.mrb[7].mxu0 }
 0x541   : > { %v19703_v57 = vpack.c.bf16 %v16692_v31, %v16691_v56  ;;  %v8160_v13 = vsel %vm23738_vm5, %v8155_v15, %v29219_v43  ;;  %v8181_v27 = vshll.u32 %v23545_v29, 16  ;;  %v16569_v9 = vadd.f32 %v21844_v44, %v29201_v7  ;;  %v29985_v15 = vld [vmem:[#allocation7_spill] sm:$0xff]  ;;  %v19275_v31 = vld [vmem:[%s23720_s9 + $0x294] sm:$0xe]  ;;  %21303 = vmatmul.mubr.msk.bf16.gmra.mrb[112].mxu1 %vm1936_vm4, %v29192_v49  ;;  %v23548_v44 = vld [vmem:[%s23720_s9 + $0x29c] sm:$0xf] }
 0x542   : > { %20020 = vst [vmem:[%s29270_s6 + $0x8] sm:$0xff] %v19708_v47   ;;  %v21846_v33 = vadd.f32 %v21717_v21, %v29984_v63  ;;  %v29277_v39 = vsel %vm24244_vm8, %v15475_v1, %v15476_v14  ;;  %v29281_v61 = vsel %vm24244_vm8, %v15478_v2, %v15479_v32  ;;  %v16567_v43 = vadd.f32 %v21845_v38, %v29201_v7 }
 0x543   : > { %19704 = vst [vmem:[%s29270_s6] sm:$0xff] %v19703_v57   ;;  %v21847_v5 = vadd.f32 %v15936_v10, %v29985_v15  ;;  %v8168_v56 = vor.u32 %v8167_v23, %v8164_v35  ;;  %v15483_v47 = vrot.slane %v23546_v16, 5  ;;  %v29295_v1 = vcombine.low %v8150_v6, %v8160_v13  ;;  %21306 = vmatprep.mubr.msk.bf16.mxu1 %vm1936_vm4, %v29203_v62  ;;  %v23547_v35 = vld [vmem:[%s23720_s9 + $0x28c] sm:$0xf] }
 0x544   : > { %v16570_v34 = vadd.f32 %v21846_v33, %v29201_v7  ;;  %v8178_v14 = vor.u32 %v8177_v42, %v29262_v46  ;;  %v8185_v32 = vshrl.u32 %v23545_v29, 16  ;;  %v8183_v49 = vrot.slane %v8181_v27, 5 }
 0x545   : > { %21823 = vmatmul.mubr.msk.bf16.gmra.mrb[112].mxu0 %vm1936_vm4, %v19366_v24  ;;  %v16568_v2 = vadd.f32 %v21847_v5, %v29201_v7  ;;  %v8191_v55 = vshll.u32 %v23547_v35, 16  ;;  %v8195_v19 = vshrl.u32 %v23547_v35, 16  ;;  %v16697_v24 = vmax.f32 %v16569_v9, 0.0  ;;  %v21720_v41 = vpop.f32.mrb[8].mxu0  ;;  %v29987_v9 = vld [vmem:[#allocation5_spill] sm:$0xff] }
 0x546   : > { %21826 = vmatprep.mubr.msk.bf16.mxu0 %vm1936_vm4, %v19367_v22  ;;  %v16698_v6 = vmax.f32 %v16570_v34, 0.0  ;;  %v19307_v23 = vrot.slane %v19275_v31, 9  ;;  %v15486_v0 = vrot.slane %v23548_v44, 5  ;;  %v16695_v42 = vmax.f32 %v16567_v43, 0.0  ;;  %v15949_v22 = vpop.f32.mrb[9].mxu0  ;;  %v29988_v5 = vld [vmem:[#allocation25_spill] sm:$0xff] }
 0x547   : > { %v16696_v57 = vmax.f32 %v16568_v2, 0.0  ;;  %v8169_v38 = vrot.slane %v8168_v56, 4  ;;  %v15485_v62 = vrot.slane %v15483_v47, 4  ;;  %v21848_v40 = vadd.f32 %v21720_v41, %v29986_v58  ;;  %v21721_v33 = vpop.f32.mrb[10].mxu0  ;;  %v23549_v34 = vld [vmem:[%s23720_s9 + $0x290] sm:$0x1] }
 0x548   : > { %v19718_v21 = vpack.c.bf16 %v16698_v6, %v16697_v24  ;;  %v8179_v13 = vrot.slane %v8178_v14, 4  ;;  %v8187_v29 = vrot.slane %v8185_v32, 4  ;;  %v21849_v63 = vadd.f32 %v15949_v22, %v29987_v9  ;;  %v15952_v31 = vpop.f32.mrb[11].mxu0  ;;  %v29989_v32 = vld [vmem:[#allocation26_spill] sm:$0xff]  ;;  %v29991_v22 = vld [vmem:[#allocation33_spill] sm:$0xff] }
 0x549   : > { %v19713_v27 = vpack.c.bf16 %v16696_v57, %v16695_v42  ;;  %v29309_v10 = vrot.slane %v8191_v55, 5  ;;  %v8197_v15 = vrot.slane %v8195_v19, 4  ;;  %v16573_v43 = vadd.f32 %v21848_v40, %v29201_v7  ;;  %21307 = vmatmul.mubr.msk.bf16.gmra.mrb[116].mxu1 %vm1936_vm4, %v29205_v45 }
 0x54a   : > { %20022 = vst [vmem:[%s29270_s6 + $0x18] sm:$0xff] %v19718_v21   ;;  %v21850_v56 = vadd.f32 %v21721_v33, %v29988_v5  ;;  %v15484_v16 = vsel %vm24244_vm8, %v19307_v23, %v15483_v47  ;;  %v8201_v2 = vshll.u32 %v23549_v34, 16  ;;  %v16571_v14 = vadd.f32 %v21849_v63, %v29201_v7  ;;  %21310 = vmatprep.mubr.msk.bf16.mxu1 %vm1936_vm4, %v29245_v54  ;;  %v23551_v21 = vld [vmem:[%s23720_s9 + $0x2a4] sm:$0x1]  ;;  %v29992_v63 = vld [vmem:[#allocation36_spill] sm:$0xff]  ;;  %v29993_v5 = vld [vmem:[#allocation38_spill] sm:$0xff] }
 0x54b   : > { %20021 = vst [vmem:[%s29270_s6 + $0x10] sm:$0xff] %v19713_v27   ;;  %v21851_v35 = vadd.f32 %v15952_v31, %v29989_v32  ;;  %v8174_v55 = vsel %vm23738_vm5, %v8169_v38, %v29262_v46  ;;  %v15487_v19 = vsel %vm24244_vm8, %v15485_v62, %v15486_v0  ;;  %v8184_v47 = vsel %vm23738_vm5, %v8179_v13, %v8183_v49  ;;  %s19699_s9 = sshll.u32 %s23662_s16, 13  ;;  %s29606_s16 = scalar_lea.sflag [#allocation3], %s161_s4 }
 0x54c   : > { %v16574_v24 = vadd.f32 %v21850_v56, %v29201_v7  ;;  %v8188_v6 = vor.u32 %v8187_v29, %v8183_v49  ;;  %v19370_v45 = vcombine.low %v29277_v39, %v29281_v61  ;;  %v8198_v25 = vor.u32 %v8197_v15, %v29309_v10  ;;  %s29598_s19 = scalar_lea.hbm %s29650_s3, %s19699_s9 }
 0x54d   : > { %21827 = vmatmul.mubr.msk.bf16.gmra.mrb[116].mxu0 %vm1936_vm4, %v19368_v12  ;;  %v16572_v23 = vadd.f32 %v21851_v35, %v29201_v7  ;;  %v15489_v12 = vrot.slane %v23550_v51, 5  ;;  %v16701_v46 = vmax.f32 %v16573_v43, 0.0  ;;  %v8203_v44 = vrot.slane %v8201_v2, 5  ;;  %v21724_v41 = vpop.f32.mrb[12].mxu0 }
 0x54e   : > { %21830 = vmatprep.mubr.msk.bf16.mxu0 %vm1936_vm4, %v19369_v59  ;;  %v16702_v49 = vmax.f32 %v16574_v24, 0.0  ;;  %v15488_v42 = vrot.slane %v15486_v0, 4  ;;  %v16699_v57 = vmax.f32 %v16571_v14, 0.0  ;;  %v18439_v38 = vcombine.low %v8174_v55, %v8184_v47  ;;  %v29990_v59 = vld [vmem:[#allocation32_spill] sm:$0xff]  ;;  %v15965_v39 = vpop.f32.mrb[13].mxu0  ;;  %v29994_v47 = vld [vmem:[#allocation39_spill] sm:$0xff] }
 0x54f   : > { %v16700_v54 = vmax.f32 %v16572_v23, 0.0  ;;  %v19371_v18 = vcombine.low %v15484_v16, %v15487_v19  ;;  %v21852_v62 = vadd.f32 %v21724_v41, %v29990_v59  ;;  %v8189_v61 = vrot.slane %v8188_v6, 4  ;;  %v21725_v29 = vpop.f32.mrb[14].mxu0 }
 0x550   : > { %v19728_v17 = vpack.c.bf16 %v16702_v49, %v16701_v46  ;;  %v15492_v58 = vrot.slane %v23551_v21, 5  ;;  %v21853_v13 = vadd.f32 %v15965_v39, %v29991_v22  ;;  %v8199_v27 = vrot.slane %v8198_v25, 4  ;;  %v15968_v15 = vpop.f32.mrb[15].mxu0  ;;  %v29996_v49 = vld [vmem:[#allocation42_spill] sm:$0xff] }
 0x551   : > { %v19723_v40 = vpack.c.bf16 %v16700_v54, %v16699_v57  ;;  %v15491_v0 = vrot.slane %v15489_v12, 4  ;;  %v16577_v9 = vadd.f32 %v21852_v62, %v29201_v7  ;;  %v21854_v33 = vadd.f32 %v21725_v29, %v29992_v63  ;;  %21311 = vmatmul.mubr.msk.bf16.gmra.mrb[120].mxu1 %vm1936_vm4, %v29295_v1  ;;  %v29997_v54 = vld [vmem:[#allocation44_spill] sm:$0xff]  ;;  %v29999_v29 = vld [vmem:[#allocation45_spill] sm:$0xff]  ;;  %v30000_v63 = vld [vmem:[#allocation46_spill] sm:$0xff] }
 0x552   : > { %20024 = vst [vmem:[%s29270_s6 + $0x28] sm:$0xff] %v19728_v17   ;;  %v16575_v43 = vadd.f32 %v21853_v13, %v29201_v7  ;;  %v21855_v56 = vadd.f32 %v15968_v15, %v29993_v5  ;;  %v8194_v16 = vsel %vm23738_vm5, %v8189_v61, %v29309_v10  ;;  %v15490_v34 = vsel %vm24244_vm8, %v15488_v42, %v15489_v12  ;;  %v29995_v12 = vld [vmem:[#allocation41_spill] sm:$0xff]  ;;  %v30001_v5 = vld [vmem:[#allocation47_spill] sm:$0xff] }
 0x553   : > { %20023 = vst [vmem:[%s29270_s6 + $0x20] sm:$0xff] %v19723_v40   ;;  %v16578_v31 = vadd.f32 %v21854_v33, %v29201_v7  ;;  %21314 = vmatprep.mubr.msk.bf16.mxu1 %vm1936_vm4, %v18439_v38  ;;  %v8204_v14 = vsel %vm23738_vm5, %v8199_v27, %v8203_v44  ;;  %v15493_v1 = vsel %vm24244_vm8, %v15491_v0, %v15492_v58  ;;  %v16705_v32 = vmax.f32 %v16577_v9, 0.0  ;;  %v29998_v58 = vld [vmem:[#allocation11_spill] sm:$0xff] }
 0x554   : > { %v16576_v2 = vadd.f32 %v21855_v56, %v29201_v7  ;;  %v16703_v10 = vmax.f32 %v16575_v43, 0.0  ;;  %v19372_v25 = vcombine.low %v15490_v34, %v15493_v1 }
 0x555   : > { %21831 = vmatmul.mubr.msk.bf16.gmra.mrb[120].mxu0 %vm1936_vm4, %v19370_v45  ;;  %v16706_v35 = vmax.f32 %v16578_v31, 0.0  ;;  %v21728_v19 = vpop.f32.mrb[16].mxu0  ;;  %v18440_v45 = vcombine.low %v8194_v16, %v8204_v14 }
 0x556   : > { %21834 = vmatprep.mubr.msk.bf16.mxu0 %vm1936_vm4, %v19371_v18  ;;  %v16704_v55 = vmax.f32 %v16576_v2, 0.0  ;;  %v21856_v6 = vadd.f32 %v21728_v19, %v29994_v47  ;;  %v15981_v23 = vpop.f32.mrb[17].mxu0  ;;  %v30003_v47 = vld [vmem:[#allocation12_spill] sm:$0xff] }
 0x557   : > { %v19738_v24 = vpack.c.bf16 %v16706_v35, %v16705_v32  ;;  %v21857_v26 = vadd.f32 %v15981_v23, %v29995_v12  ;;  %v21729_v46 = vpop.f32.mrb[18].mxu0 }
 0x558   : > { %v19733_v51 = vpack.c.bf16 %v16704_v55, %v16703_v10  ;;  %v16581_v37 = vadd.f32 %v21856_v6, %v29201_v7  ;;  %v21858_v44 = vadd.f32 %v21729_v46, %v29996_v49  ;;  %v15984_v42 = vpop.f32.mrb[19].mxu0  ;;  %v30002_v10 = vld [vmem:[#allocation9_spill] sm:$0xff]  ;;  %v30005_v46 = vld [vmem:[#allocation48_spill] sm:$0xff] }
 0x559   : > { %20026 = vst [vmem:[%s29270_s6 + $0x38] sm:$0xff] %v19738_v24   ;;  %v16579_v57 = vadd.f32 %v21857_v26, %v29201_v7  ;;  %v21859_v41 = vadd.f32 %v15984_v42, %v29997_v54  ;;  %21315 = vmatmul.mubr.msk.bf16.gmra.mrb[124].mxu1 %vm1936_vm4, %v18440_v45 }
 0x55a   : > { %20025 = vst [vmem:[%s29270_s6 + $0x30] sm:$0xff] %v19733_v51   ;;  %v16582_v38 = vadd.f32 %v21858_v44, %v29201_v7  ;;  %v16709_v17 = vmax.f32 %v16581_v37, 0.0 }
 0x55b   : > { %v16580_v18 = vadd.f32 %v21859_v41, %v29201_v7  ;;  %v16707_v62 = vmax.f32 %v16579_v57, 0.0 }
 0x55c   : > { %v16710_v59 = vmax.f32 %v16582_v38, 0.0 }
 0x55d   : > { %21835 = vmatmul.mubr.msk.bf16.gmra.mrb[124].mxu0 %vm1936_vm4, %v19372_v25  ;;  %v16708_v39 = vmax.f32 %v16580_v18, 0.0  ;;  %v21732_v61 = vpop.f32.mrb[20].mxu0  ;;  %v30004_v25 = vld [vmem:[#allocation13_spill] sm:$0xff] }
 0x55e   : > { %v19748_v21 = vpack.c.bf16 %v16710_v59, %v16709_v17  ;;  %v21860_v40 = vadd.f32 %v21732_v61, %v29998_v58  ;;  %v15997_v22 = vpop.f32.mrb[21].mxu0 }
 0x55f   : > { %v19743_v13 = vpack.c.bf16 %v16708_v39, %v16707_v62  ;;  %v21861_v27 = vadd.f32 %v15997_v22, %v29999_v29  ;;  %v21733_v0 = vpop.f32.mrb[22].mxu0 }
 0x560   : > { %20028 = vst [vmem:[%s29270_s6 + $0x48] sm:$0xff] %v19748_v21   ;;  %v16585_v9 = vadd.f32 %v21860_v40, %v29201_v7  ;;  %v21862_v33 = vadd.f32 %v21733_v0, %v30000_v63  ;;  %v16000_v15 = vpop.f32.mrb[23].mxu0 }
 0x561   : > { %20027 = vst [vmem:[%s29270_s6 + $0x40] sm:$0xff] %v19743_v13   ;;  %v16583_v43 = vadd.f32 %v21861_v27, %v29201_v7  ;;  %v21863_v56 = vadd.f32 %v16000_v15, %v30001_v5  ;;  %v30006_v13 = vld [vmem:[#allocation18_spill] sm:$0xff] }
 0x562   : > { %v16586_v31 = vadd.f32 %v21862_v33, %v29201_v7  ;;  %v16713_v34 = vmax.f32 %v16585_v9, 0.0 }
 0x563   : > { %v16584_v16 = vadd.f32 %v21863_v56, %v29201_v7  ;;  %v16711_v14 = vmax.f32 %v16583_v43, 0.0  ;;  %v30007_v43 = vld [vmem:[#allocation14_spill] sm:$0xff] }
 0x564   : > { %v16714_v2 = vmax.f32 %v16586_v31, 0.0  ;;  %v30008_v31 = vld [vmem:[#allocation15_spill] sm:$0xff] }
 0x565   : > { %v16712_v1 = vmax.f32 %v16584_v16, 0.0  ;;  %v21736_v32 = vpop.f32.mrb[24].mxu0 }
 0x566   : > { %v19758_v35 = vpack.c.bf16 %v16714_v2, %v16713_v34  ;;  %v21864_v55 = vadd.f32 %v21736_v32, %v30002_v10  ;;  %v16013_v19 = vpop.f32.mrb[25].mxu0  ;;  %v30010_v10 = vld [vmem:[#allocation17_spill] sm:$0xff] }
 0x567   : > { %v19753_v24 = vpack.c.bf16 %v16712_v1, %v16711_v14  ;;  %v21865_v6 = vadd.f32 %v16013_v19, %v30003_v47  ;;  %v21737_v23 = vpop.f32.mrb[26].mxu0  ;;  %v30009_v14 = vld [vmem:[#allocation16_spill] sm:$0xff] }
 0x568   : > { %20030 = vst [vmem:[%s29270_s6 + $0x58] sm:$0xff] %v19758_v35   ;;  %v16589_v45 = vadd.f32 %v21864_v55, %v29201_v7  ;;  %v21866_v51 = vadd.f32 %v21737_v23, %v30004_v25  ;;  %v16016_v12 = vpop.f32.mrb[27].mxu0 }
 0x569   : > { %20029 = vst [vmem:[%s29270_s6 + $0x50] sm:$0xff] %v19753_v24   ;;  %v16587_v26 = vadd.f32 %v21865_v6, %v29201_v7  ;;  %v21867_v37 = vadd.f32 %v16016_v12, %v30005_v46  ;;  %v30011_v12 = vld [vmem:[#allocation29_spill] sm:$0xff] }
 0x56a   : > { %v16590_v49 = vadd.f32 %v21866_v51, %v29201_v7  ;;  %v16717_v42 = vmax.f32 %v16589_v45, 0.0 }
 0x56b   : > { %v16588_v44 = vadd.f32 %v21867_v37, %v29201_v7  ;;  %v16715_v54 = vmax.f32 %v16587_v26, 0.0 }
 0x56c   : > { %v16718_v57 = vmax.f32 %v16590_v49, 0.0  ;;  %v30012_v49 = vld [vmem:[#allocation27_spill] sm:$0xff] }
 0x56d   : > { %v16716_v41 = vmax.f32 %v16588_v44, 0.0  ;;  %v21740_v38 = vpop.f32.mrb[28].mxu0 }
 0x56e   : > { %v19768_v18 = vpack.c.bf16 %v16718_v57, %v16717_v42  ;;  %v21868_v17 = vadd.f32 %v21740_v38, %v28648_v52  ;;  %v16029_v59 = vpop.f32.mrb[29].mxu0 }
 0x56f   : > { %v19763_v62 = vpack.c.bf16 %v16716_v41, %v16715_v54  ;;  %v21869_v39 = vadd.f32 %v16029_v59, %v28651_v28  ;;  %v21741_v61 = vpop.f32.mrb[30].mxu0  ;;  %v30013_v54 = vld [vmem:[#allocation28_spill] sm:$0xff] }
 0x570   : > { %20032 = vst [vmem:[%s29270_s6 + $0x68] sm:$0xff] %v19768_v18   ;;  %v16593_v21 = vadd.f32 %v21868_v17, %v29201_v7  ;;  %v21870_v58 = vadd.f32 %v21741_v61, %v28679_v48  ;;  %v16032_v40 = vpop.f32.mrb[31].mxu0  ;;  %v30014_v17 = vld [vmem:[#allocation49_spill] sm:$0xff] }
 0x571   : > { %20031 = vst [vmem:[%s29270_s6 + $0x60] sm:$0xff] %v19763_v62   ;;  %v16591_v22 = vadd.f32 %v21869_v39, %v29201_v7  ;;  %v21871_v29 = vadd.f32 %v16032_v40, %v30006_v13 }
 0x572   : > { %v16594_v27 = vadd.f32 %v21870_v58, %v29201_v7  ;;  %v16721_v0 = vmax.f32 %v16593_v21, 0.0 }
 0x573   : > { %v16592_v52 = vadd.f32 %v21871_v29, %v29201_v7  ;;  %v16719_v9 = vmax.f32 %v16591_v22, 0.0  ;;  %v30015_v29 = vld [vmem:[#allocation34_spill] sm:$0xff] }
 0x574   : > { %v16722_v28 = vmax.f32 %v16594_v27, 0.0 }
 0x575   : > { %v16720_v63 = vmax.f32 %v16592_v52, 0.0  ;;  %v21744_v33 = vpop.f32.mrb[32].mxu0 }
 0x576   : > { %v19778_v15 = vpack.c.bf16 %v16722_v28, %v16721_v0  ;;  %v21872_v48 = vadd.f32 %v21744_v33, %v30007_v43  ;;  %v16045_v5 = vpop.f32.mrb[33].mxu0  ;;  %v30016_v28 = vld [vmem:[#allocation30_spill] sm:$0xff] }
 0x577   : > { %v19773_v56 = vpack.c.bf16 %v16720_v63, %v16719_v9  ;;  %v21873_v16 = vadd.f32 %v16045_v5, %v30008_v31  ;;  %v21745_v34 = vpop.f32.mrb[34].mxu0 }
 0x578   : > { %20034 = vst [vmem:[%s29270_s6 + $0x78] sm:$0xff] %v19778_v15   ;;  %v16597_v2 = vadd.f32 %v21872_v48, %v29201_v7  ;;  %v21874_v1 = vadd.f32 %v21745_v34, %v30009_v14  ;;  %v16048_v32 = vpop.f32.mrb[35].mxu0  ;;  %v30017_v15 = vld [vmem:[#allocation31_spill] sm:$0xff] }
 0x579   : > { %20033 = vst [vmem:[%s29270_s6 + $0x70] sm:$0xff] %v19773_v56   ;;  %v16595_v35 = vadd.f32 %v21873_v16, %v29201_v7  ;;  %v21875_v55 = vadd.f32 %v16048_v32, %v30010_v10  ;;  %v30018_v56 = vld [vmem:[#allocation43_spill] sm:$0xff] }
 0x57a   : > { %v16598_v19 = vadd.f32 %v21874_v1, %v29201_v7  ;;  %v16725_v47 = vmax.f32 %v16597_v2, 0.0 }
 0x57b   : > { %v16596_v24 = vadd.f32 %v21875_v55, %v29201_v7  ;;  %v16723_v23 = vmax.f32 %v16595_v35, 0.0  ;;  %v30019_v55 = vld [vmem:[#allocation35_spill] sm:$0xff] }
 0x57c   : > { %v16726_v6 = vmax.f32 %v16598_v19, 0.0 }
 0x57d   : > { %v16724_v45 = vmax.f32 %v16596_v24, 0.0  ;;  %v21748_v25 = vpop.f32.mrb[36].mxu0 }
 0x57e   : > { %v19788_v51 = vpack.c.bf16 %v16726_v6, %v16725_v47  ;;  %v21876_v26 = vadd.f32 %v21748_v25, %v30011_v12  ;;  %v16061_v46 = vpop.f32.mrb[37].mxu0  ;;  %v30020_v6 = vld [vmem:[#allocation37_spill] sm:$0xff] }
 0x57f   : > { %v19783_v37 = vpack.c.bf16 %v16724_v45, %v16723_v23  ;;  %v21877_v44 = vadd.f32 %v16061_v46, %v30012_v49  ;;  %v21749_v42 = vpop.f32.mrb[38].mxu0 }
 0x580   : > { %20036 = vst [vmem:[%s29270_s6 + $0x88] sm:$0xff] %v19788_v51   ;;  %v16601_v57 = vadd.f32 %v21876_v26, %v29201_v7  ;;  %v21878_v41 = vadd.f32 %v21749_v42, %v30013_v54  ;;  %v16064_v38 = vpop.f32.mrb[39].mxu0  ;;  %v30021_v51 = vld [vmem:[#allocation10_spill] sm:$0xff] }
 0x581   : > { %20035 = vst [vmem:[%s29270_s6 + $0x80] sm:$0xff] %v19783_v37   ;;  %v16599_v18 = vadd.f32 %v21877_v44, %v29201_v7  ;;  %v21879_v59 = vadd.f32 %v16064_v38, %v30014_v17 }
 0x582   : > { %v16602_v62 = vadd.f32 %v21878_v41, %v29201_v7  ;;  %v16729_v61 = vmax.f32 %v16601_v57, 0.0 }
 0x583   : > { %v16600_v39 = vadd.f32 %v21879_v59, %v29201_v7  ;;  %v16727_v58 = vmax.f32 %v16599_v18, 0.0 }
 0x584   : > { %v16730_v21 = vmax.f32 %v16602_v62, 0.0 }
 0x585   : > { %v16728_v40 = vmax.f32 %v16600_v39, 0.0  ;;  %v21752_v22 = vpop.f32.mrb[40].mxu0 }
 0x586   : > { %v19798_v13 = vpack.c.bf16 %v16730_v21, %v16729_v61  ;;  %v21880_v27 = vadd.f32 %v21752_v22, %v30015_v29  ;;  %v16077_v52 = vpop.f32.mrb[41].mxu0 }
 0x587   : > { %v19793_v0 = vpack.c.bf16 %v16728_v40, %v16727_v58  ;;  %v21881_v9 = vadd.f32 %v16077_v52, %v30016_v28  ;;  %v21753_v63 = vpop.f32.mrb[42].mxu0 }
 0x588   : > { %20038 = vst [vmem:[%s29270_s6 + $0x98] sm:$0xff] %v19798_v13   ;;  %v16605_v33 = vadd.f32 %v21880_v27, %v29201_v7  ;;  %v21882_v43 = vadd.f32 %v21753_v63, %v30017_v15  ;;  %v16080_v48 = vpop.f32.mrb[43].mxu0 }
 0x589   : > { %20037 = vst [vmem:[%s29270_s6 + $0x90] sm:$0xff] %v19793_v0   ;;  %v16603_v5 = vadd.f32 %v21881_v9, %v29201_v7  ;;  %v21883_v31 = vadd.f32 %v16080_v48, %v30018_v56 }
 0x58a   : > { %v16606_v16 = vadd.f32 %v21882_v43, %v29201_v7  ;;  %v16733_v2 = vmax.f32 %v16605_v33, 0.0  ;;  %v30022_v43 = vld [vmem:[#allocation40_spill] sm:$0xff] }
 0x58b   : > { %v16604_v34 = vadd.f32 %v21883_v31, %v29201_v7  ;;  %v16731_v1 = vmax.f32 %v16603_v5, 0.0  ;;  %v30023_v31 = vld [vmem:[#allocation50_spill] sm:$0xff] }
 0x58c   : > { %v16734_v14 = vmax.f32 %v16606_v16, 0.0 }
 0x58d   : > { %v16732_v32 = vmax.f32 %v16604_v34, 0.0  ;;  %v21756_v35 = vpop.f32.mrb[44].mxu0 }
 0x58e   : > { %v19808_v10 = vpack.c.bf16 %v16734_v14, %v16733_v2  ;;  %v21884_v19 = vadd.f32 %v21756_v35, %v30019_v55  ;;  %v16093_v24 = vpop.f32.mrb[45].mxu0 }
 0x58f   : > { %v19803_v47 = vpack.c.bf16 %v16732_v32, %v16731_v1  ;;  %v21885_v23 = vadd.f32 %v16093_v24, %v30020_v6  ;;  %v21757_v45 = vpop.f32.mrb[46].mxu0 }
 0x590   : > { %20040 = vst [vmem:[%s29270_s6 + $0xa8] sm:$0xff] %v19808_v10   ;;  %v16609_v25 = vadd.f32 %v21884_v19, %v29201_v7  ;;  %v21886_v12 = vadd.f32 %v21757_v45, %v30021_v51  ;;  %v16096_v26 = vpop.f32.mrb[47].mxu0  ;;  %v30024_v10 = vld [vmem:[#allocation51_spill] sm:$0xff] }
 0x591   : > { %20039 = vst [vmem:[%s29270_s6 + $0xa0] sm:$0xff] %v19803_v47   ;;  %v16607_v46 = vadd.f32 %v21885_v23, %v29201_v7  ;;  %v21887_v37 = vadd.f32 %v16096_v26, %v28922_v36  ;;  %v30025_v47 = vld [vmem:[#allocation52_spill] sm:$0xff] }
 0x592   : > { %v16610_v49 = vadd.f32 %v21886_v12, %v29201_v7  ;;  %v16737_v42 = vmax.f32 %v16609_v25, 0.0  ;;  %v30026_v25 = vld [vmem:[#allocation53_spill] sm:$0xff] }
 0x593   : > { %v16608_v44 = vadd.f32 %v21887_v37, %v29201_v7  ;;  %v16735_v54 = vmax.f32 %v16607_v46, 0.0  ;;  %v30027_v46 = vld [vmem:[#allocation54_spill] sm:$0xff] }
 0x594   : > { %v16738_v57 = vmax.f32 %v16610_v49, 0.0 }
 0x595   : > { %v16736_v41 = vmax.f32 %v16608_v44, 0.0  ;;  %v21760_v38 = vpop.f32.mrb[48].mxu0 }
 0x596   : > { %v19818_v18 = vpack.c.bf16 %v16738_v57, %v16737_v42  ;;  %v21888_v17 = vadd.f32 %v21760_v38, %v28961_v60  ;;  %v16109_v59 = vpop.f32.mrb[49].mxu0 }
 0x597   : > { %v19813_v62 = vpack.c.bf16 %v16736_v41, %v16735_v54  ;;  %v21889_v39 = vadd.f32 %v16109_v59, %v28965_v53  ;;  %v21761_v61 = vpop.f32.mrb[50].mxu0 }
 0x598   : > { %20042 = vst [vmem:[%s29270_s6 + $0xb8] sm:$0xff] %v19818_v18   ;;  %v16613_v36 = vadd.f32 %v21888_v17, %v29201_v7  ;;  %v21890_v21 = vadd.f32 %v21761_v61, %v28969_v11  ;;  %v16112_v58 = vpop.f32.mrb[51].mxu0  ;;  %v30028_v17 = vld [vmem:[#allocation55_spill] sm:$0xff] }
 0x599   : > { %20041 = vst [vmem:[%s29270_s6 + $0xb0] sm:$0xff] %v19813_v62   ;;  %v16611_v40 = vadd.f32 %v21889_v39, %v29201_v7  ;;  %v21891_v22 = vadd.f32 %v16112_v58, %v28977_v8 }
 0x59a   : > { %v16614_v13 = vadd.f32 %v21890_v21, %v29201_v7  ;;  %v16741_v29 = vmax.f32 %v16613_v36, 0.0 }
 0x59b   : > { %v16612_v60 = vadd.f32 %v21891_v22, %v29201_v7  ;;  %v16739_v27 = vmax.f32 %v16611_v40, 0.0 }
 0x59c   : > { %v16742_v53 = vmax.f32 %v16614_v13, 0.0 }
 0x59d   : > { %v16740_v52 = vmax.f32 %v16612_v60, 0.0  ;;  %v21764_v0 = vpop.f32.mrb[52].mxu0 }
 0x59e   : > { %v19828_v28 = vpack.c.bf16 %v16742_v53, %v16741_v29  ;;  %v21892_v11 = vadd.f32 %v21764_v0, %v29015_v20  ;;  %v16125_v9 = vpop.f32.mrb[53].mxu0 }
 0x59f   : > { %v19823_v63 = vpack.c.bf16 %v16740_v52, %v16739_v27  ;;  %v21893_v33 = vadd.f32 %v16125_v9, %v29026_v50  ;;  %v21765_v15 = vpop.f32.mrb[54].mxu0 }
 0x5a0   : > { %20044 = vst [vmem:[%s29270_s6 + $0xc8] sm:$0xff] %v19828_v28   ;;  %v16617_v8 = vadd.f32 %v21892_v11, %v29201_v7  ;;  %v21894_v48 = vadd.f32 %v21765_v15, %v30022_v43  ;;  %v16128_v5 = vpop.f32.mrb[55].mxu0 }
 0x5a1   : > { %20043 = vst [vmem:[%s29270_s6 + $0xc0] sm:$0xff] %v19823_v63   ;;  %v16615_v56 = vadd.f32 %v21893_v33, %v29201_v7  ;;  %v21895_v16 = vadd.f32 %v16128_v5, %v30023_v31 }
 0x5a2   : > { %v16618_v34 = vadd.f32 %v21894_v48, %v29201_v7  ;;  %v16745_v2 = vmax.f32 %v16617_v8, 0.0 }
 0x5a3   : > { %v16616_v20 = vadd.f32 %v21895_v16, %v29201_v7  ;;  %v16743_v14 = vmax.f32 %v16615_v56, 0.0 }
 0x5a4   : > { %v16746_v50 = vmax.f32 %v16618_v34, 0.0 }
 0x5a5   : > { %v16744_v1 = vmax.f32 %v16616_v20, 0.0  ;;  %v21768_v32 = vpop.f32.mrb[56].mxu0 }
 0x5a6   : > { %v19838_v35 = vpack.c.bf16 %v16746_v50, %v16745_v2  ;;  %v21896_v55 = vadd.f32 %v21768_v32, %v30024_v10  ;;  %v16141_v19 = vpop.f32.mrb[57].mxu0 }
 0x5a7   : > { %v19833_v24 = vpack.c.bf16 %v16744_v1, %v16743_v14  ;;  %v21897_v6 = vadd.f32 %v16141_v19, %v30025_v47  ;;  %v21769_v23 = vpop.f32.mrb[58].mxu0 }
 0x5a8   : > { %20046 = vst [vmem:[%s29270_s6 + $0xd8] sm:$0xff] %v19838_v35   ;;  %v16621_v45 = vadd.f32 %v21896_v55, %v29201_v7  ;;  %v21898_v51 = vadd.f32 %v21769_v23, %v30026_v25  ;;  %v16144_v12 = vpop.f32.mrb[59].mxu0 }
 0x5a9   : > { %20045 = vst [vmem:[%s29270_s6 + $0xd0] sm:$0xff] %v19833_v24   ;;  %v16619_v26 = vadd.f32 %v21897_v6, %v29201_v7  ;;  %v21899_v37 = vadd.f32 %v16144_v12, %v30027_v46 }
 0x5aa   : > { %v16622_v49 = vadd.f32 %v21898_v51, %v29201_v7  ;;  %v16749_v42 = vmax.f32 %v16621_v45, 0.0 }
 0x5ab   : > { %v16620_v44 = vadd.f32 %v21899_v37, %v29201_v7  ;;  %v16747_v54 = vmax.f32 %v16619_v26, 0.0 }
 0x5ac   : > { %v16750_v57 = vmax.f32 %v16622_v49, 0.0 }
 0x5ad   : > { %v16748_v41 = vmax.f32 %v16620_v44, 0.0  ;;  %v21772_v38 = vpop.f32.mrb[60].mxu0 }
 0x5ae   : > { %v19848_v18 = vpack.c.bf16 %v16750_v57, %v16749_v42  ;;  %v21900_v59 = vadd.f32 %v21772_v38, %v30028_v17  ;;  %v16157_v62 = vpop.f32.mrb[61].mxu0 }
 0x5af   : > { %v19843_v39 = vpack.c.bf16 %v16748_v41, %v16747_v54  ;;  %v21901_v61 = vadd.f32 %v16157_v62, %v29138_v4  ;;  %v21773_v36 = vpop.f32.mrb[62].mxu0 }
 0x5b0   : > { %20048 = vst [vmem:[%s29270_s6 + $0xe8] sm:$0xff] %v19848_v18   ;;  %v16625_v21 = vadd.f32 %v21900_v59, %v29201_v7  ;;  %v21902_v58 = vadd.f32 %v21773_v36, %v29142_v3  ;;  %v16160_v40 = vpop.f32.mrb[63].mxu0 }
 0x5b1   : > { %20047 = vst [vmem:[%s29270_s6 + $0xe0] sm:$0xff] %v19843_v39   ;;  %v16623_v22 = vadd.f32 %v21901_v61, %v29201_v7  ;;  %v21903_v13 = vadd.f32 %v16160_v40, %v29149_v30 }
 0x5b2   : > { %v16626_v60 = vadd.f32 %v21902_v58, %v29201_v7  ;;  %v16753_v53 = vmax.f32 %v16625_v21, 0.0 }
 0x5b3   : > { %v16624_v29 = vadd.f32 %v21903_v13, %v29201_v7  ;;  %v16751_v4 = vmax.f32 %v16623_v22, 0.0 }
 0x5b4   : > { %v16754_v27 = vmax.f32 %v16626_v60, 0.0  ;;  %v21256_v0 = vpop.f32.mrb[64].mxu1 }
 0x5b5   : > { %v16752_v52 = vmax.f32 %v16624_v29, 0.0  ;;  %v21776_v28 = vpop.f32.mrb[64].mxu0  ;;  %v8884_v9 = vpop.f32.mrb[65].mxu1 }
 0x5b6   : > { %v19858_v11 = vpack.c.bf16 %v16754_v27, %v16753_v53  ;;  %v21904_v3 = vadd.f32 %v21776_v28, %v21256_v0  ;;  %v16173_v63 = vpop.f32.mrb[65].mxu0  ;;  %v21257_v8 = vpop.f32.mrb[66].mxu1 }
 0x5b7   : > { %v19853_v33 = vpack.c.bf16 %v16752_v52, %v16751_v4  ;;  %v21905_v15 = vadd.f32 %v16173_v63, %v8884_v9  ;;  %v21777_v30 = vpop.f32.mrb[66].mxu0  ;;  %v8887_v5 = vpop.f32.mrb[67].mxu1 }
 0x5b8   : > { %20050 = vst [vmem:[%s29270_s6 + $0xf8] sm:$0xff] %v19858_v11   ;;  %v16629_v43 = vadd.f32 %v21904_v3, %v29201_v7  ;;  %v21906_v48 = vadd.f32 %v21777_v30, %v21257_v8  ;;  %v16176_v56 = vpop.f32.mrb[67].mxu0 }
 0x5b9   : > { %20049 = vst [vmem:[%s29270_s6 + $0xf0] sm:$0xff] %v19853_v33   ;;  %v16627_v31 = vadd.f32 %v21905_v15, %v29201_v7  ;;  %v21907_v16 = vadd.f32 %v16176_v56, %v8887_v5 }
 0x5ba   : > { %v16630_v34 = vadd.f32 %v21906_v48, %v29201_v7  ;;  %v16757_v2 = vmax.f32 %v16629_v43, 0.0 }
 0x5bb   : > { %v16628_v20 = vadd.f32 %v21907_v16, %v29201_v7  ;;  %v16755_v14 = vmax.f32 %v16627_v31, 0.0 }
 0x5bc   : > { %v16758_v50 = vmax.f32 %v16630_v34, 0.0  ;;  %v21260_v32 = vpop.f32.mrb[68].mxu1 }
 0x5bd   : > { %v16756_v1 = vmax.f32 %v16628_v20, 0.0  ;;  %v8900_v19 = vpop.f32.mrb[69].mxu1 }
 0x5be   : > { %v21780_v35 = vpop.f32.mrb[68].mxu0  ;;  %v19868_v10 = vpack.c.bf16 %v16758_v50, %v16757_v2  ;;  %v21261_v23 = vpop.f32.mrb[70].mxu1 }
 0x5bf   : > { %v21908_v55 = vadd.f32 %v21780_v35, %v21260_v32  ;;  %v16189_v24 = vpop.f32.mrb[69].mxu0  ;;  %v19863_v47 = vpack.c.bf16 %v16756_v1, %v16755_v14  ;;  %v8903_v12 = vpop.f32.mrb[71].mxu1 }
 0x5c0   : > { %v21909_v6 = vadd.f32 %v16189_v24, %v8900_v19  ;;  %v21781_v45 = vpop.f32.mrb[70].mxu0  ;;  %20052 = vst [vmem:[%s29270_s6 + $0x108] sm:$0xff] %v19868_v10  }
 0x5c1   : > { %v16633_v25 = vadd.f32 %v21908_v55, %v29201_v7  ;;  %v21910_v51 = vadd.f32 %v21781_v45, %v21261_v23  ;;  %v16192_v26 = vpop.f32.mrb[71].mxu0  ;;  %20051 = vst [vmem:[%s29270_s6 + $0x100] sm:$0xff] %v19863_v47  }
 0x5c2   : > { %v16631_v46 = vadd.f32 %v21909_v6, %v29201_v7  ;;  %v21911_v37 = vadd.f32 %v16192_v26, %v8903_v12 }
 0x5c3   : > { %v16634_v49 = vadd.f32 %v21910_v51, %v29201_v7  ;;  %v16761_v42 = vmax.f32 %v16633_v25, 0.0 }
 0x5c4   : > { %v16632_v44 = vadd.f32 %v21911_v37, %v29201_v7  ;;  %v16759_v54 = vmax.f32 %v16631_v46, 0.0  ;;  %v21264_v38 = vpop.f32.mrb[72].mxu1 }
 0x5c5   : > { %v16762_v57 = vmax.f32 %v16634_v49, 0.0  ;;  %v8916_v62 = vpop.f32.mrb[73].mxu1 }
 0x5c6   : > { %v16760_v41 = vmax.f32 %v16632_v44, 0.0  ;;  %v21784_v18 = vpop.f32.mrb[72].mxu0  ;;  %v21265_v21 = vpop.f32.mrb[74].mxu1 }
 0x5c7   : > { %v19878_v17 = vpack.c.bf16 %v16762_v57, %v16761_v42  ;;  %v21912_v59 = vadd.f32 %v21784_v18, %v21264_v38  ;;  %v16205_v39 = vpop.f32.mrb[73].mxu0  ;;  %v8919_v13 = vpop.f32.mrb[75].mxu1 }
 0x5c8   : > { %v19873_v61 = vpack.c.bf16 %v16760_v41, %v16759_v54  ;;  %v21913_v36 = vadd.f32 %v16205_v39, %v8916_v62  ;;  %v21785_v58 = vpop.f32.mrb[74].mxu0 }
 0x5c9   : > { %20054 = vst [vmem:[%s29270_s6 + $0x118] sm:$0xff] %v19878_v17   ;;  %v16637_v40 = vadd.f32 %v21912_v59, %v29201_v7  ;;  %v21914_v22 = vadd.f32 %v21785_v58, %v21265_v21  ;;  %v16208_v60 = vpop.f32.mrb[75].mxu0 }
 0x5ca   : > { %20053 = vst [vmem:[%s29270_s6 + $0x110] sm:$0xff] %v19873_v61   ;;  %v16635_v29 = vadd.f32 %v21913_v36, %v29201_v7  ;;  %v21915_v53 = vadd.f32 %v16208_v60, %v8919_v13 }
 0x5cb   : > { %v16638_v27 = vadd.f32 %v21914_v22, %v29201_v7  ;;  %v16765_v52 = vmax.f32 %v16637_v40, 0.0 }
 0x5cc   : > { %v16636_v4 = vadd.f32 %v21915_v53, %v29201_v7  ;;  %v16763_v28 = vmax.f32 %v16635_v29, 0.0  ;;  %v21268_v3 = vpop.f32.mrb[76].mxu1 }
 0x5cd   : > { %v16766_v0 = vmax.f32 %v16638_v27, 0.0  ;;  %v8932_v15 = vpop.f32.mrb[77].mxu1 }
 0x5ce   : > { %v16764_v11 = vmax.f32 %v16636_v4, 0.0  ;;  %v21788_v9 = vpop.f32.mrb[76].mxu0  ;;  %v21269_v48 = vpop.f32.mrb[78].mxu1 }
 0x5cf   : > { %v19888_v63 = vpack.c.bf16 %v16766_v0, %v16765_v52  ;;  %v21916_v33 = vadd.f32 %v21788_v9, %v21268_v3  ;;  %v16221_v8 = vpop.f32.mrb[77].mxu0  ;;  %v8935_v16 = vpop.f32.mrb[79].mxu1 }
 0x5d0   : > { %v19883_v30 = vpack.c.bf16 %v16764_v11, %v16763_v28  ;;  %v21917_v43 = vadd.f32 %v16221_v8, %v8932_v15  ;;  %v21789_v5 = vpop.f32.mrb[78].mxu0 }
 0x5d1   : > { %20056 = vst [vmem:[%s29270_s6 + $0x128] sm:$0xff] %v19888_v63   ;;  %v16641_v56 = vadd.f32 %v21916_v33, %v29201_v7  ;;  %v21918_v31 = vadd.f32 %v21789_v5, %v21269_v48  ;;  %v16224_v34 = vpop.f32.mrb[79].mxu0 }
 0x5d2   : > { %20055 = vst [vmem:[%s29270_s6 + $0x120] sm:$0xff] %v19883_v30   ;;  %v16639_v20 = vadd.f32 %v21917_v43, %v29201_v7  ;;  %v21919_v2 = vadd.f32 %v16224_v34, %v8935_v16 }
 0x5d3   : > { %v16642_v50 = vadd.f32 %v21918_v31, %v29201_v7  ;;  %v16769_v1 = vmax.f32 %v16641_v56, 0.0 }
 0x5d4   : > { %v16640_v14 = vadd.f32 %v21919_v2, %v29201_v7  ;;  %v16767_v35 = vmax.f32 %v16639_v20, 0.0  ;;  %v21272_v55 = vpop.f32.mrb[80].mxu1  ;;  %v29520_v7 = vld [vmem:[%s29649_s2] ss:$0 sm:$0xff] }
 0x5d5   : > { %v16770_v32 = vmax.f32 %v16642_v50, 0.0  ;;  %v8948_v6 = vpop.f32.mrb[81].mxu1 }
 0x5d6   : > { %v16768_v10 = vmax.f32 %v16640_v14, 0.0  ;;  %v21273_v51 = vpop.f32.mrb[82].mxu1 }
 0x5d7   : > { %v21792_v19 = vpop.f32.mrb[80].mxu0  ;;  %v19898_v24 = vpack.c.bf16 %v16770_v32, %v16769_v1  ;;  %v8951_v37 = vpop.f32.mrb[83].mxu1 }
 0x5d8   : > { %v21920_v47 = vadd.f32 %v21792_v19, %v21272_v55  ;;  %v16237_v23 = vpop.f32.mrb[81].mxu0  ;;  %v19893_v45 = vpack.c.bf16 %v16768_v10, %v16767_v35 }
 0x5d9   : > { %v21921_v25 = vadd.f32 %v16237_v23, %v8948_v6  ;;  %v21793_v12 = vpop.f32.mrb[82].mxu0  ;;  %20058 = vst [vmem:[%s29270_s6 + $0x138] sm:$0xff] %v19898_v24  }
 0x5da   : > { %v16645_v26 = vadd.f32 %v29520_v7, %v21920_v47  ;;  %v21922_v46 = vadd.f32 %v21793_v12, %v21273_v51  ;;  %v16240_v49 = vpop.f32.mrb[83].mxu0  ;;  %20057 = vst [vmem:[%s29270_s6 + $0x130] sm:$0xff] %v19893_v45  }
 0x5db   : > { %v16643_v44 = vadd.f32 %v29520_v7, %v21921_v25  ;;  %v21923_v42 = vadd.f32 %v16240_v49, %v8951_v37 }
 0x5dc   : > { %v16646_v57 = vadd.f32 %v29520_v7, %v21922_v46  ;;  %v16773_v41 = vmax.f32 %v16645_v26, 0.0  ;;  %v21276_v59 = vpop.f32.mrb[84].mxu1 }
 0x5dd   : > { %v16644_v54 = vadd.f32 %v29520_v7, %v21923_v42  ;;  %v16771_v18 = vmax.f32 %v16643_v44, 0.0  ;;  %v8964_v36 = vpop.f32.mrb[85].mxu1 }
 0x5de   : > { %v16774_v38 = vmax.f32 %v16646_v57, 0.0  ;;  %v21277_v22 = vpop.f32.mrb[86].mxu1 }
 0x5df   : > { %v16772_v17 = vmax.f32 %v16644_v54, 0.0  ;;  %v21796_v62 = vpop.f32.mrb[84].mxu0  ;;  %v8967_v53 = vpop.f32.mrb[87].mxu1 }
 0x5e0   : > { %v19908_v39 = vpack.c.bf16 %v16774_v38, %v16773_v41  ;;  %v21924_v61 = vadd.f32 %v21796_v62, %v21276_v59  ;;  %v16253_v21 = vpop.f32.mrb[85].mxu0 }
 0x5e1   : > { %v19903_v58 = vpack.c.bf16 %v16772_v17, %v16771_v18  ;;  %v21925_v40 = vadd.f32 %v16253_v21, %v8964_v36  ;;  %v21797_v13 = vpop.f32.mrb[86].mxu0 }
 0x5e2   : > { %20060 = vst [vmem:[%s29270_s6 + $0x148] sm:$0xff] %v19908_v39   ;;  %v16649_v60 = vadd.f32 %v29520_v7, %v21924_v61  ;;  %v21926_v29 = vadd.f32 %v21797_v13, %v21277_v22  ;;  %v16256_v27 = vpop.f32.mrb[87].mxu0 }
 0x5e3   : > { %20059 = vst [vmem:[%s29270_s6 + $0x140] sm:$0xff] %v19903_v58   ;;  %v16647_v4 = vadd.f32 %v29520_v7, %v21925_v40  ;;  %v21927_v52 = vadd.f32 %v16256_v27, %v8967_v53 }
 0x5e4   : > { %v16650_v0 = vadd.f32 %v29520_v7, %v21926_v29  ;;  %v16777_v11 = vmax.f32 %v16649_v60, 0.0  ;;  %v21280_v33 = vpop.f32.mrb[88].mxu1 }
 0x5e5   : > { %v16648_v28 = vadd.f32 %v29520_v7, %v21927_v52  ;;  %v16775_v9 = vmax.f32 %v16647_v4, 0.0  ;;  %v8980_v43 = vpop.f32.mrb[89].mxu1 }
 0x5e6   : > { %v16778_v3 = vmax.f32 %v16650_v0, 0.0  ;;  %v21281_v31 = vpop.f32.mrb[90].mxu1 }
 0x5e7   : > { %v16776_v63 = vmax.f32 %v16648_v28, 0.0  ;;  %v21800_v15 = vpop.f32.mrb[88].mxu0  ;;  %v8983_v2 = vpop.f32.mrb[91].mxu1 }
 0x5e8   : > { %v19918_v8 = vpack.c.bf16 %v16778_v3, %v16777_v11  ;;  %v21928_v30 = vadd.f32 %v21800_v15, %v21280_v33  ;;  %v16269_v48 = vpop.f32.mrb[89].mxu0 }
 0x5e9   : > { %v19913_v5 = vpack.c.bf16 %v16776_v63, %v16775_v9  ;;  %v21929_v56 = vadd.f32 %v16269_v48, %v8980_v43  ;;  %v21801_v16 = vpop.f32.mrb[90].mxu0 }
 0x5ea   : > { %20062 = vst [vmem:[%s29270_s6 + $0x158] sm:$0xff] %v19918_v8   ;;  %v16653_v34 = vadd.f32 %v29520_v7, %v21928_v30  ;;  %v21930_v20 = vadd.f32 %v21801_v16, %v21281_v31  ;;  %v16272_v50 = vpop.f32.mrb[91].mxu0 }
 0x5eb   : > { %20061 = vst [vmem:[%s29270_s6 + $0x150] sm:$0xff] %v19913_v5   ;;  %v16651_v14 = vadd.f32 %v29520_v7, %v21929_v56  ;;  %v21931_v1 = vadd.f32 %v16272_v50, %v8983_v2 }
 0x5ec   : > { %v16654_v32 = vadd.f32 %v29520_v7, %v21930_v20  ;;  %v16781_v10 = vmax.f32 %v16653_v34, 0.0  ;;  %v21284_v47 = vpop.f32.mrb[92].mxu1 }
 0x5ed   : > { %v16652_v35 = vadd.f32 %v29520_v7, %v21931_v1  ;;  %v16779_v19 = vmax.f32 %v16651_v14, 0.0  ;;  %v8996_v25 = vpop.f32.mrb[93].mxu1 }
 0x5ee   : > { %v16782_v55 = vmax.f32 %v16654_v32, 0.0  ;;  %v21285_v46 = vpop.f32.mrb[94].mxu1 }
 0x5ef   : > { %v16780_v24 = vmax.f32 %v16652_v35, 0.0  ;;  %v21804_v6 = vpop.f32.mrb[92].mxu0  ;;  %v8999_v42 = vpop.f32.mrb[95].mxu1 }
 0x5f0   : > { %v19928_v23 = vpack.c.bf16 %v16782_v55, %v16781_v10  ;;  %v21932_v45 = vadd.f32 %v21804_v6, %v21284_v47  ;;  %v16285_v51 = vpop.f32.mrb[93].mxu0 }
 0x5f1   : > { %v19923_v12 = vpack.c.bf16 %v16780_v24, %v16779_v19  ;;  %v21933_v26 = vadd.f32 %v16285_v51, %v8996_v25  ;;  %v21805_v37 = vpop.f32.mrb[94].mxu0 }
 0x5f2   : > { %20064 = vst [vmem:[%s29270_s6 + $0x168] sm:$0xff] %v19928_v23   ;;  %v16657_v49 = vadd.f32 %v29520_v7, %v21932_v45  ;;  %v21934_v44 = vadd.f32 %v21805_v37, %v21285_v46  ;;  %v16288_v57 = vpop.f32.mrb[95].mxu0 }
 0x5f3   : > { %20063 = vst [vmem:[%s29270_s6 + $0x160] sm:$0xff] %v19923_v12   ;;  %v16655_v54 = vadd.f32 %v29520_v7, %v21933_v26  ;;  %v21935_v41 = vadd.f32 %v16288_v57, %v8999_v42 }
 0x5f4   : > { %v16658_v38 = vadd.f32 %v29520_v7, %v21934_v44  ;;  %v16785_v17 = vmax.f32 %v16657_v49, 0.0  ;;  %v21288_v61 = vpop.f32.mrb[96].mxu1 }
 0x5f5   : > { %v16656_v18 = vadd.f32 %v29520_v7, %v21935_v41  ;;  %v16783_v62 = vmax.f32 %v16655_v54, 0.0  ;;  %v9012_v40 = vpop.f32.mrb[97].mxu1 }
 0x5f6   : > { %v16786_v59 = vmax.f32 %v16658_v38, 0.0  ;;  %v21289_v29 = vpop.f32.mrb[98].mxu1 }
 0x5f7   : > { %v16784_v39 = vmax.f32 %v16656_v18, 0.0  ;;  %v21808_v36 = vpop.f32.mrb[96].mxu0  ;;  %v9015_v52 = vpop.f32.mrb[99].mxu1 }
 0x5f8   : > { %v19938_v21 = vpack.c.bf16 %v16786_v59, %v16785_v17  ;;  %v21936_v58 = vadd.f32 %v21808_v36, %v21288_v61  ;;  %v16301_v22 = vpop.f32.mrb[97].mxu0 }
 0x5f9   : > { %v19933_v13 = vpack.c.bf16 %v16784_v39, %v16783_v62  ;;  %v21937_v60 = vadd.f32 %v16301_v22, %v9012_v40  ;;  %v21809_v53 = vpop.f32.mrb[98].mxu0 }
 0x5fa   : > { %20066 = vst [vmem:[%s29270_s6 + $0x178] sm:$0xff] %v19938_v21   ;;  %v16661_v27 = vadd.f32 %v29520_v7, %v21936_v58  ;;  %v21938_v4 = vadd.f32 %v21809_v53, %v21289_v29  ;;  %v16304_v0 = vpop.f32.mrb[99].mxu0 }
 0x5fb   : > { %20065 = vst [vmem:[%s29270_s6 + $0x170] sm:$0xff] %v19933_v13   ;;  %v16659_v28 = vadd.f32 %v29520_v7, %v21937_v60  ;;  %v21939_v11 = vadd.f32 %v16304_v0, %v9015_v52 }
 0x5fc   : > { %v16662_v3 = vadd.f32 %v29520_v7, %v21938_v4  ;;  %v16789_v63 = vmax.f32 %v16661_v27, 0.0  ;;  %v21292_v30 = vpop.f32.mrb[100].mxu1 }
 0x5fd   : > { %v16660_v9 = vadd.f32 %v29520_v7, %v21939_v11  ;;  %v16787_v15 = vmax.f32 %v16659_v28, 0.0  ;;  %v9028_v56 = vpop.f32.mrb[101].mxu1 }
 0x5fe   : > { %v16790_v33 = vmax.f32 %v16662_v3, 0.0  ;;  %v21293_v20 = vpop.f32.mrb[102].mxu1 }
 0x5ff   : > { %v16788_v8 = vmax.f32 %v16660_v9, 0.0  ;;  %v21812_v43 = vpop.f32.mrb[100].mxu0  ;;  %v9031_v1 = vpop.f32.mrb[103].mxu1 }
 0x600   : > { %v19948_v48 = vpack.c.bf16 %v16790_v33, %v16789_v63  ;;  %v21940_v5 = vadd.f32 %v21812_v43, %v21292_v30  ;;  %v16317_v31 = vpop.f32.mrb[101].mxu0 }
 0x601   : > { %v19943_v16 = vpack.c.bf16 %v16788_v8, %v16787_v15  ;;  %v21941_v34 = vadd.f32 %v16317_v31, %v9028_v56  ;;  %v21813_v2 = vpop.f32.mrb[102].mxu0 }
 0x602   : > { %20068 = vst [vmem:[%s29270_s6 + $0x188] sm:$0xff] %v19948_v48   ;;  %v16665_v50 = vadd.f32 %v29520_v7, %v21940_v5  ;;  %v21942_v14 = vadd.f32 %v21813_v2, %v21293_v20  ;;  %v16320_v32 = vpop.f32.mrb[103].mxu0 }
 0x603   : > { %20067 = vst [vmem:[%s29270_s6 + $0x180] sm:$0xff] %v19943_v16   ;;  %v16663_v35 = vadd.f32 %v29520_v7, %v21941_v34  ;;  %v21943_v10 = vadd.f32 %v16320_v32, %v9031_v1 }
 0x604   : > { %v16666_v55 = vadd.f32 %v29520_v7, %v21942_v14  ;;  %v16793_v24 = vmax.f32 %v16665_v50, 0.0  ;;  %v21296_v45 = vpop.f32.mrb[104].mxu1 }
 0x605   : > { %v16664_v19 = vadd.f32 %v29520_v7, %v21943_v10  ;;  %v16791_v6 = vmax.f32 %v16663_v35, 0.0  ;;  %v9044_v26 = vpop.f32.mrb[105].mxu1 }
 0x606   : > { %v16794_v47 = vmax.f32 %v16666_v55, 0.0  ;;  %v21297_v44 = vpop.f32.mrb[106].mxu1 }
 0x607   : > { %v16792_v23 = vmax.f32 %v16664_v19, 0.0  ;;  %v21816_v25 = vpop.f32.mrb[104].mxu0  ;;  %v9047_v41 = vpop.f32.mrb[107].mxu1 }
 0x608   : > { %v19958_v51 = vpack.c.bf16 %v16794_v47, %v16793_v24  ;;  %v21944_v12 = vadd.f32 %v21816_v25, %v21296_v45  ;;  %v16333_v46 = vpop.f32.mrb[105].mxu0 }
 0x609   : > { %v19953_v37 = vpack.c.bf16 %v16792_v23, %v16791_v6  ;;  %v21945_v49 = vadd.f32 %v16333_v46, %v9044_v26  ;;  %v21817_v42 = vpop.f32.mrb[106].mxu0 }
 0x60a   : > { %20070 = vst [vmem:[%s29270_s6 + $0x198] sm:$0xff] %v19958_v51   ;;  %v16669_v57 = vadd.f32 %v29520_v7, %v21944_v12  ;;  %v21946_v54 = vadd.f32 %v21817_v42, %v21297_v44  ;;  %v16336_v38 = vpop.f32.mrb[107].mxu0 }
 0x60b   : > { %20069 = vst [vmem:[%s29270_s6 + $0x190] sm:$0xff] %v19953_v37   ;;  %v16667_v18 = vadd.f32 %v29520_v7, %v21945_v49  ;;  %v21947_v17 = vadd.f32 %v16336_v38, %v9047_v41 }
 0x60c   : > { %v16670_v59 = vadd.f32 %v29520_v7, %v21946_v54  ;;  %v16797_v39 = vmax.f32 %v16669_v57, 0.0  ;;  %v21300_v58 = vpop.f32.mrb[108].mxu1 }
 0x60d   : > { %v16668_v62 = vadd.f32 %v29520_v7, %v21947_v17  ;;  %v16795_v36 = vmax.f32 %v16667_v18, 0.0  ;;  %v9060_v60 = vpop.f32.mrb[109].mxu1 }
 0x60e   : > { %v16798_v61 = vmax.f32 %v16670_v59, 0.0  ;;  %v21301_v4 = vpop.f32.mrb[110].mxu1 }
 0x60f   : > { %v16796_v21 = vmax.f32 %v16668_v62, 0.0  ;;  %v9063_v11 = vpop.f32.mrb[111].mxu1 }
 0x610   : > { %v21820_v40 = vpop.f32.mrb[108].mxu0  ;;  %v19968_v22 = vpack.c.bf16 %v16798_v61, %v16797_v39 }
 0x611   : > { %v21948_v13 = vadd.f32 %v21820_v40, %v21300_v58  ;;  %v16349_v29 = vpop.f32.mrb[109].mxu0  ;;  %v19963_v53 = vpack.c.bf16 %v16796_v21, %v16795_v36 }
 0x612   : > { %v21949_v27 = vadd.f32 %v16349_v29, %v9060_v60  ;;  %v21821_v52 = vpop.f32.mrb[110].mxu0  ;;  %20072 = vst [vmem:[%s29270_s6 + $0x1a8] sm:$0xff] %v19968_v22  }
 0x613   : > { %v16673_v0 = vadd.f32 %v29520_v7, %v21948_v13  ;;  %v21950_v28 = vadd.f32 %v21821_v52, %v21301_v4  ;;  %v16352_v3 = vpop.f32.mrb[111].mxu0  ;;  %20071 = vst [vmem:[%s29270_s6 + $0x1a0] sm:$0xff] %v19963_v53  }
 0x614   : > { %v16671_v9 = vadd.f32 %v29520_v7, %v21949_v27  ;;  %v21951_v63 = vadd.f32 %v16352_v3, %v9063_v11  ;;  %v21304_v5 = vpop.f32.mrb[112].mxu1 }
 0x615   : > { %v16674_v33 = vadd.f32 %v29520_v7, %v21950_v28  ;;  %v16801_v8 = vmax.f32 %v16673_v0, 0.0  ;;  %v9076_v34 = vpop.f32.mrb[113].mxu1 }
 0x616   : > { %v16672_v15 = vadd.f32 %v29520_v7, %v21951_v63  ;;  %v16799_v43 = vmax.f32 %v16671_v9, 0.0  ;;  %v21305_v14 = vpop.f32.mrb[114].mxu1 }
 0x617   : > { %v16802_v30 = vmax.f32 %v16674_v33, 0.0  ;;  %v9079_v10 = vpop.f32.mrb[115].mxu1 }
 0x618   : > { %v16800_v48 = vmax.f32 %v16672_v15, 0.0  ;;  %v21824_v56 = vpop.f32.mrb[112].mxu0 }
 0x619   : > { %v19978_v31 = vpack.c.bf16 %v16802_v30, %v16801_v8  ;;  %v21952_v16 = vadd.f32 %v21824_v56, %v21304_v5  ;;  %v16365_v20 = vpop.f32.mrb[113].mxu0 }
 0x61a   : > { %v19973_v2 = vpack.c.bf16 %v16800_v48, %v16799_v43  ;;  %v21953_v50 = vadd.f32 %v16365_v20, %v9076_v34  ;;  %v21825_v1 = vpop.f32.mrb[114].mxu0 }
 0x61b   : > { %20074 = vst [vmem:[%s29270_s6 + $0x1b8] sm:$0xff] %v19978_v31   ;;  %v16677_v32 = vadd.f32 %v29520_v7, %v21952_v16  ;;  %v21954_v35 = vadd.f32 %v21825_v1, %v21305_v14  ;;  %v16368_v55 = vpop.f32.mrb[115].mxu0 }
 0x61c   : > { %20073 = vst [vmem:[%s29270_s6 + $0x1b0] sm:$0xff] %v19973_v2   ;;  %v16675_v19 = vadd.f32 %v29520_v7, %v21953_v50  ;;  %v21955_v24 = vadd.f32 %v16368_v55, %v9079_v10  ;;  %v21308_v12 = vpop.f32.mrb[116].mxu1 }
 0x61d   : > { %v16678_v47 = vadd.f32 %v29520_v7, %v21954_v35  ;;  %v16805_v23 = vmax.f32 %v16677_v32, 0.0  ;;  %v9092_v49 = vpop.f32.mrb[117].mxu1 }
 0x61e   : > { %v16676_v6 = vadd.f32 %v29520_v7, %v21955_v24  ;;  %v16803_v25 = vmax.f32 %v16675_v19, 0.0  ;;  %v21309_v54 = vpop.f32.mrb[118].mxu1 }
 0x61f   : > { %v16806_v45 = vmax.f32 %v16678_v47, 0.0  ;;  %v9095_v17 = vpop.f32.mrb[119].mxu1 }
 0x620   : > { %v16804_v51 = vmax.f32 %v16676_v6, 0.0  ;;  %v21828_v26 = vpop.f32.mrb[116].mxu0 }
 0x621   : > { %v19988_v46 = vpack.c.bf16 %v16806_v45, %v16805_v23  ;;  %v21956_v37 = vadd.f32 %v21828_v26, %v21308_v12  ;;  %v16381_v44 = vpop.f32.mrb[117].mxu0 }
 0x622   : > { %v19983_v42 = vpack.c.bf16 %v16804_v51, %v16803_v25  ;;  %v21957_v57 = vadd.f32 %v16381_v44, %v9092_v49  ;;  %v21829_v41 = vpop.f32.mrb[118].mxu0 }
 0x623   : > { %20076 = vst [vmem:[%s29270_s6 + $0x1c8] sm:$0xff] %v19988_v46   ;;  %v16681_v38 = vadd.f32 %v29520_v7, %v21956_v37  ;;  %v21958_v18 = vadd.f32 %v21829_v41, %v21309_v54  ;;  %v16384_v59 = vpop.f32.mrb[119].mxu0 }
 0x624   : > { %20075 = vst [vmem:[%s29270_s6 + $0x1c0] sm:$0xff] %v19983_v42   ;;  %v16679_v62 = vadd.f32 %v29520_v7, %v21957_v57  ;;  %v21959_v39 = vadd.f32 %v16384_v59, %v9095_v17  ;;  %v21312_v13 = vpop.f32.mrb[120].mxu1 }
 0x625   : > { %v16682_v61 = vadd.f32 %v29520_v7, %v21958_v18  ;;  %v16809_v21 = vmax.f32 %v16681_v38, 0.0  ;;  %v9108_v27 = vpop.f32.mrb[121].mxu1 }
 0x626   : > { %v16680_v36 = vadd.f32 %v29520_v7, %v21959_v39  ;;  %v16807_v40 = vmax.f32 %v16679_v62, 0.0  ;;  %v21313_v28 = vpop.f32.mrb[122].mxu1 }
 0x627   : > { %v16810_v58 = vmax.f32 %v16682_v61, 0.0  ;;  %v9111_v63 = vpop.f32.mrb[123].mxu1 }
 0x628   : > { %v16808_v22 = vmax.f32 %v16680_v36, 0.0  ;;  %v21832_v60 = vpop.f32.mrb[120].mxu0 }
 0x629   : > { %v19998_v29 = vpack.c.bf16 %v16810_v58, %v16809_v21  ;;  %v21960_v53 = vadd.f32 %v21832_v60, %v21312_v13  ;;  %v16397_v4 = vpop.f32.mrb[121].mxu0 }
 0x62a   : > { %v19993_v52 = vpack.c.bf16 %v16808_v22, %v16807_v40  ;;  %v21961_v0 = vadd.f32 %v16397_v4, %v9108_v27  ;;  %v21833_v11 = vpop.f32.mrb[122].mxu0 }
 0x62b   : > { %20078 = vst [vmem:[%s29270_s6 + $0x1d8] sm:$0xff] %v19998_v29   ;;  %v16685_v3 = vadd.f32 %v29520_v7, %v21960_v53  ;;  %v21962_v9 = vadd.f32 %v21833_v11, %v21313_v28  ;;  %v16400_v33 = vpop.f32.mrb[123].mxu0 }
 0x62c   : > { %20077 = vst [vmem:[%s29270_s6 + $0x1d0] sm:$0xff] %v19993_v52   ;;  %v16683_v15 = vadd.f32 %v29520_v7, %v21961_v0  ;;  %v21963_v8 = vadd.f32 %v16400_v33, %v9111_v63  ;;  %v21316_v16 = vpop.f32.mrb[124].mxu1 }
 0x62d   : > { %v16686_v30 = vadd.f32 %v29520_v7, %v21962_v9  ;;  %v16813_v48 = vmax.f32 %v16685_v3, 0.0  ;;  %v9124_v50 = vpop.f32.mrb[125].mxu1 }
 0x62e   : > { %v16684_v43 = vadd.f32 %v29520_v7, %v21963_v8  ;;  %v16811_v56 = vmax.f32 %v16683_v15, 0.0  ;;  %v21317_v35 = vpop.f32.mrb[126].mxu1 }
 0x62f   : > { %v16814_v5 = vmax.f32 %v16686_v30, 0.0  ;;  %v9127_v24 = vpop.f32.mrb[127].mxu1 }
 0x630   : > { %v16812_v31 = vmax.f32 %v16684_v43, 0.0  ;;  %v21836_v34 = vpop.f32.mrb[124].mxu0 }
 0x631   : > { %v20008_v20 = vpack.c.bf16 %v16814_v5, %v16813_v48  ;;  %v21964_v2 = vadd.f32 %v21836_v34, %v21316_v16  ;;  %v16413_v14 = vpop.f32.mrb[125].mxu0 }
 0x632   : > { %v20003_v1 = vpack.c.bf16 %v16812_v31, %v16811_v56  ;;  %v21965_v32 = vadd.f32 %v16413_v14, %v9124_v50  ;;  %v21837_v10 = vpop.f32.mrb[126].mxu0 }
 0x633   : > { %20080 = vst [vmem:[%s29270_s6 + $0x1e8] sm:$0xff] %v20008_v20   ;;  %v16689_v55 = vadd.f32 %v29520_v7, %v21964_v2  ;;  %v21966_v19 = vadd.f32 %v21837_v10, %v21317_v35  ;;  %v16416_v47 = vpop.f32.mrb[127].mxu0 }
 0x634   : > { %20079 = vst [vmem:[%s29270_s6 + $0x1e0] sm:$0xff] %v20003_v1   ;;  %v16687_v6 = vadd.f32 %v29520_v7, %v21965_v32  ;;  %v21967_v23 = vadd.f32 %v16416_v47, %v9127_v24 }
 0x635   : > { %v16690_v45 = vadd.f32 %v29520_v7, %v21966_v19  ;;  %v16817_v51 = vmax.f32 %v16689_v55, 0.0 }
 0x636   : > { %v16688_v25 = vadd.f32 %v29520_v7, %v21967_v23  ;;  %v16815_v26 = vmax.f32 %v16687_v6, 0.0 }
 0x637   : > { %v16818_v12 = vmax.f32 %v16690_v45, 0.0 }
 0x638   : > { %v16816_v46 = vmax.f32 %v16688_v25, 0.0 }
 0x639   : > { %v20018_v37 = vpack.c.bf16 %v16818_v12, %v16817_v51 }
 0x63a   : > { %v20013_v49 = vpack.c.bf16 %v16816_v46, %v16815_v26 }
 0x63b   : > { %20082 = vst [vmem:[%s29270_s6 + $0x1f8] sm:$0xff] %v20018_v37  }
 0x63c   : > { %20081 = vst [vmem:[%s29270_s6 + $0x1f0] sm:$0xff] %v20013_v49  }
 0x63d   : > { %23566 = shalt.err (!%p23563_p3)
}
 0x63e   : > { %s23567_s27 = scalar_lea.hbm %s29598_s19, 8192  ;;  %s23571_s30 = scalar_lea.hbm %s29650_s3, 16384 }
 0x63f   : > { %p23568_p4 = scmp.ne.s32.totalorder %s29598_s19, %s23567_s27  ;;  %p23572_p9 = scmp.lt.u32.totalorder %s29598_s19, %s29650_s3 }
 0x640   : > { %p23573_p10 = scmp.lt.u32.totalorder %s23571_s30, %s23567_s27  ;;  %p23575_p12 = scmp.lt.u32.totalorder %s23567_s27, %s29598_s19 }
 0x641   : > { %p23569_p7 = pnand %p23568_p4, %p23679_p5 }
 0x642   : > { %p23574_p11 = por %p23573_p10, %p23572_p9 }
 0x643   : > { %p23570_p8 = pneg %p23569_p7 }
 0x644   : > { %p23576_p13 = por %p23575_p12, %p23574_p11 }
 0x646   : > { %p23577_p0 = pnand %p23576_p13, %p23570_p8 }
 0x648   : > { %23580 = shalt.err (!%p23577_p0)
}
 0x649   : > { %s23619_s6 = smov 64   ;;  %s23620_s7 = smov 4  }
 0x64a   : > { %22865 = dma.vmem_to_hbm [thread:$0]  (%p23679_p5), %s29600_s10, 8192, %s29598_s19, %s29606_s16, %s23619_s6, %s23619_s6, %s23620_s7  }
 0x64b PF: > { %p22871_p1 = scmp.ge.s32.totalorder %s23615_s15, 2  ;;  %s17488_s8 = sand.u32 1, %s23603_s12  }
 0x64c   : > { %s17489_s9 = scalar_lea.sflag [#allocation3], %s17488_s8 }
 0x64d   : > { %p22868_p2 = pnand %p22871_p1, %p23683_p6 }
 0x64f   : > { %23598 = dma.done.wait (!%p22868_p2), %s17489_s9, 8192  }
 0x650   : > { %23600 = vsyncadd (!%p22868_p2), %s17489_s9, 4294959104  ;;  %p13_p3 = scmp.ge.s32.totalorder %s23666_s18, 4   ;;  %s30029_s12 = smov %s23607_s13 }
 0x651   : > { %s30030_s13 = smov %s23611_s14  ;;  %s30031_s14 = smov %s23677_s21 }
 0x652   : > { %s30032_s15 = smov %s23666_s18  ;;  %15 = sbr.rel (!%p13_p3) target bundleno = 3 (0x3), region = 77 }
 0x659   :  { %17494 = vsyncpa [#allocation3], 1 }
 0x65a   :  { %17496 = vsyncpa [#allocation3 + $0x1], 1 }

</bundles_post_ra>
